<compile_context>
chip_gen: v7x
topology: tpu7x:2x2x1
jax: 0.10.0
libtpu: 0.0.40
codegen_flags: <defaults>
</compile_context>

<pallas_src>
import functools

import jax
import jax.numpy as jnp
from jax.experimental import pallas as pl
from jax.experimental.pallas import tpu as pltpu

KSIZE = 5
PAD = 2
EPS = 1e-5


def resblock_kernel(x_ref, m_ref, w1_ref, g1_ref, be1_ref, w2_ref, g2_ref,
                    be2_ref, o_ref, *, img_w):
    """Fused ResBlock forward, channels-major lane-dense layout, VPU-only conv.

    x_ref       : (C, N*H*W)        input activations
    m_ref       : (25, N*H*W)       precomputed zero-padding masks (f32), one per tap
    w*_ref      : (C_in, 25*C_out)  conv weights as per-(tap, cout) columns
    g*/be*_ref  : (C, 1)            BN gamma / beta (per output channel)
    o_ref       : (C, N*H*W)        output (lane-dense 512-lane minor dim)
    """
    c_in, nhw = x_ref.shape
    c_out = o_ref.shape[0]
    inv_nhw = 1.0 / nhw

    def conv_bn_relu(src, w_cols_ref, gamma, beta):
        # --- 5x5 "same" conv as 25 tap-wise VPU multiply-accumulates --------
        # acc[co] accumulates w[co, tap, ci] * tap_value[ci, :] with the weight
        # column lane-broadcast; the C_in reduction happens once at the end
        # (4 cross-sublane reductions per conv instead of per-tap broadcasts).
        wv = w_cols_ref[...]                                   # (C_in, 25*C_out)
        accs = [jnp.zeros((c_in, nhw), jnp.float32) for _ in range(c_out)]
        for kh in range(KSIZE):
            for kw in range(KSIZE):
                t = kh * KSIZE + kw
                dh, dw = kh - PAD, kw - PAD
                off = dh * img_w + dw
                rolled = src if off == 0 else pltpu.roll(
                    src, shift=(-off) % nhw, axis=1)
                # Precomputed mask realizes the zero padding (and kills the
                # roll wrap-around); shared across both convolutions.
                tap = rolled * m_ref[t:t + 1, :]               # (C_in, NHW)
                for co in range(c_out):
                    col = t * c_out + co
                    accs[co] = accs[co] + wv[:, col:col + 1] * tap
        z = jnp.concatenate(
            [jnp.sum(a, axis=0, keepdims=True) for a in accs], axis=0)  # (C_out, NHW)

        # --- training-mode BatchNorm (one-pass stats) + ReLU -----------------
        # Conv bias is omitted: it cancels exactly in (z - mean).
        s1 = jnp.sum(z, axis=1, keepdims=True)
        s2 = jnp.sum(z * z, axis=1, keepdims=True)
        mean = s1 * inv_nhw
        var = jnp.maximum(s2 * inv_nhw - mean * mean, 0.0)     # biased variance
        scale = gamma * jax.lax.rsqrt(var + EPS)
        shift = beta - mean * scale
        return jnp.maximum(z * scale + shift, 0.0)

    x = x_ref[...]
    y1 = conv_bn_relu(x, w1_ref, g1_ref[...], be1_ref[...])
    y2 = conv_bn_relu(y1, w2_ref, g2_ref[...], be2_ref[...])
    # Residual add (requires Cin == Cout, as in the PyTorch module usage).
    o_ref[...] = y2 + x


@jax.jit
def resblock_forward(x_nchw, params):
    x_nchw = x_nchw.astype(jnp.float32)
    n, c, h, w = x_nchw.shape
    nhw = n * h * w
    hw = h * w
    assert params["w1"].shape[2] == c and params["w1"].shape[3] == c, \
        "residual add requires in_channel == out_channel"

    # Activations -> (C, N*H*W): channels in sublanes, flat spatial in lanes.
    x_flat = jnp.transpose(x_nchw, (1, 0, 2, 3)).reshape(c, nhw)

    # 25 zero-padding masks, built once from static shapes (constant-folded by
    # XLA under jit) and reused by both convolutions inside the kernel.
    pos = jnp.arange(nhw, dtype=jnp.int32)
    row = (pos % hw) // w
    col = pos % w
    masks = []
    for kh in range(KSIZE):
        for kw in range(KSIZE):
            dh, dw = kh - PAD, kw - PAD
            masks.append((row + dh >= 0) & (row + dh < h) &
                         (col + dw >= 0) & (col + dw < w))
    mask_arr = jnp.stack(masks, axis=0).astype(jnp.float32)     # (25, NHW)

    def to_cols(w_hwio):
        # HWIO (5,5,Cin,Cout) -> (Cin, 25*Cout); column index = t*Cout + cout
        kh_, kw_, ci, co = w_hwio.shape
        return jnp.transpose(w_hwio.reshape(kh_ * kw_, ci, co),
                             (1, 0, 2)).reshape(ci, kh_ * kw_ * co)

    w1c = to_cols(params["w1"])
    w2c = to_cols(params["w2"])
    g1 = params["g1"].reshape(c, 1)
    be1 = params["be1"].reshape(c, 1)
    g2 = params["g2"].reshape(c, 1)
    be2 = params["be2"].reshape(c, 1)
    # NOTE: conv biases b1/b2 are intentionally NOT passed to the kernel; they
    # cancel exactly in training-mode BatchNorm.

    kernel = functools.partial(resblock_kernel, img_w=w)
    out_flat = pl.pallas_call(
        kernel,
        out_shape=jax.ShapeDtypeStruct((c, nhw), jnp.float32),
        in_specs=[pl.BlockSpec(memory_space=pltpu.MemorySpace.VMEM)] * 8,
        out_specs=pl.BlockSpec(memory_space=pltpu.MemorySpace.VMEM),
        # Tiny footprint (<100 KiB); the limit only matters once the NHW-tiled
        # version exists, and then it should be chosen per generation.
        compiler_params=pltpu.CompilerParams(vmem_limit_bytes=32 * 1024 * 1024),
    )(x_flat, mask_arr, w1c, g1, be1, w2c, g2, be2)

    # (C, N*H*W) -> NCHW
    return jnp.transpose(out_flat.reshape(c, n, h, w), (1, 0, 2, 3))


def ref_forward(x_nchw, params):
    """Pure-JAX reference mirroring the PyTorch forward in training mode
    (includes the conv biases; highest-precision convolutions)."""
    x = jnp.transpose(x_nchw, (0, 2, 3, 1)).astype(jnp.float32)
    dn = jax.lax.conv_dimension_numbers(x.shape, params["w1"].shape,
                                        ("NHWC", "HWIO", "NHWC"))

    def conv(z, w, b):
        y = jax.lax.conv_general_dilated(
            z, w, window_strides=(1, 1), padding=((PAD, PAD), (PAD, PAD)),
            dimension_numbers=dn, precision=jax.lax.Precision.HIGHEST)
        return y + b.reshape(1, 1, 1, -1)

    def bn_relu(z, g, be):
        mean = jnp.mean(z, axis=(0, 1, 2), keepdims=True)
        var = jnp.mean((z - mean) ** 2, axis=(0, 1, 2), keepdims=True)
        zhat = (z - mean) * jax.lax.rsqrt(var + EPS)
        return jnp.maximum(zhat * g.reshape(1, 1, 1, -1) + be.reshape(1, 1, 1, -1), 0.0)

    y1 = bn_relu(conv(x, params["w1"], params["b1"]), params["g1"], params["be1"])
    y2 = bn_relu(conv(y1, params["w2"], params["b2"]), params["g2"], params["be2"])
    return jnp.transpose(y2 + x, (0, 3, 1, 2))


def init_params(key, c_in, c_out):
    ks = jax.random.split(key, 8)
    f32 = jnp.float32
    return {
        "w1": 0.1 * jax.random.normal(ks[0], (KSIZE, KSIZE, c_in, c_out), f32),
        "b1": 0.1 * jax.random.normal(ks[1], (1, c_out), f32),
        "g1": 1.0 + 0.1 * jax.random.normal(ks[2], (1, c_out), f32),
        "be1": 0.1 * jax.random.normal(ks[3], (1, c_out), f32),
        "w2": 0.1 * jax.random.normal(ks[4], (KSIZE, KSIZE, c_out, c_out), f32),
        "b2": 0.1 * jax.random.normal(ks[5], (1, c_out), f32),
        "g2": 1.0 + 0.1 * jax.random.normal(ks[6], (1, c_out), f32),
        "be2": 0.1 * jax.random.normal(ks[7], (1, c_out), f32),
    }


if __name__ == "__main__":
    key = jax.random.PRNGKey(0)
    k_x, k_p = jax.random.split(key)

    # residual add requires in_channel == out_channel
    N, C, H, W = 2, 4, 16, 16
    x = jax.random.normal(k_x, (N, C, H, W), jnp.float32)  # PyTorch-style NCHW
    params = init_params(k_p, C, C)

    out = jax.block_until_ready(resblock_forward(x, params))
    ref = ref_forward(x, params)

    assert out.shape == (N, C, H, W)
    # VPU f32 conv path -> near-exact vs. the HIGHEST-precision reference
    # (residual difference is only summation order / one-pass BN variance).
    err = jnp.max(jnp.abs(out - ref))
    assert jnp.allclose(out, ref, rtol=5e-4, atol=5e-4), f"max abs err {err}"

    print("KERNEL_OK")
</pallas_src>

<mosaic_0001>
module attributes {stable_mosaic.version = 11 : i64} {
  func.func @resblock_kernel(%arg0: memref<4x512xf32, #tpu.memory_space<vmem>>, %arg1: memref<25x512xf32, #tpu.memory_space<vmem>>, %arg2: memref<4x100xf32, #tpu.memory_space<vmem>>, %arg3: memref<4x1xf32, #tpu.memory_space<vmem>>, %arg4: memref<4x1xf32, #tpu.memory_space<vmem>>, %arg5: memref<4x100xf32, #tpu.memory_space<vmem>>, %arg6: memref<4x1xf32, #tpu.memory_space<vmem>>, %arg7: memref<4x1xf32, #tpu.memory_space<vmem>>, %arg8: memref<4x512xf32, #tpu.memory_space<vmem>>) attributes {dimension_semantics = [], scalar_prefetch = 0 : i64, scratch_operands = 0 : i64, tpu.core_type = #tpu.core_type<tc>} {
    %c0 = arith.constant 0 : index
    %c0_0 = arith.constant 0 : index
    %0 = vector.load %arg0[%c0, %c0_0] : memref<4x512xf32, #tpu.memory_space<vmem>>, vector<4x512xf32>
    %c0_1 = arith.constant 0 : index
    %c0_2 = arith.constant 0 : index
    %1 = vector.load %arg3[%c0_1, %c0_2] : memref<4x1xf32, #tpu.memory_space<vmem>>, vector<4x1xf32>
    %c0_3 = arith.constant 0 : index
    %c0_4 = arith.constant 0 : index
    %2 = vector.load %arg4[%c0_3, %c0_4] : memref<4x1xf32, #tpu.memory_space<vmem>>, vector<4x1xf32>
    %c0_5 = arith.constant 0 : index
    %c0_6 = arith.constant 0 : index
    %3 = vector.load %arg2[%c0_5, %c0_6] : memref<4x100xf32, #tpu.memory_space<vmem>>, vector<4x100xf32>
    %cst = arith.constant 0.000000e+00 : f32
    %4 = vector.broadcast %cst : f32 to vector<4x512xf32>
    %cst_7 = arith.constant 0.000000e+00 : f32
    %5 = vector.broadcast %cst_7 : f32 to vector<4x512xf32>
    %cst_8 = arith.constant 0.000000e+00 : f32
    %6 = vector.broadcast %cst_8 : f32 to vector<4x512xf32>
    %cst_9 = arith.constant 0.000000e+00 : f32
    %7 = vector.broadcast %cst_9 : f32 to vector<4x512xf32>
    %c34_i32 = arith.constant 34 : i32
    %8 = tpu.dynamic_rotate %0 by %c34_i32 dim 1 : vector<4x512xf32>, i32 -> vector<4x512xf32>
    %c0_10 = arith.constant 0 : index
    %c0_11 = arith.constant 0 : index
    %9 = vector.load %arg1[%c0_10, %c0_11] : memref<25x512xf32, #tpu.memory_space<vmem>>, vector<1x512xf32>
    %10 = vector.broadcast %9 : vector<1x512xf32> to vector<4x512xf32>
    %11 = arith.mulf %8, %10 : vector<4x512xf32>
    %12 = vector.extract_strided_slice %3 {offsets = [0, 0], sizes = [4, 1], strides = [1, 1]} : vector<4x100xf32> to vector<4x1xf32>
    %13 = vector.broadcast %12 : vector<4x1xf32> to vector<4x512xf32>
    %14 = arith.mulf %13, %11 : vector<4x512xf32>
    %15 = arith.addf %4, %14 : vector<4x512xf32>
    %16 = vector.extract_strided_slice %3 {offsets = [0, 1], sizes = [4, 1], strides = [1, 1]} : vector<4x100xf32> to vector<4x1xf32>
    %17 = vector.broadcast %16 : vector<4x1xf32> to vector<4x512xf32>
    %18 = arith.mulf %17, %11 : vector<4x512xf32>
    %19 = arith.addf %5, %18 : vector<4x512xf32>
    %20 = vector.extract_strided_slice %3 {offsets = [0, 2], sizes = [4, 1], strides = [1, 1]} : vector<4x100xf32> to vector<4x1xf32>
    %21 = vector.broadcast %20 : vector<4x1xf32> to vector<4x512xf32>
    %22 = arith.mulf %21, %11 : vector<4x512xf32>
    %23 = arith.addf %6, %22 : vector<4x512xf32>
    %24 = vector.extract_strided_slice %3 {offsets = [0, 3], sizes = [4, 1], strides = [1, 1]} : vector<4x100xf32> to vector<4x1xf32>
    %25 = vector.broadcast %24 : vector<4x1xf32> to vector<4x512xf32>
    %26 = arith.mulf %25, %11 : vector<4x512xf32>
    %27 = arith.addf %7, %26 : vector<4x512xf32>
    %c33_i32 = arith.constant 33 : i32
    %28 = tpu.dynamic_rotate %0 by %c33_i32 dim 1 : vector<4x512xf32>, i32 -> vector<4x512xf32>
    %c1 = arith.constant 1 : index
    %c0_12 = arith.constant 0 : index
    %29 = vector.load %arg1[%c1, %c0_12] : memref<25x512xf32, #tpu.memory_space<vmem>>, vector<1x512xf32>
    %30 = vector.broadcast %29 : vector<1x512xf32> to vector<4x512xf32>
    %31 = arith.mulf %28, %30 : vector<4x512xf32>
    %32 = vector.extract_strided_slice %3 {offsets = [0, 4], sizes = [4, 1], strides = [1, 1]} : vector<4x100xf32> to vector<4x1xf32>
    %33 = vector.broadcast %32 : vector<4x1xf32> to vector<4x512xf32>
    %34 = arith.mulf %33, %31 : vector<4x512xf32>
    %35 = arith.addf %15, %34 : vector<4x512xf32>
    %36 = vector.extract_strided_slice %3 {offsets = [0, 5], sizes = [4, 1], strides = [1, 1]} : vector<4x100xf32> to vector<4x1xf32>
    %37 = vector.broadcast %36 : vector<4x1xf32> to vector<4x512xf32>
    %38 = arith.mulf %37, %31 : vector<4x512xf32>
    %39 = arith.addf %19, %38 : vector<4x512xf32>
    %40 = vector.extract_strided_slice %3 {offsets = [0, 6], sizes = [4, 1], strides = [1, 1]} : vector<4x100xf32> to vector<4x1xf32>
    %41 = vector.broadcast %40 : vector<4x1xf32> to vector<4x512xf32>
    %42 = arith.mulf %41, %31 : vector<4x512xf32>
    %43 = arith.addf %23, %42 : vector<4x512xf32>
    %44 = vector.extract_strided_slice %3 {offsets = [0, 7], sizes = [4, 1], strides = [1, 1]} : vector<4x100xf32> to vector<4x1xf32>
    %45 = vector.broadcast %44 : vector<4x1xf32> to vector<4x512xf32>
    %46 = arith.mulf %45, %31 : vector<4x512xf32>
    %47 = arith.addf %27, %46 : vector<4x512xf32>
    %c32_i32 = arith.constant 32 : i32
    %48 = tpu.dynamic_rotate %0 by %c32_i32 dim 1 : vector<4x512xf32>, i32 -> vector<4x512xf32>
    %c2 = arith.constant 2 : index
    %c0_13 = arith.constant 0 : index
    %49 = vector.load %arg1[%c2, %c0_13] : memref<25x512xf32, #tpu.memory_space<vmem>>, vector<1x512xf32>
    %50 = vector.broadcast %49 : vector<1x512xf32> to vector<4x512xf32>
    %51 = arith.mulf %48, %50 : vector<4x512xf32>
    %52 = vector.extract_strided_slice %3 {offsets = [0, 8], sizes = [4, 1], strides = [1, 1]} : vector<4x100xf32> to vector<4x1xf32>
    %53 = vector.broadcast %52 : vector<4x1xf32> to vector<4x512xf32>
    %54 = arith.mulf %53, %51 : vector<4x512xf32>
    %55 = arith.addf %35, %54 : vector<4x512xf32>
    %56 = vector.extract_strided_slice %3 {offsets = [0, 9], sizes = [4, 1], strides = [1, 1]} : vector<4x100xf32> to vector<4x1xf32>
    %57 = vector.broadcast %56 : vector<4x1xf32> to vector<4x512xf32>
    %58 = arith.mulf %57, %51 : vector<4x512xf32>
    %59 = arith.addf %39, %58 : vector<4x512xf32>
    %60 = vector.extract_strided_slice %3 {offsets = [0, 10], sizes = [4, 1], strides = [1, 1]} : vector<4x100xf32> to vector<4x1xf32>
    %61 = vector.broadcast %60 : vector<4x1xf32> to vector<4x512xf32>
    %62 = arith.mulf %61, %51 : vector<4x512xf32>
    %63 = arith.addf %43, %62 : vector<4x512xf32>
    %64 = vector.extract_strided_slice %3 {offsets = [0, 11], sizes = [4, 1], strides = [1, 1]} : vector<4x100xf32> to vector<4x1xf32>
    %65 = vector.broadcast %64 : vector<4x1xf32> to vector<4x512xf32>
    %66 = arith.mulf %65, %51 : vector<4x512xf32>
    %67 = arith.addf %47, %66 : vector<4x512xf32>
    %c31_i32 = arith.constant 31 : i32
    %68 = tpu.dynamic_rotate %0 by %c31_i32 dim 1 : vector<4x512xf32>, i32 -> vector<4x512xf32>
    %c3 = arith.constant 3 : index
    %c0_14 = arith.constant 0 : index
    %69 = vector.load %arg1[%c3, %c0_14] : memref<25x512xf32, #tpu.memory_space<vmem>>, vector<1x512xf32>
    %70 = vector.broadcast %69 : vector<1x512xf32> to vector<4x512xf32>
    %71 = arith.mulf %68, %70 : vector<4x512xf32>
    %72 = vector.extract_strided_slice %3 {offsets = [0, 12], sizes = [4, 1], strides = [1, 1]} : vector<4x100xf32> to vector<4x1xf32>
    %73 = vector.broadcast %72 : vector<4x1xf32> to vector<4x512xf32>
    %74 = arith.mulf %73, %71 : vector<4x512xf32>
    %75 = arith.addf %55, %74 : vector<4x512xf32>
    %76 = vector.extract_strided_slice %3 {offsets = [0, 13], sizes = [4, 1], strides = [1, 1]} : vector<4x100xf32> to vector<4x1xf32>
    %77 = vector.broadcast %76 : vector<4x1xf32> to vector<4x512xf32>
    %78 = arith.mulf %77, %71 : vector<4x512xf32>
    %79 = arith.addf %59, %78 : vector<4x512xf32>
    %80 = vector.extract_strided_slice %3 {offsets = [0, 14], sizes = [4, 1], strides = [1, 1]} : vector<4x100xf32> to vector<4x1xf32>
    %81 = vector.broadcast %80 : vector<4x1xf32> to vector<4x512xf32>
    %82 = arith.mulf %81, %71 : vector<4x512xf32>
    %83 = arith.addf %63, %82 : vector<4x512xf32>
    %84 = vector.extract_strided_slice %3 {offsets = [0, 15], sizes = [4, 1], strides = [1, 1]} : vector<4x100xf32> to vector<4x1xf32>
    %85 = vector.broadcast %84 : vector<4x1xf32> to vector<4x512xf32>
    %86 = arith.mulf %85, %71 : vector<4x512xf32>
    %87 = arith.addf %67, %86 : vector<4x512xf32>
    %c30_i32 = arith.constant 30 : i32
    %88 = tpu.dynamic_rotate %0 by %c30_i32 dim 1 : vector<4x512xf32>, i32 -> vector<4x512xf32>
    %c4 = arith.constant 4 : index
    %c0_15 = arith.constant 0 : index
    %89 = vector.load %arg1[%c4, %c0_15] : memref<25x512xf32, #tpu.memory_space<vmem>>, vector<1x512xf32>
    %90 = vector.broadcast %89 : vector<1x512xf32> to vector<4x512xf32>
    %91 = arith.mulf %88, %90 : vector<4x512xf32>
    %92 = vector.extract_strided_slice %3 {offsets = [0, 16], sizes = [4, 1], strides = [1, 1]} : vector<4x100xf32> to vector<4x1xf32>
    %93 = vector.broadcast %92 : vector<4x1xf32> to vector<4x512xf32>
    %94 = arith.mulf %93, %91 : vector<4x512xf32>
    %95 = arith.addf %75, %94 : vector<4x512xf32>
    %96 = vector.extract_strided_slice %3 {offsets = [0, 17], sizes = [4, 1], strides = [1, 1]} : vector<4x100xf32> to vector<4x1xf32>
    %97 = vector.broadcast %96 : vector<4x1xf32> to vector<4x512xf32>
    %98 = arith.mulf %97, %91 : vector<4x512xf32>
    %99 = arith.addf %79, %98 : vector<4x512xf32>
    %100 = vector.extract_strided_slice %3 {offsets = [0, 18], sizes = [4, 1], strides = [1, 1]} : vector<4x100xf32> to vector<4x1xf32>
    %101 = vector.broadcast %100 : vector<4x1xf32> to vector<4x512xf32>
    %102 = arith.mulf %101, %91 : vector<4x512xf32>
    %103 = arith.addf %83, %102 : vector<4x512xf32>
    %104 = vector.extract_strided_slice %3 {offsets = [0, 19], sizes = [4, 1], strides = [1, 1]} : vector<4x100xf32> to vector<4x1xf32>
    %105 = vector.broadcast %104 : vector<4x1xf32> to vector<4x512xf32>
    %106 = arith.mulf %105, %91 : vector<4x512xf32>
    %107 = arith.addf %87, %106 : vector<4x512xf32>
    %c18_i32 = arith.constant 18 : i32
    %108 = tpu.dynamic_rotate %0 by %c18_i32 dim 1 : vector<4x512xf32>, i32 -> vector<4x512xf32>
    %c5 = arith.constant 5 : index
    %c0_16 = arith.constant 0 : index
    %109 = vector.load %arg1[%c5, %c0_16] : memref<25x512xf32, #tpu.memory_space<vmem>>, vector<1x512xf32>
    %110 = vector.broadcast %109 : vector<1x512xf32> to vector<4x512xf32>
    %111 = arith.mulf %108, %110 : vector<4x512xf32>
    %112 = vector.extract_strided_slice %3 {offsets = [0, 20], sizes = [4, 1], strides = [1, 1]} : vector<4x100xf32> to vector<4x1xf32>
    %113 = vector.broadcast %112 : vector<4x1xf32> to vector<4x512xf32>
    %114 = arith.mulf %113, %111 : vector<4x512xf32>
    %115 = arith.addf %95, %114 : vector<4x512xf32>
    %116 = vector.extract_strided_slice %3 {offsets = [0, 21], sizes = [4, 1], strides = [1, 1]} : vector<4x100xf32> to vector<4x1xf32>
    %117 = vector.broadcast %116 : vector<4x1xf32> to vector<4x512xf32>
    %118 = arith.mulf %117, %111 : vector<4x512xf32>
    %119 = arith.addf %99, %118 : vector<4x512xf32>
    %120 = vector.extract_strided_slice %3 {offsets = [0, 22], sizes = [4, 1], strides = [1, 1]} : vector<4x100xf32> to vector<4x1xf32>
    %121 = vector.broadcast %120 : vector<4x1xf32> to vector<4x512xf32>
    %122 = arith.mulf %121, %111 : vector<4x512xf32>
    %123 = arith.addf %103, %122 : vector<4x512xf32>
    %124 = vector.extract_strided_slice %3 {offsets = [0, 23], sizes = [4, 1], strides = [1, 1]} : vector<4x100xf32> to vector<4x1xf32>
    %125 = vector.broadcast %124 : vector<4x1xf32> to vector<4x512xf32>
    %126 = arith.mulf %125, %111 : vector<4x512xf32>
    %127 = arith.addf %107, %126 : vector<4x512xf32>
    %c17_i32 = arith.constant 17 : i32
    %128 = tpu.dynamic_rotate %0 by %c17_i32 dim 1 : vector<4x512xf32>, i32 -> vector<4x512xf32>
    %c6 = arith.constant 6 : index
    %c0_17 = arith.constant 0 : index
    %129 = vector.load %arg1[%c6, %c0_17] : memref<25x512xf32, #tpu.memory_space<vmem>>, vector<1x512xf32>
    %130 = vector.broadcast %129 : vector<1x512xf32> to vector<4x512xf32>
    %131 = arith.mulf %128, %130 : vector<4x512xf32>
    %132 = vector.extract_strided_slice %3 {offsets = [0, 24], sizes = [4, 1], strides = [1, 1]} : vector<4x100xf32> to vector<4x1xf32>
    %133 = vector.broadcast %132 : vector<4x1xf32> to vector<4x512xf32>
    %134 = arith.mulf %133, %131 : vector<4x512xf32>
    %135 = arith.addf %115, %134 : vector<4x512xf32>
    %136 = vector.extract_strided_slice %3 {offsets = [0, 25], sizes = [4, 1], strides = [1, 1]} : vector<4x100xf32> to vector<4x1xf32>
    %137 = vector.broadcast %136 : vector<4x1xf32> to vector<4x512xf32>
    %138 = arith.mulf %137, %131 : vector<4x512xf32>
    %139 = arith.addf %119, %138 : vector<4x512xf32>
    %140 = vector.extract_strided_slice %3 {offsets = [0, 26], sizes = [4, 1], strides = [1, 1]} : vector<4x100xf32> to vector<4x1xf32>
    %141 = vector.broadcast %140 : vector<4x1xf32> to vector<4x512xf32>
    %142 = arith.mulf %141, %131 : vector<4x512xf32>
    %143 = arith.addf %123, %142 : vector<4x512xf32>
    %144 = vector.extract_strided_slice %3 {offsets = [0, 27], sizes = [4, 1], strides = [1, 1]} : vector<4x100xf32> to vector<4x1xf32>
    %145 = vector.broadcast %144 : vector<4x1xf32> to vector<4x512xf32>
    %146 = arith.mulf %145, %131 : vector<4x512xf32>
    %147 = arith.addf %127, %146 : vector<4x512xf32>
    %c16_i32 = arith.constant 16 : i32
    %148 = tpu.dynamic_rotate %0 by %c16_i32 dim 1 : vector<4x512xf32>, i32 -> vector<4x512xf32>
    %c7 = arith.constant 7 : index
    %c0_18 = arith.constant 0 : index
    %149 = vector.load %arg1[%c7, %c0_18] : memref<25x512xf32, #tpu.memory_space<vmem>>, vector<1x512xf32>
    %150 = vector.broadcast %149 : vector<1x512xf32> to vector<4x512xf32>
    %151 = arith.mulf %148, %150 : vector<4x512xf32>
    %152 = vector.extract_strided_slice %3 {offsets = [0, 28], sizes = [4, 1], strides = [1, 1]} : vector<4x100xf32> to vector<4x1xf32>
    %153 = vector.broadcast %152 : vector<4x1xf32> to vector<4x512xf32>
    %154 = arith.mulf %153, %151 : vector<4x512xf32>
    %155 = arith.addf %135, %154 : vector<4x512xf32>
    %156 = vector.extract_strided_slice %3 {offsets = [0, 29], sizes = [4, 1], strides = [1, 1]} : vector<4x100xf32> to vector<4x1xf32>
    %157 = vector.broadcast %156 : vector<4x1xf32> to vector<4x512xf32>
    %158 = arith.mulf %157, %151 : vector<4x512xf32>
    %159 = arith.addf %139, %158 : vector<4x512xf32>
    %160 = vector.extract_strided_slice %3 {offsets = [0, 30], sizes = [4, 1], strides = [1, 1]} : vector<4x100xf32> to vector<4x1xf32>
    %161 = vector.broadcast %160 : vector<4x1xf32> to vector<4x512xf32>
    %162 = arith.mulf %161, %151 : vector<4x512xf32>
    %163 = arith.addf %143, %162 : vector<4x512xf32>
    %164 = vector.extract_strided_slice %3 {offsets = [0, 31], sizes = [4, 1], strides = [1, 1]} : vector<4x100xf32> to vector<4x1xf32>
    %165 = vector.broadcast %164 : vector<4x1xf32> to vector<4x512xf32>
    %166 = arith.mulf %165, %151 : vector<4x512xf32>
    %167 = arith.addf %147, %166 : vector<4x512xf32>
    %c15_i32 = arith.constant 15 : i32
    %168 = tpu.dynamic_rotate %0 by %c15_i32 dim 1 : vector<4x512xf32>, i32 -> vector<4x512xf32>
    %c8 = arith.constant 8 : index
    %c0_19 = arith.constant 0 : index
    %169 = vector.load %arg1[%c8, %c0_19] : memref<25x512xf32, #tpu.memory_space<vmem>>, vector<1x512xf32>
    %170 = vector.broadcast %169 : vector<1x512xf32> to vector<4x512xf32>
    %171 = arith.mulf %168, %170 : vector<4x512xf32>
    %172 = vector.extract_strided_slice %3 {offsets = [0, 32], sizes = [4, 1], strides = [1, 1]} : vector<4x100xf32> to vector<4x1xf32>
    %173 = vector.broadcast %172 : vector<4x1xf32> to vector<4x512xf32>
    %174 = arith.mulf %173, %171 : vector<4x512xf32>
    %175 = arith.addf %155, %174 : vector<4x512xf32>
    %176 = vector.extract_strided_slice %3 {offsets = [0, 33], sizes = [4, 1], strides = [1, 1]} : vector<4x100xf32> to vector<4x1xf32>
    %177 = vector.broadcast %176 : vector<4x1xf32> to vector<4x512xf32>
    %178 = arith.mulf %177, %171 : vector<4x512xf32>
    %179 = arith.addf %159, %178 : vector<4x512xf32>
    %180 = vector.extract_strided_slice %3 {offsets = [0, 34], sizes = [4, 1], strides = [1, 1]} : vector<4x100xf32> to vector<4x1xf32>
    %181 = vector.broadcast %180 : vector<4x1xf32> to vector<4x512xf32>
    %182 = arith.mulf %181, %171 : vector<4x512xf32>
    %183 = arith.addf %163, %182 : vector<4x512xf32>
    %184 = vector.extract_strided_slice %3 {offsets = [0, 35], sizes = [4, 1], strides = [1, 1]} : vector<4x100xf32> to vector<4x1xf32>
    %185 = vector.broadcast %184 : vector<4x1xf32> to vector<4x512xf32>
    %186 = arith.mulf %185, %171 : vector<4x512xf32>
    %187 = arith.addf %167, %186 : vector<4x512xf32>
    %c14_i32 = arith.constant 14 : i32
    %188 = tpu.dynamic_rotate %0 by %c14_i32 dim 1 : vector<4x512xf32>, i32 -> vector<4x512xf32>
    %c9 = arith.constant 9 : index
    %c0_20 = arith.constant 0 : index
    %189 = vector.load %arg1[%c9, %c0_20] : memref<25x512xf32, #tpu.memory_space<vmem>>, vector<1x512xf32>
    %190 = vector.broadcast %189 : vector<1x512xf32> to vector<4x512xf32>
    %191 = arith.mulf %188, %190 : vector<4x512xf32>
    %192 = vector.extract_strided_slice %3 {offsets = [0, 36], sizes = [4, 1], strides = [1, 1]} : vector<4x100xf32> to vector<4x1xf32>
    %193 = vector.broadcast %192 : vector<4x1xf32> to vector<4x512xf32>
    %194 = arith.mulf %193, %191 : vector<4x512xf32>
    %195 = arith.addf %175, %194 : vector<4x512xf32>
    %196 = vector.extract_strided_slice %3 {offsets = [0, 37], sizes = [4, 1], strides = [1, 1]} : vector<4x100xf32> to vector<4x1xf32>
    %197 = vector.broadcast %196 : vector<4x1xf32> to vector<4x512xf32>
    %198 = arith.mulf %197, %191 : vector<4x512xf32>
    %199 = arith.addf %179, %198 : vector<4x512xf32>
    %200 = vector.extract_strided_slice %3 {offsets = [0, 38], sizes = [4, 1], strides = [1, 1]} : vector<4x100xf32> to vector<4x1xf32>
    %201 = vector.broadcast %200 : vector<4x1xf32> to vector<4x512xf32>
    %202 = arith.mulf %201, %191 : vector<4x512xf32>
    %203 = arith.addf %183, %202 : vector<4x512xf32>
    %204 = vector.extract_strided_slice %3 {offsets = [0, 39], sizes = [4, 1], strides = [1, 1]} : vector<4x100xf32> to vector<4x1xf32>
    %205 = vector.broadcast %204 : vector<4x1xf32> to vector<4x512xf32>
    %206 = arith.mulf %205, %191 : vector<4x512xf32>
    %207 = arith.addf %187, %206 : vector<4x512xf32>
    %c2_i32 = arith.constant 2 : i32
    %208 = tpu.dynamic_rotate %0 by %c2_i32 dim 1 : vector<4x512xf32>, i32 -> vector<4x512xf32>
    %c10 = arith.constant 10 : index
    %c0_21 = arith.constant 0 : index
    %209 = vector.load %arg1[%c10, %c0_21] : memref<25x512xf32, #tpu.memory_space<vmem>>, vector<1x512xf32>
    %210 = vector.broadcast %209 : vector<1x512xf32> to vector<4x512xf32>
    %211 = arith.mulf %208, %210 : vector<4x512xf32>
    %212 = vector.extract_strided_slice %3 {offsets = [0, 40], sizes = [4, 1], strides = [1, 1]} : vector<4x100xf32> to vector<4x1xf32>
    %213 = vector.broadcast %212 : vector<4x1xf32> to vector<4x512xf32>
    %214 = arith.mulf %213, %211 : vector<4x512xf32>
    %215 = arith.addf %195, %214 : vector<4x512xf32>
    %216 = vector.extract_strided_slice %3 {offsets = [0, 41], sizes = [4, 1], strides = [1, 1]} : vector<4x100xf32> to vector<4x1xf32>
    %217 = vector.broadcast %216 : vector<4x1xf32> to vector<4x512xf32>
    %218 = arith.mulf %217, %211 : vector<4x512xf32>
    %219 = arith.addf %199, %218 : vector<4x512xf32>
    %220 = vector.extract_strided_slice %3 {offsets = [0, 42], sizes = [4, 1], strides = [1, 1]} : vector<4x100xf32> to vector<4x1xf32>
    %221 = vector.broadcast %220 : vector<4x1xf32> to vector<4x512xf32>
    %222 = arith.mulf %221, %211 : vector<4x512xf32>
    %223 = arith.addf %203, %222 : vector<4x512xf32>
    %224 = vector.extract_strided_slice %3 {offsets = [0, 43], sizes = [4, 1], strides = [1, 1]} : vector<4x100xf32> to vector<4x1xf32>
    %225 = vector.broadcast %224 : vector<4x1xf32> to vector<4x512xf32>
    %226 = arith.mulf %225, %211 : vector<4x512xf32>
    %227 = arith.addf %207, %226 : vector<4x512xf32>
    %c1_i32 = arith.constant 1 : i32
    %228 = tpu.dynamic_rotate %0 by %c1_i32 dim 1 : vector<4x512xf32>, i32 -> vector<4x512xf32>
    %c11 = arith.constant 11 : index
    %c0_22 = arith.constant 0 : index
    %229 = vector.load %arg1[%c11, %c0_22] : memref<25x512xf32, #tpu.memory_space<vmem>>, vector<1x512xf32>
    %230 = vector.broadcast %229 : vector<1x512xf32> to vector<4x512xf32>
    %231 = arith.mulf %228, %230 : vector<4x512xf32>
    %232 = vector.extract_strided_slice %3 {offsets = [0, 44], sizes = [4, 1], strides = [1, 1]} : vector<4x100xf32> to vector<4x1xf32>
    %233 = vector.broadcast %232 : vector<4x1xf32> to vector<4x512xf32>
    %234 = arith.mulf %233, %231 : vector<4x512xf32>
    %235 = arith.addf %215, %234 : vector<4x512xf32>
    %236 = vector.extract_strided_slice %3 {offsets = [0, 45], sizes = [4, 1], strides = [1, 1]} : vector<4x100xf32> to vector<4x1xf32>
    %237 = vector.broadcast %236 : vector<4x1xf32> to vector<4x512xf32>
    %238 = arith.mulf %237, %231 : vector<4x512xf32>
    %239 = arith.addf %219, %238 : vector<4x512xf32>
    %240 = vector.extract_strided_slice %3 {offsets = [0, 46], sizes = [4, 1], strides = [1, 1]} : vector<4x100xf32> to vector<4x1xf32>
    %241 = vector.broadcast %240 : vector<4x1xf32> to vector<4x512xf32>
    %242 = arith.mulf %241, %231 : vector<4x512xf32>
    %243 = arith.addf %223, %242 : vector<4x512xf32>
    %244 = vector.extract_strided_slice %3 {offsets = [0, 47], sizes = [4, 1], strides = [1, 1]} : vector<4x100xf32> to vector<4x1xf32>
    %245 = vector.broadcast %244 : vector<4x1xf32> to vector<4x512xf32>
    %246 = arith.mulf %245, %231 : vector<4x512xf32>
    %247 = arith.addf %227, %246 : vector<4x512xf32>
    %c12 = arith.constant 12 : index
    %c0_23 = arith.constant 0 : index
    %248 = vector.load %arg1[%c12, %c0_23] : memref<25x512xf32, #tpu.memory_space<vmem>>, vector<1x512xf32>
    %249 = vector.broadcast %248 : vector<1x512xf32> to vector<4x512xf32>
    %250 = arith.mulf %0, %249 : vector<4x512xf32>
    %251 = vector.extract_strided_slice %3 {offsets = [0, 48], sizes = [4, 1], strides = [1, 1]} : vector<4x100xf32> to vector<4x1xf32>
    %252 = vector.broadcast %251 : vector<4x1xf32> to vector<4x512xf32>
    %253 = arith.mulf %252, %250 : vector<4x512xf32>
    %254 = arith.addf %235, %253 : vector<4x512xf32>
    %255 = vector.extract_strided_slice %3 {offsets = [0, 49], sizes = [4, 1], strides = [1, 1]} : vector<4x100xf32> to vector<4x1xf32>
    %256 = vector.broadcast %255 : vector<4x1xf32> to vector<4x512xf32>
    %257 = arith.mulf %256, %250 : vector<4x512xf32>
    %258 = arith.addf %239, %257 : vector<4x512xf32>
    %259 = vector.extract_strided_slice %3 {offsets = [0, 50], sizes = [4, 1], strides = [1, 1]} : vector<4x100xf32> to vector<4x1xf32>
    %260 = vector.broadcast %259 : vector<4x1xf32> to vector<4x512xf32>
    %261 = arith.mulf %260, %250 : vector<4x512xf32>
    %262 = arith.addf %243, %261 : vector<4x512xf32>
    %263 = vector.extract_strided_slice %3 {offsets = [0, 51], sizes = [4, 1], strides = [1, 1]} : vector<4x100xf32> to vector<4x1xf32>
    %264 = vector.broadcast %263 : vector<4x1xf32> to vector<4x512xf32>
    %265 = arith.mulf %264, %250 : vector<4x512xf32>
    %266 = arith.addf %247, %265 : vector<4x512xf32>
    %c511_i32 = arith.constant 511 : i32
    %267 = tpu.dynamic_rotate %0 by %c511_i32 dim 1 : vector<4x512xf32>, i32 -> vector<4x512xf32>
    %c13 = arith.constant 13 : index
    %c0_24 = arith.constant 0 : index
    %268 = vector.load %arg1[%c13, %c0_24] : memref<25x512xf32, #tpu.memory_space<vmem>>, vector<1x512xf32>
    %269 = vector.broadcast %268 : vector<1x512xf32> to vector<4x512xf32>
    %270 = arith.mulf %267, %269 : vector<4x512xf32>
    %271 = vector.extract_strided_slice %3 {offsets = [0, 52], sizes = [4, 1], strides = [1, 1]} : vector<4x100xf32> to vector<4x1xf32>
    %272 = vector.broadcast %271 : vector<4x1xf32> to vector<4x512xf32>
    %273 = arith.mulf %272, %270 : vector<4x512xf32>
    %274 = arith.addf %254, %273 : vector<4x512xf32>
    %275 = vector.extract_strided_slice %3 {offsets = [0, 53], sizes = [4, 1], strides = [1, 1]} : vector<4x100xf32> to vector<4x1xf32>
    %276 = vector.broadcast %275 : vector<4x1xf32> to vector<4x512xf32>
    %277 = arith.mulf %276, %270 : vector<4x512xf32>
    %278 = arith.addf %258, %277 : vector<4x512xf32>
    %279 = vector.extract_strided_slice %3 {offsets = [0, 54], sizes = [4, 1], strides = [1, 1]} : vector<4x100xf32> to vector<4x1xf32>
    %280 = vector.broadcast %279 : vector<4x1xf32> to vector<4x512xf32>
    %281 = arith.mulf %280, %270 : vector<4x512xf32>
    %282 = arith.addf %262, %281 : vector<4x512xf32>
    %283 = vector.extract_strided_slice %3 {offsets = [0, 55], sizes = [4, 1], strides = [1, 1]} : vector<4x100xf32> to vector<4x1xf32>
    %284 = vector.broadcast %283 : vector<4x1xf32> to vector<4x512xf32>
    %285 = arith.mulf %284, %270 : vector<4x512xf32>
    %286 = arith.addf %266, %285 : vector<4x512xf32>
    %c510_i32 = arith.constant 510 : i32
    %287 = tpu.dynamic_rotate %0 by %c510_i32 dim 1 : vector<4x512xf32>, i32 -> vector<4x512xf32>
    %c14 = arith.constant 14 : index
    %c0_25 = arith.constant 0 : index
    %288 = vector.load %arg1[%c14, %c0_25] : memref<25x512xf32, #tpu.memory_space<vmem>>, vector<1x512xf32>
    %289 = vector.broadcast %288 : vector<1x512xf32> to vector<4x512xf32>
    %290 = arith.mulf %287, %289 : vector<4x512xf32>
    %291 = vector.extract_strided_slice %3 {offsets = [0, 56], sizes = [4, 1], strides = [1, 1]} : vector<4x100xf32> to vector<4x1xf32>
    %292 = vector.broadcast %291 : vector<4x1xf32> to vector<4x512xf32>
    %293 = arith.mulf %292, %290 : vector<4x512xf32>
    %294 = arith.addf %274, %293 : vector<4x512xf32>
    %295 = vector.extract_strided_slice %3 {offsets = [0, 57], sizes = [4, 1], strides = [1, 1]} : vector<4x100xf32> to vector<4x1xf32>
    %296 = vector.broadcast %295 : vector<4x1xf32> to vector<4x512xf32>
    %297 = arith.mulf %296, %290 : vector<4x512xf32>
    %298 = arith.addf %278, %297 : vector<4x512xf32>
    %299 = vector.extract_strided_slice %3 {offsets = [0, 58], sizes = [4, 1], strides = [1, 1]} : vector<4x100xf32> to vector<4x1xf32>
    %300 = vector.broadcast %299 : vector<4x1xf32> to vector<4x512xf32>
    %301 = arith.mulf %300, %290 : vector<4x512xf32>
    %302 = arith.addf %282, %301 : vector<4x512xf32>
    %303 = vector.extract_strided_slice %3 {offsets = [0, 59], sizes = [4, 1], strides = [1, 1]} : vector<4x100xf32> to vector<4x1xf32>
    %304 = vector.broadcast %303 : vector<4x1xf32> to vector<4x512xf32>
    %305 = arith.mulf %304, %290 : vector<4x512xf32>
    %306 = arith.addf %286, %305 : vector<4x512xf32>
    %c498_i32 = arith.constant 498 : i32
    %307 = tpu.dynamic_rotate %0 by %c498_i32 dim 1 : vector<4x512xf32>, i32 -> vector<4x512xf32>
    %c15 = arith.constant 15 : index
    %c0_26 = arith.constant 0 : index
    %308 = vector.load %arg1[%c15, %c0_26] : memref<25x512xf32, #tpu.memory_space<vmem>>, vector<1x512xf32>
    %309 = vector.broadcast %308 : vector<1x512xf32> to vector<4x512xf32>
    %310 = arith.mulf %307, %309 : vector<4x512xf32>
    %311 = vector.extract_strided_slice %3 {offsets = [0, 60], sizes = [4, 1], strides = [1, 1]} : vector<4x100xf32> to vector<4x1xf32>
    %312 = vector.broadcast %311 : vector<4x1xf32> to vector<4x512xf32>
    %313 = arith.mulf %312, %310 : vector<4x512xf32>
    %314 = arith.addf %294, %313 : vector<4x512xf32>
    %315 = vector.extract_strided_slice %3 {offsets = [0, 61], sizes = [4, 1], strides = [1, 1]} : vector<4x100xf32> to vector<4x1xf32>
    %316 = vector.broadcast %315 : vector<4x1xf32> to vector<4x512xf32>
    %317 = arith.mulf %316, %310 : vector<4x512xf32>
    %318 = arith.addf %298, %317 : vector<4x512xf32>
    %319 = vector.extract_strided_slice %3 {offsets = [0, 62], sizes = [4, 1], strides = [1, 1]} : vector<4x100xf32> to vector<4x1xf32>
    %320 = vector.broadcast %319 : vector<4x1xf32> to vector<4x512xf32>
    %321 = arith.mulf %320, %310 : vector<4x512xf32>
    %322 = arith.addf %302, %321 : vector<4x512xf32>
    %323 = vector.extract_strided_slice %3 {offsets = [0, 63], sizes = [4, 1], strides = [1, 1]} : vector<4x100xf32> to vector<4x1xf32>
    %324 = vector.broadcast %323 : vector<4x1xf32> to vector<4x512xf32>
    %325 = arith.mulf %324, %310 : vector<4x512xf32>
    %326 = arith.addf %306, %325 : vector<4x512xf32>
    %c497_i32 = arith.constant 497 : i32
    %327 = tpu.dynamic_rotate %0 by %c497_i32 dim 1 : vector<4x512xf32>, i32 -> vector<4x512xf32>
    %c16 = arith.constant 16 : index
    %c0_27 = arith.constant 0 : index
    %328 = vector.load %arg1[%c16, %c0_27] : memref<25x512xf32, #tpu.memory_space<vmem>>, vector<1x512xf32>
    %329 = vector.broadcast %328 : vector<1x512xf32> to vector<4x512xf32>
    %330 = arith.mulf %327, %329 : vector<4x512xf32>
    %331 = vector.extract_strided_slice %3 {offsets = [0, 64], sizes = [4, 1], strides = [1, 1]} : vector<4x100xf32> to vector<4x1xf32>
    %332 = vector.broadcast %331 : vector<4x1xf32> to vector<4x512xf32>
    %333 = arith.mulf %332, %330 : vector<4x512xf32>
    %334 = arith.addf %314, %333 : vector<4x512xf32>
    %335 = vector.extract_strided_slice %3 {offsets = [0, 65], sizes = [4, 1], strides = [1, 1]} : vector<4x100xf32> to vector<4x1xf32>
    %336 = vector.broadcast %335 : vector<4x1xf32> to vector<4x512xf32>
    %337 = arith.mulf %336, %330 : vector<4x512xf32>
    %338 = arith.addf %318, %337 : vector<4x512xf32>
    %339 = vector.extract_strided_slice %3 {offsets = [0, 66], sizes = [4, 1], strides = [1, 1]} : vector<4x100xf32> to vector<4x1xf32>
    %340 = vector.broadcast %339 : vector<4x1xf32> to vector<4x512xf32>
    %341 = arith.mulf %340, %330 : vector<4x512xf32>
    %342 = arith.addf %322, %341 : vector<4x512xf32>
    %343 = vector.extract_strided_slice %3 {offsets = [0, 67], sizes = [4, 1], strides = [1, 1]} : vector<4x100xf32> to vector<4x1xf32>
    %344 = vector.broadcast %343 : vector<4x1xf32> to vector<4x512xf32>
    %345 = arith.mulf %344, %330 : vector<4x512xf32>
    %346 = arith.addf %326, %345 : vector<4x512xf32>
    %c496_i32 = arith.constant 496 : i32
    %347 = tpu.dynamic_rotate %0 by %c496_i32 dim 1 : vector<4x512xf32>, i32 -> vector<4x512xf32>
    %c17 = arith.constant 17 : index
    %c0_28 = arith.constant 0 : index
    %348 = vector.load %arg1[%c17, %c0_28] : memref<25x512xf32, #tpu.memory_space<vmem>>, vector<1x512xf32>
    %349 = vector.broadcast %348 : vector<1x512xf32> to vector<4x512xf32>
    %350 = arith.mulf %347, %349 : vector<4x512xf32>
    %351 = vector.extract_strided_slice %3 {offsets = [0, 68], sizes = [4, 1], strides = [1, 1]} : vector<4x100xf32> to vector<4x1xf32>
    %352 = vector.broadcast %351 : vector<4x1xf32> to vector<4x512xf32>
    %353 = arith.mulf %352, %350 : vector<4x512xf32>
    %354 = arith.addf %334, %353 : vector<4x512xf32>
    %355 = vector.extract_strided_slice %3 {offsets = [0, 69], sizes = [4, 1], strides = [1, 1]} : vector<4x100xf32> to vector<4x1xf32>
    %356 = vector.broadcast %355 : vector<4x1xf32> to vector<4x512xf32>
    %357 = arith.mulf %356, %350 : vector<4x512xf32>
    %358 = arith.addf %338, %357 : vector<4x512xf32>
    %359 = vector.extract_strided_slice %3 {offsets = [0, 70], sizes = [4, 1], strides = [1, 1]} : vector<4x100xf32> to vector<4x1xf32>
    %360 = vector.broadcast %359 : vector<4x1xf32> to vector<4x512xf32>
    %361 = arith.mulf %360, %350 : vector<4x512xf32>
    %362 = arith.addf %342, %361 : vector<4x512xf32>
    %363 = vector.extract_strided_slice %3 {offsets = [0, 71], sizes = [4, 1], strides = [1, 1]} : vector<4x100xf32> to vector<4x1xf32>
    %364 = vector.broadcast %363 : vector<4x1xf32> to vector<4x512xf32>
    %365 = arith.mulf %364, %350 : vector<4x512xf32>
    %366 = arith.addf %346, %365 : vector<4x512xf32>
    %c495_i32 = arith.constant 495 : i32
    %367 = tpu.dynamic_rotate %0 by %c495_i32 dim 1 : vector<4x512xf32>, i32 -> vector<4x512xf32>
    %c18 = arith.constant 18 : index
    %c0_29 = arith.constant 0 : index
    %368 = vector.load %arg1[%c18, %c0_29] : memref<25x512xf32, #tpu.memory_space<vmem>>, vector<1x512xf32>
    %369 = vector.broadcast %368 : vector<1x512xf32> to vector<4x512xf32>
    %370 = arith.mulf %367, %369 : vector<4x512xf32>
    %371 = vector.extract_strided_slice %3 {offsets = [0, 72], sizes = [4, 1], strides = [1, 1]} : vector<4x100xf32> to vector<4x1xf32>
    %372 = vector.broadcast %371 : vector<4x1xf32> to vector<4x512xf32>
    %373 = arith.mulf %372, %370 : vector<4x512xf32>
    %374 = arith.addf %354, %373 : vector<4x512xf32>
    %375 = vector.extract_strided_slice %3 {offsets = [0, 73], sizes = [4, 1], strides = [1, 1]} : vector<4x100xf32> to vector<4x1xf32>
    %376 = vector.broadcast %375 : vector<4x1xf32> to vector<4x512xf32>
    %377 = arith.mulf %376, %370 : vector<4x512xf32>
    %378 = arith.addf %358, %377 : vector<4x512xf32>
    %379 = vector.extract_strided_slice %3 {offsets = [0, 74], sizes = [4, 1], strides = [1, 1]} : vector<4x100xf32> to vector<4x1xf32>
    %380 = vector.broadcast %379 : vector<4x1xf32> to vector<4x512xf32>
    %381 = arith.mulf %380, %370 : vector<4x512xf32>
    %382 = arith.addf %362, %381 : vector<4x512xf32>
    %383 = vector.extract_strided_slice %3 {offsets = [0, 75], sizes = [4, 1], strides = [1, 1]} : vector<4x100xf32> to vector<4x1xf32>
    %384 = vector.broadcast %383 : vector<4x1xf32> to vector<4x512xf32>
    %385 = arith.mulf %384, %370 : vector<4x512xf32>
    %386 = arith.addf %366, %385 : vector<4x512xf32>
    %c494_i32 = arith.constant 494 : i32
    %387 = tpu.dynamic_rotate %0 by %c494_i32 dim 1 : vector<4x512xf32>, i32 -> vector<4x512xf32>
    %c19 = arith.constant 19 : index
    %c0_30 = arith.constant 0 : index
    %388 = vector.load %arg1[%c19, %c0_30] : memref<25x512xf32, #tpu.memory_space<vmem>>, vector<1x512xf32>
    %389 = vector.broadcast %388 : vector<1x512xf32> to vector<4x512xf32>
    %390 = arith.mulf %387, %389 : vector<4x512xf32>
    %391 = vector.extract_strided_slice %3 {offsets = [0, 76], sizes = [4, 1], strides = [1, 1]} : vector<4x100xf32> to vector<4x1xf32>
    %392 = vector.broadcast %391 : vector<4x1xf32> to vector<4x512xf32>
    %393 = arith.mulf %392, %390 : vector<4x512xf32>
    %394 = arith.addf %374, %393 : vector<4x512xf32>
    %395 = vector.extract_strided_slice %3 {offsets = [0, 77], sizes = [4, 1], strides = [1, 1]} : vector<4x100xf32> to vector<4x1xf32>
    %396 = vector.broadcast %395 : vector<4x1xf32> to vector<4x512xf32>
    %397 = arith.mulf %396, %390 : vector<4x512xf32>
    %398 = arith.addf %378, %397 : vector<4x512xf32>
    %399 = vector.extract_strided_slice %3 {offsets = [0, 78], sizes = [4, 1], strides = [1, 1]} : vector<4x100xf32> to vector<4x1xf32>
    %400 = vector.broadcast %399 : vector<4x1xf32> to vector<4x512xf32>
    %401 = arith.mulf %400, %390 : vector<4x512xf32>
    %402 = arith.addf %382, %401 : vector<4x512xf32>
    %403 = vector.extract_strided_slice %3 {offsets = [0, 79], sizes = [4, 1], strides = [1, 1]} : vector<4x100xf32> to vector<4x1xf32>
    %404 = vector.broadcast %403 : vector<4x1xf32> to vector<4x512xf32>
    %405 = arith.mulf %404, %390 : vector<4x512xf32>
    %406 = arith.addf %386, %405 : vector<4x512xf32>
    %c482_i32 = arith.constant 482 : i32
    %407 = tpu.dynamic_rotate %0 by %c482_i32 dim 1 : vector<4x512xf32>, i32 -> vector<4x512xf32>
    %c20 = arith.constant 20 : index
    %c0_31 = arith.constant 0 : index
    %408 = vector.load %arg1[%c20, %c0_31] : memref<25x512xf32, #tpu.memory_space<vmem>>, vector<1x512xf32>
    %409 = vector.broadcast %408 : vector<1x512xf32> to vector<4x512xf32>
    %410 = arith.mulf %407, %409 : vector<4x512xf32>
    %411 = vector.extract_strided_slice %3 {offsets = [0, 80], sizes = [4, 1], strides = [1, 1]} : vector<4x100xf32> to vector<4x1xf32>
    %412 = vector.broadcast %411 : vector<4x1xf32> to vector<4x512xf32>
    %413 = arith.mulf %412, %410 : vector<4x512xf32>
    %414 = arith.addf %394, %413 : vector<4x512xf32>
    %415 = vector.extract_strided_slice %3 {offsets = [0, 81], sizes = [4, 1], strides = [1, 1]} : vector<4x100xf32> to vector<4x1xf32>
    %416 = vector.broadcast %415 : vector<4x1xf32> to vector<4x512xf32>
    %417 = arith.mulf %416, %410 : vector<4x512xf32>
    %418 = arith.addf %398, %417 : vector<4x512xf32>
    %419 = vector.extract_strided_slice %3 {offsets = [0, 82], sizes = [4, 1], strides = [1, 1]} : vector<4x100xf32> to vector<4x1xf32>
    %420 = vector.broadcast %419 : vector<4x1xf32> to vector<4x512xf32>
    %421 = arith.mulf %420, %410 : vector<4x512xf32>
    %422 = arith.addf %402, %421 : vector<4x512xf32>
    %423 = vector.extract_strided_slice %3 {offsets = [0, 83], sizes = [4, 1], strides = [1, 1]} : vector<4x100xf32> to vector<4x1xf32>
    %424 = vector.broadcast %423 : vector<4x1xf32> to vector<4x512xf32>
    %425 = arith.mulf %424, %410 : vector<4x512xf32>
    %426 = arith.addf %406, %425 : vector<4x512xf32>
    %c481_i32 = arith.constant 481 : i32
    %427 = tpu.dynamic_rotate %0 by %c481_i32 dim 1 : vector<4x512xf32>, i32 -> vector<4x512xf32>
    %c21 = arith.constant 21 : index
    %c0_32 = arith.constant 0 : index
    %428 = vector.load %arg1[%c21, %c0_32] : memref<25x512xf32, #tpu.memory_space<vmem>>, vector<1x512xf32>
    %429 = vector.broadcast %428 : vector<1x512xf32> to vector<4x512xf32>
    %430 = arith.mulf %427, %429 : vector<4x512xf32>
    %431 = vector.extract_strided_slice %3 {offsets = [0, 84], sizes = [4, 1], strides = [1, 1]} : vector<4x100xf32> to vector<4x1xf32>
    %432 = vector.broadcast %431 : vector<4x1xf32> to vector<4x512xf32>
    %433 = arith.mulf %432, %430 : vector<4x512xf32>
    %434 = arith.addf %414, %433 : vector<4x512xf32>
    %435 = vector.extract_strided_slice %3 {offsets = [0, 85], sizes = [4, 1], strides = [1, 1]} : vector<4x100xf32> to vector<4x1xf32>
    %436 = vector.broadcast %435 : vector<4x1xf32> to vector<4x512xf32>
    %437 = arith.mulf %436, %430 : vector<4x512xf32>
    %438 = arith.addf %418, %437 : vector<4x512xf32>
    %439 = vector.extract_strided_slice %3 {offsets = [0, 86], sizes = [4, 1], strides = [1, 1]} : vector<4x100xf32> to vector<4x1xf32>
    %440 = vector.broadcast %439 : vector<4x1xf32> to vector<4x512xf32>
    %441 = arith.mulf %440, %430 : vector<4x512xf32>
    %442 = arith.addf %422, %441 : vector<4x512xf32>
    %443 = vector.extract_strided_slice %3 {offsets = [0, 87], sizes = [4, 1], strides = [1, 1]} : vector<4x100xf32> to vector<4x1xf32>
    %444 = vector.broadcast %443 : vector<4x1xf32> to vector<4x512xf32>
    %445 = arith.mulf %444, %430 : vector<4x512xf32>
    %446 = arith.addf %426, %445 : vector<4x512xf32>
    %c480_i32 = arith.constant 480 : i32
    %447 = tpu.dynamic_rotate %0 by %c480_i32 dim 1 : vector<4x512xf32>, i32 -> vector<4x512xf32>
    %c22 = arith.constant 22 : index
    %c0_33 = arith.constant 0 : index
    %448 = vector.load %arg1[%c22, %c0_33] : memref<25x512xf32, #tpu.memory_space<vmem>>, vector<1x512xf32>
    %449 = vector.broadcast %448 : vector<1x512xf32> to vector<4x512xf32>
    %450 = arith.mulf %447, %449 : vector<4x512xf32>
    %451 = vector.extract_strided_slice %3 {offsets = [0, 88], sizes = [4, 1], strides = [1, 1]} : vector<4x100xf32> to vector<4x1xf32>
    %452 = vector.broadcast %451 : vector<4x1xf32> to vector<4x512xf32>
    %453 = arith.mulf %452, %450 : vector<4x512xf32>
    %454 = arith.addf %434, %453 : vector<4x512xf32>
    %455 = vector.extract_strided_slice %3 {offsets = [0, 89], sizes = [4, 1], strides = [1, 1]} : vector<4x100xf32> to vector<4x1xf32>
    %456 = vector.broadcast %455 : vector<4x1xf32> to vector<4x512xf32>
    %457 = arith.mulf %456, %450 : vector<4x512xf32>
    %458 = arith.addf %438, %457 : vector<4x512xf32>
    %459 = vector.extract_strided_slice %3 {offsets = [0, 90], sizes = [4, 1], strides = [1, 1]} : vector<4x100xf32> to vector<4x1xf32>
    %460 = vector.broadcast %459 : vector<4x1xf32> to vector<4x512xf32>
    %461 = arith.mulf %460, %450 : vector<4x512xf32>
    %462 = arith.addf %442, %461 : vector<4x512xf32>
    %463 = vector.extract_strided_slice %3 {offsets = [0, 91], sizes = [4, 1], strides = [1, 1]} : vector<4x100xf32> to vector<4x1xf32>
    %464 = vector.broadcast %463 : vector<4x1xf32> to vector<4x512xf32>
    %465 = arith.mulf %464, %450 : vector<4x512xf32>
    %466 = arith.addf %446, %465 : vector<4x512xf32>
    %c479_i32 = arith.constant 479 : i32
    %467 = tpu.dynamic_rotate %0 by %c479_i32 dim 1 : vector<4x512xf32>, i32 -> vector<4x512xf32>
    %c23 = arith.constant 23 : index
    %c0_34 = arith.constant 0 : index
    %468 = vector.load %arg1[%c23, %c0_34] : memref<25x512xf32, #tpu.memory_space<vmem>>, vector<1x512xf32>
    %469 = vector.broadcast %468 : vector<1x512xf32> to vector<4x512xf32>
    %470 = arith.mulf %467, %469 : vector<4x512xf32>
    %471 = vector.extract_strided_slice %3 {offsets = [0, 92], sizes = [4, 1], strides = [1, 1]} : vector<4x100xf32> to vector<4x1xf32>
    %472 = vector.broadcast %471 : vector<4x1xf32> to vector<4x512xf32>
    %473 = arith.mulf %472, %470 : vector<4x512xf32>
    %474 = arith.addf %454, %473 : vector<4x512xf32>
    %475 = vector.extract_strided_slice %3 {offsets = [0, 93], sizes = [4, 1], strides = [1, 1]} : vector<4x100xf32> to vector<4x1xf32>
    %476 = vector.broadcast %475 : vector<4x1xf32> to vector<4x512xf32>
    %477 = arith.mulf %476, %470 : vector<4x512xf32>
    %478 = arith.addf %458, %477 : vector<4x512xf32>
    %479 = vector.extract_strided_slice %3 {offsets = [0, 94], sizes = [4, 1], strides = [1, 1]} : vector<4x100xf32> to vector<4x1xf32>
    %480 = vector.broadcast %479 : vector<4x1xf32> to vector<4x512xf32>
    %481 = arith.mulf %480, %470 : vector<4x512xf32>
    %482 = arith.addf %462, %481 : vector<4x512xf32>
    %483 = vector.extract_strided_slice %3 {offsets = [0, 95], sizes = [4, 1], strides = [1, 1]} : vector<4x100xf32> to vector<4x1xf32>
    %484 = vector.broadcast %483 : vector<4x1xf32> to vector<4x512xf32>
    %485 = arith.mulf %484, %470 : vector<4x512xf32>
    %486 = arith.addf %466, %485 : vector<4x512xf32>
    %c478_i32 = arith.constant 478 : i32
    %487 = tpu.dynamic_rotate %0 by %c478_i32 dim 1 : vector<4x512xf32>, i32 -> vector<4x512xf32>
    %c24 = arith.constant 24 : index
    %c0_35 = arith.constant 0 : index
    %488 = vector.load %arg1[%c24, %c0_35] : memref<25x512xf32, #tpu.memory_space<vmem>>, vector<1x512xf32>
    %489 = vector.broadcast %488 : vector<1x512xf32> to vector<4x512xf32>
    %490 = arith.mulf %487, %489 : vector<4x512xf32>
    %491 = vector.extract_strided_slice %3 {offsets = [0, 96], sizes = [4, 1], strides = [1, 1]} : vector<4x100xf32> to vector<4x1xf32>
    %492 = vector.broadcast %491 : vector<4x1xf32> to vector<4x512xf32>
    %493 = arith.mulf %492, %490 : vector<4x512xf32>
    %494 = arith.addf %474, %493 : vector<4x512xf32>
    %495 = vector.extract_strided_slice %3 {offsets = [0, 97], sizes = [4, 1], strides = [1, 1]} : vector<4x100xf32> to vector<4x1xf32>
    %496 = vector.broadcast %495 : vector<4x1xf32> to vector<4x512xf32>
    %497 = arith.mulf %496, %490 : vector<4x512xf32>
    %498 = arith.addf %478, %497 : vector<4x512xf32>
    %499 = vector.extract_strided_slice %3 {offsets = [0, 98], sizes = [4, 1], strides = [1, 1]} : vector<4x100xf32> to vector<4x1xf32>
    %500 = vector.broadcast %499 : vector<4x1xf32> to vector<4x512xf32>
    %501 = arith.mulf %500, %490 : vector<4x512xf32>
    %502 = arith.addf %482, %501 : vector<4x512xf32>
    %503 = vector.extract_strided_slice %3 {offsets = [0, 99], sizes = [4, 1], strides = [1, 1]} : vector<4x100xf32> to vector<4x1xf32>
    %504 = vector.broadcast %503 : vector<4x1xf32> to vector<4x512xf32>
    %505 = arith.mulf %504, %490 : vector<4x512xf32>
    %506 = arith.addf %486, %505 : vector<4x512xf32>
    %cst_36 = arith.constant dense<0.000000e+00> : vector<512xf32>
    %507 = vector.multi_reduction <add>, %494, %cst_36 [0] : vector<4x512xf32> to vector<512xf32>
    %508 = vector.shape_cast %507 : vector<512xf32> to vector<1x512xf32>
    %cst_37 = arith.constant dense<0.000000e+00> : vector<512xf32>
    %509 = vector.multi_reduction <add>, %498, %cst_37 [0] : vector<4x512xf32> to vector<512xf32>
    %510 = vector.shape_cast %509 : vector<512xf32> to vector<1x512xf32>
    %cst_38 = arith.constant dense<0.000000e+00> : vector<512xf32>
    %511 = vector.multi_reduction <add>, %502, %cst_38 [0] : vector<4x512xf32> to vector<512xf32>
    %512 = vector.shape_cast %511 : vector<512xf32> to vector<1x512xf32>
    %cst_39 = arith.constant dense<0.000000e+00> : vector<512xf32>
    %513 = vector.multi_reduction <add>, %506, %cst_39 [0] : vector<4x512xf32> to vector<512xf32>
    %514 = vector.shape_cast %513 : vector<512xf32> to vector<1x512xf32>
    %515 = tpu.concatenate %508, %510, %512, %514 in 0 : vector<1x512xf32>, vector<1x512xf32>, vector<1x512xf32>, vector<1x512xf32> -> vector<4x512xf32>
    %cst_40 = arith.constant dense<0.000000e+00> : vector<4xf32>
    %516 = vector.multi_reduction <add>, %515, %cst_40 [1] : vector<4x512xf32> to vector<4xf32>
    %517 = vector.shape_cast %516 : vector<4xf32> to vector<4x1xf32>
    %518 = arith.mulf %515, %515 : vector<4x512xf32>
    %cst_41 = arith.constant dense<0.000000e+00> : vector<4xf32>
    %519 = vector.multi_reduction <add>, %518, %cst_41 [1] : vector<4x512xf32> to vector<4xf32>
    %520 = vector.shape_cast %519 : vector<4xf32> to vector<4x1xf32>
    %cst_42 = arith.constant 0.001953125 : f32
    %521 = vector.broadcast %cst_42 : f32 to vector<4x1xf32>
    %522 = arith.mulf %517, %521 : vector<4x1xf32>
    %cst_43 = arith.constant 0.001953125 : f32
    %523 = vector.broadcast %cst_43 : f32 to vector<4x1xf32>
    %524 = arith.mulf %520, %523 : vector<4x1xf32>
    %525 = arith.mulf %522, %522 : vector<4x1xf32>
    %526 = arith.subf %524, %525 : vector<4x1xf32>
    %cst_44 = arith.constant 0.000000e+00 : f32
    %527 = vector.broadcast %cst_44 : f32 to vector<4x1xf32>
    %528 = arith.maximumf %526, %527 : vector<4x1xf32>
    %cst_45 = arith.constant 9.99999974E-6 : f32
    %529 = vector.broadcast %cst_45 : f32 to vector<4x1xf32>
    %530 = arith.addf %528, %529 : vector<4x1xf32>
    %531 = math.rsqrt %530 : vector<4x1xf32>
    %532 = arith.mulf %1, %531 : vector<4x1xf32>
    %533 = arith.mulf %522, %532 : vector<4x1xf32>
    %534 = arith.subf %2, %533 : vector<4x1xf32>
    %535 = vector.broadcast %532 : vector<4x1xf32> to vector<4x512xf32>
    %536 = arith.mulf %515, %535 : vector<4x512xf32>
    %537 = vector.broadcast %534 : vector<4x1xf32> to vector<4x512xf32>
    %538 = arith.addf %536, %537 : vector<4x512xf32>
    %cst_46 = arith.constant 0.000000e+00 : f32
    %539 = vector.broadcast %cst_46 : f32 to vector<4x512xf32>
    %540 = arith.maximumf %538, %539 : vector<4x512xf32>
    %c0_47 = arith.constant 0 : index
    %c0_48 = arith.constant 0 : index
    %541 = vector.load %arg6[%c0_47, %c0_48] : memref<4x1xf32, #tpu.memory_space<vmem>>, vector<4x1xf32>
    %c0_49 = arith.constant 0 : index
    %c0_50 = arith.constant 0 : index
    %542 = vector.load %arg7[%c0_49, %c0_50] : memref<4x1xf32, #tpu.memory_space<vmem>>, vector<4x1xf32>
    %c0_51 = arith.constant 0 : index
    %c0_52 = arith.constant 0 : index
    %543 = vector.load %arg5[%c0_51, %c0_52] : memref<4x100xf32, #tpu.memory_space<vmem>>, vector<4x100xf32>
    %cst_53 = arith.constant 0.000000e+00 : f32
    %544 = vector.broadcast %cst_53 : f32 to vector<4x512xf32>
    %cst_54 = arith.constant 0.000000e+00 : f32
    %545 = vector.broadcast %cst_54 : f32 to vector<4x512xf32>
    %cst_55 = arith.constant 0.000000e+00 : f32
    %546 = vector.broadcast %cst_55 : f32 to vector<4x512xf32>
    %cst_56 = arith.constant 0.000000e+00 : f32
    %547 = vector.broadcast %cst_56 : f32 to vector<4x512xf32>
    %c34_i32_57 = arith.constant 34 : i32
    %548 = tpu.dynamic_rotate %540 by %c34_i32_57 dim 1 : vector<4x512xf32>, i32 -> vector<4x512xf32>
    %c0_58 = arith.constant 0 : index
    %c0_59 = arith.constant 0 : index
    %549 = vector.load %arg1[%c0_58, %c0_59] : memref<25x512xf32, #tpu.memory_space<vmem>>, vector<1x512xf32>
    %550 = vector.broadcast %549 : vector<1x512xf32> to vector<4x512xf32>
    %551 = arith.mulf %548, %550 : vector<4x512xf32>
    %552 = vector.extract_strided_slice %543 {offsets = [0, 0], sizes = [4, 1], strides = [1, 1]} : vector<4x100xf32> to vector<4x1xf32>
    %553 = vector.broadcast %552 : vector<4x1xf32> to vector<4x512xf32>
    %554 = arith.mulf %553, %551 : vector<4x512xf32>
    %555 = arith.addf %544, %554 : vector<4x512xf32>
    %556 = vector.extract_strided_slice %543 {offsets = [0, 1], sizes = [4, 1], strides = [1, 1]} : vector<4x100xf32> to vector<4x1xf32>
    %557 = vector.broadcast %556 : vector<4x1xf32> to vector<4x512xf32>
    %558 = arith.mulf %557, %551 : vector<4x512xf32>
    %559 = arith.addf %545, %558 : vector<4x512xf32>
    %560 = vector.extract_strided_slice %543 {offsets = [0, 2], sizes = [4, 1], strides = [1, 1]} : vector<4x100xf32> to vector<4x1xf32>
    %561 = vector.broadcast %560 : vector<4x1xf32> to vector<4x512xf32>
    %562 = arith.mulf %561, %551 : vector<4x512xf32>
    %563 = arith.addf %546, %562 : vector<4x512xf32>
    %564 = vector.extract_strided_slice %543 {offsets = [0, 3], sizes = [4, 1], strides = [1, 1]} : vector<4x100xf32> to vector<4x1xf32>
    %565 = vector.broadcast %564 : vector<4x1xf32> to vector<4x512xf32>
    %566 = arith.mulf %565, %551 : vector<4x512xf32>
    %567 = arith.addf %547, %566 : vector<4x512xf32>
    %c33_i32_60 = arith.constant 33 : i32
    %568 = tpu.dynamic_rotate %540 by %c33_i32_60 dim 1 : vector<4x512xf32>, i32 -> vector<4x512xf32>
    %c1_61 = arith.constant 1 : index
    %c0_62 = arith.constant 0 : index
    %569 = vector.load %arg1[%c1_61, %c0_62] : memref<25x512xf32, #tpu.memory_space<vmem>>, vector<1x512xf32>
    %570 = vector.broadcast %569 : vector<1x512xf32> to vector<4x512xf32>
    %571 = arith.mulf %568, %570 : vector<4x512xf32>
    %572 = vector.extract_strided_slice %543 {offsets = [0, 4], sizes = [4, 1], strides = [1, 1]} : vector<4x100xf32> to vector<4x1xf32>
    %573 = vector.broadcast %572 : vector<4x1xf32> to vector<4x512xf32>
    %574 = arith.mulf %573, %571 : vector<4x512xf32>
    %575 = arith.addf %555, %574 : vector<4x512xf32>
    %576 = vector.extract_strided_slice %543 {offsets = [0, 5], sizes = [4, 1], strides = [1, 1]} : vector<4x100xf32> to vector<4x1xf32>
    %577 = vector.broadcast %576 : vector<4x1xf32> to vector<4x512xf32>
    %578 = arith.mulf %577, %571 : vector<4x512xf32>
    %579 = arith.addf %559, %578 : vector<4x512xf32>
    %580 = vector.extract_strided_slice %543 {offsets = [0, 6], sizes = [4, 1], strides = [1, 1]} : vector<4x100xf32> to vector<4x1xf32>
    %581 = vector.broadcast %580 : vector<4x1xf32> to vector<4x512xf32>
    %582 = arith.mulf %581, %571 : vector<4x512xf32>
    %583 = arith.addf %563, %582 : vector<4x512xf32>
    %584 = vector.extract_strided_slice %543 {offsets = [0, 7], sizes = [4, 1], strides = [1, 1]} : vector<4x100xf32> to vector<4x1xf32>
    %585 = vector.broadcast %584 : vector<4x1xf32> to vector<4x512xf32>
    %586 = arith.mulf %585, %571 : vector<4x512xf32>
    %587 = arith.addf %567, %586 : vector<4x512xf32>
    %c32_i32_63 = arith.constant 32 : i32
    %588 = tpu.dynamic_rotate %540 by %c32_i32_63 dim 1 : vector<4x512xf32>, i32 -> vector<4x512xf32>
    %c2_64 = arith.constant 2 : index
    %c0_65 = arith.constant 0 : index
    %589 = vector.load %arg1[%c2_64, %c0_65] : memref<25x512xf32, #tpu.memory_space<vmem>>, vector<1x512xf32>
    %590 = vector.broadcast %589 : vector<1x512xf32> to vector<4x512xf32>
    %591 = arith.mulf %588, %590 : vector<4x512xf32>
    %592 = vector.extract_strided_slice %543 {offsets = [0, 8], sizes = [4, 1], strides = [1, 1]} : vector<4x100xf32> to vector<4x1xf32>
    %593 = vector.broadcast %592 : vector<4x1xf32> to vector<4x512xf32>
    %594 = arith.mulf %593, %591 : vector<4x512xf32>
    %595 = arith.addf %575, %594 : vector<4x512xf32>
    %596 = vector.extract_strided_slice %543 {offsets = [0, 9], sizes = [4, 1], strides = [1, 1]} : vector<4x100xf32> to vector<4x1xf32>
    %597 = vector.broadcast %596 : vector<4x1xf32> to vector<4x512xf32>
    %598 = arith.mulf %597, %591 : vector<4x512xf32>
    %599 = arith.addf %579, %598 : vector<4x512xf32>
    %600 = vector.extract_strided_slice %543 {offsets = [0, 10], sizes = [4, 1], strides = [1, 1]} : vector<4x100xf32> to vector<4x1xf32>
    %601 = vector.broadcast %600 : vector<4x1xf32> to vector<4x512xf32>
    %602 = arith.mulf %601, %591 : vector<4x512xf32>
    %603 = arith.addf %583, %602 : vector<4x512xf32>
    %604 = vector.extract_strided_slice %543 {offsets = [0, 11], sizes = [4, 1], strides = [1, 1]} : vector<4x100xf32> to vector<4x1xf32>
    %605 = vector.broadcast %604 : vector<4x1xf32> to vector<4x512xf32>
    %606 = arith.mulf %605, %591 : vector<4x512xf32>
    %607 = arith.addf %587, %606 : vector<4x512xf32>
    %c31_i32_66 = arith.constant 31 : i32
    %608 = tpu.dynamic_rotate %540 by %c31_i32_66 dim 1 : vector<4x512xf32>, i32 -> vector<4x512xf32>
    %c3_67 = arith.constant 3 : index
    %c0_68 = arith.constant 0 : index
    %609 = vector.load %arg1[%c3_67, %c0_68] : memref<25x512xf32, #tpu.memory_space<vmem>>, vector<1x512xf32>
    %610 = vector.broadcast %609 : vector<1x512xf32> to vector<4x512xf32>
    %611 = arith.mulf %608, %610 : vector<4x512xf32>
    %612 = vector.extract_strided_slice %543 {offsets = [0, 12], sizes = [4, 1], strides = [1, 1]} : vector<4x100xf32> to vector<4x1xf32>
    %613 = vector.broadcast %612 : vector<4x1xf32> to vector<4x512xf32>
    %614 = arith.mulf %613, %611 : vector<4x512xf32>
    %615 = arith.addf %595, %614 : vector<4x512xf32>
    %616 = vector.extract_strided_slice %543 {offsets = [0, 13], sizes = [4, 1], strides = [1, 1]} : vector<4x100xf32> to vector<4x1xf32>
    %617 = vector.broadcast %616 : vector<4x1xf32> to vector<4x512xf32>
    %618 = arith.mulf %617, %611 : vector<4x512xf32>
    %619 = arith.addf %599, %618 : vector<4x512xf32>
    %620 = vector.extract_strided_slice %543 {offsets = [0, 14], sizes = [4, 1], strides = [1, 1]} : vector<4x100xf32> to vector<4x1xf32>
    %621 = vector.broadcast %620 : vector<4x1xf32> to vector<4x512xf32>
    %622 = arith.mulf %621, %611 : vector<4x512xf32>
    %623 = arith.addf %603, %622 : vector<4x512xf32>
    %624 = vector.extract_strided_slice %543 {offsets = [0, 15], sizes = [4, 1], strides = [1, 1]} : vector<4x100xf32> to vector<4x1xf32>
    %625 = vector.broadcast %624 : vector<4x1xf32> to vector<4x512xf32>
    %626 = arith.mulf %625, %611 : vector<4x512xf32>
    %627 = arith.addf %607, %626 : vector<4x512xf32>
    %c30_i32_69 = arith.constant 30 : i32
    %628 = tpu.dynamic_rotate %540 by %c30_i32_69 dim 1 : vector<4x512xf32>, i32 -> vector<4x512xf32>
    %c4_70 = arith.constant 4 : index
    %c0_71 = arith.constant 0 : index
    %629 = vector.load %arg1[%c4_70, %c0_71] : memref<25x512xf32, #tpu.memory_space<vmem>>, vector<1x512xf32>
    %630 = vector.broadcast %629 : vector<1x512xf32> to vector<4x512xf32>
    %631 = arith.mulf %628, %630 : vector<4x512xf32>
    %632 = vector.extract_strided_slice %543 {offsets = [0, 16], sizes = [4, 1], strides = [1, 1]} : vector<4x100xf32> to vector<4x1xf32>
    %633 = vector.broadcast %632 : vector<4x1xf32> to vector<4x512xf32>
    %634 = arith.mulf %633, %631 : vector<4x512xf32>
    %635 = arith.addf %615, %634 : vector<4x512xf32>
    %636 = vector.extract_strided_slice %543 {offsets = [0, 17], sizes = [4, 1], strides = [1, 1]} : vector<4x100xf32> to vector<4x1xf32>
    %637 = vector.broadcast %636 : vector<4x1xf32> to vector<4x512xf32>
    %638 = arith.mulf %637, %631 : vector<4x512xf32>
    %639 = arith.addf %619, %638 : vector<4x512xf32>
    %640 = vector.extract_strided_slice %543 {offsets = [0, 18], sizes = [4, 1], strides = [1, 1]} : vector<4x100xf32> to vector<4x1xf32>
    %641 = vector.broadcast %640 : vector<4x1xf32> to vector<4x512xf32>
    %642 = arith.mulf %641, %631 : vector<4x512xf32>
    %643 = arith.addf %623, %642 : vector<4x512xf32>
    %644 = vector.extract_strided_slice %543 {offsets = [0, 19], sizes = [4, 1], strides = [1, 1]} : vector<4x100xf32> to vector<4x1xf32>
    %645 = vector.broadcast %644 : vector<4x1xf32> to vector<4x512xf32>
    %646 = arith.mulf %645, %631 : vector<4x512xf32>
    %647 = arith.addf %627, %646 : vector<4x512xf32>
    %c18_i32_72 = arith.constant 18 : i32
    %648 = tpu.dynamic_rotate %540 by %c18_i32_72 dim 1 : vector<4x512xf32>, i32 -> vector<4x512xf32>
    %c5_73 = arith.constant 5 : index
    %c0_74 = arith.constant 0 : index
    %649 = vector.load %arg1[%c5_73, %c0_74] : memref<25x512xf32, #tpu.memory_space<vmem>>, vector<1x512xf32>
    %650 = vector.broadcast %649 : vector<1x512xf32> to vector<4x512xf32>
    %651 = arith.mulf %648, %650 : vector<4x512xf32>
    %652 = vector.extract_strided_slice %543 {offsets = [0, 20], sizes = [4, 1], strides = [1, 1]} : vector<4x100xf32> to vector<4x1xf32>
    %653 = vector.broadcast %652 : vector<4x1xf32> to vector<4x512xf32>
    %654 = arith.mulf %653, %651 : vector<4x512xf32>
    %655 = arith.addf %635, %654 : vector<4x512xf32>
    %656 = vector.extract_strided_slice %543 {offsets = [0, 21], sizes = [4, 1], strides = [1, 1]} : vector<4x100xf32> to vector<4x1xf32>
    %657 = vector.broadcast %656 : vector<4x1xf32> to vector<4x512xf32>
    %658 = arith.mulf %657, %651 : vector<4x512xf32>
    %659 = arith.addf %639, %658 : vector<4x512xf32>
    %660 = vector.extract_strided_slice %543 {offsets = [0, 22], sizes = [4, 1], strides = [1, 1]} : vector<4x100xf32> to vector<4x1xf32>
    %661 = vector.broadcast %660 : vector<4x1xf32> to vector<4x512xf32>
    %662 = arith.mulf %661, %651 : vector<4x512xf32>
    %663 = arith.addf %643, %662 : vector<4x512xf32>
    %664 = vector.extract_strided_slice %543 {offsets = [0, 23], sizes = [4, 1], strides = [1, 1]} : vector<4x100xf32> to vector<4x1xf32>
    %665 = vector.broadcast %664 : vector<4x1xf32> to vector<4x512xf32>
    %666 = arith.mulf %665, %651 : vector<4x512xf32>
    %667 = arith.addf %647, %666 : vector<4x512xf32>
    %c17_i32_75 = arith.constant 17 : i32
    %668 = tpu.dynamic_rotate %540 by %c17_i32_75 dim 1 : vector<4x512xf32>, i32 -> vector<4x512xf32>
    %c6_76 = arith.constant 6 : index
    %c0_77 = arith.constant 0 : index
    %669 = vector.load %arg1[%c6_76, %c0_77] : memref<25x512xf32, #tpu.memory_space<vmem>>, vector<1x512xf32>
    %670 = vector.broadcast %669 : vector<1x512xf32> to vector<4x512xf32>
    %671 = arith.mulf %668, %670 : vector<4x512xf32>
    %672 = vector.extract_strided_slice %543 {offsets = [0, 24], sizes = [4, 1], strides = [1, 1]} : vector<4x100xf32> to vector<4x1xf32>
    %673 = vector.broadcast %672 : vector<4x1xf32> to vector<4x512xf32>
    %674 = arith.mulf %673, %671 : vector<4x512xf32>
    %675 = arith.addf %655, %674 : vector<4x512xf32>
    %676 = vector.extract_strided_slice %543 {offsets = [0, 25], sizes = [4, 1], strides = [1, 1]} : vector<4x100xf32> to vector<4x1xf32>
    %677 = vector.broadcast %676 : vector<4x1xf32> to vector<4x512xf32>
    %678 = arith.mulf %677, %671 : vector<4x512xf32>
    %679 = arith.addf %659, %678 : vector<4x512xf32>
    %680 = vector.extract_strided_slice %543 {offsets = [0, 26], sizes = [4, 1], strides = [1, 1]} : vector<4x100xf32> to vector<4x1xf32>
    %681 = vector.broadcast %680 : vector<4x1xf32> to vector<4x512xf32>
    %682 = arith.mulf %681, %671 : vector<4x512xf32>
    %683 = arith.addf %663, %682 : vector<4x512xf32>
    %684 = vector.extract_strided_slice %543 {offsets = [0, 27], sizes = [4, 1], strides = [1, 1]} : vector<4x100xf32> to vector<4x1xf32>
    %685 = vector.broadcast %684 : vector<4x1xf32> to vector<4x512xf32>
    %686 = arith.mulf %685, %671 : vector<4x512xf32>
    %687 = arith.addf %667, %686 : vector<4x512xf32>
    %c16_i32_78 = arith.constant 16 : i32
    %688 = tpu.dynamic_rotate %540 by %c16_i32_78 dim 1 : vector<4x512xf32>, i32 -> vector<4x512xf32>
    %c7_79 = arith.constant 7 : index
    %c0_80 = arith.constant 0 : index
    %689 = vector.load %arg1[%c7_79, %c0_80] : memref<25x512xf32, #tpu.memory_space<vmem>>, vector<1x512xf32>
    %690 = vector.broadcast %689 : vector<1x512xf32> to vector<4x512xf32>
    %691 = arith.mulf %688, %690 : vector<4x512xf32>
    %692 = vector.extract_strided_slice %543 {offsets = [0, 28], sizes = [4, 1], strides = [1, 1]} : vector<4x100xf32> to vector<4x1xf32>
    %693 = vector.broadcast %692 : vector<4x1xf32> to vector<4x512xf32>
    %694 = arith.mulf %693, %691 : vector<4x512xf32>
    %695 = arith.addf %675, %694 : vector<4x512xf32>
    %696 = vector.extract_strided_slice %543 {offsets = [0, 29], sizes = [4, 1], strides = [1, 1]} : vector<4x100xf32> to vector<4x1xf32>
    %697 = vector.broadcast %696 : vector<4x1xf32> to vector<4x512xf32>
    %698 = arith.mulf %697, %691 : vector<4x512xf32>
    %699 = arith.addf %679, %698 : vector<4x512xf32>
    %700 = vector.extract_strided_slice %543 {offsets = [0, 30], sizes = [4, 1], strides = [1, 1]} : vector<4x100xf32> to vector<4x1xf32>
    %701 = vector.broadcast %700 : vector<4x1xf32> to vector<4x512xf32>
    %702 = arith.mulf %701, %691 : vector<4x512xf32>
    %703 = arith.addf %683, %702 : vector<4x512xf32>
    %704 = vector.extract_strided_slice %543 {offsets = [0, 31], sizes = [4, 1], strides = [1, 1]} : vector<4x100xf32> to vector<4x1xf32>
    %705 = vector.broadcast %704 : vector<4x1xf32> to vector<4x512xf32>
    %706 = arith.mulf %705, %691 : vector<4x512xf32>
    %707 = arith.addf %687, %706 : vector<4x512xf32>
    %c15_i32_81 = arith.constant 15 : i32
    %708 = tpu.dynamic_rotate %540 by %c15_i32_81 dim 1 : vector<4x512xf32>, i32 -> vector<4x512xf32>
    %c8_82 = arith.constant 8 : index
    %c0_83 = arith.constant 0 : index
    %709 = vector.load %arg1[%c8_82, %c0_83] : memref<25x512xf32, #tpu.memory_space<vmem>>, vector<1x512xf32>
    %710 = vector.broadcast %709 : vector<1x512xf32> to vector<4x512xf32>
    %711 = arith.mulf %708, %710 : vector<4x512xf32>
    %712 = vector.extract_strided_slice %543 {offsets = [0, 32], sizes = [4, 1], strides = [1, 1]} : vector<4x100xf32> to vector<4x1xf32>
    %713 = vector.broadcast %712 : vector<4x1xf32> to vector<4x512xf32>
    %714 = arith.mulf %713, %711 : vector<4x512xf32>
    %715 = arith.addf %695, %714 : vector<4x512xf32>
    %716 = vector.extract_strided_slice %543 {offsets = [0, 33], sizes = [4, 1], strides = [1, 1]} : vector<4x100xf32> to vector<4x1xf32>
    %717 = vector.broadcast %716 : vector<4x1xf32> to vector<4x512xf32>
    %718 = arith.mulf %717, %711 : vector<4x512xf32>
    %719 = arith.addf %699, %718 : vector<4x512xf32>
    %720 = vector.extract_strided_slice %543 {offsets = [0, 34], sizes = [4, 1], strides = [1, 1]} : vector<4x100xf32> to vector<4x1xf32>
    %721 = vector.broadcast %720 : vector<4x1xf32> to vector<4x512xf32>
    %722 = arith.mulf %721, %711 : vector<4x512xf32>
    %723 = arith.addf %703, %722 : vector<4x512xf32>
    %724 = vector.extract_strided_slice %543 {offsets = [0, 35], sizes = [4, 1], strides = [1, 1]} : vector<4x100xf32> to vector<4x1xf32>
    %725 = vector.broadcast %724 : vector<4x1xf32> to vector<4x512xf32>
    %726 = arith.mulf %725, %711 : vector<4x512xf32>
    %727 = arith.addf %707, %726 : vector<4x512xf32>
    %c14_i32_84 = arith.constant 14 : i32
    %728 = tpu.dynamic_rotate %540 by %c14_i32_84 dim 1 : vector<4x512xf32>, i32 -> vector<4x512xf32>
    %c9_85 = arith.constant 9 : index
    %c0_86 = arith.constant 0 : index
    %729 = vector.load %arg1[%c9_85, %c0_86] : memref<25x512xf32, #tpu.memory_space<vmem>>, vector<1x512xf32>
    %730 = vector.broadcast %729 : vector<1x512xf32> to vector<4x512xf32>
    %731 = arith.mulf %728, %730 : vector<4x512xf32>
    %732 = vector.extract_strided_slice %543 {offsets = [0, 36], sizes = [4, 1], strides = [1, 1]} : vector<4x100xf32> to vector<4x1xf32>
    %733 = vector.broadcast %732 : vector<4x1xf32> to vector<4x512xf32>
    %734 = arith.mulf %733, %731 : vector<4x512xf32>
    %735 = arith.addf %715, %734 : vector<4x512xf32>
    %736 = vector.extract_strided_slice %543 {offsets = [0, 37], sizes = [4, 1], strides = [1, 1]} : vector<4x100xf32> to vector<4x1xf32>
    %737 = vector.broadcast %736 : vector<4x1xf32> to vector<4x512xf32>
    %738 = arith.mulf %737, %731 : vector<4x512xf32>
    %739 = arith.addf %719, %738 : vector<4x512xf32>
    %740 = vector.extract_strided_slice %543 {offsets = [0, 38], sizes = [4, 1], strides = [1, 1]} : vector<4x100xf32> to vector<4x1xf32>
    %741 = vector.broadcast %740 : vector<4x1xf32> to vector<4x512xf32>
    %742 = arith.mulf %741, %731 : vector<4x512xf32>
    %743 = arith.addf %723, %742 : vector<4x512xf32>
    %744 = vector.extract_strided_slice %543 {offsets = [0, 39], sizes = [4, 1], strides = [1, 1]} : vector<4x100xf32> to vector<4x1xf32>
    %745 = vector.broadcast %744 : vector<4x1xf32> to vector<4x512xf32>
    %746 = arith.mulf %745, %731 : vector<4x512xf32>
    %747 = arith.addf %727, %746 : vector<4x512xf32>
    %c2_i32_87 = arith.constant 2 : i32
    %748 = tpu.dynamic_rotate %540 by %c2_i32_87 dim 1 : vector<4x512xf32>, i32 -> vector<4x512xf32>
    %c10_88 = arith.constant 10 : index
    %c0_89 = arith.constant 0 : index
    %749 = vector.load %arg1[%c10_88, %c0_89] : memref<25x512xf32, #tpu.memory_space<vmem>>, vector<1x512xf32>
    %750 = vector.broadcast %749 : vector<1x512xf32> to vector<4x512xf32>
    %751 = arith.mulf %748, %750 : vector<4x512xf32>
    %752 = vector.extract_strided_slice %543 {offsets = [0, 40], sizes = [4, 1], strides = [1, 1]} : vector<4x100xf32> to vector<4x1xf32>
    %753 = vector.broadcast %752 : vector<4x1xf32> to vector<4x512xf32>
    %754 = arith.mulf %753, %751 : vector<4x512xf32>
    %755 = arith.addf %735, %754 : vector<4x512xf32>
    %756 = vector.extract_strided_slice %543 {offsets = [0, 41], sizes = [4, 1], strides = [1, 1]} : vector<4x100xf32> to vector<4x1xf32>
    %757 = vector.broadcast %756 : vector<4x1xf32> to vector<4x512xf32>
    %758 = arith.mulf %757, %751 : vector<4x512xf32>
    %759 = arith.addf %739, %758 : vector<4x512xf32>
    %760 = vector.extract_strided_slice %543 {offsets = [0, 42], sizes = [4, 1], strides = [1, 1]} : vector<4x100xf32> to vector<4x1xf32>
    %761 = vector.broadcast %760 : vector<4x1xf32> to vector<4x512xf32>
    %762 = arith.mulf %761, %751 : vector<4x512xf32>
    %763 = arith.addf %743, %762 : vector<4x512xf32>
    %764 = vector.extract_strided_slice %543 {offsets = [0, 43], sizes = [4, 1], strides = [1, 1]} : vector<4x100xf32> to vector<4x1xf32>
    %765 = vector.broadcast %764 : vector<4x1xf32> to vector<4x512xf32>
    %766 = arith.mulf %765, %751 : vector<4x512xf32>
    %767 = arith.addf %747, %766 : vector<4x512xf32>
    %c1_i32_90 = arith.constant 1 : i32
    %768 = tpu.dynamic_rotate %540 by %c1_i32_90 dim 1 : vector<4x512xf32>, i32 -> vector<4x512xf32>
    %c11_91 = arith.constant 11 : index
    %c0_92 = arith.constant 0 : index
    %769 = vector.load %arg1[%c11_91, %c0_92] : memref<25x512xf32, #tpu.memory_space<vmem>>, vector<1x512xf32>
    %770 = vector.broadcast %769 : vector<1x512xf32> to vector<4x512xf32>
    %771 = arith.mulf %768, %770 : vector<4x512xf32>
    %772 = vector.extract_strided_slice %543 {offsets = [0, 44], sizes = [4, 1], strides = [1, 1]} : vector<4x100xf32> to vector<4x1xf32>
    %773 = vector.broadcast %772 : vector<4x1xf32> to vector<4x512xf32>
    %774 = arith.mulf %773, %771 : vector<4x512xf32>
    %775 = arith.addf %755, %774 : vector<4x512xf32>
    %776 = vector.extract_strided_slice %543 {offsets = [0, 45], sizes = [4, 1], strides = [1, 1]} : vector<4x100xf32> to vector<4x1xf32>
    %777 = vector.broadcast %776 : vector<4x1xf32> to vector<4x512xf32>
    %778 = arith.mulf %777, %771 : vector<4x512xf32>
    %779 = arith.addf %759, %778 : vector<4x512xf32>
    %780 = vector.extract_strided_slice %543 {offsets = [0, 46], sizes = [4, 1], strides = [1, 1]} : vector<4x100xf32> to vector<4x1xf32>
    %781 = vector.broadcast %780 : vector<4x1xf32> to vector<4x512xf32>
    %782 = arith.mulf %781, %771 : vector<4x512xf32>
    %783 = arith.addf %763, %782 : vector<4x512xf32>
    %784 = vector.extract_strided_slice %543 {offsets = [0, 47], sizes = [4, 1], strides = [1, 1]} : vector<4x100xf32> to vector<4x1xf32>
    %785 = vector.broadcast %784 : vector<4x1xf32> to vector<4x512xf32>
    %786 = arith.mulf %785, %771 : vector<4x512xf32>
    %787 = arith.addf %767, %786 : vector<4x512xf32>
    %c12_93 = arith.constant 12 : index
    %c0_94 = arith.constant 0 : index
    %788 = vector.load %arg1[%c12_93, %c0_94] : memref<25x512xf32, #tpu.memory_space<vmem>>, vector<1x512xf32>
    %789 = vector.broadcast %788 : vector<1x512xf32> to vector<4x512xf32>
    %790 = arith.mulf %540, %789 : vector<4x512xf32>
    %791 = vector.extract_strided_slice %543 {offsets = [0, 48], sizes = [4, 1], strides = [1, 1]} : vector<4x100xf32> to vector<4x1xf32>
    %792 = vector.broadcast %791 : vector<4x1xf32> to vector<4x512xf32>
    %793 = arith.mulf %792, %790 : vector<4x512xf32>
    %794 = arith.addf %775, %793 : vector<4x512xf32>
    %795 = vector.extract_strided_slice %543 {offsets = [0, 49], sizes = [4, 1], strides = [1, 1]} : vector<4x100xf32> to vector<4x1xf32>
    %796 = vector.broadcast %795 : vector<4x1xf32> to vector<4x512xf32>
    %797 = arith.mulf %796, %790 : vector<4x512xf32>
    %798 = arith.addf %779, %797 : vector<4x512xf32>
    %799 = vector.extract_strided_slice %543 {offsets = [0, 50], sizes = [4, 1], strides = [1, 1]} : vector<4x100xf32> to vector<4x1xf32>
    %800 = vector.broadcast %799 : vector<4x1xf32> to vector<4x512xf32>
    %801 = arith.mulf %800, %790 : vector<4x512xf32>
    %802 = arith.addf %783, %801 : vector<4x512xf32>
    %803 = vector.extract_strided_slice %543 {offsets = [0, 51], sizes = [4, 1], strides = [1, 1]} : vector<4x100xf32> to vector<4x1xf32>
    %804 = vector.broadcast %803 : vector<4x1xf32> to vector<4x512xf32>
    %805 = arith.mulf %804, %790 : vector<4x512xf32>
    %806 = arith.addf %787, %805 : vector<4x512xf32>
    %c511_i32_95 = arith.constant 511 : i32
    %807 = tpu.dynamic_rotate %540 by %c511_i32_95 dim 1 : vector<4x512xf32>, i32 -> vector<4x512xf32>
    %c13_96 = arith.constant 13 : index
    %c0_97 = arith.constant 0 : index
    %808 = vector.load %arg1[%c13_96, %c0_97] : memref<25x512xf32, #tpu.memory_space<vmem>>, vector<1x512xf32>
    %809 = vector.broadcast %808 : vector<1x512xf32> to vector<4x512xf32>
    %810 = arith.mulf %807, %809 : vector<4x512xf32>
    %811 = vector.extract_strided_slice %543 {offsets = [0, 52], sizes = [4, 1], strides = [1, 1]} : vector<4x100xf32> to vector<4x1xf32>
    %812 = vector.broadcast %811 : vector<4x1xf32> to vector<4x512xf32>
    %813 = arith.mulf %812, %810 : vector<4x512xf32>
    %814 = arith.addf %794, %813 : vector<4x512xf32>
    %815 = vector.extract_strided_slice %543 {offsets = [0, 53], sizes = [4, 1], strides = [1, 1]} : vector<4x100xf32> to vector<4x1xf32>
    %816 = vector.broadcast %815 : vector<4x1xf32> to vector<4x512xf32>
    %817 = arith.mulf %816, %810 : vector<4x512xf32>
    %818 = arith.addf %798, %817 : vector<4x512xf32>
    %819 = vector.extract_strided_slice %543 {offsets = [0, 54], sizes = [4, 1], strides = [1, 1]} : vector<4x100xf32> to vector<4x1xf32>
    %820 = vector.broadcast %819 : vector<4x1xf32> to vector<4x512xf32>
    %821 = arith.mulf %820, %810 : vector<4x512xf32>
    %822 = arith.addf %802, %821 : vector<4x512xf32>
    %823 = vector.extract_strided_slice %543 {offsets = [0, 55], sizes = [4, 1], strides = [1, 1]} : vector<4x100xf32> to vector<4x1xf32>
    %824 = vector.broadcast %823 : vector<4x1xf32> to vector<4x512xf32>
    %825 = arith.mulf %824, %810 : vector<4x512xf32>
    %826 = arith.addf %806, %825 : vector<4x512xf32>
    %c510_i32_98 = arith.constant 510 : i32
    %827 = tpu.dynamic_rotate %540 by %c510_i32_98 dim 1 : vector<4x512xf32>, i32 -> vector<4x512xf32>
    %c14_99 = arith.constant 14 : index
    %c0_100 = arith.constant 0 : index
    %828 = vector.load %arg1[%c14_99, %c0_100] : memref<25x512xf32, #tpu.memory_space<vmem>>, vector<1x512xf32>
    %829 = vector.broadcast %828 : vector<1x512xf32> to vector<4x512xf32>
    %830 = arith.mulf %827, %829 : vector<4x512xf32>
    %831 = vector.extract_strided_slice %543 {offsets = [0, 56], sizes = [4, 1], strides = [1, 1]} : vector<4x100xf32> to vector<4x1xf32>
    %832 = vector.broadcast %831 : vector<4x1xf32> to vector<4x512xf32>
    %833 = arith.mulf %832, %830 : vector<4x512xf32>
    %834 = arith.addf %814, %833 : vector<4x512xf32>
    %835 = vector.extract_strided_slice %543 {offsets = [0, 57], sizes = [4, 1], strides = [1, 1]} : vector<4x100xf32> to vector<4x1xf32>
    %836 = vector.broadcast %835 : vector<4x1xf32> to vector<4x512xf32>
    %837 = arith.mulf %836, %830 : vector<4x512xf32>
    %838 = arith.addf %818, %837 : vector<4x512xf32>
    %839 = vector.extract_strided_slice %543 {offsets = [0, 58], sizes = [4, 1], strides = [1, 1]} : vector<4x100xf32> to vector<4x1xf32>
    %840 = vector.broadcast %839 : vector<4x1xf32> to vector<4x512xf32>
    %841 = arith.mulf %840, %830 : vector<4x512xf32>
    %842 = arith.addf %822, %841 : vector<4x512xf32>
    %843 = vector.extract_strided_slice %543 {offsets = [0, 59], sizes = [4, 1], strides = [1, 1]} : vector<4x100xf32> to vector<4x1xf32>
    %844 = vector.broadcast %843 : vector<4x1xf32> to vector<4x512xf32>
    %845 = arith.mulf %844, %830 : vector<4x512xf32>
    %846 = arith.addf %826, %845 : vector<4x512xf32>
    %c498_i32_101 = arith.constant 498 : i32
    %847 = tpu.dynamic_rotate %540 by %c498_i32_101 dim 1 : vector<4x512xf32>, i32 -> vector<4x512xf32>
    %c15_102 = arith.constant 15 : index
    %c0_103 = arith.constant 0 : index
    %848 = vector.load %arg1[%c15_102, %c0_103] : memref<25x512xf32, #tpu.memory_space<vmem>>, vector<1x512xf32>
    %849 = vector.broadcast %848 : vector<1x512xf32> to vector<4x512xf32>
    %850 = arith.mulf %847, %849 : vector<4x512xf32>
    %851 = vector.extract_strided_slice %543 {offsets = [0, 60], sizes = [4, 1], strides = [1, 1]} : vector<4x100xf32> to vector<4x1xf32>
    %852 = vector.broadcast %851 : vector<4x1xf32> to vector<4x512xf32>
    %853 = arith.mulf %852, %850 : vector<4x512xf32>
    %854 = arith.addf %834, %853 : vector<4x512xf32>
    %855 = vector.extract_strided_slice %543 {offsets = [0, 61], sizes = [4, 1], strides = [1, 1]} : vector<4x100xf32> to vector<4x1xf32>
    %856 = vector.broadcast %855 : vector<4x1xf32> to vector<4x512xf32>
    %857 = arith.mulf %856, %850 : vector<4x512xf32>
    %858 = arith.addf %838, %857 : vector<4x512xf32>
    %859 = vector.extract_strided_slice %543 {offsets = [0, 62], sizes = [4, 1], strides = [1, 1]} : vector<4x100xf32> to vector<4x1xf32>
    %860 = vector.broadcast %859 : vector<4x1xf32> to vector<4x512xf32>
    %861 = arith.mulf %860, %850 : vector<4x512xf32>
    %862 = arith.addf %842, %861 : vector<4x512xf32>
    %863 = vector.extract_strided_slice %543 {offsets = [0, 63], sizes = [4, 1], strides = [1, 1]} : vector<4x100xf32> to vector<4x1xf32>
    %864 = vector.broadcast %863 : vector<4x1xf32> to vector<4x512xf32>
    %865 = arith.mulf %864, %850 : vector<4x512xf32>
    %866 = arith.addf %846, %865 : vector<4x512xf32>
    %c497_i32_104 = arith.constant 497 : i32
    %867 = tpu.dynamic_rotate %540 by %c497_i32_104 dim 1 : vector<4x512xf32>, i32 -> vector<4x512xf32>
    %c16_105 = arith.constant 16 : index
    %c0_106 = arith.constant 0 : index
    %868 = vector.load %arg1[%c16_105, %c0_106] : memref<25x512xf32, #tpu.memory_space<vmem>>, vector<1x512xf32>
    %869 = vector.broadcast %868 : vector<1x512xf32> to vector<4x512xf32>
    %870 = arith.mulf %867, %869 : vector<4x512xf32>
    %871 = vector.extract_strided_slice %543 {offsets = [0, 64], sizes = [4, 1], strides = [1, 1]} : vector<4x100xf32> to vector<4x1xf32>
    %872 = vector.broadcast %871 : vector<4x1xf32> to vector<4x512xf32>
    %873 = arith.mulf %872, %870 : vector<4x512xf32>
    %874 = arith.addf %854, %873 : vector<4x512xf32>
    %875 = vector.extract_strided_slice %543 {offsets = [0, 65], sizes = [4, 1], strides = [1, 1]} : vector<4x100xf32> to vector<4x1xf32>
    %876 = vector.broadcast %875 : vector<4x1xf32> to vector<4x512xf32>
    %877 = arith.mulf %876, %870 : vector<4x512xf32>
    %878 = arith.addf %858, %877 : vector<4x512xf32>
    %879 = vector.extract_strided_slice %543 {offsets = [0, 66], sizes = [4, 1], strides = [1, 1]} : vector<4x100xf32> to vector<4x1xf32>
    %880 = vector.broadcast %879 : vector<4x1xf32> to vector<4x512xf32>
    %881 = arith.mulf %880, %870 : vector<4x512xf32>
    %882 = arith.addf %862, %881 : vector<4x512xf32>
    %883 = vector.extract_strided_slice %543 {offsets = [0, 67], sizes = [4, 1], strides = [1, 1]} : vector<4x100xf32> to vector<4x1xf32>
    %884 = vector.broadcast %883 : vector<4x1xf32> to vector<4x512xf32>
    %885 = arith.mulf %884, %870 : vector<4x512xf32>
    %886 = arith.addf %866, %885 : vector<4x512xf32>
    %c496_i32_107 = arith.constant 496 : i32
    %887 = tpu.dynamic_rotate %540 by %c496_i32_107 dim 1 : vector<4x512xf32>, i32 -> vector<4x512xf32>
    %c17_108 = arith.constant 17 : index
    %c0_109 = arith.constant 0 : index
    %888 = vector.load %arg1[%c17_108, %c0_109] : memref<25x512xf32, #tpu.memory_space<vmem>>, vector<1x512xf32>
    %889 = vector.broadcast %888 : vector<1x512xf32> to vector<4x512xf32>
    %890 = arith.mulf %887, %889 : vector<4x512xf32>
    %891 = vector.extract_strided_slice %543 {offsets = [0, 68], sizes = [4, 1], strides = [1, 1]} : vector<4x100xf32> to vector<4x1xf32>
    %892 = vector.broadcast %891 : vector<4x1xf32> to vector<4x512xf32>
    %893 = arith.mulf %892, %890 : vector<4x512xf32>
    %894 = arith.addf %874, %893 : vector<4x512xf32>
    %895 = vector.extract_strided_slice %543 {offsets = [0, 69], sizes = [4, 1], strides = [1, 1]} : vector<4x100xf32> to vector<4x1xf32>
    %896 = vector.broadcast %895 : vector<4x1xf32> to vector<4x512xf32>
    %897 = arith.mulf %896, %890 : vector<4x512xf32>
    %898 = arith.addf %878, %897 : vector<4x512xf32>
    %899 = vector.extract_strided_slice %543 {offsets = [0, 70], sizes = [4, 1], strides = [1, 1]} : vector<4x100xf32> to vector<4x1xf32>
    %900 = vector.broadcast %899 : vector<4x1xf32> to vector<4x512xf32>
    %901 = arith.mulf %900, %890 : vector<4x512xf32>
    %902 = arith.addf %882, %901 : vector<4x512xf32>
    %903 = vector.extract_strided_slice %543 {offsets = [0, 71], sizes = [4, 1], strides = [1, 1]} : vector<4x100xf32> to vector<4x1xf32>
    %904 = vector.broadcast %903 : vector<4x1xf32> to vector<4x512xf32>
    %905 = arith.mulf %904, %890 : vector<4x512xf32>
    %906 = arith.addf %886, %905 : vector<4x512xf32>
    %c495_i32_110 = arith.constant 495 : i32
    %907 = tpu.dynamic_rotate %540 by %c495_i32_110 dim 1 : vector<4x512xf32>, i32 -> vector<4x512xf32>
    %c18_111 = arith.constant 18 : index
    %c0_112 = arith.constant 0 : index
    %908 = vector.load %arg1[%c18_111, %c0_112] : memref<25x512xf32, #tpu.memory_space<vmem>>, vector<1x512xf32>
    %909 = vector.broadcast %908 : vector<1x512xf32> to vector<4x512xf32>
    %910 = arith.mulf %907, %909 : vector<4x512xf32>
    %911 = vector.extract_strided_slice %543 {offsets = [0, 72], sizes = [4, 1], strides = [1, 1]} : vector<4x100xf32> to vector<4x1xf32>
    %912 = vector.broadcast %911 : vector<4x1xf32> to vector<4x512xf32>
    %913 = arith.mulf %912, %910 : vector<4x512xf32>
    %914 = arith.addf %894, %913 : vector<4x512xf32>
    %915 = vector.extract_strided_slice %543 {offsets = [0, 73], sizes = [4, 1], strides = [1, 1]} : vector<4x100xf32> to vector<4x1xf32>
    %916 = vector.broadcast %915 : vector<4x1xf32> to vector<4x512xf32>
    %917 = arith.mulf %916, %910 : vector<4x512xf32>
    %918 = arith.addf %898, %917 : vector<4x512xf32>
    %919 = vector.extract_strided_slice %543 {offsets = [0, 74], sizes = [4, 1], strides = [1, 1]} : vector<4x100xf32> to vector<4x1xf32>
    %920 = vector.broadcast %919 : vector<4x1xf32> to vector<4x512xf32>
    %921 = arith.mulf %920, %910 : vector<4x512xf32>
    %922 = arith.addf %902, %921 : vector<4x512xf32>
    %923 = vector.extract_strided_slice %543 {offsets = [0, 75], sizes = [4, 1], strides = [1, 1]} : vector<4x100xf32> to vector<4x1xf32>
    %924 = vector.broadcast %923 : vector<4x1xf32> to vector<4x512xf32>
    %925 = arith.mulf %924, %910 : vector<4x512xf32>
    %926 = arith.addf %906, %925 : vector<4x512xf32>
    %c494_i32_113 = arith.constant 494 : i32
    %927 = tpu.dynamic_rotate %540 by %c494_i32_113 dim 1 : vector<4x512xf32>, i32 -> vector<4x512xf32>
    %c19_114 = arith.constant 19 : index
    %c0_115 = arith.constant 0 : index
    %928 = vector.load %arg1[%c19_114, %c0_115] : memref<25x512xf32, #tpu.memory_space<vmem>>, vector<1x512xf32>
    %929 = vector.broadcast %928 : vector<1x512xf32> to vector<4x512xf32>
    %930 = arith.mulf %927, %929 : vector<4x512xf32>
    %931 = vector.extract_strided_slice %543 {offsets = [0, 76], sizes = [4, 1], strides = [1, 1]} : vector<4x100xf32> to vector<4x1xf32>
    %932 = vector.broadcast %931 : vector<4x1xf32> to vector<4x512xf32>
    %933 = arith.mulf %932, %930 : vector<4x512xf32>
    %934 = arith.addf %914, %933 : vector<4x512xf32>
    %935 = vector.extract_strided_slice %543 {offsets = [0, 77], sizes = [4, 1], strides = [1, 1]} : vector<4x100xf32> to vector<4x1xf32>
    %936 = vector.broadcast %935 : vector<4x1xf32> to vector<4x512xf32>
    %937 = arith.mulf %936, %930 : vector<4x512xf32>
    %938 = arith.addf %918, %937 : vector<4x512xf32>
    %939 = vector.extract_strided_slice %543 {offsets = [0, 78], sizes = [4, 1], strides = [1, 1]} : vector<4x100xf32> to vector<4x1xf32>
    %940 = vector.broadcast %939 : vector<4x1xf32> to vector<4x512xf32>
    %941 = arith.mulf %940, %930 : vector<4x512xf32>
    %942 = arith.addf %922, %941 : vector<4x512xf32>
    %943 = vector.extract_strided_slice %543 {offsets = [0, 79], sizes = [4, 1], strides = [1, 1]} : vector<4x100xf32> to vector<4x1xf32>
    %944 = vector.broadcast %943 : vector<4x1xf32> to vector<4x512xf32>
    %945 = arith.mulf %944, %930 : vector<4x512xf32>
    %946 = arith.addf %926, %945 : vector<4x512xf32>
    %c482_i32_116 = arith.constant 482 : i32
    %947 = tpu.dynamic_rotate %540 by %c482_i32_116 dim 1 : vector<4x512xf32>, i32 -> vector<4x512xf32>
    %c20_117 = arith.constant 20 : index
    %c0_118 = arith.constant 0 : index
    %948 = vector.load %arg1[%c20_117, %c0_118] : memref<25x512xf32, #tpu.memory_space<vmem>>, vector<1x512xf32>
    %949 = vector.broadcast %948 : vector<1x512xf32> to vector<4x512xf32>
    %950 = arith.mulf %947, %949 : vector<4x512xf32>
    %951 = vector.extract_strided_slice %543 {offsets = [0, 80], sizes = [4, 1], strides = [1, 1]} : vector<4x100xf32> to vector<4x1xf32>
    %952 = vector.broadcast %951 : vector<4x1xf32> to vector<4x512xf32>
    %953 = arith.mulf %952, %950 : vector<4x512xf32>
    %954 = arith.addf %934, %953 : vector<4x512xf32>
    %955 = vector.extract_strided_slice %543 {offsets = [0, 81], sizes = [4, 1], strides = [1, 1]} : vector<4x100xf32> to vector<4x1xf32>
    %956 = vector.broadcast %955 : vector<4x1xf32> to vector<4x512xf32>
    %957 = arith.mulf %956, %950 : vector<4x512xf32>
    %958 = arith.addf %938, %957 : vector<4x512xf32>
    %959 = vector.extract_strided_slice %543 {offsets = [0, 82], sizes = [4, 1], strides = [1, 1]} : vector<4x100xf32> to vector<4x1xf32>
    %960 = vector.broadcast %959 : vector<4x1xf32> to vector<4x512xf32>
    %961 = arith.mulf %960, %950 : vector<4x512xf32>
    %962 = arith.addf %942, %961 : vector<4x512xf32>
    %963 = vector.extract_strided_slice %543 {offsets = [0, 83], sizes = [4, 1], strides = [1, 1]} : vector<4x100xf32> to vector<4x1xf32>
    %964 = vector.broadcast %963 : vector<4x1xf32> to vector<4x512xf32>
    %965 = arith.mulf %964, %950 : vector<4x512xf32>
    %966 = arith.addf %946, %965 : vector<4x512xf32>
    %c481_i32_119 = arith.constant 481 : i32
    %967 = tpu.dynamic_rotate %540 by %c481_i32_119 dim 1 : vector<4x512xf32>, i32 -> vector<4x512xf32>
    %c21_120 = arith.constant 21 : index
    %c0_121 = arith.constant 0 : index
    %968 = vector.load %arg1[%c21_120, %c0_121] : memref<25x512xf32, #tpu.memory_space<vmem>>, vector<1x512xf32>
    %969 = vector.broadcast %968 : vector<1x512xf32> to vector<4x512xf32>
    %970 = arith.mulf %967, %969 : vector<4x512xf32>
    %971 = vector.extract_strided_slice %543 {offsets = [0, 84], sizes = [4, 1], strides = [1, 1]} : vector<4x100xf32> to vector<4x1xf32>
    %972 = vector.broadcast %971 : vector<4x1xf32> to vector<4x512xf32>
    %973 = arith.mulf %972, %970 : vector<4x512xf32>
    %974 = arith.addf %954, %973 : vector<4x512xf32>
    %975 = vector.extract_strided_slice %543 {offsets = [0, 85], sizes = [4, 1], strides = [1, 1]} : vector<4x100xf32> to vector<4x1xf32>
    %976 = vector.broadcast %975 : vector<4x1xf32> to vector<4x512xf32>
    %977 = arith.mulf %976, %970 : vector<4x512xf32>
    %978 = arith.addf %958, %977 : vector<4x512xf32>
    %979 = vector.extract_strided_slice %543 {offsets = [0, 86], sizes = [4, 1], strides = [1, 1]} : vector<4x100xf32> to vector<4x1xf32>
    %980 = vector.broadcast %979 : vector<4x1xf32> to vector<4x512xf32>
    %981 = arith.mulf %980, %970 : vector<4x512xf32>
    %982 = arith.addf %962, %981 : vector<4x512xf32>
    %983 = vector.extract_strided_slice %543 {offsets = [0, 87], sizes = [4, 1], strides = [1, 1]} : vector<4x100xf32> to vector<4x1xf32>
    %984 = vector.broadcast %983 : vector<4x1xf32> to vector<4x512xf32>
    %985 = arith.mulf %984, %970 : vector<4x512xf32>
    %986 = arith.addf %966, %985 : vector<4x512xf32>
    %c480_i32_122 = arith.constant 480 : i32
    %987 = tpu.dynamic_rotate %540 by %c480_i32_122 dim 1 : vector<4x512xf32>, i32 -> vector<4x512xf32>
    %c22_123 = arith.constant 22 : index
    %c0_124 = arith.constant 0 : index
    %988 = vector.load %arg1[%c22_123, %c0_124] : memref<25x512xf32, #tpu.memory_space<vmem>>, vector<1x512xf32>
    %989 = vector.broadcast %988 : vector<1x512xf32> to vector<4x512xf32>
    %990 = arith.mulf %987, %989 : vector<4x512xf32>
    %991 = vector.extract_strided_slice %543 {offsets = [0, 88], sizes = [4, 1], strides = [1, 1]} : vector<4x100xf32> to vector<4x1xf32>
    %992 = vector.broadcast %991 : vector<4x1xf32> to vector<4x512xf32>
    %993 = arith.mulf %992, %990 : vector<4x512xf32>
    %994 = arith.addf %974, %993 : vector<4x512xf32>
    %995 = vector.extract_strided_slice %543 {offsets = [0, 89], sizes = [4, 1], strides = [1, 1]} : vector<4x100xf32> to vector<4x1xf32>
    %996 = vector.broadcast %995 : vector<4x1xf32> to vector<4x512xf32>
    %997 = arith.mulf %996, %990 : vector<4x512xf32>
    %998 = arith.addf %978, %997 : vector<4x512xf32>
    %999 = vector.extract_strided_slice %543 {offsets = [0, 90], sizes = [4, 1], strides = [1, 1]} : vector<4x100xf32> to vector<4x1xf32>
    %1000 = vector.broadcast %999 : vector<4x1xf32> to vector<4x512xf32>
    %1001 = arith.mulf %1000, %990 : vector<4x512xf32>
    %1002 = arith.addf %982, %1001 : vector<4x512xf32>
    %1003 = vector.extract_strided_slice %543 {offsets = [0, 91], sizes = [4, 1], strides = [1, 1]} : vector<4x100xf32> to vector<4x1xf32>
    %1004 = vector.broadcast %1003 : vector<4x1xf32> to vector<4x512xf32>
    %1005 = arith.mulf %1004, %990 : vector<4x512xf32>
    %1006 = arith.addf %986, %1005 : vector<4x512xf32>
    %c479_i32_125 = arith.constant 479 : i32
    %1007 = tpu.dynamic_rotate %540 by %c479_i32_125 dim 1 : vector<4x512xf32>, i32 -> vector<4x512xf32>
    %c23_126 = arith.constant 23 : index
    %c0_127 = arith.constant 0 : index
    %1008 = vector.load %arg1[%c23_126, %c0_127] : memref<25x512xf32, #tpu.memory_space<vmem>>, vector<1x512xf32>
    %1009 = vector.broadcast %1008 : vector<1x512xf32> to vector<4x512xf32>
    %1010 = arith.mulf %1007, %1009 : vector<4x512xf32>
    %1011 = vector.extract_strided_slice %543 {offsets = [0, 92], sizes = [4, 1], strides = [1, 1]} : vector<4x100xf32> to vector<4x1xf32>
    %1012 = vector.broadcast %1011 : vector<4x1xf32> to vector<4x512xf32>
    %1013 = arith.mulf %1012, %1010 : vector<4x512xf32>
    %1014 = arith.addf %994, %1013 : vector<4x512xf32>
    %1015 = vector.extract_strided_slice %543 {offsets = [0, 93], sizes = [4, 1], strides = [1, 1]} : vector<4x100xf32> to vector<4x1xf32>
    %1016 = vector.broadcast %1015 : vector<4x1xf32> to vector<4x512xf32>
    %1017 = arith.mulf %1016, %1010 : vector<4x512xf32>
    %1018 = arith.addf %998, %1017 : vector<4x512xf32>
    %1019 = vector.extract_strided_slice %543 {offsets = [0, 94], sizes = [4, 1], strides = [1, 1]} : vector<4x100xf32> to vector<4x1xf32>
    %1020 = vector.broadcast %1019 : vector<4x1xf32> to vector<4x512xf32>
    %1021 = arith.mulf %1020, %1010 : vector<4x512xf32>
    %1022 = arith.addf %1002, %1021 : vector<4x512xf32>
    %1023 = vector.extract_strided_slice %543 {offsets = [0, 95], sizes = [4, 1], strides = [1, 1]} : vector<4x100xf32> to vector<4x1xf32>
    %1024 = vector.broadcast %1023 : vector<4x1xf32> to vector<4x512xf32>
    %1025 = arith.mulf %1024, %1010 : vector<4x512xf32>
    %1026 = arith.addf %1006, %1025 : vector<4x512xf32>
    %c478_i32_128 = arith.constant 478 : i32
    %1027 = tpu.dynamic_rotate %540 by %c478_i32_128 dim 1 : vector<4x512xf32>, i32 -> vector<4x512xf32>
    %c24_129 = arith.constant 24 : index
    %c0_130 = arith.constant 0 : index
    %1028 = vector.load %arg1[%c24_129, %c0_130] : memref<25x512xf32, #tpu.memory_space<vmem>>, vector<1x512xf32>
    %1029 = vector.broadcast %1028 : vector<1x512xf32> to vector<4x512xf32>
    %1030 = arith.mulf %1027, %1029 : vector<4x512xf32>
    %1031 = vector.extract_strided_slice %543 {offsets = [0, 96], sizes = [4, 1], strides = [1, 1]} : vector<4x100xf32> to vector<4x1xf32>
    %1032 = vector.broadcast %1031 : vector<4x1xf32> to vector<4x512xf32>
    %1033 = arith.mulf %1032, %1030 : vector<4x512xf32>
    %1034 = arith.addf %1014, %1033 : vector<4x512xf32>
    %1035 = vector.extract_strided_slice %543 {offsets = [0, 97], sizes = [4, 1], strides = [1, 1]} : vector<4x100xf32> to vector<4x1xf32>
    %1036 = vector.broadcast %1035 : vector<4x1xf32> to vector<4x512xf32>
    %1037 = arith.mulf %1036, %1030 : vector<4x512xf32>
    %1038 = arith.addf %1018, %1037 : vector<4x512xf32>
    %1039 = vector.extract_strided_slice %543 {offsets = [0, 98], sizes = [4, 1], strides = [1, 1]} : vector<4x100xf32> to vector<4x1xf32>
    %1040 = vector.broadcast %1039 : vector<4x1xf32> to vector<4x512xf32>
    %1041 = arith.mulf %1040, %1030 : vector<4x512xf32>
    %1042 = arith.addf %1022, %1041 : vector<4x512xf32>
    %1043 = vector.extract_strided_slice %543 {offsets = [0, 99], sizes = [4, 1], strides = [1, 1]} : vector<4x100xf32> to vector<4x1xf32>
    %1044 = vector.broadcast %1043 : vector<4x1xf32> to vector<4x512xf32>
    %1045 = arith.mulf %1044, %1030 : vector<4x512xf32>
    %1046 = arith.addf %1026, %1045 : vector<4x512xf32>
    %cst_131 = arith.constant dense<0.000000e+00> : vector<512xf32>
    %1047 = vector.multi_reduction <add>, %1034, %cst_131 [0] : vector<4x512xf32> to vector<512xf32>
    %1048 = vector.shape_cast %1047 : vector<512xf32> to vector<1x512xf32>
    %cst_132 = arith.constant dense<0.000000e+00> : vector<512xf32>
    %1049 = vector.multi_reduction <add>, %1038, %cst_132 [0] : vector<4x512xf32> to vector<512xf32>
    %1050 = vector.shape_cast %1049 : vector<512xf32> to vector<1x512xf32>
    %cst_133 = arith.constant dense<0.000000e+00> : vector<512xf32>
    %1051 = vector.multi_reduction <add>, %1042, %cst_133 [0] : vector<4x512xf32> to vector<512xf32>
    %1052 = vector.shape_cast %1051 : vector<512xf32> to vector<1x512xf32>
    %cst_134 = arith.constant dense<0.000000e+00> : vector<512xf32>
    %1053 = vector.multi_reduction <add>, %1046, %cst_134 [0] : vector<4x512xf32> to vector<512xf32>
    %1054 = vector.shape_cast %1053 : vector<512xf32> to vector<1x512xf32>
    %1055 = tpu.concatenate %1048, %1050, %1052, %1054 in 0 : vector<1x512xf32>, vector<1x512xf32>, vector<1x512xf32>, vector<1x512xf32> -> vector<4x512xf32>
    %cst_135 = arith.constant dense<0.000000e+00> : vector<4xf32>
    %1056 = vector.multi_reduction <add>, %1055, %cst_135 [1] : vector<4x512xf32> to vector<4xf32>
    %1057 = vector.shape_cast %1056 : vector<4xf32> to vector<4x1xf32>
    %1058 = arith.mulf %1055, %1055 : vector<4x512xf32>
    %cst_136 = arith.constant dense<0.000000e+00> : vector<4xf32>
    %1059 = vector.multi_reduction <add>, %1058, %cst_136 [1] : vector<4x512xf32> to vector<4xf32>
    %1060 = vector.shape_cast %1059 : vector<4xf32> to vector<4x1xf32>
    %cst_137 = arith.constant 0.001953125 : f32
    %1061 = vector.broadcast %cst_137 : f32 to vector<4x1xf32>
    %1062 = arith.mulf %1057, %1061 : vector<4x1xf32>
    %cst_138 = arith.constant 0.001953125 : f32
    %1063 = vector.broadcast %cst_138 : f32 to vector<4x1xf32>
    %1064 = arith.mulf %1060, %1063 : vector<4x1xf32>
    %1065 = arith.mulf %1062, %1062 : vector<4x1xf32>
    %1066 = arith.subf %1064, %1065 : vector<4x1xf32>
    %cst_139 = arith.constant 0.000000e+00 : f32
    %1067 = vector.broadcast %cst_139 : f32 to vector<4x1xf32>
    %1068 = arith.maximumf %1066, %1067 : vector<4x1xf32>
    %cst_140 = arith.constant 9.99999974E-6 : f32
    %1069 = vector.broadcast %cst_140 : f32 to vector<4x1xf32>
    %1070 = arith.addf %1068, %1069 : vector<4x1xf32>
    %1071 = math.rsqrt %1070 : vector<4x1xf32>
    %1072 = arith.mulf %541, %1071 : vector<4x1xf32>
    %1073 = arith.mulf %1062, %1072 : vector<4x1xf32>
    %1074 = arith.subf %542, %1073 : vector<4x1xf32>
    %1075 = vector.broadcast %1072 : vector<4x1xf32> to vector<4x512xf32>
    %1076 = arith.mulf %1055, %1075 : vector<4x512xf32>
    %1077 = vector.broadcast %1074 : vector<4x1xf32> to vector<4x512xf32>
    %1078 = arith.addf %1076, %1077 : vector<4x512xf32>
    %cst_141 = arith.constant 0.000000e+00 : f32
    %1079 = vector.broadcast %cst_141 : f32 to vector<4x512xf32>
    %1080 = arith.maximumf %1078, %1079 : vector<4x512xf32>
    %1081 = arith.addf %1080, %0 : vector<4x512xf32>
    %c0_142 = arith.constant 0 : index
    %c0_143 = arith.constant 0 : index
    %1082 = vector.load %arg8[%c0_142, %c0_143] : memref<4x512xf32, #tpu.memory_space<vmem>>, vector<4x512xf32>
    tpu.vector_store %arg8[%c0_142, %c0_143], %1081 {strides = array<i32>} : memref<4x512xf32, #tpu.memory_space<vmem>>, vector<4x512xf32>,
    return
  }
}

</mosaic_0001>

<bundles_post_ra>
// kernel: resblock_forward.1
= control target key start
LH: loop header
LB: loop body
LE: loop exit
PB: predicated region body
PF: predicated region fallthrough
CT: control target
= control target key end

     0   :  { %v9314_v2 = vmov 3   ;;  %v9320_v3 = vmov 1   ;;  %s4574_s9 = smov 34   ;;  %v9316_v7 = vmov 2   ;;  %s4576_s12 = smov 33   ;;  %v9323_v8 = vmov 4   ;;  %s9258_s0 = inlined_call_operand.vmem [shape: f32[4,512], index: 0, kind: input, shape index: {}]   ;;  %s9259_s2 = inlined_call_operand.vmem [shape: f32[4,100], index: 2, kind: input, shape index: {}]   ;;  %s9260_s1 = inlined_call_operand.vmem [shape: f32[25,512], index: 1, kind: input, shape index: {}]   ;;  %s9261_s3 = inlined_call_operand.vmem [shape: f32[4,1], index: 3, kind: input, shape index: {}]   ;;  %s9262_s4 = inlined_call_operand.vmem [shape: f32[4,1], index: 4, kind: input, shape index: {}]   ;;  %s9263_s5 = inlined_call_operand.vmem [shape: f32[4,100], index: 5, kind: input, shape index: {}]   ;;  %s9264_s6 = inlined_call_operand.vmem [shape: f32[4,1], index: 6, kind: input, shape index: {}]   ;;  %s9265_s7 = inlined_call_operand.vmem [shape: f32[4,1], index: 7, kind: input, shape index: {}]   ;;  %s9266_s8 = inlined_call_operand.vmem [shape: f32[4,512], index: 8, kind: output, shape index: {}]  }
   0x1   :  { %v4744_v0 = vld [vmem:[%s9258_s0 + $0x8] sm:$0xff]  ;;  %v4749_v1 = vld [vmem:[%s9258_s0] sm:$0xff]  ;;  %4357 = vset.pattern.permute.xlu0 %v9314_v2  ;;  %4355 = vset.pattern.permute.xlu1 %v9320_v3  ;;  %v9311_v9 = vmov 5   ;;  %v9322_v10 = vmov 7   ;;  %s4580_s13 = smov 32   ;;  %v9321_v11 = vmov 8  }
   0x2   :  { %44 = vrot.lane.b32.xlu1 %v4744_v0, %s4574_s9  ;;  %40 = vrot.lane.b32.xlu0 %v4749_v1, %s4574_s9  ;;  %v4759_v4 = vcombine.high %v4744_v0, %v4744_v0  ;;  %v4763_v5 = vcombine.high %v4749_v1, %v4749_v1  ;;  %v4772_v6 = vld [vmem:[%s9259_s2] sm:$0xf]  ;;  %v9307_v12 = vmov 6   ;;  %v9318_v13 = vmov 11   ;;  %s4584_s14 = smov 31   ;;  %s4588_s15 = smov 30  }
   0x3   :  { %v9312_v14 = vmov 12   ;;  %v9304_v15 = vmov 9   ;;  %v9309_v16 = vmov 15   ;;  %v9308_v17 = vmov 16   ;;  %s4593_s16 = smov 18   ;;  %s4597_s17 = smov 17  }
   0x4   :  { %9728 = vst [vmem:[#allocation2_spill] sm:$0xff] %v4759_v4  ;;  %9729 = vst [vmem:[#allocation3_spill] sm:$0xff] %v4763_v5  ;;  %v9299_v18 = vmov 10   ;;  %v9306_v19 = vmov 19   ;;  %v9295_v20 = vmov 13   ;;  %v9302_v21 = vmov 20  }
   0x5   :  { %v9300_v22 = vmov 23   ;;  %v9292_v23 = vmov 14   ;;  %v9298_v24 = vmov 24   ;;  %v9289_v25 = vmov 17   ;;  %s4601_s18 = smov 16   ;;  %s4606_s19 = smov 15  }
   0x6   :  { %46 = vrot.lane.b32.xlu1 %v4759_v4, %s4574_s9  ;;  %42 = vrot.lane.b32.xlu0 %v4763_v5, %s4574_s9  ;;  %v9294_v26 = vmov 27   ;;  %v9293_v27 = vmov 28   ;;  %v9282_v28 = vmov 18   ;;  %v9290_v29 = vmov 31   ;;  %s9426_s20 = smov 14   ;;  %s9424_s21 = smov 2  }
   0x7   :  { %v9280_v30 = vmov 21   ;;  %v9288_v31 = vmov 32   ;;  %v9286_v32 = vmov 35   ;;  %v9276_v33 = vmov 22   ;;  %s9420_s22 = smov 1   ;;  %s9362_s23 = smov 127  }
   0x8   :  { %v9285_v34 = vmov 36   ;;  %v9274_v35 = vmov 25   ;;  %v9281_v36 = vmov 39   ;;  %v9278_v39 = vmov 40   ;;  %s9375_s24 = smov 126   ;;  %s9414_s25 = smov 114  }
   0x9   :  { %v9277_v44 = vmov 43   ;;  %v9269_v45 = vmov 26   ;;  %v9275_v48 = vmov 44   ;;  %v9268_v51 = vmov 29   ;;  %s9412_s26 = smov 113   ;;  %s9418_s27 = smov 112  }
   0xa   :  { %95 = vperm.xlu1 %4355, %v4772_v6   ;;  %119 = vperm.xlu0 %4357, %v4772_v6   ;;  %v9272_v54 = vmov 47   ;;  %v9271_v57 = vmov 50   ;;  %v9267_v60 = vmov 30   ;;  %v9270_v62 = vmov 53   ;;  %s4645_s28 = smov 111   ;;  %s4648_s29 = smov 110  }
   0xb   :  { %v9319_v2 = vmov 72   ;;  %s4654_s30 = smov 98   ;;  %s4659_s10 = smov 97  }
   0xc   :  { %s4664_s11 = smov 96  }
   0xe   :  { %4356 = vset.pattern.permute.xlu1 %v9316_v7  ;;  %134 = vrot.lane.b32.xlu0 %v4744_v0, %s4576_s12 }
   0xf   :  { %107 = vperm.xlu1 %4356, %v4772_v6   ;;  %4358 = vset.pattern.permute.xlu0 %v9323_v8  ;;  %v9329_v8 = vmov 76  }
  0x12   :  { %171 = vperm.xlu0 %4358, %v4772_v6  }
  0x13   :  { %130 = vrot.lane.b32.xlu1 %v4749_v1, %s4576_s12 }
  0x14   :  { %4359 = vset.pattern.permute.xlu1 %v9311_v9 }
  0x16   :  { %4361 = vset.pattern.permute.xlu0 %v9322_v10  ;;  %v9330_v10 = vmov 46  }
  0x17   :  { %132 = vrot.lane.b32.xlu1 %v4763_v5, %s4576_s12  ;;  %207 = vperm.xlu0 %4361, %v4772_v6  }
  0x1b   :  { %136 = vrot.lane.b32.xlu1 %v4759_v4, %s4576_s12  ;;  %222 = vrot.lane.b32.xlu0 %v4744_v0, %s4580_s13 }
  0x1c   :  { %4362 = vset.pattern.permute.xlu0 %v9321_v11 }
  0x1f   :  { %183 = vperm.xlu1 %4359, %v4772_v6   ;;  %259 = vperm.xlu0 %4362, %v4772_v6  }
  0x23   :  { %4360 = vset.pattern.permute.xlu1 %v9307_v12  ;;  %4365 = vset.pattern.permute.xlu0 %v9318_v13  ;;  %v9313_v12 = vmov 42   ;;  %v9324_v13 = vmov 75  }
  0x24   :  { %195 = vperm.xlu1 %4360, %v4772_v6   ;;  %295 = vperm.xlu0 %4365, %v4772_v6  }
  0x28   :  { %218 = vrot.lane.b32.xlu1 %v4749_v1, %s4580_s13  ;;  %310 = vrot.lane.b32.xlu0 %v4744_v0, %s4584_s14 }
  0x29   :  { %4366 = vset.pattern.permute.xlu0 %v9312_v14  ;;  %4363 = vset.pattern.permute.xlu1 %v9304_v15  ;;  %v9310_v15 = vmov 68   ;;  %v9317_v14 = vmov 45  }
  0x2c   :  { %220 = vrot.lane.b32.xlu1 %v4763_v5, %s4580_s13  ;;  %347 = vperm.xlu0 %4366, %v4772_v6  }
  0x30   :  { %224 = vrot.lane.b32.xlu1 %v4759_v4, %s4580_s13  ;;  %4369 = vset.pattern.permute.xlu0 %v9309_v16  ;;  %v9315_v16 = vmov 71  }
  0x31   :  { %383 = vperm.xlu0 %4369, %v4772_v6  }
  0x34   :  { %271 = vperm.xlu1 %4363, %v4772_v6  }
  0x35   :  { %398 = vrot.lane.b32.xlu0 %v4744_v0, %s4588_s15 }
  0x36   :  { %4370 = vset.pattern.permute.xlu0 %v9308_v17 }
  0x38   :  { %4364 = vset.pattern.permute.xlu1 %v9299_v18 }
  0x39   :  { %283 = vperm.xlu1 %4364, %v4772_v6   ;;  %435 = vperm.xlu0 %4370, %v4772_v6  }
  0x3d   :  { %306 = vrot.lane.b32.xlu1 %v4749_v1, %s4584_s14  ;;  %4373 = vset.pattern.permute.xlu0 %v9306_v19 }
  0x3e   :  { %471 = vperm.xlu0 %4373, %v4772_v6   ;;  %4367 = vset.pattern.permute.xlu1 %v9295_v20  ;;  %v9301_v20 = vmov 64  }
  0x41   :  { %308 = vrot.lane.b32.xlu1 %v4763_v5, %s4584_s14 }
  0x42   :  { %486 = vrot.lane.b32.xlu0 %v4744_v0, %s4593_s16 }
  0x43   :  { %4374 = vset.pattern.permute.xlu0 %v9302_v21 }
  0x45   :  { %312 = vrot.lane.b32.xlu1 %v4759_v4, %s4584_s14 }
  0x46   :  { %523 = vperm.xlu0 %4374, %v4772_v6  }
  0x49   :  { %359 = vperm.xlu1 %4367, %v4772_v6  }
  0x4a   :  { %4377 = vset.pattern.permute.xlu0 %v9300_v22  ;;  %v9305_v22 = vmov 67  }
  0x4b   :  { %559 = vperm.xlu0 %4377, %v4772_v6  }
  0x4d   :  { %4368 = vset.pattern.permute.xlu1 %v9292_v23  ;;  %v9297_v23 = vmov 38  }
  0x4e   :  { %371 = vperm.xlu1 %4368, %v4772_v6  }
  0x4f   :  { %574 = vrot.lane.b32.xlu0 %v4744_v0, %s4597_s17 }
  0x50   :  { %4378 = vset.pattern.permute.xlu0 %v9298_v24 }
  0x52   :  { %394 = vrot.lane.b32.xlu1 %v4749_v1, %s4588_s15 }
  0x53   :  { %611 = vperm.xlu0 %4378, %v4772_v6   ;;  %4371 = vset.pattern.permute.xlu1 %v9289_v25 }
  0x56   :  { %396 = vrot.lane.b32.xlu1 %v4763_v5, %s4588_s15 }
  0x57   :  { %4381 = vset.pattern.permute.xlu0 %v9294_v26 }
  0x58   :  { %647 = vperm.xlu0 %4381, %v4772_v6  }
  0x5a   :  { %400 = vrot.lane.b32.xlu1 %v4759_v4, %s4588_s15 }
  0x5c   :  { %662 = vrot.lane.b32.xlu0 %v4744_v0, %s4601_s18 }
  0x5d   :  { %4382 = vset.pattern.permute.xlu0 %v9293_v27 }
  0x5e   :  { %447 = vperm.xlu1 %4371, %v4772_v6  }
  0x60   :  { %699 = vperm.xlu0 %4382, %v4772_v6  }
  0x62   :  { %4372 = vset.pattern.permute.xlu1 %v9282_v28  ;;  %v9287_v28 = vmov 37  }
  0x63   :  { %459 = vperm.xlu1 %4372, %v4772_v6  }
  0x64   :  { %4385 = vset.pattern.permute.xlu0 %v9290_v29  ;;  %v9296_v29 = vmov 63  }
  0x65   :  { %735 = vperm.xlu0 %4385, %v4772_v6  }
  0x67   :  { %482 = vrot.lane.b32.xlu1 %v4749_v1, %s4593_s16 }
  0x68   :  { %4375 = vset.pattern.permute.xlu1 %v9280_v30  ;;  %v9284_v30 = vmov 59  }
  0x69   :  { %750 = vrot.lane.b32.xlu0 %v4744_v0, %s4606_s19 }
  0x6a   :  { %4386 = vset.pattern.permute.xlu0 %v9288_v31 }
  0x6b   :  { %484 = vrot.lane.b32.xlu1 %v4763_v5, %s4593_s16 }
  0x6d   :  { %787 = vperm.xlu0 %4386, %v4772_v6  }
  0x6f   :  { %488 = vrot.lane.b32.xlu1 %v4759_v4, %s4593_s16 }
  0x71   :  { %4389 = vset.pattern.permute.xlu0 %v9286_v32 }
  0x72   :  { %823 = vperm.xlu0 %4389, %v4772_v6  }
  0x73   :  { %535 = vperm.xlu1 %4375, %v4772_v6  }
  0x74   :  { %v4884_v37 = vpop.permute.xlu1 %44  ;;  %v4886_v38 = vpop.permute.xlu0 %40 }
  0x76   :  { %838 = vrot.lane.b32.xlu0 %v4744_v0, %s9426_s20 }
  0x77   :  { %4376 = vset.pattern.permute.xlu1 %v9276_v33  ;;  %4390 = vset.pattern.permute.xlu0 %v9285_v34  ;;  %v9291_v34 = vmov 60  }
  0x78   :  { %547 = vperm.xlu1 %4376, %v4772_v6   ;;  %v4896_v40 = vpop.permute.xlu1 %46  ;;  %v4898_v41 = vpop.permute.xlu0 %42 }
  0x7a   :  { %875 = vperm.xlu0 %4390, %v4772_v6  }
  0x7c   :  { %570 = vrot.lane.b32.xlu1 %v4749_v1, %s4597_s17 }
  0x7d   :  { %4379 = vset.pattern.permute.xlu1 %v9274_v35 }
  0x7e   :  { %4393 = vset.pattern.permute.xlu0 %v9281_v36 }
  0x7f   :  { %911 = vperm.xlu0 %4393, %v4772_v6  }
  0x80   :  { %572 = vrot.lane.b32.xlu1 %v4763_v5, %s4597_s17 }
  0x83   :  { %926 = vrot.lane.b32.xlu0 %v4744_v0, %s9424_s21 }
  0x84   :  { %576 = vrot.lane.b32.xlu1 %v4759_v4, %s4597_s17  ;;  %4394 = vset.pattern.permute.xlu0 %v9278_v39 }
  0x87   :  { %963 = vperm.xlu0 %4394, %v4772_v6  }
  0x88   :  { %623 = vperm.xlu1 %4379, %v4772_v6  }
  0x89   :  { %v4902_v42 = vpop.permute.xlu1 %95  ;;  %v4904_v43 = vpop.permute.xlu0 %119 }
  0x8b   :  { %4397 = vset.pattern.permute.xlu0 %v9277_v44  ;;  %v9283_v44 = vmov 34  }
  0x8c   :  { %4380 = vset.pattern.permute.xlu1 %v9269_v45  ;;  %999 = vperm.xlu0 %4397, %v4772_v6  }
  0x8d   :  { %635 = vperm.xlu1 %4380, %v4772_v6   ;;  %v4910_v46 = vpop.permute.xlu0 %134 }
  0x8e   :  { %v4912_v47 = vpop.permute.xlu1 %107 }
  0x90   :  { %1014 = vrot.lane.b32.xlu0 %v4744_v0, %s9420_s22 }
  0x91   :  { %658 = vrot.lane.b32.xlu1 %v4749_v1, %s4601_s18  ;;  %4398 = vset.pattern.permute.xlu0 %v9275_v48  ;;  %v4919_v49 = vpop.permute.xlu0 %171 }
  0x92   :  { %v4921_v50 = vpop.permute.xlu1 %130  ;;  %4383 = vset.pattern.permute.xlu1 %v9268_v51  ;;  %v9273_v51 = vmov 33  }
  0x94   :  { %1051 = vperm.xlu0 %4398, %v4772_v6  }
  0x95   :  { %660 = vrot.lane.b32.xlu1 %v4763_v5, %s4601_s18 }
  0x96   :  { %v4927_v52 = vpop.permute.xlu1 %132  ;;  %v4929_v53 = vpop.permute.xlu0 %207 }
  0x98   :  { %4401 = vset.pattern.permute.xlu0 %v9272_v54 }
  0x99   :  { %664 = vrot.lane.b32.xlu1 %v4759_v4, %s4601_s18  ;;  %1087 = vperm.xlu0 %4401, %v4772_v6  }
  0x9a   :  { %v4935_v55 = vpop.permute.xlu1 %136  ;;  %v4937_v56 = vpop.permute.xlu0 %222 }
  0x9d   :  { %711 = vperm.xlu1 %4383, %v4772_v6   ;;  %4404 = vset.pattern.permute.xlu0 %v9271_v57 }
  0x9e   :  { %v4941_v58 = vpop.permute.xlu1 %183  ;;  %1158 = vperm.xlu0 %4404, %v4772_v6   ;;  %v4944_v59 = vpop.permute.xlu0 %259 }
  0xa1   :  { %4384 = vset.pattern.permute.xlu1 %v9267_v60 }
  0xa2   :  { %723 = vperm.xlu1 %4384, %v4772_v6   ;;  %1183 = vrot.lane.b32.xlu0 %v4763_v5, %s9362_s23 }
  0xa3   :  { %v4950_v61 = vpop.permute.xlu1 %195  ;;  %4407 = vset.pattern.permute.xlu0 %v9270_v62  ;;  %v4953_v63 = vpop.permute.xlu0 %295 }
  0xa6   :  { %746 = vrot.lane.b32.xlu1 %v4749_v1, %s4606_s19  ;;  %1187 = vrot.lane.b32.xlu0 %v4759_v4, %s9362_s23 }
  0xa7   :  { %v4959_v60 = vpop.permute.xlu1 %218  ;;  %4387 = vset.pattern.permute.xlu1 %v9273_v51  ;;  %v4962_v45 = vpop.permute.xlu0 %310  ;;  %v9279_v51 = vmov 56  }
  0xaa   :  { %748 = vrot.lane.b32.xlu1 %v4763_v5, %s4606_s19  ;;  %1234 = vperm.xlu0 %4407, %v4772_v6  }
  0xab   :  { %v4967_v62 = vpop.permute.xlu1 %220  ;;  %v4969_v57 = vpop.permute.xlu0 %347 }
  0xac   :  { %9730 = vst [vmem:[#allocation4_spill] sm:$0xff] %v4969_v57 }
  0xae   :  { %752 = vrot.lane.b32.xlu1 %v4759_v4, %s4606_s19  ;;  %1269 = vrot.lane.b32.xlu0 %v4749_v1, %s9375_s24 }
  0xaf   :  { %v4975_v54 = vpop.permute.xlu1 %224  ;;  %4410 = vset.pattern.permute.xlu0 %v9279_v51 }
  0xb0   :  { %v4978_v35 = vpop.permute.xlu0 %383 }
  0xb2   :  { %799 = vperm.xlu1 %4387, %v4772_v6   ;;  %1273 = vrot.lane.b32.xlu0 %v4744_v0, %s9375_s24 }
  0xb3   :  { %v4983_v48 = vpop.permute.xlu1 %271 }
  0xb4   :  { %v4985_v33 = vpop.permute.xlu0 %398 }
  0xb5   :  { %9731 = vst [vmem:[#allocation5_spill] sm:$0xff] %v4985_v33 }
  0xb6   :  { %4388 = vset.pattern.permute.xlu1 %v9283_v44  ;;  %1310 = vperm.xlu0 %4410, %v4772_v6  }
  0xb7   :  { %811 = vperm.xlu1 %4388, %v4772_v6  }
  0xb8   :  { %v4990_v39 = vpop.permute.xlu1 %283  ;;  %v4992_v51 = vpop.permute.xlu0 %435 }
  0xb9   :  { %9732 = vst [vmem:[#allocation6_spill] sm:$0xff] %v4992_v51 }
  0xba   :  { %4413 = vset.pattern.permute.xlu0 %v9284_v30 }
  0xbb   :  { %834 = vrot.lane.b32.xlu1 %v4749_v1, %s9426_s20  ;;  %1346 = vperm.xlu0 %4413, %v4772_v6  }
  0xbc   :  { %v4998_v36 = vpop.permute.xlu1 %306  ;;  %4391 = vset.pattern.permute.xlu1 %v9287_v28 }
  0xbd   :  { %v5001_v44 = vpop.permute.xlu0 %471 }
  0xbe   :  { %9733 = vst [vmem:[#allocation7_spill] sm:$0xff] %v5001_v44  ;;  %v9450_v44 = vmov 73  }
  0xbf   :  { %836 = vrot.lane.b32.xlu1 %v4763_v5, %s9426_s20  ;;  %1361 = vrot.lane.b32.xlu0 %v4744_v0, %s9414_s25 }
  0xc0   :  { %v5007_v30 = vpop.permute.xlu1 %308  ;;  %4414 = vset.pattern.permute.xlu0 %v9291_v34 }
  0xc1   :  { %v5010_v32 = vpop.permute.xlu0 %486 }
  0xc2   :  { %9734 = vst [vmem:[#allocation8_spill] sm:$0xff] %v5010_v32 }
  0xc3   :  { %840 = vrot.lane.b32.xlu1 %v4759_v4, %s9426_s20  ;;  %1398 = vperm.xlu0 %4414, %v4772_v6  }
  0xc4   :  { %v5015_v28 = vpop.permute.xlu1 %312 }
  0xc5   :  { %v5017_v31 = vpop.permute.xlu0 %523 }
  0xc6   :  { %9735 = vst [vmem:[#allocation9_spill] sm:$0xff] %v5017_v31 }
  0xc7   :  { %887 = vperm.xlu1 %4391, %v4772_v6   ;;  %4417 = vset.pattern.permute.xlu0 %v9296_v29 }
  0xc8   :  { %v5020_v25 = vpop.permute.xlu1 %359  ;;  %1434 = vperm.xlu0 %4417, %v4772_v6  }
  0xc9   :  { %9736 = vst [vmem:[#allocation10_spill] sm:$0xff] %v5020_v25 }
  0xca   :  { %v5024_v34 = vpop.permute.xlu0 %559 }
  0xcb   :  { %9737 = vst [vmem:[#allocation11_spill] sm:$0xff] %v5024_v34  ;;  %4392 = vset.pattern.permute.xlu1 %v9297_v23  ;;  %v9303_v23 = vmov 41  }
  0xcc   :  { %899 = vperm.xlu1 %4392, %v4772_v6   ;;  %1449 = vrot.lane.b32.xlu0 %v4744_v0, %s9412_s26 }
  0xcd   :  { %v5028_v27 = vpop.permute.xlu1 %371  ;;  %4418 = vset.pattern.permute.xlu0 %v9301_v20 }
  0xce   :  { %9738 = vst [vmem:[#allocation12_spill] sm:$0xff] %v5028_v27  ;;  %v5032_v26 = vpop.permute.xlu0 %574 }
  0xcf   :  { %9739 = vst [vmem:[#allocation13_spill] sm:$0xff] %v5032_v26 }
  0xd0   :  { %922 = vrot.lane.b32.xlu1 %v4749_v1, %s9424_s21  ;;  %1486 = vperm.xlu0 %4418, %v4772_v6  }
  0xd1   :  { %v5037_v29 = vpop.permute.xlu1 %394  ;;  %4395 = vset.pattern.permute.xlu1 %v9303_v23 }
  0xd2   :  { %9740 = vst [vmem:[#allocation14_spill] sm:$0xff] %v5037_v29  ;;  %v5041_v24 = vpop.permute.xlu0 %611 }
  0xd3   :  { %9741 = vst [vmem:[#allocation15_spill] sm:$0xff] %v5041_v24 }
  0xd4   :  { %924 = vrot.lane.b32.xlu1 %v4763_v5, %s9424_s21  ;;  %4421 = vset.pattern.permute.xlu0 %v9305_v22 }
  0xd5   :  { %v5045_v18 = vpop.permute.xlu1 %396  ;;  %1522 = vperm.xlu0 %4421, %v4772_v6  }
  0xd6   :  { %9742 = vst [vmem:[#allocation16_spill] sm:$0xff] %v5045_v18 }
  0xd7   :  { %v5049_v20 = vpop.permute.xlu0 %647 }
  0xd8   :  { %9743 = vst [vmem:[#allocation17_spill] sm:$0xff] %v5049_v20  ;;  %928 = vrot.lane.b32.xlu1 %v4759_v4, %s9424_s21 }
  0xd9   :  { %v5053_v21 = vpop.permute.xlu1 %400  ;;  %1537 = vrot.lane.b32.xlu0 %v4744_v0, %s9418_s27 }
  0xda   :  { %9744 = vst [vmem:[#allocation18_spill] sm:$0xff] %v5053_v21  ;;  %4422 = vset.pattern.permute.xlu0 %v9310_v15 }
  0xdb   :  { %v5057_v23 = vpop.permute.xlu0 %662 }
  0xdc   :  { %9745 = vst [vmem:[#allocation19_spill] sm:$0xff] %v5057_v23  ;;  %975 = vperm.xlu1 %4395, %v4772_v6   ;;  %v9343_v23 = vmov 83  }
  0xdd   :  { %v5061_v22 = vpop.permute.xlu1 %447  ;;  %1574 = vperm.xlu0 %4422, %v4772_v6  }
  0xde   :  { %9746 = vst [vmem:[#allocation20_spill] sm:$0xff] %v5061_v22 }
  0xdf   :  { %v5064_v19 = vpop.permute.xlu0 %699 }
  0xe0   :  { %9747 = vst [vmem:[#allocation21_spill] sm:$0xff] %v5064_v19  ;;  %4396 = vset.pattern.permute.xlu1 %v9313_v12  ;;  %v9336_v19 = vmov 49  }
  0xe1   :  { %987 = vperm.xlu1 %4396, %v4772_v6   ;;  %4425 = vset.pattern.permute.xlu0 %v9315_v16 }
  0xe2   :  { %v5068_v17 = vpop.permute.xlu1 %459  ;;  %1610 = vperm.xlu0 %4425, %v4772_v6  }
  0xe3   :  { %9748 = vst [vmem:[#allocation22_spill] sm:$0xff] %v5068_v17 }
  0xe4   :  { %v5072_v15 = vpop.permute.xlu0 %735 }
  0xe5   :  { %9749 = vst [vmem:[#allocation23_spill] sm:$0xff] %v5072_v15  ;;  %1010 = vrot.lane.b32.xlu1 %v4749_v1, %s9420_s22  ;;  %v9341_v15 = vmov 51  }
  0xe6   :  { %v5076_v9 = vpop.permute.xlu1 %482  ;;  %4399 = vset.pattern.permute.xlu1 %v9317_v14  ;;  %1625 = vrot.lane.b32.xlu0 %v4744_v0, %s4645_s28 }
  0xe7   :  { %9750 = vst [vmem:[#allocation24_spill] sm:$0xff] %v5076_v9  ;;  %4426 = vset.pattern.permute.xlu0 %v9319_v2 }
  0xe8   :  { %v5081_v12 = vpop.permute.xlu0 %750 }
  0xe9   :  { %9751 = vst [vmem:[#allocation25_spill] sm:$0xff] %v5081_v12  ;;  %1012 = vrot.lane.b32.xlu1 %v4763_v5, %s9420_s22 }
  0xea   :  { %v5086_v16 = vpop.permute.xlu1 %484  ;;  %1662 = vperm.xlu0 %4426, %v4772_v6  }
  0xeb   :  { %9752 = vst [vmem:[#allocation26_spill] sm:$0xff] %v5086_v16  ;;  %v4211_v16 = vld [vmem:[%s9260_s1 + $0x5] ss:$8 sm:$0xf] }
  0xec   :  { %v5089_v7 = vpop.permute.xlu0 %787 }
  0xed   :  { %9753 = vst [vmem:[#allocation27_spill] sm:$0xff] %v5089_v7  ;;  %1016 = vrot.lane.b32.xlu1 %v4759_v4, %s9420_s22 }
  0xee   :  { %v5093_v14 = vpop.permute.xlu1 %488  ;;  %4429 = vset.pattern.permute.xlu0 %v9324_v13 }
  0xef   :  { %9754 = vst [vmem:[#allocation28_spill] sm:$0xff] %v5093_v14  ;;  %1698 = vperm.xlu0 %4429, %v4772_v6  }
  0xf1   :  { %v5097_v2 = vpop.permute.xlu0 %823  ;;  %1063 = vperm.xlu1 %4399, %v4772_v6  }
  0xf2   :  { %9755 = vst [vmem:[#allocation29_spill] sm:$0xff] %v5097_v2  ;;  %v5100_v3 = vpop.permute.xlu1 %535  ;;  %v9332_v2 = vmov 48  }
  0xf3   :  { %9756 = vst [vmem:[#allocation30_spill] sm:$0xff] %v5100_v3  ;;  %1713 = vrot.lane.b32.xlu0 %v4744_v0, %s4648_s29 }
  0xf4   :  { %4430 = vset.pattern.permute.xlu0 %v9329_v8 }
  0xf5   :  { %v5104_v11 = vpop.permute.xlu0 %838  ;;  %4400 = vset.pattern.permute.xlu1 %v9330_v10 }
  0xf6   :  { %9757 = vst [vmem:[#allocation31_spill] sm:$0xff] %v5104_v11  ;;  %1075 = vperm.xlu1 %4400, %v4772_v6   ;;  %v9334_v11 = vmov 79  }
  0xf7   :  { %v5109_v13 = vpop.permute.xlu1 %547  ;;  %1750 = vperm.xlu0 %4430, %v4772_v6  }
  0xf8   :  { %9758 = vst [vmem:[#allocation32_spill] sm:$0xff] %v5109_v13  ;;  %v9431_v13 = vmov 70  }
  0xf9   :  { %v5112_v7 = vpop.permute.xlu0 %875 }
  0xfa   :  { %9759 = vst [vmem:[#allocation33_spill] sm:$0xff] %v5112_v7  ;;  %4402 = vset.pattern.permute.xlu1 %v9332_v2 }
  0xfb   :  { %v5115_v12 = vpop.permute.xlu1 %570  ;;  %1128 = vperm.xlu1 %4402, %v4772_v6   ;;  %4433 = vset.pattern.permute.xlu0 %v9334_v11  ;;  %v9339_v11 = vmov 80  }
  0xfc   :  { %9760 = vst [vmem:[#allocation34_spill] sm:$0xff] %v5115_v12  ;;  %1786 = vperm.xlu0 %4433, %v4772_v6  }
  0xfe   :  { %v5120_v8 = vpop.permute.xlu0 %911 }
  0xff   :  { %9761 = vst [vmem:[#allocation35_spill] sm:$0xff] %v5120_v8  ;;  %v5122_v10 = vpop.permute.xlu1 %572  ;;  %4403 = vset.pattern.permute.xlu1 %v9336_v19 }
 0x100   :  { %9762 = vst [vmem:[#allocation36_spill] sm:$0xff] %v5122_v10  ;;  %1146 = vperm.xlu1 %4403, %v4772_v6   ;;  %1801 = vrot.lane.b32.xlu0 %v4744_v0, %s4654_s30 }
 0x101   :  { %4434 = vset.pattern.permute.xlu0 %v9339_v11 }
 0x102   :  { %v5128_v2 = vpop.permute.xlu0 %926 }
 0x103   :  { %9763 = vst [vmem:[#allocation37_spill] sm:$0xff] %v5128_v2  ;;  %v5130_v7 = vpop.permute.xlu1 %576 }
 0x104   :  { %9764 = vst [vmem:[#allocation38_spill] sm:$0xff] %v5130_v7  ;;  %4405 = vset.pattern.permute.xlu1 %v9341_v15  ;;  %1838 = vperm.xlu0 %4434, %v4772_v6   ;;  %v9346_v15 = vmov 52  }
 0x105   :  { %1170 = vperm.xlu1 %4405, %v4772_v6  }
 0x106   :  { %v5136_v19 = vpop.permute.xlu0 %963 }
 0x107   :  { %9765 = vst [vmem:[#allocation39_spill] sm:$0xff] %v5136_v19  ;;  %v5138_v8 = vpop.permute.xlu1 %623 }
 0x108   :  { %9766 = vst [vmem:[#allocation40_spill] sm:$0xff] %v5138_v8  ;;  %4437 = vset.pattern.permute.xlu0 %v9343_v23  ;;  %v9351_v8 = vmov 84  }
 0x109   :  { %1181 = vrot.lane.b32.xlu1 %v4749_v1, %s9362_s23  ;;  %1874 = vperm.xlu0 %4437, %v4772_v6  }
 0x10a   :  { %4406 = vset.pattern.permute.xlu1 %v9346_v15 }
 0x10b   :  { %v5144_v11 = vpop.permute.xlu0 %999 }
 0x10c   :  { %9767 = vst [vmem:[#allocation41_spill] sm:$0xff] %v5144_v11  ;;  %v5146_v2 = vpop.permute.xlu1 %635 }
 0x10d   :  { %9768 = vst [vmem:[#allocation42_spill] sm:$0xff] %v5146_v2  ;;  %1185 = vrot.lane.b32.xlu1 %v4744_v0, %s9362_s23  ;;  %1889 = vrot.lane.b32.xlu0 %v4744_v0, %s4659_s10  ;;  %v9353_v2 = vmov 54   ;;  %s4668_s23 = smov 95  }
 0x10e   :  { %4438 = vset.pattern.permute.xlu0 %v9351_v8 }
 0x10f   :  { %v5151_v19 = vpop.permute.xlu0 %1014 }
 0x110   :  { %9769 = vst [vmem:[#allocation43_spill] sm:$0xff] %v5151_v19  ;;  %v5155_v23 = vpop.permute.xlu1 %658  ;;  %v9354_v19 = vmov 87  }
 0x111   :  { %9770 = vst [vmem:[#allocation44_spill] sm:$0xff] %v5155_v23  ;;  %1222 = vperm.xlu1 %4406, %v4772_v6   ;;  %1926 = vperm.xlu0 %4438, %v4772_v6  }
 0x113   :  { %v5159_v11 = vpop.permute.xlu0 %1051 }
 0x114   :  { %9771 = vst [vmem:[#allocation45_spill] sm:$0xff] %v5159_v11  ;;  %v5162_v15 = vpop.permute.xlu1 %660  ;;  %v9357_v11 = vmov 55  }
 0x115   :  { %9772 = vst [vmem:[#allocation46_spill] sm:$0xff] %v5162_v15  ;;  %4408 = vset.pattern.permute.xlu1 %v9353_v2  ;;  %4441 = vset.pattern.permute.xlu0 %v9354_v19  ;;  %v9361_v19 = vmov 88  }
 0x116   :  { %1246 = vperm.xlu1 %4408, %v4772_v6   ;;  %1962 = vperm.xlu0 %4441, %v4772_v6  }
 0x118   :  { %v5166_v24 = vpop.permute.xlu1 %664  ;;  %v5168_v23 = vpop.permute.xlu0 %1087 }
 0x119   :  { %9773 = vst [vmem:[#allocation47_spill] sm:$0xff] %v5166_v24  ;;  %9774 = vst [vmem:[#allocation48_spill] sm:$0xff] %v5168_v23 }
 0x11a   :  { %4409 = vset.pattern.permute.xlu1 %v9357_v11  ;;  %1977 = vrot.lane.b32.xlu0 %v4744_v0, %s4664_s11  ;;  %v9364_v11 = vmov 57  }
 0x11b   :  { %1258 = vperm.xlu1 %4409, %v4772_v6   ;;  %4442 = vset.pattern.permute.xlu0 %v9361_v19 }
 0x11c   :  { %v5172_v8 = vpop.permute.xlu1 %711 }
 0x11d   :  { %9775 = vst [vmem:[#allocation49_spill] sm:$0xff] %v5172_v8  ;;  %v5177_v2 = vpop.permute.xlu0 %1158  ;;  %v9365_v8 = vmov 91  }
 0x11e   :  { %9776 = vst [vmem:[#allocation50_spill] sm:$0xff] %v5177_v2  ;;  %2014 = vperm.xlu0 %4442, %v4772_v6  }
 0x11f   :  { %1271 = vrot.lane.b32.xlu1 %v4763_v5, %s9375_s24 }
 0x120   :  { %4411 = vset.pattern.permute.xlu1 %v9364_v11 }
 0x121   :  { %v5182_v23 = vpop.permute.xlu1 %723  ;;  %v5184_v24 = vpop.permute.xlu0 %1183 }
 0x122   :  { %9777 = vst [vmem:[#allocation51_spill] sm:$0xff] %v5182_v23  ;;  %9778 = vst [vmem:[#allocation52_spill] sm:$0xff] %v5184_v24  ;;  %4445 = vset.pattern.permute.xlu0 %v9365_v8  ;;  %v9372_v8 = vmov 92  }
 0x123   :  { %1275 = vrot.lane.b32.xlu1 %v4759_v4, %s9375_s24  ;;  %2050 = vperm.xlu0 %4445, %v4772_v6   ;;  %s4673_s24 = smov 94  }
 0x125   :  { %v5190_v2 = vpop.permute.xlu1 %746  ;;  %v5192_v15 = vpop.permute.xlu0 %1187 }
 0x126   :  { %9779 = vst [vmem:[#allocation53_spill] sm:$0xff] %v5190_v2  ;;  %9780 = vst [vmem:[#allocation54_spill] sm:$0xff] %v5192_v15  ;;  %v9373_v15 = vmov 58  }
 0x127   :  { %1322 = vperm.xlu1 %4411, %v4772_v6   ;;  %2065 = vrot.lane.b32.xlu0 %v4744_v0, %s4668_s23 }
 0x128   :  { %4446 = vset.pattern.permute.xlu0 %v9372_v8  ;;  %v9379_v8 = vmov 61  }
 0x129   :  { %v5197_v19 = vpop.permute.xlu1 %748  ;;  %v5202_v11 = vpop.permute.xlu0 %1234 }
 0x12a   :  { %9781 = vst [vmem:[#allocation55_spill] sm:$0xff] %v5197_v19  ;;  %9782 = vst [vmem:[#allocation56_spill] sm:$0xff] %v5202_v11  ;;  %v9377_v19 = vmov 95  }
 0x12b   :  { %4412 = vset.pattern.permute.xlu1 %v9373_v15  ;;  %2102 = vperm.xlu0 %4446, %v4772_v6  }
 0x12c   :  { %1334 = vperm.xlu1 %4412, %v4772_v6  }
 0x12d   :  { %v5205_v24 = vpop.permute.xlu1 %752  ;;  %v5209_v23 = vpop.permute.xlu0 %1269 }
 0x12e   :  { %9783 = vst [vmem:[#allocation57_spill] sm:$0xff] %v5205_v24  ;;  %9784 = vst [vmem:[#allocation58_spill] sm:$0xff] %v5209_v23 }
 0x12f   :  { %4449 = vset.pattern.permute.xlu0 %v9377_v19  ;;  %v9382_v19 = vmov 96  }
 0x130   :  { %1357 = vrot.lane.b32.xlu1 %v4749_v1, %s9414_s25  ;;  %2138 = vperm.xlu0 %4449, %v4772_v6  }
 0x131   :  { %v5212_v2 = vpop.permute.xlu1 %799  ;;  %v5215_v11 = vpop.permute.xlu0 %1273  ;;  %4415 = vset.pattern.permute.xlu1 %v9379_v8 }
 0x132   :  { %9785 = vst [vmem:[#allocation59_spill] sm:$0xff] %v5212_v2  ;;  %9786 = vst [vmem:[#allocation60_spill] sm:$0xff] %v5215_v11  ;;  %v9389_v2 = vmov 62  }
 0x134   :  { %1359 = vrot.lane.b32.xlu1 %v4763_v5, %s9414_s25  ;;  %2153 = vrot.lane.b32.xlu0 %v4744_v0, %s4673_s24 }
 0x135   :  { %v5223_v23 = vpop.permute.xlu0 %1310  ;;  %4450 = vset.pattern.permute.xlu0 %v9382_v19 }
 0x136   :  { %v5221_v15 = vpop.permute.xlu1 %811  ;;  %9788 = vst [vmem:[#allocation62_spill] sm:$0xff] %v5223_v23 }
 0x137   :  { %9787 = vst [vmem:[#allocation61_spill] sm:$0xff] %v5221_v15  ;;  %v9387_v15 = vmov 99  }
 0x138   :  { %1363 = vrot.lane.b32.xlu1 %v4759_v4, %s9414_s25  ;;  %2190 = vperm.xlu0 %4450, %v4772_v6  }
 0x13a   :  { %v5230_v11 = vpop.permute.xlu1 %834  ;;  %v5235_v8 = vpop.permute.xlu0 %1346 }
 0x13b   :  { %9789 = vst [vmem:[#allocation63_spill] sm:$0xff] %v5230_v11  ;;  %9790 = vst [vmem:[#allocation64_spill] sm:$0xff] %v5235_v8  ;;  %v9391_v8 = vmov 0  }
 0x13c   :  { %1410 = vperm.xlu1 %4415, %v4772_v6   ;;  %4453 = vset.pattern.permute.xlu0 %v9387_v15  ;;  %v9395_v15 = vmov 65  }
 0x13d   :  { %2226 = vperm.xlu0 %4453, %v4772_v6  }
 0x13e   :  { %v5237_v23 = vpop.permute.xlu1 %836  ;;  %v5241_v0 = vpop.permute.xlu0 %1361 }
 0x13f   :  { %9791 = vst [vmem:[#allocation65_spill] sm:$0xff] %v5237_v23  ;;  %9792 = vst [vmem:[#allocation66_spill] sm:$0xff] %v5241_v0 }
 0x140   :  { %4416 = vset.pattern.permute.xlu1 %v9389_v2 }
 0x141   :  { %1422 = vperm.xlu1 %4416, %v4772_v6   ;;  %4454 = vset.pattern.permute.xlu0 %v9391_v8 }
 0x142   :  { %v5244_v19 = vpop.permute.xlu1 %840  ;;  %v5247_v11 = vpop.permute.xlu0 %1398  ;;  %83 = vperm.xlu0 %4454, %v4772_v6  }
 0x143   :  { %9793 = vst [vmem:[#allocation67_spill] sm:$0xff] %v5244_v19  ;;  %9794 = vst [vmem:[#allocation68_spill] sm:$0xff] %v5247_v11 }
 0x145   :  { %1445 = vrot.lane.b32.xlu1 %v4749_v1, %s9412_s26 }
 0x146   :  { %v5252_v23 = vpop.permute.xlu1 %887  ;;  %4419 = vset.pattern.permute.xlu1 %v9395_v15 }
 0x147   :  { %9795 = vst [vmem:[#allocation69_spill] sm:$0xff] %v5252_v23  ;;  %v5257_v0 = vpop.permute.xlu0 %1434 }
 0x148   :  { %9796 = vst [vmem:[#allocation70_spill] sm:$0xff] %v5257_v0  ;;  %v9402_v0 = vmov 66  }
 0x149   :  { %1447 = vrot.lane.b32.xlu1 %v4763_v5, %s9412_s26 }
 0x14b   :  { %v5261_v2 = vpop.permute.xlu1 %899  ;;  %v5263_v11 = vpop.permute.xlu0 %1449 }
 0x14c   :  { %9797 = vst [vmem:[#allocation71_spill] sm:$0xff] %v5261_v2  ;;  %9798 = vst [vmem:[#allocation72_spill] sm:$0xff] %v5263_v11 }
 0x14d   :  { %1451 = vrot.lane.b32.xlu1 %v4759_v4, %s9412_s26 }
 0x14f   :  { %v5267_v8 = vpop.permute.xlu1 %922  ;;  %v5269_v23 = vpop.permute.xlu0 %1486 }
 0x150   :  { %9799 = vst [vmem:[#allocation73_spill] sm:$0xff] %v5267_v8  ;;  %9800 = vst [vmem:[#allocation74_spill] sm:$0xff] %v5269_v23  ;;  %v9408_v23 = vmov 69  }
 0x151   :  { %1498 = vperm.xlu1 %4419, %v4772_v6  }
 0x153   :  { %v5272_v19 = vpop.permute.xlu1 %924 }
 0x154   :  { %9801 = vst [vmem:[#allocation75_spill] sm:$0xff] %v5272_v19  ;;  %v5274_v15 = vpop.permute.xlu0 %1522 }
 0x155   :  { %9802 = vst [vmem:[#allocation76_spill] sm:$0xff] %v5274_v15  ;;  %4420 = vset.pattern.permute.xlu1 %v9402_v0  ;;  %v48_v0 = vlaneseq }
 0x156   :  { %1510 = vperm.xlu1 %4420, %v4772_v6  }
 0x157   :  { %v5277_v24 = vpop.permute.xlu1 %928 }
 0x158   :  { %9803 = vst [vmem:[#allocation77_spill] sm:$0xff] %v5277_v24  ;;  %v5284_v2 = vpop.permute.xlu0 %1537  ;;  %v58_v24 = vshrl.u32 %v48_v0, 7 }
 0x159   :  { %9805 = vst [vmem:[#allocation79_spill] sm:$0xff] %v5284_v2 }
 0x15a   :  { %1533 = vrot.lane.b32.xlu1 %v4749_v1, %s9418_s27  ;;  %v5304_v20 = vsub.s32 0, %v58_v24  ;;  %v5308_v7 = vsub.s32 1, %v58_v24 }
 0x15b   :  { %v5280_v11 = vpop.permute.xlu1 %975  ;;  %4423 = vset.pattern.permute.xlu1 %v9408_v23  ;;  %v5302_v23 = vand.u32 127, %v48_v0 }
 0x15c   :  { %9804 = vst [vmem:[#allocation78_spill] sm:$0xff] %v5280_v11  ;;  %v5291_v8 = vpop.permute.xlu0 %1574 }
 0x15d   :  { %9807 = vst [vmem:[#allocation81_spill] sm:$0xff] %v5291_v8  ;;  %v55_v8 = vld [vmem:[%s9260_s1] ss:$8 sm:$0xf]  ;;  %vm50_vm0 = vcmp.lt.s32.totalorder %v5302_v23, 34  ;;  %vm138_vm1 = vcmp.lt.s32.totalorder %v5302_v23, 33 }
 0x15e   :  { %1535 = vrot.lane.b32.xlu1 %v4763_v5, %s9418_s27  ;;  %v5333_v31 = vrot.slane %v55_v8, %v5308_v7  ;;  %v54_v21 = vsel %vm50_vm0, %v4896_v40, %v4886_v38  ;;  %vm226_vm2 = vcmp.lt.s32.totalorder %v5302_v23, 32  ;;  %vm314_vm3 = vcmp.lt.s32.totalorder %v5302_v23, 31 }
 0x15f   :  { %vm402_vm4 = vcmp.lt.s32.totalorder %v5302_v23, 30  ;;  %vm490_vm5 = vcmp.lt.s32.totalorder %v5302_v23, 18  ;;  %vm578_vm6 = vcmp.lt.s32.totalorder %v5302_v23, 17  ;;  %vm666_vm7 = vcmp.lt.s32.totalorder %v5302_v23, 16 }
 0x160   :  { %v5289_v15 = vpop.permute.xlu1 %987  ;;  %9816 = vst [vmem:[#allocation90_spill] sm:$0xff] %v5333_v31  ;;  %vm754_vm8 = vcmp.lt.s32.totalorder %v5302_v23, 15  ;;  %vm842_vm9 = vcmp.lt.s32.totalorder %v5302_v23, 14  ;;  %vm930_vm10 = vcmp.lt.s32.totalorder %v5302_v23, 2  ;;  %vm1018_vm11 = vcmp.lt.s32.totalorder %v5302_v23, 1 }
 0x161   :  { %9806 = vst [vmem:[#allocation80_spill] sm:$0xff] %v5289_v15  ;;  %v5300_v19 = vpop.permute.xlu0 %1610  ;;  %v5306_v15 = vsub.s32 3, %v58_v24  ;;  %vm9644_vm12 = vcmp.lt.s32.totalorder %v5302_v23, 127  ;;  %vm9643_vm13 = vcmp.lt.s32.totalorder %v5302_v23, 126  ;;  %vm9624_vm14 = vcmp.lt.s32.totalorder %v5302_v23, 114 }
 0x162   :  { %1539 = vrot.lane.b32.xlu1 %v4759_v4, %s9418_s27  ;;  %9810 = vst [vmem:[#allocation84_spill] sm:$0xff] %v5300_v19  ;;  %v4208_v19 = vld [vmem:[%s9260_s1 + $0x2] ss:$8 sm:$0xf]  ;;  %vm9625_vm15 = vcmp.lt.s32.totalorder %v5302_v23, 113 }
 0x163   :  { %9811 = vst [vmem:[#allocation85_spill] sm:$0xff] %v5306_v15  ;;  %v5330_v3 = vrot.slane %v55_v8, %v5306_v15  ;;  %v5357_v14 = vrot.slane %v4208_v19, %v5308_v7  ;;  %v5368_v22 = vrot.slane %v4208_v19, %v5304_v20  ;;  %v5371_v9 = vrot.slane %v4208_v19, %v5306_v15 }
 0x164   :  { %v5295_v11 = vpop.permute.xlu1 %1010 }
 0x165   :  { %9808 = vst [vmem:[#allocation82_spill] sm:$0xff] %v5295_v11  ;;  %v5313_v11 = vsub.s32 2, %v58_v24  ;;  %v5327_v24 = vrot.slane %v55_v8, %v5304_v20  ;;  %9815 = vst [vmem:[#allocation89_spill] sm:$0xff] %v5330_v3 }
 0x166   :  { %1586 = vperm.xlu1 %4423, %v4772_v6   ;;  %9823 = vst [vmem:[#allocation97_spill] sm:$0xff] %v5357_v14  ;;  %9826 = vst [vmem:[#allocation100_spill] sm:$0xff] %v5368_v22 }
 0x167   :  { %9812 = vst [vmem:[#allocation86_spill] sm:$0xff] %v5313_v11  ;;  %9814 = vst [vmem:[#allocation88_spill] sm:$0xff] %v5327_v24  ;;  %v5341_v26 = vrot.slane %v55_v8, %v5313_v11  ;;  %v4210_v8 = vld [vmem:[%s9260_s1 + $0x4] ss:$8 sm:$0xf]  ;;  %v5365_v17 = vrot.slane %v4208_v19, %v5313_v11 }
 0x168   :  { %v5298_v2 = vpop.permute.xlu1 %1012  ;;  %9827 = vst [vmem:[#allocation101_spill] sm:$0xff] %v5371_v9  ;;  %v5404_v27 = vrot.slane %v4210_v8, %v5308_v7  ;;  %v5407_v25 = vrot.slane %v4210_v8, %v5313_v11  ;;  %v5418_v29 = vrot.slane %v4210_v8, %v5306_v15 }
 0x169   :  { %9809 = vst [vmem:[#allocation83_spill] sm:$0xff] %v5298_v2  ;;  %v4207_v2 = vld [vmem:[%s9260_s1 + $0x1] ss:$8 sm:$0xf]  ;;  %9818 = vst [vmem:[#allocation92_spill] sm:$0xff] %v5341_v26 }
 0x16a   :  { %4424 = vset.pattern.permute.xlu1 %v9431_v13  ;;  %v4209_v13 = vld [vmem:[%s9260_s1 + $0x3] ss:$8 sm:$0xf]  ;;  %v5348_v12 = vrot.slane %v4207_v2, %v5313_v11  ;;  %v5351_v10 = vrot.slane %v4207_v2, %v5304_v20  ;;  %v5354_v34 = vrot.slane %v4207_v2, %v5306_v15  ;;  %9825 = vst [vmem:[#allocation99_spill] sm:$0xff] %v5365_v17  ;;  %9832 = vst [vmem:[#allocation106_spill] sm:$0xff] %v5404_v27 }
 0x16b   :  { %1598 = vperm.xlu1 %4424, %v4772_v6   ;;  %v5345_v6 = vrot.slane %v4207_v2, %v5308_v7  ;;  %v5374_v2 = vrot.slane %v4209_v13, %v5308_v7  ;;  %v5386_v32 = vrot.slane %v4209_v13, %v5313_v11  ;;  %v5389_v19 = vrot.slane %v4209_v13, %v5304_v20 }
 0x16c   :  { %v5319_v0 = vpop.permute.xlu1 %1016  ;;  %9820 = vst [vmem:[#allocation94_spill] sm:$0xff] %v5348_v12  ;;  %9821 = vst [vmem:[#allocation95_spill] sm:$0xff] %v5351_v10  ;;  %v5392_v51 = vrot.slane %v4209_v13, %v5306_v15  ;;  %v52_v13 = vsel %vm50_vm0, %v4898_v41, %v4884_v37 }
 0x16d   :  { %9813 = vst [vmem:[#allocation87_spill] sm:$0xff] %v5319_v0  ;;  %v5338_v0 = vpop.permute.xlu0 %1625  ;;  %9819 = vst [vmem:[#allocation93_spill] sm:$0xff] %v5345_v6 }
 0x16e   :  { %9817 = vst [vmem:[#allocation91_spill] sm:$0xff] %v5338_v0  ;;  %9822 = vst [vmem:[#allocation96_spill] sm:$0xff] %v5354_v34 }
 0x16f   :  { %9828 = vst [vmem:[#allocation102_spill] sm:$0xff] %v5374_v2  ;;  %1621 = vrot.lane.b32.xlu1 %v4749_v1, %s4645_s28  ;;  %9829 = vst [vmem:[#allocation103_spill] sm:$0xff] %v5386_v32  ;;  %v51_v1 = vsel %vm50_vm0, %v4884_v37, %v4896_v40  ;;  %v4212_v40 = vld [vmem:[%s9260_s1 + $0x6] ss:$8 sm:$0xf]  ;;  %v140_v37 = vsel %vm138_vm1, %v4927_v52, %v4910_v46 }
 0x170   :  { %v5362_v0 = vpop.permute.xlu1 %1063  ;;  %9830 = vst [vmem:[#allocation104_spill] sm:$0xff] %v5389_v19  ;;  %9831 = vst [vmem:[#allocation105_spill] sm:$0xff] %v5392_v51  ;;  %4427 = vset.pattern.permute.xlu1 %v9450_v44  ;;  %v5415_v44 = vrot.slane %v4210_v8, %v5304_v20  ;;  %v5440_v8 = vrot.slane %v4211_v16, %v5313_v11 }
 0x171   :  { %9824 = vst [vmem:[#allocation98_spill] sm:$0xff] %v5362_v0  ;;  %v53_v0 = vsel %vm50_vm0, %v4886_v38, %v4898_v41  ;;  %9833 = vst [vmem:[#allocation107_spill] sm:$0xff] %v5407_v25  ;;  %v5421_v38 = vrot.slane %v4211_v16, %v5308_v7  ;;  %v5426_v25 = vpop.permute.xlu0 %1662  ;;  %v141_v41 = vsel %vm138_vm1, %v4921_v50, %v4927_v52 }
 0x172   :  { %9834 = vst [vmem:[#allocation108_spill] sm:$0xff] %v5415_v44  ;;  %9835 = vst [vmem:[#allocation109_spill] sm:$0xff] %v5418_v29  ;;  %v5429_v27 = vmul.f32 %v5333_v31, %v53_v0  ;;  %v5447_v0 = vmul.f32 %v5327_v24, %v54_v21  ;;  %v5450_v31 = vmul.f32 %v5330_v3, %v51_v1 }
 0x173   :  { %9836 = vst [vmem:[#allocation110_spill] sm:$0xff] %v5421_v38  ;;  %9837 = vst [vmem:[#allocation111_spill] sm:$0xff] %v5426_v25  ;;  %1623 = vrot.lane.b32.xlu1 %v4763_v5, %s4645_s28  ;;  %v5453_v38 = vrot.slane %v4211_v16, %v5304_v20  ;;  %v5456_v29 = vrot.slane %v4211_v16, %v5306_v15  ;;  %v5459_v52 = vmul.f32 %v5341_v26, %v52_v13 }
 0x174   :  { %9838 = vst [vmem:[#allocation112_spill] sm:$0xff] %v5429_v27  ;;  %9839 = vst [vmem:[#allocation113_spill] sm:$0xff] %v5440_v8  ;;  %v142_v21 = vsel %vm138_vm1, %v4935_v55, %v4921_v50  ;;  %v5470_v1 = vrot.slane %v4212_v40, %v5308_v7  ;;  %v167_v3 = vmul.f32 %v5345_v6, %v141_v41 }
 0x175   :  { %v5444_v25 = vpop.permute.xlu1 %1075  ;;  %9841 = vst [vmem:[#allocation115_spill] sm:$0xff] %v5447_v0  ;;  %9842 = vst [vmem:[#allocation116_spill] sm:$0xff] %v5450_v31  ;;  %v168_v16 = vmul.f32 %v5348_v12, %v140_v37  ;;  %v5475_v13 = vrot.slane %v4212_v40, %v5313_v11  ;;  %v5478_v24 = vrot.slane %v4212_v40, %v5304_v20 }
 0x176   :  { %9840 = vst [vmem:[#allocation114_spill] sm:$0xff] %v5444_v25  ;;  %9843 = vst [vmem:[#allocation117_spill] sm:$0xff] %v5453_v38  ;;  %v139_v25 = vsel %vm138_vm1, %v4910_v46, %v4935_v55  ;;  %v98_v46 = vmul.f32 %v4902_v42, %v5447_v0  ;;  %v99_v26 = vmul.f32 %v4902_v42, %v5429_v27 }
 0x177   :  { %9844 = vst [vmem:[#allocation118_spill] sm:$0xff] %v5456_v29  ;;  %9845 = vst [vmem:[#allocation119_spill] sm:$0xff] %v5459_v52  ;;  %v100_v50 = vmul.f32 %v4902_v42, %v5459_v52  ;;  %v5487_v55 = vrot.slane %v4212_v40, %v5306_v15  ;;  %1627 = vrot.lane.b32.xlu1 %v4759_v4, %s4645_s28  ;;  %v5493_v37 = vmul.f32 %v4902_v42, %v5450_v31  ;;  %v5502_v40 = vpop.permute.xlu0 %1698 }
 0x178   :  { %9846 = vst [vmem:[#allocation120_spill] sm:$0xff] %v5470_v1  ;;  %9847 = vst [vmem:[#allocation121_spill] sm:$0xff] %v5475_v13  ;;  %v122_v41 = vmul.f32 %v4904_v43, %v5447_v0  ;;  %v166_v12 = vmul.f32 %v5351_v10, %v142_v21  ;;  %v169_v6 = vmul.f32 %v5354_v34, %v139_v25 }
 0x179   :  { %9848 = vst [vmem:[#allocation122_spill] sm:$0xff] %v5478_v24  ;;  %9849 = vst [vmem:[#allocation123_spill] sm:$0xff] %v5487_v55  ;;  %v4213_v24 = vld [vmem:[%s9260_s1 + $0x7] ss:$8 sm:$0xf]  ;;  %v123_v13 = vmul.f32 %v4904_v43, %v5429_v27  ;;  %v124_v42 = vmul.f32 %v4904_v43, %v5459_v52  ;;  %v125_v1 = vmul.f32 %v4904_v43, %v5450_v31 }
 0x17a   :  { %9850 = vst [vmem:[#allocation124_spill] sm:$0xff] %v5502_v40  ;;  %v5504_v55 = vpop.permute.xlu1 %1128  ;;  %v110_v25 = vmul.f32 %v4912_v47, %v5447_v0  ;;  %v111_v21 = vmul.f32 %v4912_v47, %v5429_v27  ;;  %v112_v34 = vmul.f32 %v4912_v47, %v5459_v52  ;;  %v211_v10 = vmul.f32 %v4929_v53, %v167_v3  ;;  %v5534_v52 = vld [vmem:[%s9259_s2] sm:$0xf] }
 0x17b   :  { %9851 = vst [vmem:[#allocation125_spill] sm:$0xff] %v5504_v55  ;;  %v212_v40 = vmul.f32 %v4929_v53, %v168_v16  ;;  %v113_v55 = vmul.f32 %v4912_v47, %v5450_v31  ;;  %v5523_v29 = vrot.slane %v4213_v24, %v5308_v7  ;;  %v5526_v43 = vrot.slane %v4213_v24, %v5313_v11  ;;  %v5556_v18 = vpop.permute.xlu0 %1713 }
 0x17c   :  { %v5529_v0 = vrot.slane %v4213_v24, %v5304_v20  ;;  %1674 = vperm.xlu1 %4427, %v5534_v52   ;;  %v210_v27 = vmul.f32 %v4929_v53, %v166_v12  ;;  %v213_v47 = vmul.f32 %v4929_v53, %v169_v6  ;;  %v186_v31 = vmul.f32 %v4941_v58, %v166_v12 }
 0x17d   :  { %9852 = vst [vmem:[#allocation126_spill] sm:$0xff] %v5523_v29  ;;  %9853 = vst [vmem:[#allocation127_spill] sm:$0xff] %v5526_v43  ;;  %v229_v43 = vsel %vm226_vm2, %v4959_v60, %v4967_v62  ;;  %v5551_v38 = vmul.f32 %v4919_v49, %v167_v3  ;;  %v5554_v8 = vmul.f32 %v4919_v49, %v168_v16 }
 0x17e   :  { %9854 = vst [vmem:[#allocation128_spill] sm:$0xff] %v5529_v0  ;;  %v5546_v0 = vrot.slane %v4213_v24, %v5306_v15  ;;  %v215_v53 = vadd.f32 %v211_v10, %v123_v13  ;;  %v216_v44 = vadd.f32 %v212_v40, %v124_v42  ;;  %9859 = vst [vmem:[#allocation133_spill] sm:$0xff] %v5556_v18  ;;  %v9489_v13 = vmov 74  }
 0x17f   :  { %v5548_v29 = vpop.permute.xlu1 %1146  ;;  %9857 = vst [vmem:[#allocation131_spill] sm:$0xff] %v5551_v38  ;;  %9858 = vst [vmem:[#allocation132_spill] sm:$0xff] %v5554_v8  ;;  %v5559_v33 = vmul.f32 %v4919_v49, %v166_v12  ;;  %v5562_v57 = vmul.f32 %v4919_v49, %v169_v6  ;;  %v187_v24 = vmul.f32 %v4941_v58, %v167_v3  ;;  %v9917_v38 = vld [vmem:[#allocation22_spill] sm:$0xff] }
 0x180   :  { %9855 = vst [vmem:[#allocation129_spill] sm:$0xff] %v5546_v0  ;;  %9856 = vst [vmem:[#allocation130_spill] sm:$0xff] %v5548_v29  ;;  %v188_v29 = vmul.f32 %v4941_v58, %v168_v16  ;;  %v189_v0 = vmul.f32 %v4941_v58, %v169_v6  ;;  %v228_v10 = vsel %vm226_vm2, %v4967_v62, %v4937_v56  ;;  %4428 = vset.pattern.permute.xlu1 %v9489_v13  ;;  %v4218_v58 = vld [vmem:[%s9260_s1 + $0x24] ss:$8 sm:$0xf] }
 0x181   :  { %9860 = vst [vmem:[#allocation134_spill] sm:$0xff] %v5559_v33  ;;  %9861 = vst [vmem:[#allocation135_spill] sm:$0xff] %v5562_v57  ;;  %v214_v40 = vadd.f32 %v210_v27, %v122_v41  ;;  %v5572_v42 = vadd.f32 %v213_v47, %v125_v1  ;;  %v5574_v18 = vadd.f32 %v186_v31, %v98_v46  ;;  %1686 = vperm.xlu1 %4428, %v5534_v52  }
 0x182   :  { %v5577_v49 = vmul.f32 %v5357_v14, %v229_v43  ;;  %v198_v57 = vmul.f32 %v4950_v61, %v166_v12  ;;  %v199_v62 = vmul.f32 %v4950_v61, %v167_v3  ;;  %v200_v13 = vmul.f32 %v4950_v61, %v168_v16  ;;  %v5601_v16 = vld [vmem:[%s9260_s1 + $0x20] ss:$8 sm:$0xf] }
 0x183   :  { %v230_v27 = vsel %vm226_vm2, %v4975_v54, %v4959_v60  ;;  %v201_v31 = vmul.f32 %v4950_v61, %v169_v6  ;;  %v256_v1 = vmul.f32 %v5365_v17, %v228_v10  ;;  %v227_v46 = vsel %vm226_vm2, %v4937_v56, %v4975_v54 }
 0x184   :  { %v5596_v41 = vpop.permute.xlu1 %1170  ;;  %v191_v12 = vadd.f32 %v187_v24, %v99_v26  ;;  %v192_v3 = vadd.f32 %v188_v29, %v100_v50  ;;  %v5604_v60 = vrot.slane %v4218_v58, %v5304_v20  ;;  %v5607_v61 = vrot.slane %v4218_v58, %v5308_v7  ;;  %v5618_v29 = vpop.permute.xlu0 %1750  ;;  %v5623_v50 = vld [vmem:[%s9258_s0] sm:$0xff] }
 0x185   :  { %9862 = vst [vmem:[#allocation136_spill] sm:$0xff] %v5596_v41  ;;  %v299_v6 = vmul.f32 %v4953_v63, %v5577_v49  ;;  %v254_v54 = vmul.f32 %v5368_v22, %v230_v27  ;;  %v5613_v56 = vrot.slane %v4218_v58, %v5313_v11  ;;  %v5616_v26 = vrot.slane %v4218_v58, %v5306_v15 }
 0x186   :  { %9863 = vst [vmem:[#allocation137_spill] sm:$0xff] %v5604_v60  ;;  %9864 = vst [vmem:[#allocation138_spill] sm:$0xff] %v5607_v61  ;;  %1709 = vrot.lane.b32.xlu1 %v5623_v50, %s4648_s29  ;;  %v193_v43 = vadd.f32 %v189_v0, %v5493_v37  ;;  %v202_v47 = vadd.f32 %v198_v57, %v110_v25  ;;  %v203_v24 = vadd.f32 %v199_v62, %v111_v21  ;;  %v9494_v27 = vmov 77  }
 0x187   :  { %9865 = vst [vmem:[#allocation139_spill] sm:$0xff] %v5613_v56  ;;  %9866 = vst [vmem:[#allocation140_spill] sm:$0xff] %v5616_v26  ;;  %v257_v10 = vmul.f32 %v5371_v9, %v227_v46  ;;  %4431 = vset.pattern.permute.xlu1 %v9494_v27  ;;  %v204_v58 = vadd.f32 %v200_v13, %v112_v34  ;;  %v205_v22 = vadd.f32 %v201_v31, %v113_v55 }
 0x188   :  { %9867 = vst [vmem:[#allocation141_spill] sm:$0xff] %v5618_v29  ;;  %v300_v17 = vmul.f32 %v4953_v63, %v256_v1  ;;  %v5633_v14 = vrot.slane %v5601_v16, %v5308_v7  ;;  %v5635_v29 = vpop.permute.xlu1 %1181  ;;  %v5639_v0 = vmul.f32 %v4944_v59, %v5577_v49  ;;  %v5642_v57 = vmul.f32 %v4944_v59, %v256_v1 }
 0x189   :  { %9869 = vst [vmem:[#allocation143_spill] sm:$0xff] %v5635_v29  ;;  %v5646_v37 = vrot.slane %v5601_v16, %v5313_v11  ;;  %v1121_v34 = vcombine.low %v5604_v60, %v5607_v61  ;;  %v303_v55 = vadd.f32 %v299_v6, %v215_v53  ;;  %v298_v25 = vmul.f32 %v4953_v63, %v254_v54  ;;  %v5678_v60 = vpop.permute.xlu0 %1786  ;;  %v9922_v29 = vld [vmem:[#allocation28_spill] sm:$0xff] }
 0x18a   :  { %9868 = vst [vmem:[#allocation142_spill] sm:$0xff] %v5633_v14  ;;  %9870 = vst [vmem:[#allocation144_spill] sm:$0xff] %v5639_v0  ;;  %v317_v21 = vsel %vm314_vm3, %v4998_v36, %v5007_v30  ;;  %v1122_v13 = vcombine.low %v5613_v56, %v5616_v26  ;;  %1711 = vrot.lane.b32.xlu1 %v4763_v5, %s4648_s29  ;;  %v301_v62 = vmul.f32 %v4953_v63, %v257_v10  ;;  %v9897_v0 = vld [vmem:[#allocation107_spill] sm:$0xff] }
 0x18b   :  { %9871 = vst [vmem:[#allocation145_spill] sm:$0xff] %v5642_v57  ;;  %9872 = vst [vmem:[#allocation146_spill] sm:$0xff] %v5646_v37  ;;  %v274_v31 = vmul.f32 %v4983_v48, %v254_v54  ;;  %v275_v53 = vmul.f32 %v4983_v48, %v5577_v49  ;;  %v316_v46 = vsel %vm314_vm3, %v5007_v30, %v4962_v45 }
 0x18c   :  { %v304_v6 = vadd.f32 %v300_v17, %v216_v44  ;;  %v5669_v27 = vmul.f32 %v4944_v59, %v254_v54  ;;  %v5672_v9 = vmul.f32 %v4944_v59, %v257_v10  ;;  %v5676_v63 = vrot.slane %v5601_v16, %v5304_v20  ;;  %9876 = vst [vmem:[#allocation150_spill] sm:$0xff] %v5678_v60  ;;  %v5680_v26 = vpop.permute.xlu1 %1185  ;;  %v4565_v60 = vld [vmem:[%s9258_s0 + $0x8] sm:$0xff] }
 0x18d   :  { %9877 = vst [vmem:[#allocation151_spill] sm:$0xff] %v5680_v26  ;;  %v276_v56 = vmul.f32 %v4983_v48, %v256_v1  ;;  %v277_v30 = vmul.f32 %v4983_v48, %v257_v10  ;;  %v343_v17 = vmul.f32 %v5374_v2, %v317_v21  ;;  %v5686_v44 = vmul.f32 %v5623_v50, %v1121_v34 }
 0x18e   :  { %9873 = vst [vmem:[#allocation147_spill] sm:$0xff] %v5669_v27  ;;  %9874 = vst [vmem:[#allocation148_spill] sm:$0xff] %v5672_v9  ;;  %v5688_v61 = vadd.f32 %v298_v25, %v214_v40  ;;  %v286_v59 = vmul.f32 %v4990_v39, %v254_v54  ;;  %v344_v9 = vmul.f32 %v5386_v32, %v316_v46  ;;  %1715 = vrot.lane.b32.xlu1 %v4759_v4, %s4648_s29  ;;  %v9898_v27 = vld [vmem:[#allocation18_spill] sm:$0xff] }
 0x18f   :  { %9875 = vst [vmem:[#allocation149_spill] sm:$0xff] %v5676_v63  ;;  %v5695_v57 = vmul.f32 %v4565_v60, %v1122_v13  ;;  %v305_v48 = vadd.f32 %v301_v62, %v5572_v42  ;;  %v278_v34 = vadd.f32 %v274_v31, %v5574_v18  ;;  %v279_v21 = vadd.f32 %v275_v53, %v191_v12 }
 0x190   :  { %v287_v40 = vmul.f32 %v4990_v39, %v5577_v49  ;;  %v288_v54 = vmul.f32 %v4990_v39, %v256_v1  ;;  %v289_v25 = vmul.f32 %v4990_v39, %v257_v10  ;;  %v315_v60 = vsel %vm314_vm3, %v4962_v45, %v5015_v28  ;;  %v4215_v39 = vld [vmem:[%s9260_s1 + $0x21] ss:$8 sm:$0xf]  ;;  %v5721_v1 = vpop.permute.xlu1 %1222 }
 0x191   :  { %v318_v42 = vsel %vm314_vm3, %v5015_v28, %v4998_v36  ;;  %v280_v13 = vadd.f32 %v276_v56, %v192_v3  ;;  %v281_v18 = vadd.f32 %v277_v30, %v193_v43  ;;  %v387_v12 = vmul.f32 %v4978_v35, %v343_v17  ;;  %9878 = vst [vmem:[#allocation152_spill] sm:$0xff] %v5721_v1  ;;  %v5732_v3 = vpop.permute.xlu0 %1801  ;;  %v9883_v30 = vld [vmem:[#allocation4_spill] sm:$0xff] }
 0x192   :  { %v5716_v49 = vcombine.high %v5686_v44, %v5686_v44  ;;  %v290_v45 = vadd.f32 %v286_v59, %v202_v47  ;;  %v388_v10 = vmul.f32 %v4978_v35, %v344_v9  ;;  %v5726_v28 = vcombine.high %v5695_v57, %v5695_v57  ;;  %9880 = vst [vmem:[#allocation154_spill] sm:$0xff] %v5732_v3 }
 0x193   :  { %v5730_v36 = vrot.slane %v5601_v16, %v5306_v15  ;;  %1762 = vperm.xlu1 %4431, %v5534_v52   ;;  %v291_v56 = vadd.f32 %v287_v40, %v203_v24  ;;  %v342_v43 = vmul.f32 %v5389_v19, %v318_v42  ;;  %v345_v62 = vmul.f32 %v5392_v51, %v315_v60  ;;  %v9888_v40 = vld [vmem:[#allocation16_spill] sm:$0xff]  ;;  %v9892_v51 = vld [vmem:[#allocation10_spill] sm:$0xff] }
 0x194   :  { %v292_v47 = vadd.f32 %v288_v54, %v204_v58  ;;  %v293_v31 = vadd.f32 %v289_v25, %v205_v22  ;;  %v5738_v53 = vrot.slane %v4215_v39, %v5308_v7  ;;  %v5741_v46 = vrot.slane %v4215_v39, %v5313_v11  ;;  %v9887_v22 = vld [vmem:[#allocation5_spill] sm:$0xff]  ;;  %v9889_v25 = vld [vmem:[#allocation14_spill] sm:$0xff] }
 0x195   :  { %9879 = vst [vmem:[#allocation153_spill] sm:$0xff] %v5730_v36  ;;  %v5744_v16 = vmul.f32 %v9883_v30, %v343_v17  ;;  %v5747_v59 = vmul.f32 %v9883_v30, %v344_v9  ;;  %v391_v32 = vadd.f32 %v387_v12, %v303_v55  ;;  %v5751_v24 = vrot.slane %v4215_v39, %v5304_v20  ;;  %v5772_v2 = vpop.permute.xlu1 %1246  ;;  %v5778_v1 = vpop.permute.xlu0 %1838 }
 0x196   :  { %9881 = vst [vmem:[#allocation155_spill] sm:$0xff] %v5738_v53  ;;  %9882 = vst [vmem:[#allocation156_spill] sm:$0xff] %v5741_v46  ;;  %v392_v58 = vadd.f32 %v388_v10, %v304_v6  ;;  %v404_v54 = vsel %vm402_vm4, %v9888_v40, %v9887_v22  ;;  %v405_v60 = vsel %vm402_vm4, %v9889_v25, %v9888_v40  ;;  %v9506_v55 = vmov 78  }
 0x197   :  { %9884 = vst [vmem:[#allocation4_spill] sm:$0xff] %v5744_v16  ;;  %9885 = vst [vmem:[#allocation157_spill] sm:$0xff] %v5747_v59  ;;  %v5762_v42 = vrot.slane %v4215_v39, %v5306_v15  ;;  %4432 = vset.pattern.permute.xlu1 %v9506_v55  ;;  %v5766_v12 = vmul.f32 %v9883_v30, %v342_v43  ;;  %v386_v6 = vmul.f32 %v4978_v35, %v342_v43  ;;  %v9894_v55 = vld [vmem:[#allocation12_spill] sm:$0xff]  ;;  %v9896_v16 = vld [vmem:[#allocation106_spill] sm:$0xff] }
 0x198   :  { %9886 = vst [vmem:[#allocation158_spill] sm:$0xff] %v5751_v24  ;;  %v389_v10 = vmul.f32 %v4978_v35, %v345_v62  ;;  %v362_v19 = vmul.f32 %v9892_v51, %v342_v43  ;;  %1774 = vperm.xlu1 %4432, %v5534_v52   ;;  %9893 = vst [vmem:[#allocation14_spill] sm:$0xff] %v5772_v2  ;;  %v363_v40 = vmul.f32 %v9892_v51, %v343_v17 }
 0x199   :  { %9890 = vst [vmem:[#allocation5_spill] sm:$0xff] %v5762_v42  ;;  %9891 = vst [vmem:[#allocation16_spill] sm:$0xff] %v5766_v12  ;;  %v364_v39 = vmul.f32 %v9892_v51, %v344_v9  ;;  %v365_v3 = vmul.f32 %v9892_v51, %v345_v62  ;;  %v374_v59 = vmul.f32 %v9894_v55, %v342_v43 }
 0x19a   :  { %9895 = vst [vmem:[#allocation10_spill] sm:$0xff] %v5778_v1  ;;  %v431_v12 = vmul.f32 %v9896_v16, %v405_v60  ;;  %v432_v35 = vmul.f32 %v9897_v0, %v404_v54  ;;  %v406_v8 = vsel %vm402_vm4, %v9898_v27, %v9889_v25  ;;  %v375_v2 = vmul.f32 %v9894_v55, %v343_v17  ;;  %v4216_v17 = vld [vmem:[%s9260_s1 + $0x22] ss:$8 sm:$0xf] }
 0x19b   :  { %v376_v41 = vmul.f32 %v9894_v55, %v344_v9  ;;  %v377_v26 = vmul.f32 %v9894_v55, %v345_v62  ;;  %v403_v51 = vsel %vm402_vm4, %v9887_v22, %v9898_v27  ;;  %v5794_v43 = vmul.f32 %v9883_v30, %v345_v62  ;;  %v9900_v16 = vld [vmem:[#allocation108_spill] sm:$0xff]  ;;  %v5803_v27 = vpop.permute.xlu1 %1258  ;;  %v9903_v30 = vld [vmem:[#allocation109_spill] sm:$0xff] }
 0x19c   :  { %v390_v54 = vadd.f32 %v386_v6, %v5688_v61  ;;  %v393_v60 = vadd.f32 %v389_v10, %v305_v48  ;;  %v366_v0 = vadd.f32 %v362_v19, %v278_v34  ;;  %1797 = vrot.lane.b32.xlu1 %v5623_v50, %s4654_s30  ;;  %v367_v9 = vadd.f32 %v363_v40, %v279_v21  ;;  %v9902_v48 = vld [vmem:[#allocation7_spill] sm:$0xff] }
 0x19d   :  { %9899 = vst [vmem:[#allocation12_spill] sm:$0xff] %v5794_v43  ;;  %v368_v25 = vadd.f32 %v364_v39, %v280_v13  ;;  %v369_v55 = vadd.f32 %v365_v3, %v281_v18  ;;  %v430_v1 = vmul.f32 %v9900_v16, %v406_v8  ;;  %9901 = vst [vmem:[#allocation18_spill] sm:$0xff] %v5803_v27  ;;  %v9512_v62 = vmov 81   ;;  %v5813_v8 = vpop.permute.xlu0 %1874  ;;  %v9906_v3 = vld [vmem:[#allocation6_spill] sm:$0xff] }
 0x19e   :  { %4435 = vset.pattern.permute.xlu1 %v9512_v62  ;;  %v378_v61 = vadd.f32 %v374_v59, %v290_v45  ;;  %v475_v19 = vmul.f32 %v9902_v48, %v431_v12  ;;  %v476_v34 = vmul.f32 %v9902_v48, %v432_v35  ;;  %v433_v22 = vmul.f32 %v9903_v30, %v403_v51 }
 0x19f   :  { %v379_v6 = vadd.f32 %v375_v2, %v291_v56  ;;  %v380_v21 = vadd.f32 %v376_v41, %v292_v47  ;;  %v381_v13 = vadd.f32 %v377_v26, %v293_v31  ;;  %v5811_v18 = vrot.slane %v4216_v17, %v5308_v7  ;;  %9905 = vst [vmem:[#allocation159_spill] sm:$0xff] %v5813_v8  ;;  %v9911_v41 = vld [vmem:[#allocation8_spill] sm:$0xff]  ;;  %v9912_v26 = vld [vmem:[#allocation26_spill] sm:$0xff]  ;;  %v5841_v51 = vpop.permute.xlu1 %1271 }
 0x1a0   :  { %v5816_v10 = vmul.f32 %v9906_v3, %v431_v12  ;;  %v5819_v45 = vmul.f32 %v9906_v3, %v432_v35  ;;  %v5822_v59 = vrot.slane %v4216_v17, %v5313_v11  ;;  %v5825_v40 = vrot.slane %v4216_v17, %v5304_v20  ;;  %1799 = vrot.lane.b32.xlu1 %v4763_v5, %s4654_s30  ;;  %v9913_v47 = vld [vmem:[#allocation24_spill] sm:$0xff] }
 0x1a1   :  { %9904 = vst [vmem:[#allocation7_spill] sm:$0xff] %v5811_v18  ;;  %v474_v2 = vmul.f32 %v9902_v48, %v430_v1  ;;  %v492_v56 = vsel %vm490_vm5, %v9912_v26, %v9911_v41  ;;  %v493_v31 = vsel %vm490_vm5, %v9913_v47, %v9912_v26  ;;  %v5839_v39 = vrot.slane %v4216_v17, %v5306_v15  ;;  %v9916_v8 = vld [vmem:[#allocation20_spill] sm:$0xff] }
 0x1a2   :  { %9907 = vst [vmem:[#allocation6_spill] sm:$0xff] %v5816_v10  ;;  %9908 = vst [vmem:[#allocation160_spill] sm:$0xff] %v5819_v45  ;;  %v479_v62 = vadd.f32 %v475_v19, %v391_v32  ;;  %v480_v30 = vadd.f32 %v476_v34, %v392_v58  ;;  %v477_v16 = vmul.f32 %v9902_v48, %v433_v22  ;;  %v9920_v58 = vld [vmem:[#allocation113_spill] sm:$0xff] }
 0x1a3   :  { %9909 = vst [vmem:[#allocation161_spill] sm:$0xff] %v5822_v59  ;;  %9910 = vst [vmem:[#allocation162_spill] sm:$0xff] %v5825_v40  ;;  %v450_v27 = vmul.f32 %v9916_v8, %v430_v1  ;;  %v451_v45 = vmul.f32 %v9916_v8, %v431_v12  ;;  %v452_v10 = vmul.f32 %v9916_v8, %v432_v35 }
 0x1a4   :  { %9914 = vst [vmem:[#allocation8_spill] sm:$0xff] %v5839_v39  ;;  %9915 = vst [vmem:[#allocation26_spill] sm:$0xff] %v5841_v51  ;;  %v453_v43 = vmul.f32 %v9916_v8, %v433_v22  ;;  %v462_v33 = vmul.f32 %v9917_v38, %v430_v1  ;;  %v5850_v26 = vmul.f32 %v9906_v3, %v430_v1  ;;  %v9919_v51 = vld [vmem:[#allocation110_spill] sm:$0xff]  ;;  %1803 = vrot.lane.b32.xlu1 %v4759_v4, %s4654_s30 }
 0x1a5   :  { %v463_v17 = vmul.f32 %v9917_v38, %v431_v12  ;;  %v519_v32 = vmul.f32 %v9919_v51, %v493_v31  ;;  %v520_v19 = vmul.f32 %v9920_v58, %v492_v56  ;;  %v5858_v48 = vmul.f32 %v9906_v3, %v433_v22  ;;  %v5867_v12 = vpop.permute.xlu1 %1275 }
 0x1a6   :  { %9918 = vst [vmem:[#allocation24_spill] sm:$0xff] %v5850_v26  ;;  %v478_v34 = vadd.f32 %v474_v2, %v390_v54  ;;  %v464_v8 = vmul.f32 %v9917_v38, %v432_v35  ;;  %v494_v1 = vsel %vm490_vm5, %v9922_v29, %v9913_v47  ;;  %v5865_v26 = vpop.permute.xlu0 %1889  ;;  %9924 = vst [vmem:[#allocation28_spill] sm:$0xff] %v5867_v12  ;;  %v4217_v47 = vld [vmem:[%s9260_s1 + $0x23] ss:$8 sm:$0xf] }
 0x1a7   :  { %9921 = vst [vmem:[#allocation20_spill] sm:$0xff] %v5858_v48  ;;  %9923 = vst [vmem:[#allocation22_spill] sm:$0xff] %v5865_v26  ;;  %v481_v31 = vadd.f32 %v477_v16, %v393_v60  ;;  %v454_v56 = vadd.f32 %v450_v27, %v366_v0  ;;  %v465_v58 = vmul.f32 %v9917_v38, %v433_v22  ;;  %v9925_v48 = vld [vmem:[#allocation11_spill] sm:$0xff]  ;;  %v9926_v16 = vld [vmem:[#allocation117_spill] sm:$0xff] }
 0x1a8   :  { %v491_v54 = vsel %vm490_vm5, %v9911_v41, %v9922_v29  ;;  %v455_v3 = vadd.f32 %v451_v45, %v367_v9  ;;  %v456_v35 = vadd.f32 %v452_v10, %v368_v25  ;;  %v457_v2 = vadd.f32 %v453_v43, %v369_v55  ;;  %1850 = vperm.xlu1 %4435, %v5534_v52   ;;  %v9927_v27 = vld [vmem:[#allocation118_spill] sm:$0xff]  ;;  %v9928_v9 = vld [vmem:[#allocation36_spill] sm:$0xff]  ;;  %v9934_v10 = vld [vmem:[#allocation9_spill] sm:$0xff] }
 0x1a9   :  { %v466_v51 = vadd.f32 %v462_v33, %v378_v61  ;;  %v467_v26 = vadd.f32 %v463_v17, %v379_v6  ;;  %v563_v12 = vmul.f32 %v9925_v48, %v519_v32  ;;  %v564_v0 = vmul.f32 %v9925_v48, %v520_v19  ;;  %v9929_v25 = vld [vmem:[#allocation34_spill] sm:$0xff]  ;;  %v5886_v43 = vpop.permute.xlu1 %1322  ;;  %v9931_v61 = vld [vmem:[#allocation13_spill] sm:$0xff] }
 0x1aa   :  { %v518_v38 = vmul.f32 %v9926_v16, %v494_v1  ;;  %v468_v60 = vadd.f32 %v464_v8, %v380_v21  ;;  %v521_v29 = vmul.f32 %v9927_v27, %v491_v54  ;;  %v581_v33 = vsel %vm578_vm6, %v9929_v25, %v9928_v9  ;;  %9930 = vst [vmem:[#allocation11_spill] sm:$0xff] %v5886_v43 }
 0x1ab   :  { %v469_v55 = vadd.f32 %v465_v58, %v381_v13  ;;  %v580_v22 = vsel %vm578_vm6, %v9928_v9, %v9931_v61  ;;  %v5894_v6 = vrot.slane %v4217_v47, %v5308_v7  ;;  %v5897_v21 = vrot.slane %v4217_v47, %v5313_v11  ;;  %v5911_v58 = vpop.permute.xlu0 %1926  ;;  %v9940_v9 = vld [vmem:[#allocation120_spill] sm:$0xff] }
 0x1ac   :  { %v5900_v45 = vmul.f32 %v9934_v10, %v519_v32  ;;  %v5903_v41 = vmul.f32 %v9934_v10, %v520_v19  ;;  %v5906_v13 = vrot.slane %v4217_v47, %v5304_v20  ;;  %v5909_v17 = vrot.slane %v4217_v47, %v5306_v15  ;;  %9939 = vst [vmem:[#allocation165_spill] sm:$0xff] %v5911_v58 }
 0x1ad   :  { %9932 = vst [vmem:[#allocation36_spill] sm:$0xff] %v5894_v6  ;;  %9933 = vst [vmem:[#allocation34_spill] sm:$0xff] %v5897_v21  ;;  %v567_v8 = vadd.f32 %v563_v12, %v479_v62  ;;  %v568_v1 = vadd.f32 %v564_v0, %v480_v30  ;;  %v562_v54 = vmul.f32 %v9925_v48, %v518_v38  ;;  %v9522_v16 = vmov 82   ;;  %v9942_v21 = vld [vmem:[#allocation121_spill] sm:$0xff]  ;;  %v9943_v12 = vld [vmem:[#allocation32_spill] sm:$0xff] }
 0x1ae   :  { %9935 = vst [vmem:[#allocation13_spill] sm:$0xff] %v5900_v45  ;;  %9936 = vst [vmem:[#allocation9_spill] sm:$0xff] %v5903_v41  ;;  %v607_v27 = vmul.f32 %v9940_v9, %v581_v33  ;;  %4436 = vset.pattern.permute.xlu1 %v9522_v16  ;;  %v565_v43 = vmul.f32 %v9925_v48, %v521_v29  ;;  %v9941_v41 = vld [vmem:[#allocation30_spill] sm:$0xff]  ;;  %v608_v47 = vmul.f32 %v9942_v21, %v580_v22  ;;  %v5928_v48 = vpop.permute.xlu1 %1334 }
 0x1af   :  { %9937 = vst [vmem:[#allocation163_spill] sm:$0xff] %v5906_v13  ;;  %9938 = vst [vmem:[#allocation164_spill] sm:$0xff] %v5909_v17  ;;  %v538_v45 = vmul.f32 %v9941_v41, %v518_v38  ;;  %v539_v13 = vmul.f32 %v9941_v41, %v519_v32  ;;  %1862 = vperm.xlu1 %4436, %v5534_v52   ;;  %v540_v62 = vmul.f32 %v9941_v41, %v520_v19  ;;  %v9944_v33 = vld [vmem:[#allocation38_spill] sm:$0xff]  ;;  %v5946_v59 = vpop.permute.xlu0 %1962 }
 0x1b0   :  { %v541_v30 = vmul.f32 %v9941_v41, %v521_v29  ;;  %v550_v0 = vmul.f32 %v9943_v12, %v518_v38  ;;  %v582_v16 = vsel %vm578_vm6, %v9944_v33, %v9929_v25  ;;  %9945 = vst [vmem:[#allocation30_spill] sm:$0xff] %v5928_v48  ;;  %v551_v9 = vmul.f32 %v9943_v12, %v519_v32  ;;  %v9948_v25 = vld [vmem:[#allocation17_spill] sm:$0xff] }
 0x1b1   :  { %v552_v58 = vmul.f32 %v9943_v12, %v520_v19  ;;  %v579_v22 = vsel %vm578_vm6, %v9931_v61, %v9944_v33  ;;  %v5937_v41 = vmul.f32 %v9934_v10, %v518_v38  ;;  %v5940_v21 = vmul.f32 %v9934_v10, %v521_v29  ;;  %v9949_v19 = vld [vmem:[#allocation122_spill] sm:$0xff]  ;;  %9950 = vst [vmem:[#allocation17_spill] sm:$0xff] %v5946_v59  ;;  %v9951_v10 = vld [vmem:[#allocation123_spill] sm:$0xff] }
 0x1b2   :  { %v553_v17 = vmul.f32 %v9943_v12, %v521_v29  ;;  %v651_v6 = vmul.f32 %v9948_v25, %v607_v27  ;;  %v566_v48 = vadd.f32 %v562_v54, %v478_v34  ;;  %v569_v39 = vadd.f32 %v565_v43, %v481_v31  ;;  %v9953_v12 = vld [vmem:[#allocation15_spill] sm:$0xff] }
 0x1b3   :  { %9946 = vst [vmem:[#allocation32_spill] sm:$0xff] %v5937_v41  ;;  %9947 = vst [vmem:[#allocation38_spill] sm:$0xff] %v5940_v21  ;;  %v652_v32 = vmul.f32 %v9948_v25, %v608_v47  ;;  %v606_v40 = vmul.f32 %v9949_v19, %v582_v16  ;;  %1885 = vrot.lane.b32.xlu1 %v5623_v50, %s4659_s10  ;;  %v542_v38 = vadd.f32 %v538_v45, %v454_v56  ;;  %v5951_v41 = vpop.permute.xlu1 %1357  ;;  %v9531_v29 = vmov 85   ;;  %v9957_v45 = vld [vmem:[#allocation19_spill] sm:$0xff] }
 0x1b4   :  { %v543_v61 = vadd.f32 %v539_v13, %v455_v3  ;;  %v544_v33 = vadd.f32 %v540_v62, %v456_v35  ;;  %v609_v21 = vmul.f32 %v9951_v10, %v579_v22  ;;  %9952 = vst [vmem:[#allocation166_spill] sm:$0xff] %v5951_v41  ;;  %4439 = vset.pattern.permute.xlu1 %v9531_v29  ;;  %v9958_v13 = vld [vmem:[#allocation46_spill] sm:$0xff]  ;;  %v5990_v22 = vpop.permute.xlu0 %1977  ;;  %v9967_v10 = vld [vmem:[#allocation127_spill] sm:$0xff] }
 0x1b5   :  { %v545_v34 = vadd.f32 %v541_v30, %v457_v2  ;;  %v554_v31 = vadd.f32 %v550_v0, %v466_v51  ;;  %v555_v43 = vadd.f32 %v551_v9, %v467_v26  ;;  %v556_v54 = vadd.f32 %v552_v58, %v468_v60  ;;  %v9959_v51 = vld [vmem:[#allocation44_spill] sm:$0xff]  ;;  %v9961_v58 = vld [vmem:[#allocation47_spill] sm:$0xff]  ;;  %9963 = vst [vmem:[#allocation46_spill] sm:$0xff] %v5990_v22 }
 0x1b6   :  { %v557_v16 = vadd.f32 %v553_v17, %v469_v55  ;;  %v5955_v19 = vmul.f32 %v9953_v12, %v607_v27  ;;  %v5958_v59 = vmul.f32 %v9953_v12, %v608_v47  ;;  %v655_v56 = vadd.f32 %v651_v6, %v567_v8  ;;  %v9960_v6 = vld [vmem:[#allocation40_spill] sm:$0xff] }
 0x1b7   :  { %v656_v3 = vadd.f32 %v652_v32, %v568_v1  ;;  %v5961_v35 = vmul.f32 %v9953_v12, %v606_v40  ;;  %v668_v2 = vsel %vm666_vm7, %v9958_v13, %v9957_v45  ;;  %v669_v26 = vsel %vm666_vm7, %v9959_v51, %v9958_v13  ;;  %1887 = vrot.lane.b32.xlu1 %v4763_v5, %s4659_s10  ;;  %v5981_v1 = vpop.permute.xlu1 %1359  ;;  %v9965_v32 = vld [vmem:[#allocation42_spill] sm:$0xff] }
 0x1b8   :  { %9954 = vst [vmem:[#allocation15_spill] sm:$0xff] %v5955_v19  ;;  %9955 = vst [vmem:[#allocation167_spill] sm:$0xff] %v5958_v59  ;;  %v650_v60 = vmul.f32 %v9948_v25, %v606_v40  ;;  %v653_v55 = vmul.f32 %v9948_v25, %v609_v21  ;;  %v626_v17 = vmul.f32 %v9960_v6, %v606_v40 }
 0x1b9   :  { %9956 = vst [vmem:[#allocation168_spill] sm:$0xff] %v5961_v35  ;;  %v670_v8 = vsel %vm666_vm7, %v9961_v58, %v9959_v51  ;;  %9962 = vst [vmem:[#allocation19_spill] sm:$0xff] %v5981_v1  ;;  %v627_v9 = vmul.f32 %v9960_v6, %v607_v27  ;;  %v628_v62 = vmul.f32 %v9960_v6, %v608_v47  ;;  %v9966_v51 = vld [vmem:[#allocation126_spill] sm:$0xff] }
 0x1ba   :  { %v629_v30 = vmul.f32 %v9960_v6, %v609_v21  ;;  %v667_v0 = vsel %vm666_vm7, %v9957_v45, %v9961_v58  ;;  %v5993_v25 = vmul.f32 %v9953_v12, %v609_v21  ;;  %v638_v13 = vmul.f32 %v9965_v32, %v606_v40  ;;  %v4219_v6 = vld [vmem:[%s9260_s1 + $0x25] ss:$8 sm:$0xf] }
 0x1bb   :  { %v695_v29 = vmul.f32 %v9966_v51, %v669_v26  ;;  %v696_v41 = vmul.f32 %v9967_v10, %v668_v2  ;;  %v639_v1 = vmul.f32 %v9965_v32, %v607_v27  ;;  %v640_v59 = vmul.f32 %v9965_v32, %v608_v47  ;;  %v9968_v58 = vld [vmem:[#allocation128_spill] sm:$0xff]  ;;  %1891 = vrot.lane.b32.xlu1 %v4759_v4, %s4659_s10  ;;  %v9969_v51 = vld [vmem:[#allocation129_spill] sm:$0xff]  ;;  %v6008_v10 = vpop.permute.xlu1 %1363 }
 0x1bc   :  { %9964 = vst [vmem:[#allocation44_spill] sm:$0xff] %v5993_v25  ;;  %v641_v45 = vmul.f32 %v9965_v32, %v609_v21  ;;  %v694_v22 = vmul.f32 %v9968_v58, %v670_v8  ;;  %v654_v40 = vadd.f32 %v650_v60, %v566_v48  ;;  %v657_v12 = vadd.f32 %v653_v55, %v569_v39  ;;  %v9972_v21 = vld [vmem:[#allocation23_spill] sm:$0xff]  ;;  %v6019_v55 = vpop.permute.xlu0 %2014 }
 0x1bd   :  { %v630_v26 = vadd.f32 %v626_v17, %v542_v38  ;;  %v697_v2 = vmul.f32 %v9969_v51, %v667_v0  ;;  %9970 = vst [vmem:[#allocation40_spill] sm:$0xff] %v6008_v10  ;;  %v631_v25 = vadd.f32 %v627_v9, %v543_v61  ;;  %v632_v19 = vadd.f32 %v628_v62, %v544_v33  ;;  %v9975_v33 = vld [vmem:[#allocation49_spill] sm:$0xff]  ;;  %v9983_v0 = vld [vmem:[#allocation55_spill] sm:$0xff] }
 0x1be   :  { %v633_v35 = vadd.f32 %v629_v30, %v545_v34  ;;  %v6011_v27 = vrot.slane %v4219_v6, %v5304_v20  ;;  %v642_v47 = vadd.f32 %v638_v13, %v554_v31  ;;  %v739_v32 = vmul.f32 %v9972_v21, %v695_v29  ;;  %9974 = vst [vmem:[#allocation23_spill] sm:$0xff] %v6019_v55  ;;  %v9977_v9 = vld [vmem:[#allocation21_spill] sm:$0xff] }
 0x1bf   :  { %v740_v8 = vmul.f32 %v9972_v21, %v696_v41  ;;  %v6016_v58 = vrot.slane %v4219_v6, %v5306_v15  ;;  %v643_v39 = vadd.f32 %v639_v1, %v555_v43  ;;  %v644_v48 = vadd.f32 %v640_v59, %v556_v54  ;;  %1938 = vperm.xlu1 %4439, %v5534_v52   ;;  %v6025_v17 = vpop.permute.xlu1 %1410  ;;  %v9982_v30 = vld [vmem:[#allocation25_spill] sm:$0xff] }
 0x1c0   :  { %9971 = vst [vmem:[#allocation47_spill] sm:$0xff] %v6011_v27  ;;  %v645_v38 = vadd.f32 %v641_v45, %v557_v16  ;;  %v738_v60 = vmul.f32 %v9972_v21, %v694_v22  ;;  %v741_v61 = vmul.f32 %v9972_v21, %v697_v2  ;;  %v714_v34 = vmul.f32 %v9975_v33, %v694_v22  ;;  %v9984_v45 = vld [vmem:[#allocation53_spill] sm:$0xff] }
 0x1c1   :  { %9973 = vst [vmem:[#allocation42_spill] sm:$0xff] %v6016_v58  ;;  %v715_v31 = vmul.f32 %v9975_v33, %v695_v29  ;;  %9976 = vst [vmem:[#allocation49_spill] sm:$0xff] %v6025_v17  ;;  %v6028_v62 = vmul.f32 %v9977_v9, %v695_v29  ;;  %v6031_v59 = vmul.f32 %v9977_v9, %v696_v41 }
 0x1c2   :  { %v6035_v43 = vrot.slane %v4219_v6, %v5308_v7  ;;  %v6038_v54 = vrot.slane %v4219_v6, %v5313_v11  ;;  %v743_v16 = vadd.f32 %v739_v32, %v655_v56  ;;  %v744_v1 = vadd.f32 %v740_v8, %v656_v3 }
 0x1c3   :  { %9978 = vst [vmem:[#allocation21_spill] sm:$0xff] %v6028_v62  ;;  %9979 = vst [vmem:[#allocation169_spill] sm:$0xff] %v6031_v59  ;;  %v756_v13 = vsel %vm754_vm8, %v9983_v0, %v9982_v30  ;;  %v757_v21 = vsel %vm754_vm8, %v9984_v45, %v9983_v0  ;;  %v6049_v51 = vmul.f32 %v9977_v9, %v694_v22  ;;  %v9538_v3 = vmov 86   ;;  %v9987_v0 = vld [vmem:[#allocation51_spill] sm:$0xff] }
 0x1c4   :  { %9980 = vst [vmem:[#allocation170_spill] sm:$0xff] %v6035_v43  ;;  %9981 = vst [vmem:[#allocation171_spill] sm:$0xff] %v6038_v54  ;;  %v6052_v55 = vmul.f32 %v9977_v9, %v697_v2  ;;  %v716_v6 = vmul.f32 %v9975_v33, %v696_v41  ;;  %v717_v56 = vmul.f32 %v9975_v33, %v697_v2  ;;  %4440 = vset.pattern.permute.xlu1 %v9538_v3  ;;  %v9988_v33 = vld [vmem:[#allocation57_spill] sm:$0xff] }
 0x1c5   :  { %9985 = vst [vmem:[#allocation25_spill] sm:$0xff] %v6049_v51  ;;  %v742_v32 = vadd.f32 %v738_v60, %v654_v40  ;;  %v6057_v8 = vadd.f32 %v741_v61, %v657_v12  ;;  %v6059_v17 = vadd.f32 %v714_v34, %v630_v26  ;;  %v6061_v10 = vadd.f32 %v715_v31, %v631_v25  ;;  %v6071_v40 = vpop.permute.xlu0 %2050  ;;  %v6073_v12 = vpop.permute.xlu1 %1422  ;;  %v4220_v60 = vld [vmem:[%s9260_s1 + $0x26] ss:$8 sm:$0xf] }
 0x1c6   :  { %9986 = vst [vmem:[#allocation55_spill] sm:$0xff] %v6052_v55  ;;  %1950 = vperm.xlu1 %4440, %v5534_v52   ;;  %v726_v59 = vmul.f32 %v9987_v0, %v694_v22  ;;  %v783_v9 = vmul.f32 %v5633_v14, %v757_v21  ;;  %v784_v55 = vmul.f32 %v5646_v37, %v756_v13  ;;  %9989 = vst [vmem:[#allocation53_spill] sm:$0xff] %v6071_v40  ;;  %v9991_v13 = vld [vmem:[#allocation50_spill] sm:$0xff]  ;;  %v9996_v40 = vld [vmem:[#allocation27_spill] sm:$0xff] }
 0x1c7   :  { %v758_v3 = vsel %vm754_vm8, %v9988_v33, %v9984_v45  ;;  %9990 = vst [vmem:[#allocation51_spill] sm:$0xff] %v6073_v12  ;;  %v727_v25 = vmul.f32 %v9987_v0, %v695_v29  ;;  %v728_v26 = vmul.f32 %v9987_v0, %v696_v41  ;;  %v755_v22 = vsel %vm754_vm8, %v9982_v30, %v9988_v33 }
 0x1c8   :  { %v720_v61 = vadd.f32 %v716_v6, %v632_v19  ;;  %v721_v34 = vadd.f32 %v717_v56, %v633_v35  ;;  %v729_v31 = vmul.f32 %v9987_v0, %v697_v2  ;;  %v6087_v45 = vmul.f32 %v9991_v13, %v5686_v44  ;;  %v9992_v35 = vld [vmem:[#allocation29_spill] sm:$0xff] }
 0x1c9   :  { %v6091_v41 = vmul.f32 %v9991_v13, %v5716_v49  ;;  %v6095_v29 = vmul.f32 %v9991_v13, %v5695_v57  ;;  %v6099_v30 = vmul.f32 %v9991_v13, %v5726_v28  ;;  %v782_v19 = vmul.f32 %v5676_v63, %v758_v3  ;;  %v6110_v0 = vpop.permute.xlu1 %1445 }
 0x1ca   :  { %1973 = vrot.lane.b32.xlu1 %v5623_v50, %s4664_s11  ;;  %v827_v2 = vmul.f32 %v9992_v35, %v783_v9  ;;  %v828_v21 = vmul.f32 %v9992_v35, %v784_v55  ;;  %v785_v6 = vmul.f32 %v5730_v36, %v755_v22  ;;  %v6108_v56 = vrot.slane %v4220_v60, %v5304_v20 }
 0x1cb   :  { %9994 = vst [vmem:[#allocation50_spill] sm:$0xff] %v6110_v0  ;;  %v9546_v33 = vmov 89   ;;  %v730_v13 = vadd.f32 %v726_v59, %v642_v47  ;;  %v731_v37 = vadd.f32 %v727_v25, %v643_v39  ;;  %v732_v3 = vadd.f32 %v728_v26, %v644_v48  ;;  %v6126_v0 = vpop.permute.xlu0 %2065  ;;  %v10002_v48 = vld [vmem:[#allocation31_spill] sm:$0xff]  ;;  %v10003_v59 = vld [vmem:[#allocation65_spill] sm:$0xff] }
 0x1cc   :  { %9993 = vst [vmem:[#allocation57_spill] sm:$0xff] %v6108_v56  ;;  %4443 = vset.pattern.permute.xlu1 %v9546_v33  ;;  %v6115_v63 = vrot.slane %v4220_v60, %v5308_v7  ;;  %v733_v14 = vadd.f32 %v729_v31, %v645_v38  ;;  %v6118_v12 = vmul.f32 %v9996_v40, %v783_v9  ;;  %10000 = vst [vmem:[#allocation174_spill] sm:$0xff] %v6126_v0  ;;  %v10004_v25 = vld [vmem:[#allocation63_spill] sm:$0xff] }
 0x1cd   :  { %v6121_v22 = vrot.slane %v4220_v60, %v5313_v11  ;;  %v6124_v36 = vrot.slane %v4220_v60, %v5306_v15  ;;  %v6129_v47 = vmul.f32 %v9996_v40, %v784_v55  ;;  %v826_v39 = vmul.f32 %v9992_v35, %v782_v19  ;;  %v10005_v0 = vld [vmem:[#allocation59_spill] sm:$0xff] }
 0x1ce   :  { %9995 = vst [vmem:[#allocation29_spill] sm:$0xff] %v6115_v63  ;;  %9997 = vst [vmem:[#allocation27_spill] sm:$0xff] %v6118_v12  ;;  %v844_v38 = vsel %vm842_vm9, %v10003_v59, %v10002_v48  ;;  %v845_v26 = vsel %vm842_vm9, %v10004_v25, %v10003_v59  ;;  %1975 = vrot.lane.b32.xlu1 %v4763_v5, %s4664_s11  ;;  %v831_v60 = vadd.f32 %v827_v2, %v743_v16  ;;  %v6144_v12 = vpop.permute.xlu1 %1447 }
 0x1cf   :  { %9998 = vst [vmem:[#allocation172_spill] sm:$0xff] %v6121_v22  ;;  %9999 = vst [vmem:[#allocation173_spill] sm:$0xff] %v6124_v36  ;;  %v832_v31 = vadd.f32 %v828_v21, %v744_v1  ;;  %v829_v33 = vmul.f32 %v9992_v35, %v785_v6  ;;  %v803_v62 = vmul.f32 %v10005_v0, %v783_v9  ;;  %v10007_v22 = vld [vmem:[#allocation67_spill] sm:$0xff] }
 0x1d0   :  { %10001 = vst [vmem:[#allocation175_spill] sm:$0xff] %v6129_v47  ;;  %v802_v47 = vmul.f32 %v10005_v0, %v782_v19  ;;  %10006 = vst [vmem:[#allocation31_spill] sm:$0xff] %v6144_v12  ;;  %v804_v51 = vmul.f32 %v10005_v0, %v784_v55  ;;  %v805_v36 = vmul.f32 %v10005_v0, %v785_v6  ;;  %v10009_v12 = vld [vmem:[#allocation61_spill] sm:$0xff] }
 0x1d1   :  { %v846_v59 = vsel %vm842_vm9, %v10007_v22, %v10004_v25  ;;  %v6154_v16 = vmul.f32 %v9996_v40, %v782_v19  ;;  %v6157_v1 = vmul.f32 %v9996_v40, %v785_v6  ;;  %v871_v35 = vmul.f32 %v5738_v53, %v845_v26  ;;  %v4221_v25 = vld [vmem:[%s9260_s1 + $0x27] ss:$8 sm:$0xf] }
 0x1d2   :  { %v872_v2 = vmul.f32 %v5741_v46, %v844_v38  ;;  %v830_v21 = vadd.f32 %v826_v39, %v742_v32  ;;  %v814_v63 = vmul.f32 %v10009_v12, %v782_v19  ;;  %v815_v0 = vmul.f32 %v10009_v12, %v783_v9  ;;  %1979 = vrot.lane.b32.xlu1 %v4759_v4, %s4664_s11  ;;  %v6176_v19 = vpop.permute.xlu0 %2102 }
 0x1d3   :  { %10008 = vst [vmem:[#allocation65_spill] sm:$0xff] %v6157_v1  ;;  %v816_v56 = vmul.f32 %v10009_v12, %v784_v55  ;;  %v833_v40 = vadd.f32 %v829_v33, %v6057_v8  ;;  %v817_v26 = vmul.f32 %v10009_v12, %v785_v6  ;;  %v843_v32 = vsel %vm842_vm9, %v10002_v48, %v10007_v22  ;;  %v6178_v55 = vpop.permute.xlu1 %1451  ;;  %v10012_v8 = vld [vmem:[#allocation35_spill] sm:$0xff] }
 0x1d4   :  { %v870_v9 = vmul.f32 %v5751_v24, %v846_v59  ;;  %10010 = vst [vmem:[#allocation63_spill] sm:$0xff] %v6176_v19  ;;  %10011 = vst [vmem:[#allocation59_spill] sm:$0xff] %v6178_v55  ;;  %v806_v39 = vadd.f32 %v802_v47, %v6059_v17  ;;  %v807_v38 = vadd.f32 %v803_v62, %v6061_v10  ;;  %v10016_v17 = vld [vmem:[#allocation73_spill] sm:$0xff] }
 0x1d5   :  { %v808_v46 = vadd.f32 %v804_v51, %v720_v61  ;;  %v809_v53 = vadd.f32 %v805_v36, %v721_v34  ;;  %v915_v33 = vmul.f32 %v10012_v8, %v871_v35  ;;  %v916_v12 = vmul.f32 %v10012_v8, %v872_v2  ;;  %v10015_v51 = vld [vmem:[#allocation75_spill] sm:$0xff]  ;;  %v10018_v34 = vld [vmem:[#allocation33_spill] sm:$0xff] }
 0x1d6   :  { %v6185_v6 = vrot.slane %v4221_v25, %v5304_v20  ;;  %v6188_v22 = vrot.slane %v4221_v25, %v5308_v7  ;;  %v818_v48 = vadd.f32 %v814_v63, %v730_v13  ;;  %v819_v59 = vadd.f32 %v815_v0, %v731_v37  ;;  %2026 = vperm.xlu1 %4443, %v5534_v52   ;;  %v10020_v63 = vld [vmem:[#allocation37_spill] sm:$0xff] }
 0x1d7   :  { %v820_v24 = vadd.f32 %v816_v56, %v732_v3  ;;  %v873_v19 = vmul.f32 %v5762_v42, %v843_v32  ;;  %v821_v10 = vadd.f32 %v817_v26, %v733_v14  ;;  %v914_v36 = vmul.f32 %v10012_v8, %v870_v9  ;;  %v6197_v61 = vpop.permute.xlu1 %1498  ;;  %v6219_v32 = vpop.permute.xlu0 %2138  ;;  %v10026_v42 = vld [vmem:[#allocation69_spill] sm:$0xff] }
 0x1d8   :  { %10013 = vst [vmem:[#allocation67_spill] sm:$0xff] %v6185_v6  ;;  %10014 = vst [vmem:[#allocation61_spill] sm:$0xff] %v6188_v22  ;;  %v933_v62 = vsel %vm930_vm10, %v10016_v17, %v10015_v51  ;;  %v6200_v47 = vmul.f32 %v10018_v34, %v871_v35  ;;  %v932_v37 = vsel %vm930_vm10, %v10015_v51, %v10020_v63 }
 0x1d9   :  { %10017 = vst [vmem:[#allocation35_spill] sm:$0xff] %v6197_v61  ;;  %v6207_v56 = vrot.slane %v4221_v25, %v5313_v11  ;;  %v6210_v14 = vrot.slane %v4221_v25, %v5306_v15  ;;  %v6213_v13 = vmul.f32 %v10018_v34, %v872_v2  ;;  %v919_v3 = vadd.f32 %v915_v33, %v831_v60 }
 0x1da   :  { %10019 = vst [vmem:[#allocation75_spill] sm:$0xff] %v6200_v47  ;;  %v920_v0 = vadd.f32 %v916_v12, %v832_v31  ;;  %v6216_v26 = vmul.f32 %v10018_v34, %v870_v9  ;;  %10025 = vst [vmem:[#allocation177_spill] sm:$0xff] %v6219_v32  ;;  %v917_v51 = vmul.f32 %v10012_v8, %v873_v19  ;;  %v10028_v12 = vld [vmem:[#allocation161_spill] sm:$0xff]  ;;  %v10029_v32 = vld [vmem:[#allocation71_spill] sm:$0xff] }
 0x1db   :  { %10021 = vst [vmem:[#allocation73_spill] sm:$0xff] %v6207_v56  ;;  %10022 = vst [vmem:[#allocation33_spill] sm:$0xff] %v6210_v14  ;;  %v890_v61 = vmul.f32 %v10026_v42, %v870_v9  ;;  %v891_v55 = vmul.f32 %v10026_v42, %v871_v35  ;;  %v959_v25 = vmul.f32 %v5811_v18, %v933_v62  ;;  %v9563_v14 = vmov 90   ;;  %v10030_v47 = vld [vmem:[#allocation77_spill] sm:$0xff]  ;;  %v6254_v1 = vpop.permute.xlu0 %2153 }
 0x1dc   :  { %10023 = vst [vmem:[#allocation37_spill] sm:$0xff] %v6213_v13  ;;  %10024 = vst [vmem:[#allocation176_spill] sm:$0xff] %v6216_v26  ;;  %4444 = vset.pattern.permute.xlu1 %v9563_v14  ;;  %v6227_v60 = vmul.f32 %v10018_v34, %v873_v19  ;;  %v918_v31 = vadd.f32 %v914_v36, %v830_v21  ;;  %v892_v33 = vmul.f32 %v10026_v42, %v872_v2  ;;  %v6242_v36 = vpop.permute.xlu1 %1510  ;;  %v10034_v26 = vld [vmem:[#allocation8_spill] sm:$0xff] }
 0x1dd   :  { %v960_v13 = vmul.f32 %v10028_v12, %v932_v37  ;;  %2038 = vperm.xlu1 %4444, %v5534_v52   ;;  %v893_v8 = vmul.f32 %v10026_v42, %v873_v19  ;;  %v902_v56 = vmul.f32 %v10029_v32, %v870_v9  ;;  %v931_v62 = vsel %vm930_vm10, %v10020_v63, %v10030_v47  ;;  %v4222_v9 = vld [vmem:[%s9260_s1 + $0x40] ss:$8 sm:$0xf] }
 0x1de   :  { %10027 = vst [vmem:[#allocation69_spill] sm:$0xff] %v6227_v60  ;;  %v934_v21 = vsel %vm930_vm10, %v10030_v47, %v10016_v17  ;;  %10031 = vst [vmem:[#allocation71_spill] sm:$0xff] %v6242_v36  ;;  %v903_v34 = vmul.f32 %v10029_v32, %v871_v35  ;;  %v904_v52 = vmul.f32 %v10029_v32, %v872_v2  ;;  %v10032_v12 = vld [vmem:[#allocation41_spill] sm:$0xff]  ;;  %v10033_v47 = vld [vmem:[#allocation162_spill] sm:$0xff] }
 0x1df   :  { %v905_v42 = vmul.f32 %v10029_v32, %v873_v19  ;;  %v921_v37 = vadd.f32 %v917_v51, %v833_v40  ;;  %v894_v14 = vadd.f32 %v890_v61, %v806_v39  ;;  %v895_v63 = vadd.f32 %v891_v55, %v807_v38  ;;  %10035 = vst [vmem:[#allocation77_spill] sm:$0xff] %v6254_v1  ;;  %v6306_v1 = vpop.permute.xlu0 %2190 }
 0x1e0   :  { %v1003_v18 = vmul.f32 %v10032_v12, %v959_v25  ;;  %v896_v60 = vadd.f32 %v892_v33, %v808_v46  ;;  %v1004_v17 = vmul.f32 %v10032_v12, %v960_v13  ;;  %v958_v36 = vmul.f32 %v10033_v47, %v934_v21  ;;  %v6264_v46 = vpop.permute.xlu1 %1533 }
 0x1e1   :  { %v961_v35 = vmul.f32 %v10034_v26, %v931_v62  ;;  %2061 = vrot.lane.b32.xlu1 %v5623_v50, %s4668_s23  ;;  %v897_v2 = vadd.f32 %v893_v8, %v809_v53  ;;  %v906_v19 = vadd.f32 %v902_v56, %v818_v48  ;;  %v6259_v40 = vrot.slane %v4222_v9, %v5304_v20  ;;  %v10040_v50 = vld [vmem:[#allocation39_spill] sm:$0xff]  ;;  %v10045_v62 = vld [vmem:[#allocation78_spill] sm:$0xff] }
 0x1e2   :  { %v6262_v55 = vrot.slane %v4222_v9, %v5308_v7  ;;  %10038 = vst [vmem:[#allocation179_spill] sm:$0xff] %v6264_v46  ;;  %v9566_v39 = vmov 93   ;;  %v907_v38 = vadd.f32 %v903_v34, %v819_v59  ;;  %v908_v61 = vadd.f32 %v904_v52, %v820_v24  ;;  %v10046_v34 = vld [vmem:[#allocation83_spill] sm:$0xff]  ;;  %v10047_v52 = vld [vmem:[#allocation82_spill] sm:$0xff] }
 0x1e3   :  { %10036 = vst [vmem:[#allocation41_spill] sm:$0xff] %v6259_v40  ;;  %4447 = vset.pattern.permute.xlu1 %v9566_v39  ;;  %v909_v32 = vadd.f32 %v905_v42, %v821_v10  ;;  %v6268_v51 = vrot.slane %v4222_v9, %v5313_v11  ;;  %v6271_v53 = vmul.f32 %v10040_v50, %v959_v25  ;;  %v10050_v26 = vld [vmem:[#allocation43_spill] sm:$0xff]  ;;  %10051 = vst [vmem:[#allocation83_spill] sm:$0xff] %v6306_v1 }
 0x1e4   :  { %10037 = vst [vmem:[#allocation178_spill] sm:$0xff] %v6262_v55  ;;  %v6274_v48 = vmul.f32 %v10040_v50, %v960_v13  ;;  %v6276_v56 = vadd.f32 %v1003_v18, %v919_v3  ;;  %v6279_v33 = vrot.slane %v4222_v9, %v5306_v15  ;;  %v6282_v8 = vmul.f32 %v10040_v50, %v958_v36  ;;  %v6297_v9 = vpop.permute.xlu1 %1535 }
 0x1e5   :  { %10039 = vst [vmem:[#allocation180_spill] sm:$0xff] %v6268_v51  ;;  %10041 = vst [vmem:[#allocation39_spill] sm:$0xff] %v6271_v53  ;;  %v1002_v24 = vmul.f32 %v10032_v12, %v958_v36  ;;  %v1005_v59 = vmul.f32 %v10032_v12, %v961_v35  ;;  %v6286_v10 = vadd.f32 %v1004_v17, %v920_v0  ;;  %2063 = vrot.lane.b32.xlu1 %v4763_v5, %s4668_s23  ;;  %v10049_v0 = vld [vmem:[#allocation80_spill] sm:$0xff]  ;;  %v10052_v51 = vld [vmem:[#allocation87_spill] sm:$0xff] }
 0x1e6   :  { %10042 = vst [vmem:[#allocation181_spill] sm:$0xff] %v6274_v48  ;;  %10043 = vst [vmem:[#allocation182_spill] sm:$0xff] %v6279_v33  ;;  %v978_v21 = vmul.f32 %v10045_v62, %v958_v36  ;;  %v979_v18 = vmul.f32 %v10045_v62, %v959_v25  ;;  %v980_v3 = vmul.f32 %v10045_v62, %v960_v13  ;;  %v10055_v48 = vld [vmem:[#allocation34_spill] sm:$0xff] }
 0x1e7   :  { %10044 = vst [vmem:[#allocation183_spill] sm:$0xff] %v6282_v8  ;;  %v1021_v42 = vsel %vm1018_vm11, %v10047_v52, %v10046_v34  ;;  %10048 = vst [vmem:[#allocation78_spill] sm:$0xff] %v6297_v9  ;;  %v981_v12 = vmul.f32 %v10045_v62, %v961_v35  ;;  %v990_v17 = vmul.f32 %v10049_v0, %v958_v36  ;;  %v10060_v8 = vld [vmem:[#allocation48_spill] sm:$0xff] }
 0x1e8   :  { %v991_v39 = vmul.f32 %v10049_v0, %v959_v25  ;;  %v1020_v47 = vsel %vm1018_vm11, %v10046_v34, %v10050_v26  ;;  %v992_v46 = vmul.f32 %v10049_v0, %v960_v13  ;;  %v993_v33 = vmul.f32 %v10049_v0, %v961_v35  ;;  %v10054_v34 = vld [vmem:[#allocation36_spill] sm:$0xff] }
 0x1e9   :  { %v1019_v62 = vsel %vm1018_vm11, %v10050_v26, %v10052_v51  ;;  %v1022_v25 = vsel %vm1018_vm11, %v10052_v51, %v10047_v52  ;;  %v6319_v36 = vmul.f32 %v10040_v50, %v961_v35  ;;  %v1047_v9 = vmul.f32 %v10054_v34, %v1021_v42  ;;  %v4223_v13 = vld [vmem:[%s9260_s1 + $0x41] ss:$8 sm:$0xf]  ;;  %2067 = vrot.lane.b32.xlu1 %v4759_v4, %s4668_s23  ;;  %v6328_v51 = vpop.permute.xlu1 %1539 }
 0x1ea   :  { %v1006_v1 = vadd.f32 %v1002_v24, %v918_v31  ;;  %v1009_v55 = vadd.f32 %v1005_v59, %v921_v37  ;;  %v982_v26 = vadd.f32 %v978_v21, %v894_v14  ;;  %v983_v0 = vadd.f32 %v979_v18, %v895_v63  ;;  %10056 = vst [vmem:[#allocation80_spill] sm:$0xff] %v6328_v51  ;;  %v10057_v52 = vld [vmem:[#allocation163_spill] sm:$0xff]  ;;  %v10058_v31 = vld [vmem:[#allocation164_spill] sm:$0xff]  ;;  %v10061_v63 = vld [vmem:[#allocation114_spill] sm:$0xff] }
 0x1eb   :  { %10053 = vst [vmem:[#allocation82_spill] sm:$0xff] %v6319_v36  ;;  %v984_v40 = vadd.f32 %v980_v3, %v896_v60  ;;  %v1048_v53 = vmul.f32 %v10055_v48, %v1020_v47  ;;  %v985_v35 = vadd.f32 %v981_v12, %v897_v2  ;;  %v994_v50 = vadd.f32 %v990_v17, %v906_v19  ;;  %v6338_v47 = vpop.permute.xlu0 %2226  ;;  %v10067_v12 = vld [vmem:[#allocation45_spill] sm:$0xff] }
 0x1ec   :  { %v1046_v42 = vmul.f32 %v10057_v52, %v1022_v25  ;;  %v1049_v37 = vmul.f32 %v10058_v31, %v1019_v62  ;;  %v995_v24 = vadd.f32 %v991_v39, %v907_v38  ;;  %v996_v59 = vadd.f32 %v992_v46, %v908_v61  ;;  %10062 = vst [vmem:[#allocation87_spill] sm:$0xff] %v6338_v47  ;;  %v6349_v46 = vld [vmem:[%s9259_s2] sm:$0xf] }
 0x1ed   :  { %v997_v34 = vadd.f32 %v993_v33, %v909_v32  ;;  %v6333_v36 = vrot.slane %v4223_v13, %v5304_v20  ;;  %v1091_v14 = vmul.f32 %v10060_v8, %v1047_v9  ;;  %v6341_v2 = vrot.slane %v4223_v13, %v5308_v7  ;;  %2114 = vperm.xlu1 %4447, %v6349_v46   ;;  %v6355_v32 = vpop.permute.xlu1 %1586  ;;  %v10068_v62 = vld [vmem:[#allocation98_spill] sm:$0xff] }
 0x1ee   :  { %v1078_v60 = vmul.f32 %v10061_v63, %v1046_v42  ;;  %v6344_v19 = vrot.slane %v4223_v13, %v5313_v11  ;;  %v1092_v39 = vmul.f32 %v10060_v8, %v1048_v53  ;;  %v1079_v38 = vmul.f32 %v10061_v63, %v1047_v9  ;;  %10065 = vst [vmem:[#allocation184_spill] sm:$0xff] %v6355_v32 }
 0x1ef   :  { %10059 = vst [vmem:[#allocation43_spill] sm:$0xff] %v6333_v36  ;;  %10063 = vst [vmem:[#allocation48_spill] sm:$0xff] %v6341_v2  ;;  %v1080_v61 = vmul.f32 %v10061_v63, %v1048_v53  ;;  %v1090_v33 = vmul.f32 %v10060_v8, %v1046_v42  ;;  %v1093_v21 = vmul.f32 %v10060_v8, %v1049_v37 }
 0x1f0   :  { %10064 = vst [vmem:[#allocation114_spill] sm:$0xff] %v6344_v19  ;;  %v1081_v18 = vmul.f32 %v10061_v63, %v1049_v37  ;;  %v6361_v3 = vrot.slane %v4223_v13, %v5306_v15  ;;  %v6364_v17 = vmul.f32 %v10067_v12, %v1047_v9  ;;  %v1066_v25 = vmul.f32 %v10068_v62, %v1046_v42 }
 0x1f1   :  { %v1067_v31 = vmul.f32 %v10068_v62, %v1047_v9  ;;  %v1068_v52 = vmul.f32 %v10068_v62, %v1048_v53  ;;  %v6370_v48 = vmul.f32 %v10067_v12, %v1048_v53  ;;  %v1069_v47 = vmul.f32 %v10068_v62, %v1049_v37  ;;  %v4224_v53 = vld [vmem:[%s9260_s1 + $0x42] ss:$8 sm:$0xf] }
 0x1f2   :  { %10066 = vst [vmem:[#allocation185_spill] sm:$0xff] %v6361_v3  ;;  %v1082_v8 = vadd.f32 %v1078_v60, %v994_v50  ;;  %v6374_v63 = vadd.f32 %v1091_v14, %v6276_v56  ;;  %v9580_v13 = vmov 94   ;;  %v6378_v32 = vmul.f32 %v10067_v12, %v1046_v42  ;;  %v84_v42 = vpop.permute.xlu0 %83 }
 0x1f3   :  { %4448 = vset.pattern.permute.xlu1 %v9580_v13  ;;  %v1083_v3 = vadd.f32 %v1079_v38, %v995_v24  ;;  %v1084_v19 = vadd.f32 %v1080_v61, %v996_v59  ;;  %v6381_v9 = vadd.f32 %v1092_v39, %v6286_v10  ;;  %v6388_v56 = vmul.f32 %v10067_v12, %v1049_v37  ;;  %v6394_v24 = vpop.permute.xlu1 %1598  ;;  %v10078_v12 = vld [vmem:[#allocation143_spill] sm:$0xff] }
 0x1f4   :  { %2126 = vperm.xlu1 %4448, %v6349_v46   ;;  %v1085_v50 = vadd.f32 %v1081_v18, %v997_v34  ;;  %v6390_v14 = vadd.f32 %v1090_v33, %v1006_v1  ;;  %v6392_v60 = vadd.f32 %v1093_v21, %v1009_v55  ;;  %10069 = vst [vmem:[#allocation45_spill] sm:$0xff] %v6394_v24  ;;  %v10072_v34 = vld [vmem:[#allocation115_spill] sm:$0xff]  ;;  %v10076_v33 = vld [vmem:[#allocation130_spill] sm:$0xff] }
 0x1f5   :  { %v1070_v59 = vadd.f32 %v1066_v25, %v982_v26  ;;  %v1071_v10 = vadd.f32 %v1067_v31, %v983_v0  ;;  %v1072_v39 = vadd.f32 %v1068_v52, %v984_v40  ;;  %v1073_v38 = vadd.f32 %v1069_v47, %v985_v35  ;;  %v10073_v0 = vld [vmem:[#allocation112_spill] sm:$0xff]  ;;  %v10074_v35 = vld [vmem:[#allocation125_spill] sm:$0xff] }
 0x1f6   :  { %v6397_v61 = vadd.f32 %v6087_v45, %v1082_v8  ;;  %v6400_v62 = vrot.slane %v4224_v53, %v5304_v20  ;;  %v6403_v37 = vrot.slane %v4224_v53, %v5308_v7  ;;  %v6406_v1 = vadd.f32 %v6091_v41, %v1083_v3  ;;  %v4567_v45 = vld [vmem:[%s9258_s0] sm:$0xff]  ;;  %v10077_v3 = vld [vmem:[#allocation52_spill] sm:$0xff] }
 0x1f7   :  { %v6409_v55 = vadd.f32 %v6095_v29, %v1084_v19  ;;  %v86_v26 = vmul.f32 %v84_v42, %v10072_v34  ;;  %v87_v40 = vmul.f32 %v84_v42, %v10073_v0  ;;  %v6419_v52 = vmul.f32 %v10074_v35, %v5686_v44  ;;  %v6432_v47 = vpop.permute.xlu1 %1621  ;;  %v10079_v8 = vld [vmem:[#allocation54_spill] sm:$0xff]  ;;  %v10080_v34 = vld [vmem:[#allocation119_spill] sm:$0xff] }
 0x1f8   :  { %10070 = vst [vmem:[#allocation98_spill] sm:$0xff] %v6400_v62  ;;  %10071 = vst [vmem:[#allocation186_spill] sm:$0xff] %v6403_v37  ;;  %2149 = vrot.lane.b32.xlu1 %v4567_v45, %s4673_s24  ;;  %v6423_v41 = vmul.f32 %v5716_v49, %v10074_v35  ;;  %v6427_v29 = vmul.f32 %v10074_v35, %v5695_v57  ;;  %v6430_v31 = vadd.f32 %v6099_v30, %v1085_v50  ;;  %v9579_v19 = vmov 97   ;;  %v10081_v45 = vld [vmem:[#allocation116_spill] sm:$0xff]  ;;  %v10083_v37 = vld [vmem:[#allocation134_spill] sm:$0xff] }
 0x1f9   :  { %10075 = vst [vmem:[#allocation115_spill] sm:$0xff] %v6432_v47  ;;  %4451 = vset.pattern.permute.xlu1 %v9579_v19  ;;  %v1149_v21 = vmul.f32 %v10076_v33, %v5686_v44  ;;  %v1150_v18 = vmul.f32 %v10076_v33, %v5716_v49  ;;  %v1192_v25 = vsel %vm9644_vm12, %v10078_v12, %v10077_v3  ;;  %v10084_v47 = vld [vmem:[#allocation131_spill] sm:$0xff] }
 0x1fa   :  { %v1193_v30 = vsel %vm9644_vm12, %v10079_v8, %v10078_v12  ;;  %v6449_v50 = vmul.f32 %v5726_v28, %v10074_v35  ;;  %v88_v0 = vmul.f32 %v84_v42, %v10080_v34  ;;  %v89_v19 = vmul.f32 %v84_v42, %v10081_v45 }
 0x1fb   :  { %v6454_v13 = vrot.slane %v4224_v53, %v5313_v11  ;;  %v1151_v24 = vmul.f32 %v10076_v33, %v5695_v57  ;;  %v178_v62 = vadd.f32 %v10083_v37, %v86_v26  ;;  %v179_v51 = vadd.f32 %v10084_v47, %v87_v40  ;;  %v6474_v37 = vpop.permute.xlu1 %1623  ;;  %v10087_v47 = vld [vmem:[#allocation151_spill] sm:$0xff] }
 0x1fc   :  { %2151 = vrot.lane.b32.xlu1 %v4763_v5, %s4673_s24  ;;  %v6463_v35 = vrot.slane %v4224_v53, %v5306_v15  ;;  %v1152_v12 = vmul.f32 %v10076_v33, %v5726_v28  ;;  %v6468_v42 = vmul.f32 %v6011_v27, %v1192_v25  ;;  %v6471_v34 = vmul.f32 %v6016_v58, %v1193_v30  ;;  %v10088_v25 = vld [vmem:[#allocation136_spill] sm:$0xff] }
 0x1fd   :  { %10082 = vst [vmem:[#allocation112_spill] sm:$0xff] %v6454_v13  ;;  %10086 = vst [vmem:[#allocation130_spill] sm:$0xff] %v6474_v37  ;;  %v1153_v26 = vadd.f32 %v1149_v21, %v1070_v59  ;;  %v1154_v40 = vadd.f32 %v1150_v18, %v1071_v10  ;;  %v1190_v53 = vsel %vm9644_vm12, %v10087_v47, %v10079_v8  ;;  %v10089_v5 = vld [vmem:[#allocation132_spill] sm:$0xff]  ;;  %v10090_v59 = vld [vmem:[#allocation135_spill] sm:$0xff] }
 0x1fe   :  { %10085 = vst [vmem:[#allocation125_spill] sm:$0xff] %v6463_v35  ;;  %v1191_v33 = vsel %vm9644_vm12, %v10077_v3, %v10087_v47  ;;  %v1173_v30 = vmul.f32 %v10088_v25, %v5686_v44  ;;  %v1174_v45 = vmul.f32 %v10088_v25, %v5716_v49  ;;  %v180_v27 = vadd.f32 %v10089_v5, %v88_v0  ;;  %v4225_v21 = vld [vmem:[%s9260_s1 + $0x43] ss:$8 sm:$0xf] }
 0x1ff   :  { %v181_v10 = vadd.f32 %v10090_v59, %v89_v19  ;;  %v1175_v18 = vmul.f32 %v10088_v25, %v5695_v57  ;;  %v1176_v3 = vmul.f32 %v10088_v25, %v5726_v28  ;;  %v10091_v8 = vld [vmem:[#allocation147_spill] sm:$0xff]  ;;  %v10092_v44 = vld [vmem:[#allocation144_spill] sm:$0xff]  ;;  %v1218_v0 = vmul.f32 %v6035_v43, %v1191_v33  ;;  %v6507_v59 = vpop.permute.xlu1 %1627 }
 0x200   :  { %v266_v47 = vadd.f32 %v10091_v8, %v178_v62  ;;  %v267_v58 = vadd.f32 %v10092_v44, %v179_v51  ;;  %2155 = vrot.lane.b32.xlu1 %v4759_v4, %s4673_s24  ;;  %v10093_v5 = vld [vmem:[#allocation56_spill] sm:$0xff]  ;;  %v1219_v57 = vmul.f32 %v6038_v54, %v1190_v53  ;;  %10094 = vst [vmem:[#allocation52_spill] sm:$0xff] %v6507_v59  ;;  %v10097_v4 = vld [vmem:[#allocation145_spill] sm:$0xff]  ;;  %v9598_v35 = vmov 98   ;;  %v10132_v59 = vld [vmem:[#allocation15_spill] sm:$0xff] }
 0x201   :  { %v1237_v49 = vmul.f32 %v10093_v5, %v6468_v42  ;;  %v1240_v19 = vmul.f32 %v10093_v5, %v6471_v34  ;;  %v1155_v28 = vadd.f32 %v1151_v24, %v1072_v39  ;;  %v1156_v25 = vadd.f32 %v1152_v12, %v1073_v38  ;;  %v10098_v43 = vld [vmem:[#allocation148_spill] sm:$0xff] }
 0x202   :  { %v6510_v62 = vrot.slane %v4225_v21, %v5304_v20  ;;  %v6513_v51 = vrot.slane %v4225_v21, %v5308_v7  ;;  %v6516_v8 = vadd.f32 %v1173_v30, %v6390_v14  ;;  %v6519_v44 = vadd.f32 %v1174_v45, %v6374_v63  ;;  %v10099_v39 = vld [vmem:[#allocation16_spill] sm:$0xff] }
 0x203   :  { %v268_v33 = vadd.f32 %v10097_v4, %v180_v27  ;;  %v269_v53 = vadd.f32 %v10098_v43, %v181_v10  ;;  %v6524_v54 = vadd.f32 %v1175_v18, %v6381_v9  ;;  %v6527_v24 = vadd.f32 %v1176_v3, %v6392_v60  ;;  %v10100_v12 = vld [vmem:[#allocation4_spill] sm:$0xff]  ;;  %v6538_v27 = vpop.permute.xlu1 %1674  ;;  %v10102_v43 = vld [vmem:[#allocation14_spill] sm:$0xff]  ;;  %v10106_v3 = vld [vmem:[#allocation157_spill] sm:$0xff] }
 0x204   :  { %10095 = vst [vmem:[#allocation143_spill] sm:$0xff] %v6510_v62  ;;  %10096 = vst [vmem:[#allocation54_spill] sm:$0xff] %v6513_v51  ;;  %v354_v38 = vadd.f32 %v10099_v39, %v266_v47  ;;  %v355_v51 = vadd.f32 %v10100_v12, %v267_v58  ;;  %2202 = vperm.xlu1 %4451, %v6349_v46   ;;  %v1238_v14 = vmul.f32 %v10093_v5, %v1218_v0  ;;  %v10105_v10 = vld [vmem:[#allocation152_spill] sm:$0xff]  ;;  %v10110_v12 = vld [vmem:[#allocation58_spill] sm:$0xff]  ;;  %vm2360_vm12 = vcmask 1042432  }
 0x205   :  { %v1239_v63 = vmul.f32 %v10093_v5, %v1219_v57  ;;  %v6534_v30 = vadd.f32 %v1237_v49, %v1153_v26  ;;  %v6536_v4 = vadd.f32 %v1240_v19, %v1156_v25  ;;  %10101 = vst [vmem:[#allocation119_spill] sm:$0xff] %v6538_v27  ;;  %v1249_v9 = vmul.f32 %v10102_v43, %v6468_v42  ;;  %v10107_v5 = vld [vmem:[#allocation12_spill] sm:$0xff]  ;;  %v10109_v25 = vld [vmem:[#allocation26_spill] sm:$0xff] }
 0x206   :  { %v1250_v60 = vmul.f32 %v10102_v43, %v1218_v0  ;;  %v6544_v45 = vrot.slane %v4225_v21, %v5313_v11  ;;  %v6547_v58 = vrot.slane %v4225_v21, %v5306_v15  ;;  %v6551_v18 = vmul.f32 %v10105_v10, %v6468_v42  ;;  %v10108_v19 = vld [vmem:[#allocation60_spill] sm:$0xff]  ;;  %v10112_v27 = vld [vmem:[#allocation6_spill] sm:$0xff] }
 0x207   :  { %v6554_v26 = vmul.f32 %v10105_v10, %v1218_v0  ;;  %v356_v47 = vadd.f32 %v10106_v3, %v268_v33  ;;  %v357_v49 = vadd.f32 %v10107_v5, %v269_v53  ;;  %v1279_v39 = vsel %vm9643_vm13, %v10109_v25, %v10108_v19 }
 0x208   :  { %10103 = vst [vmem:[#allocation116_spill] sm:$0xff] %v6544_v45  ;;  %10104 = vst [vmem:[#allocation134_spill] sm:$0xff] %v6547_v58  ;;  %v1280_v21 = vsel %vm9643_vm13, %v10110_v12, %v10109_v25  ;;  %v10111_v58 = vld [vmem:[#allocation24_spill] sm:$0xff]  ;;  %v443_v62 = vadd.f32 %v10112_v27, %v355_v51  ;;  %4452 = vset.pattern.permute.xlu1 %v9598_v35  ;;  %v6570_v33 = vmul.f32 %v10105_v10, %v1219_v57  ;;  %v6590_v25 = vpop.permute.xlu1 %1686 }
 0x209   :  { %v442_v45 = vadd.f32 %v10111_v58, %v354_v38  ;;  %v6574_v53 = vmul.f32 %v10105_v10, %v6471_v34  ;;  %v6576_v3 = vadd.f32 %v1238_v14, %v1154_v40  ;;  %v6578_v5 = vadd.f32 %v1239_v63, %v1155_v28  ;;  %2214 = vperm.xlu1 %4452, %v6349_v46   ;;  %v10114_v10 = vld [vmem:[#allocation57_spill] sm:$0xff]  ;;  %v10116_v46 = vld [vmem:[#allocation160_spill] sm:$0xff] }
 0x20a   :  { %v1251_v38 = vmul.f32 %v10102_v43, %v1219_v57  ;;  %v1252_v51 = vmul.f32 %v10102_v43, %v6471_v34  ;;  %v6585_v27 = vadd.f32 %v1249_v9, %v6397_v61  ;;  %v6588_v58 = vadd.f32 %v1250_v60, %v6406_v1  ;;  %10113 = vst [vmem:[#allocation131_spill] sm:$0xff] %v6590_v25  ;;  %v10115_v14 = vld [vmem:[#allocation29_spill] sm:$0xff]  ;;  %v10117_v35 = vld [vmem:[#allocation20_spill] sm:$0xff] }
 0x20b   :  { %v1305_v40 = vmul.f32 %v10114_v10, %v1280_v21  ;;  %v1306_v28 = vmul.f32 %v10115_v14, %v1279_v39  ;;  %v444_v63 = vadd.f32 %v10116_v46, %v356_v47  ;;  %v445_v13 = vadd.f32 %v10117_v35, %v357_v49  ;;  %v4226_v61 = vld [vmem:[%s9260_s1 + $0x44] ss:$8 sm:$0xf] }
 0x20c   :  { %v10118_v43 = vld [vmem:[#allocation28_spill] sm:$0xff]  ;;  %v10120_v21 = vld [vmem:[#allocation13_spill] sm:$0xff]  ;;  %v10121_v35 = vld [vmem:[#allocation18_spill] sm:$0xff]  ;;  %v6618_v25 = vadd.f32 %v1251_v38, %v6409_v55 }
 0x20d   :  { %v1278_v1 = vsel %vm9643_vm13, %v10108_v19, %v10118_v43  ;;  %v1281_v9 = vsel %vm9643_vm13, %v10118_v43, %v10110_v12  ;;  %v10119_v60 = vld [vmem:[#allocation32_spill] sm:$0xff]  ;;  %v531_v47 = vadd.f32 %v10120_v21, %v443_v62  ;;  %v1261_v49 = vmul.f32 %v10121_v35, %v6468_v42  ;;  %v10127_v43 = vld [vmem:[#allocation173_spill] sm:$0xff] }
 0x20e   :  { %v530_v39 = vadd.f32 %v10119_v60, %v442_v45  ;;  %v1262_v46 = vmul.f32 %v10121_v35, %v1218_v0  ;;  %v1263_v10 = vmul.f32 %v10121_v35, %v1219_v57  ;;  %v1264_v14 = vmul.f32 %v10121_v35, %v6471_v34  ;;  %v6623_v45 = vpop.permute.xlu1 %1709  ;;  %v10126_v0 = vld [vmem:[#allocation172_spill] sm:$0xff]  ;;  %v10128_v60 = vld [vmem:[#allocation9_spill] sm:$0xff]  ;;  %v10129_v35 = vld [vmem:[#allocation38_spill] sm:$0xff] }
 0x20f   :  { %v10122_v19 = vmov 0   ;;  %v6621_v12 = vadd.f32 %v1252_v51, %v6430_v31  ;;  %10123 = vst [vmem:[#allocation151_spill] sm:$0xff] %v6623_v45  ;;  %v6626_v62 = vrot.slane %v4226_v61, %v5304_v20  ;;  %v6629_v42 = vrot.slane %v4226_v61, %v5308_v7  ;;  %v10130_v38 = vld [vmem:[#allocation64_spill] sm:$0xff] }
 0x210   :  { %4455 = vset.pattern.permute.xlu1 %v10122_v19  ;;  %v1307_v57 = vmul.f32 %v10126_v0, %v1278_v1  ;;  %v1308_v34 = vmul.f32 %v10127_v43, %v1281_v9  ;;  %v532_v21 = vadd.f32 %v10128_v60, %v444_v63  ;;  %v533_v55 = vadd.f32 %v10129_v35, %v445_v13  ;;  %v10131_v51 = vld [vmem:[#allocation168_spill] sm:$0xff]  ;;  %v10133_v43 = vld [vmem:[#allocation62_spill] sm:$0xff] }
 0x211   :  { %10124 = vst [vmem:[#allocation136_spill] sm:$0xff] %v6626_v62  ;;  %10125 = vst [vmem:[#allocation132_spill] sm:$0xff] %v6629_v42  ;;  %v1349_v19 = vmul.f32 %v10130_v38, %v1305_v40  ;;  %v1350_v31 = vmul.f32 %v10130_v38, %v1306_v28  ;;  %v618_v45 = vadd.f32 %v10131_v51, %v530_v39  ;;  %v10142_v51 = vld [vmem:[#allocation21_spill] sm:$0xff]  ;;  %vm2355_vm13 = vcmask 1041408  }
 0x212   :  { %v619_v37 = vadd.f32 %v10132_v59, %v531_v47  ;;  %v1265_v62 = vadd.f32 %v1261_v49, %v6516_v8  ;;  %v1266_v42 = vadd.f32 %v1262_v46, %v6519_v44  ;;  %v1267_v1 = vadd.f32 %v1263_v10, %v6524_v54  ;;  %v6649_v60 = vpop.permute.xlu1 %1711  ;;  %v10139_v44 = vld [vmem:[#allocation167_spill] sm:$0xff]  ;;  %v10140_v10 = vld [vmem:[#allocation44_spill] sm:$0xff]  ;;  %v10141_v46 = vld [vmem:[#allocation25_spill] sm:$0xff] }
 0x213   :  { %v1268_v9 = vadd.f32 %v1264_v14, %v6527_v24  ;;  %v6644_v63 = vmul.f32 %v10133_v43, %v1305_v40  ;;  %v6647_v13 = vmul.f32 %v10133_v43, %v1306_v28  ;;  %10136 = vst [vmem:[#allocation144_spill] sm:$0xff] %v6649_v60  ;;  %v6652_v39 = vrot.slane %v4226_v61, %v5313_v11 }
 0x214   :  { %v6655_v59 = vrot.slane %v4226_v61, %v5306_v15  ;;  %v1351_v8 = vmul.f32 %v10130_v38, %v1307_v57  ;;  %v1352_v54 = vmul.f32 %v10130_v38, %v1308_v34  ;;  %v620_v24 = vadd.f32 %v10139_v44, %v532_v21 }
 0x215   :  { %10134 = vst [vmem:[#allocation135_spill] sm:$0xff] %v6644_v63  ;;  %10135 = vst [vmem:[#allocation147_spill] sm:$0xff] %v6647_v13  ;;  %v621_v14 = vadd.f32 %v10140_v10, %v533_v55  ;;  %v1353_v47 = vadd.f32 %v1349_v19, %v1265_v62  ;;  %v1354_v49 = vadd.f32 %v1350_v31, %v1266_v42  ;;  %v10146_v19 = vld [vmem:[#allocation66_spill] sm:$0xff]  ;;  %v10147_v62 = vld [vmem:[#allocation19_spill] sm:$0xff] }
 0x216   :  { %10137 = vst [vmem:[#allocation56_spill] sm:$0xff] %v6652_v39  ;;  %10138 = vst [vmem:[#allocation145_spill] sm:$0xff] %v6655_v59  ;;  %v706_v35 = vadd.f32 %v10141_v46, %v618_v45  ;;  %v707_v0 = vadd.f32 %v10142_v51, %v619_v37  ;;  %v6664_v60 = vmul.f32 %v10133_v43, %v1307_v57  ;;  %v10145_v59 = vld [vmem:[#allocation11_spill] sm:$0xff]  ;;  %v10148_v37 = vld [vmem:[#allocation166_spill] sm:$0xff] }
 0x217   :  { %v6667_v61 = vmul.f32 %v10133_v43, %v1308_v34  ;;  %v1325_v39 = vmul.f32 %v10145_v59, %v1305_v40  ;;  %v1326_v38 = vmul.f32 %v10145_v59, %v1306_v28  ;;  %v1327_v21 = vmul.f32 %v10145_v59, %v1307_v57  ;;  %v6681_v43 = vpop.permute.xlu1 %1715  ;;  %v10150_v10 = vld [vmem:[#allocation169_spill] sm:$0xff]  ;;  %v10151_v51 = vld [vmem:[#allocation55_spill] sm:$0xff] }
 0x218   :  { %10143 = vst [vmem:[#allocation148_spill] sm:$0xff] %v6664_v60  ;;  %v1328_v55 = vmul.f32 %v10145_v59, %v1308_v34  ;;  %v1367_v45 = vsel %vm9624_vm14, %v10147_v62, %v10146_v19  ;;  %v1368_v42 = vsel %vm9624_vm14, %v10148_v37, %v10147_v62  ;;  %10149 = vst [vmem:[#allocation4_spill] sm:$0xff] %v6681_v43  ;;  %v10152_v59 = vld [vmem:[#allocation30_spill] sm:$0xff]  ;;  %v10153_v13 = vld [vmem:[#allocation27_spill] sm:$0xff] }
 0x219   :  { %10144 = vst [vmem:[#allocation16_spill] sm:$0xff] %v6667_v61  ;;  %v1355_v31 = vadd.f32 %v1351_v8, %v1267_v1  ;;  %v1356_v44 = vadd.f32 %v1352_v54, %v1268_v9  ;;  %v708_v46 = vadd.f32 %v10150_v10, %v620_v24  ;;  %v709_v2 = vadd.f32 %v10151_v51, %v621_v14  ;;  %v10154_v24 = vld [vmem:[#allocation40_spill] sm:$0xff]  ;;  %v10160_v10 = vld [vmem:[#allocation70_spill] sm:$0xff] }
 0x21a   :  { %v1337_v36 = vmul.f32 %v10152_v59, %v1305_v40  ;;  %v1338_v61 = vmul.f32 %v10152_v59, %v1306_v28  ;;  %v794_v60 = vadd.f32 %v6154_v16, %v706_v35  ;;  %v795_v63 = vadd.f32 %v10153_v13, %v707_v0  ;;  %v10156_v13 = vld [vmem:[#allocation175_spill] sm:$0xff]  ;;  %v10180_v43 = vld [vmem:[#allocation178_spill] sm:$0xff] }
 0x21b   :  { %v6691_v62 = vadd.f32 %v1325_v39, %v6534_v30  ;;  %v6694_v1 = vadd.f32 %v1326_v38, %v6576_v3  ;;  %v1393_v9 = vmul.f32 %v6185_v6, %v1368_v42  ;;  %v1394_v8 = vmul.f32 %v6188_v22, %v1367_v45  ;;  %v6708_v3 = vpop.permute.xlu1 %1762  ;;  %v10157_v39 = vld [vmem:[#allocation65_spill] sm:$0xff] }
 0x21c   :  { %v1339_v54 = vmul.f32 %v10152_v59, %v1307_v57  ;;  %v1340_v40 = vmul.f32 %v10152_v59, %v1308_v34  ;;  %v1366_v16 = vsel %vm9624_vm14, %v10146_v19, %v10154_v24  ;;  %v1369_v30 = vsel %vm9624_vm14, %v10154_v24, %v10148_v37  ;;  %10155 = vst [vmem:[#allocation14_spill] sm:$0xff] %v6708_v3  ;;  %v4227_v14 = vld [vmem:[%s9260_s1 + $0x45] ss:$8 sm:$0xf] }
 0x21d   :  { %v1331_v28 = vadd.f32 %v1327_v21, %v6578_v5  ;;  %v1332_v0 = vadd.f32 %v1328_v55, %v6536_v4  ;;  %v796_v57 = vadd.f32 %v10156_v13, %v708_v46  ;;  %v797_v34 = vadd.f32 %v10157_v39, %v709_v2  ;;  %v10158_v19 = vld [vmem:[#allocation176_spill] sm:$0xff]  ;;  %v10159_v37 = vld [vmem:[#allocation75_spill] sm:$0xff]  ;;  %v10161_v21 = vld [vmem:[#allocation73_spill] sm:$0xff] }
 0x21e   :  { %v1341_v35 = vadd.f32 %v1337_v36, %v6585_v27  ;;  %v1342_v38 = vadd.f32 %v1338_v61, %v6588_v58  ;;  %v882_v45 = vadd.f32 %v10158_v19, %v794_v60  ;;  %v883_v42 = vadd.f32 %v10159_v37, %v795_v63  ;;  %v10162_v46 = vld [vmem:[#allocation33_spill] sm:$0xff]  ;;  %v10165_v58 = vld [vmem:[#allocation68_spill] sm:$0xff] }
 0x21f   :  { %v1437_v5 = vmul.f32 %v10160_v10, %v1393_v9  ;;  %v1438_v4 = vmul.f32 %v10160_v10, %v1394_v8  ;;  %v1395_v55 = vmul.f32 %v10161_v21, %v1366_v16  ;;  %v1396_v2 = vmul.f32 %v10162_v46, %v1369_v30  ;;  %v10166_v61 = vld [vmem:[#allocation37_spill] sm:$0xff]  ;;  %v6741_v13 = vpop.permute.xlu1 %1774 }
 0x220   :  { %v1343_v51 = vadd.f32 %v1339_v54, %v6618_v25  ;;  %v1344_v59 = vadd.f32 %v1340_v40, %v6621_v12  ;;  %v6728_v36 = vrot.slane %v4227_v14, %v5304_v20  ;;  %v6731_v27 = vrot.slane %v4227_v14, %v5308_v7  ;;  %v10167_v16 = vld [vmem:[#allocation69_spill] sm:$0xff]  ;;  %10168 = vst [vmem:[#allocation12_spill] sm:$0xff] %v6741_v13  ;;  %v10169_v25 = vld [vmem:[#allocation183_spill] sm:$0xff] }
 0x221   :  { %v6734_v63 = vmul.f32 %v10165_v58, %v1393_v9  ;;  %v6737_v60 = vmul.f32 %v10165_v58, %v1394_v8  ;;  %v884_v24 = vadd.f32 %v10166_v61, %v796_v57  ;;  %v885_v30 = vadd.f32 %v10167_v16, %v797_v34  ;;  %v10170_v54 = vld [vmem:[#allocation39_spill] sm:$0xff]  ;;  %v10179_v13 = vld [vmem:[#allocation41_spill] sm:$0xff] }
 0x222   :  { %10163 = vst [vmem:[#allocation152_spill] sm:$0xff] %v6728_v36  ;;  %10164 = vst [vmem:[#allocation157_spill] sm:$0xff] %v6731_v27  ;;  %v970_v12 = vadd.f32 %v10169_v25, %v882_v45  ;;  %v971_v40 = vadd.f32 %v10170_v54, %v883_v42  ;;  %v6746_v39 = vrot.slane %v4227_v14, %v5313_v11  ;;  %v10173_v45 = vld [vmem:[#allocation72_spill] sm:$0xff]  ;;  %v10174_v42 = vld [vmem:[#allocation31_spill] sm:$0xff]  ;;  %vm9626_vm14 = vcmp.lt.s32.totalorder %v5302_v23, 112 }
 0x223   :  { %v6749_v19 = vrot.slane %v4227_v14, %v5306_v15  ;;  %v1441_v37 = vadd.f32 %v1437_v5, %v1353_v47  ;;  %v1442_v46 = vadd.f32 %v1438_v4, %v1354_v49  ;;  %v1439_v21 = vmul.f32 %v10160_v10, %v1395_v55  ;;  %v10175_v14 = vld [vmem:[#allocation50_spill] sm:$0xff]  ;;  %v10176_v49 = vld [vmem:[#allocation49_spill] sm:$0xff]  ;;  %v10181_v11 = vld [vmem:[#allocation51_spill] sm:$0xff] }
 0x224   :  { %10171 = vst [vmem:[#allocation60_spill] sm:$0xff] %v6746_v39  ;;  %v1440_v57 = vmul.f32 %v10160_v10, %v1396_v2  ;;  %v6754_v34 = vmul.f32 %v10165_v58, %v1395_v55  ;;  %v6757_v61 = vmul.f32 %v10165_v58, %v1396_v2  ;;  %v1455_v16 = vsel %vm9625_vm15, %v10174_v42, %v10173_v45  ;;  %v10177_v4 = vld [vmem:[#allocation181_spill] sm:$0xff]  ;;  %v10178_v54 = vld [vmem:[#allocation82_spill] sm:$0xff]  ;;  %v6771_v58 = vpop.permute.xlu1 %1797 }
 0x225   :  { %10172 = vst [vmem:[#allocation26_spill] sm:$0xff] %v6749_v19  ;;  %v1456_v47 = vsel %vm9625_vm15, %v10175_v14, %v10174_v42  ;;  %v1413_v5 = vmul.f32 %v10176_v49, %v1393_v9  ;;  %v1414_v10 = vmul.f32 %v10176_v49, %v1394_v8  ;;  %v972_v25 = vadd.f32 %v10177_v4, %v884_v24 }
 0x226   :  { %v973_v6 = vadd.f32 %v10178_v54, %v885_v30  ;;  %v1415_v22 = vmul.f32 %v10176_v49, %v1395_v55  ;;  %v1416_v19 = vmul.f32 %v10176_v49, %v1396_v2  ;;  %v1058_v39 = vadd.f32 %v6378_v32, %v970_v12 }
 0x227   :  { %v1059_v27 = vadd.f32 %v6364_v17, %v971_v40  ;;  %v1443_v36 = vadd.f32 %v1439_v21, %v1355_v31  ;;  %v1444_v42 = vadd.f32 %v1440_v57, %v1356_v44  ;;  %v1481_v3 = vmul.f32 %v10179_v13, %v1456_v47  ;;  %v10182_v31 = vld [vmem:[#allocation59_spill] sm:$0xff]  ;;  %v10185_v47 = vld [vmem:[#allocation182_spill] sm:$0xff] }
 0x228   :  { %v1482_v15 = vmul.f32 %v10180_v43, %v1455_v16  ;;  %v1425_v24 = vmul.f32 %v10181_v11, %v1393_v9  ;;  %v1426_v30 = vmul.f32 %v10181_v11, %v1394_v8  ;;  %v1427_v4 = vmul.f32 %v10181_v11, %v1395_v55  ;;  %v6794_v8 = vpop.permute.xlu1 %1799  ;;  %v4228_v57 = vld [vmem:[%s9260_s1 + $0x46] ss:$8 sm:$0xf] }
 0x229   :  { %v1428_v54 = vmul.f32 %v10181_v11, %v1396_v2  ;;  %v1060_v32 = vadd.f32 %v6370_v48, %v972_v25  ;;  %v1061_v17 = vadd.f32 %v6388_v56, %v973_v6  ;;  %v1454_v44 = vsel %vm9625_vm15, %v10173_v45, %v10182_v31  ;;  %v10183_v2 = vld [vmem:[#allocation76_spill] sm:$0xff]  ;;  %v10198_v43 = vld [vmem:[#allocation43_spill] sm:$0xff] }
 0x22a   :  { %v1457_v9 = vsel %vm9625_vm15, %v10182_v31, %v10175_v14  ;;  %v1417_v11 = vadd.f32 %v1413_v5, %v6691_v62  ;;  %v1418_v21 = vadd.f32 %v1414_v10, %v6694_v1  ;;  %v1141_v48 = vadd.f32 %v6419_v52, %v1058_v39  ;;  %v10184_v14 = vld [vmem:[#allocation180_spill] sm:$0xff]  ;;  %v10189_v5 = vld [vmem:[#allocation35_spill] sm:$0xff] }
 0x22b   :  { %v1142_v6 = vadd.f32 %v6423_v41, %v1059_v27  ;;  %v1419_v56 = vadd.f32 %v1415_v22, %v1331_v28  ;;  %v1420_v55 = vadd.f32 %v1416_v19, %v1332_v0  ;;  %v1525_v12 = vmul.f32 %v10183_v2, %v1481_v3 }
 0x22c   :  { %v1526_v40 = vmul.f32 %v10183_v2, %v1482_v15  ;;  %v1429_v45 = vadd.f32 %v1425_v24, %v1341_v35  ;;  %v1430_v16 = vadd.f32 %v1426_v30, %v1342_v38  ;;  %v1483_v62 = vmul.f32 %v10184_v14, %v1454_v44  ;;  %v6809_v28 = vpop.permute.xlu1 %1803  ;;  %v10188_v38 = vld [vmem:[#allocation74_spill] sm:$0xff] }
 0x22d   :  { %v1484_v1 = vmul.f32 %v10185_v47, %v1457_v9  ;;  %v1431_v49 = vadd.f32 %v1427_v4, %v1343_v51  ;;  %v1432_v52 = vadd.f32 %v1428_v54, %v1344_v59  ;;  %v1143_v41 = vadd.f32 %v6427_v29, %v1060_v32  ;;  %v10191_v32 = vld [vmem:[#allocation147_spill] sm:$0xff] }
 0x22e   :  { %v1144_v22 = vadd.f32 %v6449_v50, %v1061_v17  ;;  %v1229_v0 = vadd.f32 %v6551_v18, %v1141_v48  ;;  %v1230_v27 = vadd.f32 %v6554_v26, %v1142_v6  ;;  %v6814_v39 = vrot.slane %v4228_v57, %v5304_v20  ;;  %v10192_v9 = vld [vmem:[#allocation71_spill] sm:$0xff]  ;;  %v10194_v6 = vld [vmem:[#allocation78_spill] sm:$0xff] }
 0x22f   :  { %v6817_v35 = vrot.slane %v4228_v57, %v5308_v7  ;;  %v1489_v19 = vmul.f32 %v10188_v38, %v1481_v3  ;;  %v1490_v51 = vmul.f32 %v10188_v38, %v1482_v15  ;;  %v6821_v59 = vadd.f32 %v1525_v12, %v1441_v37  ;;  %v10193_v48 = vld [vmem:[#allocation79_spill] sm:$0xff] }
 0x230   :  { %10186 = vst [vmem:[#allocation58_spill] sm:$0xff] %v6814_v39  ;;  %v6823_v29 = vadd.f32 %v1526_v40, %v1442_v46  ;;  %v1527_v50 = vmul.f32 %v10183_v2, %v1483_v62  ;;  %v1528_v18 = vmul.f32 %v10183_v2, %v1484_v1  ;;  %v1501_v26 = vmul.f32 %v10189_v5, %v1481_v3  ;;  %v6833_v37 = vpop.permute.xlu1 %1850  ;;  %v10190_v46 = vld [vmem:[#allocation135_spill] sm:$0xff] }
 0x231   :  { %10187 = vst [vmem:[#allocation24_spill] sm:$0xff] %v6817_v35  ;;  %v1502_v10 = vmul.f32 %v10189_v5, %v1482_v15  ;;  %v1231_v25 = vadd.f32 %v6570_v33, %v1143_v41  ;;  %v1232_v24 = vadd.f32 %v6574_v53, %v1144_v22  ;;  %v1491_v30 = vmul.f32 %v10188_v38, %v1483_v62  ;;  %v10195_v12 = vld [vmem:[#allocation179_spill] sm:$0xff] }
 0x232   :  { %v1492_v4 = vmul.f32 %v10188_v38, %v1484_v1  ;;  %v1317_v54 = vadd.f32 %v10190_v46, %v1229_v0  ;;  %v1318_v17 = vadd.f32 %v10191_v32, %v1230_v27  ;;  %v1503_v31 = vmul.f32 %v10189_v5, %v1483_v62  ;;  %v10196_v27 = vld [vmem:[#allocation148_spill] sm:$0xff] }
 0x233   :  { %v1504_v44 = vmul.f32 %v10189_v5, %v1484_v1  ;;  %vm9630_vm15 = vcmp.lt.s32.totalorder %v5302_v23, 111  ;;  %v1513_v33 = vmul.f32 %v10192_v9, %v1481_v3  ;;  %v1514_v53 = vmul.f32 %v10192_v9, %v1482_v15  ;;  %v10197_v38 = vld [vmem:[#allocation16_spill] sm:$0xff] }
 0x234   :  { %v1543_v2 = vsel %vm9626_vm14, %v10194_v6, %v10193_v48  ;;  %v1544_v40 = vsel %vm9626_vm14, %v10195_v12, %v10194_v6  ;;  %v6850_v41 = vadd.f32 %v1527_v50, %v1443_v36  ;;  %v6852_v22 = vadd.f32 %v1528_v18, %v1444_v42  ;;  %v10199_v36 = vld [vmem:[#allocation48_spill] sm:$0xff]  ;;  %v6862_v42 = vpop.permute.xlu1 %1862 }
 0x235   :  { %v1515_v0 = vmul.f32 %v10192_v9, %v1483_v62  ;;  %v1516_v3 = vmul.f32 %v10192_v9, %v1484_v1  ;;  %v1319_v15 = vadd.f32 %v10196_v27, %v1231_v25  ;;  %v1320_v5 = vadd.f32 %v10197_v38, %v1232_v24  ;;  %v10215_v27 = vld [vmem:[#allocation130_spill] sm:$0xff]  ;;  %v10216_v38 = vld [vmem:[#allocation115_spill] sm:$0xff] }
 0x236   :  { %v1505_v46 = vadd.f32 %v1501_v26, %v1417_v11  ;;  %v1506_v32 = vadd.f32 %v1502_v10, %v1418_v21  ;;  %v1405_v47 = vadd.f32 %v6734_v63, %v1317_v54  ;;  %v1406_v14 = vadd.f32 %v6737_v60, %v1318_v17  ;;  %v10200_v63 = vld [vmem:[#allocation80_spill] sm:$0xff]  ;;  %v10203_v26 = vld [vmem:[#allocation85_spill] sm:$0xff] }
 0x237   :  { %v1569_v6 = vmul.f32 %v10198_v43, %v1544_v40  ;;  %v1570_v50 = vmul.f32 %v10199_v36, %v1543_v2  ;;  %v6864_v18 = vadd.f32 %v1503_v31, %v1419_v56  ;;  %v6866_v62 = vadd.f32 %v1504_v44, %v1420_v55  ;;  %v4229_v55 = vld [vmem:[%s9260_s1 + $0x47] ss:$8 sm:$0xf] }
 0x238   :  { %v6868_v1 = vadd.f32 %v1513_v33, %v1429_v45  ;;  %v6870_v25 = vadd.f32 %v1514_v53, %v1430_v16  ;;  %v6872_v11 = vadd.f32 %v1515_v0, %v1431_v49  ;;  %v6874_v21 = vadd.f32 %v1516_v3, %v1432_v52  ;;  %v10201_v49 = vld [vmem:[#allocation86_spill] sm:$0xff]  ;;  %v10205_v17 = vld [vmem:[#allocation81_spill] sm:$0xff]  ;;  %v6897_v9 = vpop.permute.xlu1 %1885  ;;  %v10214_v3 = vld [vmem:[#allocation91_spill] sm:$0xff] }
 0x239   :  { %v1542_v60 = vsel %vm9626_vm14, %v10193_v48, %v10200_v63  ;;  %v1545_v56 = vsel %vm9626_vm14, %v10200_v63, %v10195_v12  ;;  %v1407_v45 = vadd.f32 %v6754_v34, %v1319_v15  ;;  %v1408_v16 = vadd.f32 %v6757_v61, %v1320_v5  ;;  %v10206_v33 = vld [vmem:[#allocation114_spill] sm:$0xff]  ;;  %v10207_v48 = vld [vmem:[#allocation185_spill] sm:$0xff] }
 0x23a   :  { %v6890_v52 = vrot.slane %v4228_v57, %v10201_v49  ;;  %v6893_v10 = vrot.slane %v4228_v57, %v10203_v26  ;;  %v1493_v24 = vadd.f32 %v1489_v19, %v1405_v47  ;;  %v1494_v54 = vadd.f32 %v1490_v51, %v1406_v14  ;;  %v10210_v57 = vld [vmem:[#allocation84_spill] sm:$0xff] }
 0x23b   :  { %v1577_v31 = vmul.f32 %v10205_v17, %v1569_v6  ;;  %v1578_v44 = vmul.f32 %v10205_v17, %v1570_v50  ;;  %v1571_v53 = vmul.f32 %v10206_v33, %v1542_v60  ;;  %v1572_v34 = vmul.f32 %v10207_v48, %v1545_v56  ;;  %v10213_v51 = vld [vmem:[#allocation184_spill] sm:$0xff] }
 0x23c   :  { %10202 = vst [vmem:[#allocation6_spill] sm:$0xff] %v6890_v52  ;;  %10204 = vst [vmem:[#allocation160_spill] sm:$0xff] %v6893_v10  ;;  %v6902_v61 = vrot.slane %v4229_v55, %v5304_v20  ;;  %v6905_v2 = vrot.slane %v4229_v55, %v5308_v7  ;;  %v1613_v12 = vmul.f32 %v10210_v57, %v1569_v6  ;;  %vm9636_vm14 = vcmp.lt.s32.totalorder %v5302_v23, 110 }
 0x23d   :  { %v1614_v14 = vmul.f32 %v10210_v57, %v1570_v50  ;;  %v6911_v47 = vrot.slane %v4229_v55, %v10201_v49  ;;  %v6914_v19 = vrot.slane %v4229_v55, %v10203_v26  ;;  %v1589_v40 = vmul.f32 %v10213_v51, %v1569_v6  ;;  %v6926_v55 = vpop.permute.xlu1 %1887 }
 0x23e   :  { %10208 = vst [vmem:[#allocation20_spill] sm:$0xff] %v6902_v61  ;;  %10209 = vst [vmem:[#allocation28_spill] sm:$0xff] %v6905_v2  ;;  %v1590_v0 = vmul.f32 %v10213_v51, %v1570_v50  ;;  %v1631_v15 = vsel %vm9630_vm15, %v10215_v27, %v10214_v3  ;;  %v1632_v5 = vsel %vm9630_vm15, %v10216_v38, %v10215_v27  ;;  %v10217_v2 = vld [vmem:[#allocation98_spill] sm:$0xff] }
 0x23f   :  { %10211 = vst [vmem:[#allocation32_spill] sm:$0xff] %v6911_v47  ;;  %10212 = vst [vmem:[#allocation13_spill] sm:$0xff] %v6914_v19  ;;  %v1495_v63 = vadd.f32 %v1491_v30, %v1407_v45  ;;  %v1496_v60 = vadd.f32 %v1492_v4, %v1408_v16  ;;  %v1581_v56 = vadd.f32 %v1577_v31, %v1493_v24  ;;  %v10218_v30 = vld [vmem:[#allocation186_spill] sm:$0xff] }
 0x240   :  { %v1582_v48 = vadd.f32 %v1578_v44, %v1494_v54  ;;  %v1579_v33 = vmul.f32 %v10205_v17, %v1571_v53  ;;  %v1580_v36 = vmul.f32 %v10205_v17, %v1572_v34  ;;  %v1615_v43 = vmul.f32 %v10210_v57, %v1571_v53  ;;  %v10219_v17 = vld [vmem:[#allocation45_spill] sm:$0xff]  ;;  %v10239_v61 = vld [vmem:[#allocation134_spill] sm:$0xff] }
 0x241   :  { %v1616_v13 = vmul.f32 %v10210_v57, %v1572_v34  ;;  %v1617_v19 = vadd.f32 %v1613_v12, %v6821_v59  ;;  %v1618_v47 = vadd.f32 %v1614_v14, %v6823_v29  ;;  %v1657_v27 = vmul.f32 %v10217_v2, %v1632_v5  ;;  %v10220_v57 = vld [vmem:[#allocation52_spill] sm:$0xff]  ;;  %v6952_v12 = vpop.permute.xlu1 %1891  ;;  %v10227_v2 = vld [vmem:[#allocation151_spill] sm:$0xff] }
 0x242   :  { %v1658_v4 = vmul.f32 %v10218_v30, %v1631_v15  ;;  %v1591_v45 = vmul.f32 %v10213_v51, %v1571_v53  ;;  %v1592_v16 = vmul.f32 %v10213_v51, %v1572_v34  ;;  %v6938_v24 = vadd.f32 %v1589_v40, %v1505_v46  ;;  %v10221_v40 = vld [vmem:[#allocation111_spill] sm:$0xff] }
 0x243   :  { %v6940_v54 = vadd.f32 %v1590_v0, %v1506_v32  ;;  %v1601_v31 = vmul.f32 %v10219_v17, %v1569_v6  ;;  %v1602_v44 = vmul.f32 %v10219_v17, %v1570_v50  ;;  %v1630_v59 = vsel %vm9630_vm15, %v10214_v3, %v10220_v57  ;;  %v4230_v15 = vld [vmem:[%s9260_s1 + $0x60] ss:$8 sm:$0xf] }
 0x244   :  { %v1633_v29 = vsel %vm9630_vm15, %v10220_v57, %v10216_v38  ;;  %v1583_v46 = vadd.f32 %v1579_v33, %v1495_v63  ;;  %v1584_v14 = vadd.f32 %v1580_v36, %v1496_v60  ;;  %v1619_v32 = vadd.f32 %v1615_v43, %v6850_v41  ;;  %v10222_v38 = vld [vmem:[#allocation124_spill] sm:$0xff]  ;;  %v10224_v41 = vld [vmem:[#allocation125_spill] sm:$0xff] }
 0x245   :  { %v1620_v6 = vadd.f32 %v1616_v13, %v6852_v22  ;;  %v1603_v50 = vmul.f32 %v10219_v17, %v1571_v53  ;;  %v1604_v51 = vmul.f32 %v10219_v17, %v1572_v34  ;;  %v1665_v0 = vmul.f32 %v10221_v40, %v1657_v27  ;;  %v10223_v33 = vld [vmem:[#allocation112_spill] sm:$0xff]  ;;  %v6971_v60 = vpop.permute.xlu1 %1938  ;;  %v10225_v17 = vld [vmem:[#allocation133_spill] sm:$0xff] }
 0x246   :  { %v1666_v3 = vmul.f32 %v10221_v40, %v1658_v4  ;;  %v1701_v5 = vmul.f32 %v10222_v38, %v1657_v27  ;;  %v1702_v36 = vmul.f32 %v10222_v38, %v1658_v4  ;;  %v1659_v43 = vmul.f32 %v10223_v33, %v1630_v59  ;;  %v10226_v57 = vld [vmem:[#allocation144_spill] sm:$0xff]  ;;  %v10231_v33 = vld [vmem:[#allocation54_spill] sm:$0xff] }
 0x247   :  { %v1660_v13 = vmul.f32 %v10224_v41, %v1633_v29  ;;  %v1595_v22 = vadd.f32 %v1591_v45, %v6864_v18  ;;  %v1596_v53 = vadd.f32 %v1592_v16, %v6866_v62  ;;  %v1605_v34 = vadd.f32 %v1601_v31, %v6868_v1  ;;  %v10230_v41 = vld [vmem:[#allocation143_spill] sm:$0xff] }
 0x248   :  { %v1606_v63 = vadd.f32 %v1602_v44, %v6870_v25  ;;  %v1719_v30 = vsel %vm9636_vm14, %v10226_v57, %v10225_v17  ;;  %v1720_v59 = vsel %vm9636_vm14, %v10227_v2, %v10226_v57  ;;  %v6982_v18 = vrot.slane %v4230_v15, %v5304_v20 }
 0x249   :  { %v6985_v62 = vrot.slane %v4230_v15, %v5308_v7  ;;  %v1607_v1 = vadd.f32 %v1603_v50, %v6872_v11  ;;  %v1608_v25 = vadd.f32 %v1604_v51, %v6874_v21  ;;  %v1669_v45 = vadd.f32 %v1665_v0, %v1581_v56  ;;  %v7004_v50 = vpop.permute.xlu1 %1950 }
 0x24a   :  { %10228 = vst [vmem:[#allocation18_spill] sm:$0xff] %v6982_v18  ;;  %v1670_v16 = vadd.f32 %v1666_v3, %v1582_v48  ;;  %vm9637_vm15 = vcmp.lt.s32.totalorder %v5302_v23, 98  ;;  %v1705_v31 = vadd.f32 %v1701_v5, %v1617_v19  ;;  %v1706_v44 = vadd.f32 %v1702_v36, %v1618_v47  ;;  %v10234_v19 = vld [vmem:[#allocation119_spill] sm:$0xff] }
 0x24b   :  { %10229 = vst [vmem:[#allocation9_spill] sm:$0xff] %v6985_v62  ;;  %v1667_v29 = vmul.f32 %v10221_v40, %v1659_v43  ;;  %v1668_v57 = vmul.f32 %v10221_v40, %v1660_v13  ;;  %v1745_v20 = vmul.f32 %v10230_v41, %v1720_v59  ;;  %v1746_v18 = vmul.f32 %v10231_v33, %v1719_v30  ;;  %v10235_v40 = vld [vmem:[#allocation4_spill] sm:$0xff] }
 0x24c   :  { %v6995_v7 = vrot.slane %v4230_v15, %v10201_v49  ;;  %v6998_v11 = vrot.slane %v4230_v15, %v10203_v26  ;;  %v1703_v21 = vmul.f32 %v10222_v38, %v1659_v43  ;;  %v1704_v48 = vmul.f32 %v10222_v38, %v1660_v13  ;;  %v10236_v15 = vld [vmem:[#allocation131_spill] sm:$0xff] }
 0x24d   :  { %v1677_v47 = vmul.f32 %v10234_v19, %v1657_v27  ;;  %v1678_v56 = vmul.f32 %v10234_v19, %v1658_v4  ;;  %v1679_v51 = vmul.f32 %v10234_v19, %v1659_v43  ;;  %v1680_v30 = vmul.f32 %v10234_v19, %v1660_v13  ;;  %v10237_v19 = vld [vmem:[#allocation141_spill] sm:$0xff] }
 0x24e   :  { %10232 = vst [vmem:[#allocation38_spill] sm:$0xff] %v6995_v7  ;;  %10233 = vst [vmem:[#allocation64_spill] sm:$0xff] %v6998_v11  ;;  %v1718_v49 = vsel %vm9636_vm14, %v10225_v17, %v10235_v40  ;;  %v1721_v26 = vsel %vm9636_vm14, %v10235_v40, %v10227_v2  ;;  %v1671_v0 = vadd.f32 %v1667_v29, %v1583_v46  ;;  %v10238_v7 = vld [vmem:[#allocation116_spill] sm:$0xff]  ;;  %v7024_v46 = vpop.permute.xlu1 %1973  ;;  %vm9638_vm14 = vcmp.lt.s32.totalorder %v5302_v23, 97 }
 0x24f   :  { %v1672_v3 = vadd.f32 %v1668_v57, %v1584_v14  ;;  %v1689_v38 = vmul.f32 %v10236_v15, %v1657_v27  ;;  %v1690_v5 = vmul.f32 %v10236_v15, %v1658_v4  ;;  %v1691_v36 = vmul.f32 %v10236_v15, %v1659_v43  ;;  %v10240_v14 = vld [vmem:[#allocation150_spill] sm:$0xff] }
 0x250   :  { %v1692_v59 = vmul.f32 %v10236_v15, %v1660_v13  ;;  %v1753_v33 = vmul.f32 %v10237_v19, %v1745_v20  ;;  %v1754_v41 = vmul.f32 %v10237_v19, %v1746_v18  ;;  %v1707_v17 = vadd.f32 %v1703_v21, %v1619_v32 }
 0x251   :  { %v1708_v11 = vadd.f32 %v1704_v48, %v1620_v6  ;;  %v1747_v62 = vmul.f32 %v10238_v7, %v1718_v49  ;;  %v1748_v2 = vmul.f32 %v10239_v61, %v1721_v26  ;;  %v1681_v27 = vadd.f32 %v1677_v47, %v6938_v24  ;;  %v10241_v47 = vld [vmem:[#allocation154_spill] sm:$0xff]  ;;  %v10244_v26 = vld [vmem:[#allocation132_spill] sm:$0xff]  ;;  %v10247_v61 = vld [vmem:[#allocation145_spill] sm:$0xff] }
 0x252   :  { %v1682_v4 = vadd.f32 %v1678_v56, %v6940_v54  ;;  %v1789_v43 = vmul.f32 %v10240_v14, %v1745_v20  ;;  %v1790_v13 = vmul.f32 %v10240_v14, %v1746_v18  ;;  %v1683_v29 = vadd.f32 %v1679_v51, %v1595_v22  ;;  %v10243_v51 = vld [vmem:[#allocation136_spill] sm:$0xff] }
 0x253   :  { %v1684_v57 = vadd.f32 %v1680_v30, %v1596_v53  ;;  %v1693_v40 = vadd.f32 %v1689_v38, %v1605_v34  ;;  %v1694_v15 = vadd.f32 %v1690_v5, %v1606_v63  ;;  %v1695_v32 = vadd.f32 %v1691_v36, %v1607_v1  ;;  %v7041_v53 = vpop.permute.xlu1 %1975  ;;  %v10242_v1 = vld [vmem:[#allocation14_spill] sm:$0xff]  ;;  %v10245_v36 = vld [vmem:[#allocation12_spill] sm:$0xff] }
 0x254   :  { %v1696_v6 = vadd.f32 %v1692_v59, %v1608_v25  ;;  %v1757_v21 = vadd.f32 %v1753_v33, %v1669_v45  ;;  %v1758_v48 = vadd.f32 %v1754_v41, %v1670_v16  ;;  %v1755_v49 = vmul.f32 %v10237_v19, %v1747_v62 }
 0x255   :  { %v1756_v24 = vmul.f32 %v10237_v19, %v1748_v2  ;;  %v1807_v54 = vsel %vm9637_vm15, %v6794_v8, %v10241_v47  ;;  %v1808_v22 = vsel %vm9637_vm15, %v6771_v58, %v6794_v8  ;;  %v1793_v34 = vadd.f32 %v1789_v43, %v1705_v31 }
 0x256   :  { %v1794_v63 = vadd.f32 %v1790_v13, %v1706_v44  ;;  %v1791_v33 = vmul.f32 %v10240_v14, %v1747_v62  ;;  %v1792_v41 = vmul.f32 %v10240_v14, %v1748_v2  ;;  %v1765_v25 = vmul.f32 %v10242_v1, %v1745_v20 }
 0x257   :  { %v1766_v45 = vmul.f32 %v10242_v1, %v1746_v18  ;;  %v1767_v16 = vmul.f32 %v10242_v1, %v1747_v62  ;;  %v1768_v56 = vmul.f32 %v10242_v1, %v1748_v2  ;;  %v1833_v30 = vmul.f32 %v10243_v51, %v1808_v22  ;;  %v7061_v14 = vpop.permute.xlu1 %1979 }
 0x258   :  { %v1834_v8 = vmul.f32 %v10244_v26, %v1807_v54  ;;  %v1806_v31 = vsel %vm9637_vm15, %v10241_v47, %v6809_v28  ;;  %v1809_v44 = vsel %vm9637_vm15, %v6809_v28, %v6771_v58  ;;  %v1759_v38 = vadd.f32 %v1755_v49, %v1671_v0  ;;  %v10246_v26 = vld [vmem:[#allocation56_spill] sm:$0xff]  ;;  %v10248_v28 = vld [vmem:[#allocation10_spill] sm:$0xff] }
 0x259   :  { %v1760_v5 = vadd.f32 %v1756_v24, %v1672_v3  ;;  %v1777_v59 = vmul.f32 %v10245_v36, %v1745_v20  ;;  %v1778_v19 = vmul.f32 %v10245_v36, %v1746_v18  ;;  %v1795_v43 = vadd.f32 %v1791_v33, %v1707_v17  ;;  %v10249_v3 = vld [vmem:[#allocation159_spill] sm:$0xff]  ;;  %v10250_v33 = vld [vmem:[#allocation22_spill] sm:$0xff] }
 0x25a   :  { %v1796_v13 = vadd.f32 %v1792_v41, %v1708_v11  ;;  %v1779_v54 = vmul.f32 %v10245_v36, %v1747_v62  ;;  %v1780_v22 = vmul.f32 %v10245_v36, %v1748_v2  ;;  %v1769_v47 = vadd.f32 %v1765_v25, %v1681_v27 }
 0x25b   :  { %v1770_v1 = vadd.f32 %v1766_v45, %v1682_v4  ;;  %v1835_v51 = vmul.f32 %v10246_v26, %v1806_v31  ;;  %v1836_v58 = vmul.f32 %v10247_v61, %v1809_v44  ;;  %v1841_v0 = vmul.f32 %v10248_v28, %v1833_v30  ;;  %v7072_v27 = vpop.permute.xlu1 %2026  ;;  %v10251_v44 = vld [vmem:[#allocation152_spill] sm:$0xff] }
 0x25c   :  { %v1842_v20 = vmul.f32 %v10248_v28, %v1834_v8  ;;  %v1877_v18 = vmul.f32 %v10249_v3, %v1833_v30  ;;  %v1878_v49 = vmul.f32 %v10249_v3, %v1834_v8  ;;  %vm9640_vm15 = vcmp.lt.s32.totalorder %v5302_v23, 96 }
 0x25d   :  { %v1771_v11 = vadd.f32 %v1767_v16, %v1683_v29  ;;  %v1772_v62 = vadd.f32 %v1768_v56, %v1684_v57  ;;  %v1781_v17 = vadd.f32 %v1777_v59, %v1693_v40  ;;  %v1782_v2 = vadd.f32 %v1778_v19, %v1694_v15  ;;  %v10252_v59 = vld [vmem:[#allocation157_spill] sm:$0xff] }
 0x25e   :  { %v1783_v4 = vadd.f32 %v1779_v54, %v1695_v32  ;;  %v1784_v24 = vadd.f32 %v1780_v22, %v1696_v6  ;;  %v1895_v41 = vsel %vm9638_vm14, %v6926_v55, %v10250_v33  ;;  %v1896_v25 = vsel %vm9638_vm14, %v6897_v9, %v6926_v55 }
 0x25f   :  { %v1843_v45 = vmul.f32 %v10248_v28, %v1835_v51  ;;  %v1844_v29 = vmul.f32 %v10248_v28, %v1836_v58  ;;  %v1879_v57 = vmul.f32 %v10249_v3, %v1835_v51  ;;  %v1880_v40 = vmul.f32 %v10249_v3, %v1836_v58 }
 0x260   :  { %v1845_v15 = vadd.f32 %v1841_v0, %v1757_v21  ;;  %v1846_v32 = vadd.f32 %v1842_v20, %v1758_v48  ;;  %v1881_v6 = vadd.f32 %v1877_v18, %v1793_v34  ;;  %v1882_v16 = vadd.f32 %v1878_v49, %v1794_v63  ;;  %v7100_v34 = vpop.permute.xlu1 %2038  ;;  %v10253_v49 = vld [vmem:[#allocation165_spill] sm:$0xff] }
 0x261   :  { %v1853_v56 = vmul.f32 %v6833_v37, %v1833_v30  ;;  %v1854_v31 = vmul.f32 %v6833_v37, %v1834_v8  ;;  %v1921_v36 = vmul.f32 %v10251_v44, %v1896_v25  ;;  %v1922_v55 = vmul.f32 %v10252_v59, %v1895_v41  ;;  %v10254_v25 = vld [vmem:[#allocation60_spill] sm:$0xff] }
 0x262   :  { %v1855_v19 = vmul.f32 %v6833_v37, %v1835_v51  ;;  %v1856_v54 = vmul.f32 %v6833_v37, %v1836_v58  ;;  %v1894_v21 = vsel %vm9638_vm14, %v10250_v33, %v6952_v12  ;;  %v1897_v48 = vsel %vm9638_vm14, %v6952_v12, %v6897_v9  ;;  %v10255_v12 = vld [vmem:[#allocation26_spill] sm:$0xff] }
 0x263   :  { %v1847_v63 = vadd.f32 %v1843_v45, %v1759_v38  ;;  %v1848_v22 = vadd.f32 %v1844_v29, %v1760_v5  ;;  %v1883_v28 = vadd.f32 %v1879_v57, %v1795_v43  ;;  %v1884_v0 = vadd.f32 %v1880_v40, %v1796_v13  ;;  %v10256_v43 = vld [vmem:[#allocation17_spill] sm:$0xff] }
 0x264   :  { %v1865_v20 = vmul.f32 %v6862_v42, %v1833_v30  ;;  %v1866_v37 = vmul.f32 %v6862_v42, %v1834_v8  ;;  %v1867_v3 = vmul.f32 %v6862_v42, %v1835_v51  ;;  %v1868_v18 = vmul.f32 %v6862_v42, %v1836_v58  ;;  %v2062_v45 = vpop.permute.xlu1 %2061  ;;  %v10257_v51 = vld [vmem:[#allocation46_spill] sm:$0xff] }
 0x265   :  { %v1929_v33 = vmul.f32 %v10253_v49, %v1921_v36  ;;  %v1930_v41 = vmul.f32 %v10253_v49, %v1922_v55  ;;  %v1923_v9 = vmul.f32 %v10254_v25, %v1894_v21  ;;  %v1924_v59 = vmul.f32 %v10255_v12, %v1897_v48 }
 0x266   :  { %v1857_v38 = vadd.f32 %v1853_v56, %v1769_v47  ;;  %v1858_v5 = vadd.f32 %v1854_v31, %v1770_v1  ;;  %v1965_v13 = vmul.f32 %v10256_v43, %v1921_v36  ;;  %v1966_v30 = vmul.f32 %v10256_v43, %v1922_v55 }
 0x267   :  { %v1859_v8 = vadd.f32 %v1855_v19, %v1771_v11  ;;  %v1860_v29 = vadd.f32 %v1856_v54, %v1772_v62  ;;  %v1983_v42 = vsel %vm9640_vm15, %v7041_v53, %v10257_v51  ;;  %v1984_v58 = vsel %vm9640_vm15, %v7024_v46, %v7041_v53 }
 0x268   :  { %v1869_v57 = vadd.f32 %v1865_v20, %v1781_v17  ;;  %v1870_v47 = vadd.f32 %v1866_v37, %v1782_v2  ;;  %v1871_v1 = vadd.f32 %v1867_v3, %v1783_v4  ;;  %v1872_v40 = vadd.f32 %v1868_v18, %v1784_v24  ;;  %v2064_v12 = vpop.permute.xlu1 %2063 }
 0x269   :  { %vm9641_vm14 = vcmp.lt.s32.totalorder %v5302_v23, 95  ;;  %v1933_v56 = vadd.f32 %v1929_v33, %v1845_v15  ;;  %v1934_v31 = vadd.f32 %v1930_v41, %v1846_v32  ;;  %v1931_v11 = vmul.f32 %v10253_v49, %v1923_v9 }
 0x26a   :  { %v1932_v62 = vmul.f32 %v10253_v49, %v1924_v59  ;;  %v1969_v19 = vadd.f32 %v1965_v13, %v1881_v6  ;;  %v1970_v54 = vadd.f32 %v1966_v30, %v1882_v16  ;;  %v2009_v21 = vmul.f32 %v6814_v39, %v1984_v58  ;;  %v10258_v49 = vld [vmem:[#allocation23_spill] sm:$0xff] }
 0x26b   :  { %v2010_v48 = vmul.f32 %v6817_v35, %v1983_v42  ;;  %v1967_v53 = vmul.f32 %v10256_v43, %v1923_v9  ;;  %v1968_v17 = vmul.f32 %v10256_v43, %v1924_v59  ;;  %v1941_v2 = vmul.f32 %v6971_v60, %v1921_v36 }
 0x26c   :  { %v1942_v4 = vmul.f32 %v6971_v60, %v1922_v55  ;;  %v1943_v24 = vmul.f32 %v6971_v60, %v1923_v9  ;;  %v1944_v15 = vmul.f32 %v6971_v60, %v1924_v59  ;;  %v1982_v32 = vsel %vm9640_vm15, %v10257_v51, %v7061_v14  ;;  %v2068_v43 = vpop.permute.xlu1 %2067 }
 0x26d   :  { %v1985_v6 = vsel %vm9640_vm15, %v7061_v14, %v7024_v46  ;;  %v1935_v16 = vadd.f32 %v1931_v11, %v1847_v63  ;;  %v1936_v20 = vadd.f32 %v1932_v62, %v1848_v22  ;;  %v1953_v37 = vmul.f32 %v7004_v50, %v1921_v36 }
 0x26e   :  { %v1954_v3 = vmul.f32 %v7004_v50, %v1922_v55  ;;  %v1955_v18 = vmul.f32 %v7004_v50, %v1923_v9  ;;  %v1956_v60 = vmul.f32 %v7004_v50, %v1924_v59  ;;  %v2017_v33 = vmul.f32 %v10258_v49, %v2009_v21  ;;  %v10259_v9 = vld [vmem:[#allocation53_spill] sm:$0xff] }
 0x26f   :  { %v2018_v41 = vmul.f32 %v10258_v49, %v2010_v48  ;;  %v1971_v13 = vadd.f32 %v1967_v53, %v1883_v28  ;;  %v1972_v30 = vadd.f32 %v1968_v17, %v1884_v0  ;;  %v2011_v51 = vmul.f32 %v6890_v52, %v1982_v32  ;;  %v10260_v17 = vld [vmem:[#allocation174_spill] sm:$0xff] }
 0x270   :  { %v2012_v46 = vmul.f32 %v6893_v10, %v1985_v6  ;;  %v1945_v14 = vadd.f32 %v1941_v2, %v1857_v38  ;;  %v1946_v63 = vadd.f32 %v1942_v4, %v1858_v5  ;;  %v1947_v36 = vadd.f32 %v1943_v24, %v1859_v8  ;;  %v2115_v28 = vpop.permute.xlu1 %2114  ;;  %v10261_v4 = vld [vmem:[#allocation20_spill] sm:$0xff] }
 0x271   :  { %v1948_v22 = vadd.f32 %v1944_v15, %v1860_v29  ;;  %v1957_v55 = vadd.f32 %v1953_v37, %v1869_v57  ;;  %v1958_v42 = vadd.f32 %v1954_v3, %v1870_v47  ;;  %v2053_v58 = vmul.f32 %v10259_v9, %v2009_v21  ;;  %v10262_v15 = vld [vmem:[#allocation28_spill] sm:$0xff] }
 0x272   :  { %v2054_v50 = vmul.f32 %v10259_v9, %v2010_v48  ;;  %v1959_v59 = vadd.f32 %v1955_v18, %v1871_v1  ;;  %v1960_v11 = vadd.f32 %v1956_v60, %v1872_v40  ;;  %v2021_v62 = vadd.f32 %v2017_v33, %v1933_v56  ;;  %v10263_v3 = vld [vmem:[#allocation32_spill] sm:$0xff] }
 0x273   :  { %v2022_v35 = vadd.f32 %v2018_v41, %v1934_v31  ;;  %v2019_v0 = vmul.f32 %v10258_v49, %v2011_v51  ;;  %v2020_v53 = vmul.f32 %v10258_v49, %v2012_v46  ;;  %v2071_v38 = vsel %vm9641_vm14, %v2064_v12, %v10260_v17 }
 0x274   :  { %v2072_v5 = vsel %vm9641_vm14, %v2062_v45, %v2064_v12  ;;  %v2055_v8 = vmul.f32 %v10259_v9, %v2011_v51  ;;  %v2056_v29 = vmul.f32 %v10259_v9, %v2012_v46  ;;  %v2070_v57 = vsel %vm9641_vm14, %v10260_v17, %v2068_v43  ;;  %v2127_v18 = vpop.permute.xlu1 %2126  ;;  %v10266_v17 = vld [vmem:[#allocation177_spill] sm:$0xff] }
 0x275   :  { %v2073_v47 = vsel %vm9641_vm14, %v2068_v43, %v2062_v45  ;;  %v2057_v1 = vadd.f32 %v2053_v58, %v1969_v19  ;;  %v2058_v40 = vadd.f32 %v2054_v50, %v1970_v54  ;;  %v2029_v56 = vmul.f32 %v7072_v27, %v2009_v21  ;;  %v10264_v19 = vld [vmem:[#allocation13_spill] sm:$0xff] }
 0x276   :  { %v2030_v31 = vmul.f32 %v7072_v27, %v2010_v48  ;;  %vm9642_vm15 = vcmp.lt.s32.totalorder %v5302_v23, 94  ;;  %v2031_v12 = vmul.f32 %v7072_v27, %v2011_v51  ;;  %v2032_v2 = vmul.f32 %v7072_v27, %v2012_v46 }
 0x277   :  { %v2097_v24 = vmul.f32 %v10261_v4, %v2072_v5  ;;  %v2098_v32 = vmul.f32 %v10262_v15, %v2071_v38  ;;  %v2023_v6 = vadd.f32 %v2019_v0, %v1935_v16  ;;  %v2024_v37 = vadd.f32 %v2020_v53, %v1936_v20  ;;  %v10265_v20 = vld [vmem:[#allocation63_spill] sm:$0xff] }
 0x278   :  { %v2099_v45 = vmul.f32 %v10263_v3, %v2070_v57  ;;  %v2100_v54 = vmul.f32 %v10264_v19, %v2073_v47  ;;  %v2059_v60 = vadd.f32 %v2055_v8, %v1971_v13  ;;  %v2060_v49 = vadd.f32 %v2056_v29, %v1972_v30  ;;  %v2150_v30 = vpop.permute.xlu1 %2149 }
 0x279   :  { %v2041_v33 = vmul.f32 %v7100_v34, %v2009_v21  ;;  %v2042_v41 = vmul.f32 %v7100_v34, %v2010_v48  ;;  %v2033_v43 = vadd.f32 %v2029_v56, %v1945_v14  ;;  %v2034_v9 = vadd.f32 %v2030_v31, %v1946_v63 }
 0x27a   :  { %v2043_v27 = vmul.f32 %v7100_v34, %v2011_v51  ;;  %v2044_v58 = vmul.f32 %v7100_v34, %v2012_v46  ;;  %v2035_v50 = vadd.f32 %v2031_v12, %v1947_v36  ;;  %v2036_v16 = vadd.f32 %v2032_v2, %v1948_v22 }
 0x27b   :  { %v2105_v0 = vmul.f32 %v10265_v20, %v2097_v24  ;;  %v2106_v53 = vmul.f32 %v10265_v20, %v2098_v32  ;;  %v2141_v38 = vmul.f32 %v10266_v17, %v2097_v24  ;;  %v2142_v13 = vmul.f32 %v10266_v17, %v2098_v32 }
 0x27c   :  { %v2107_v21 = vmul.f32 %v10265_v20, %v2099_v45  ;;  %v2108_v48 = vmul.f32 %v10265_v20, %v2100_v54  ;;  %v2045_v14 = vadd.f32 %v2041_v33, %v1957_v55  ;;  %v2046_v63 = vadd.f32 %v2042_v41, %v1958_v42  ;;  %v2152_v42 = vpop.permute.xlu1 %2151  ;;  %v10267_v41 = vld [vmem:[#allocation77_spill] sm:$0xff] }
 0x27d   :  { %v2143_v51 = vmul.f32 %v10266_v17, %v2099_v45  ;;  %v2144_v34 = vmul.f32 %v10266_v17, %v2100_v54  ;;  %vm2237_vm14 = vcmask 1043456   ;;  %v7184_v46 = vadd.f32 %v2043_v27, %v1959_v59 }
 0x27e   :  { %v7186_v36 = vadd.f32 %v2044_v58, %v1960_v11  ;;  %v2117_v22 = vmul.f32 %v2115_v28, %v2097_v24  ;;  %v2118_v5 = vmul.f32 %v2115_v28, %v2098_v32  ;;  %v2109_v8 = vadd.f32 %v2105_v0, %v2021_v62  ;;  %v10270_v58 = vld [vmem:[#allocation83_spill] sm:$0xff] }
 0x27f   :  { %v2110_v29 = vadd.f32 %v2106_v53, %v2022_v35  ;;  %v2119_v57 = vmul.f32 %v2115_v28, %v2099_v45  ;;  %v2120_v47 = vmul.f32 %v2115_v28, %v2100_v54  ;;  %v2145_v56 = vadd.f32 %v2141_v38, %v2057_v1  ;;  %v10268_v35 = vld [vmem:[#allocation18_spill] sm:$0xff]  ;;  %v10269_v1 = vld [vmem:[#allocation9_spill] sm:$0xff] }
 0x280   :  { %v2146_v31 = vadd.f32 %v2142_v13, %v2058_v40  ;;  %v2111_v12 = vadd.f32 %v2107_v21, %v2023_v6  ;;  %v2112_v55 = vadd.f32 %v2108_v48, %v2024_v37  ;;  %v2147_v2 = vadd.f32 %v2143_v51, %v2059_v60  ;;  %v2156_v17 = vpop.permute.xlu1 %2155 }
 0x281   :  { %v2148_v33 = vadd.f32 %v2144_v34, %v2060_v49  ;;  %v2159_v59 = vsel %vm9642_vm15, %v2152_v42, %v10267_v41  ;;  %v2160_v11 = vsel %vm9642_vm15, %v2150_v30, %v2152_v42  ;;  %v7193_v27 = vadd.f32 %v2117_v22, %v2033_v43  ;;  %v10272_v22 = vld [vmem:[#allocation38_spill] sm:$0xff] }
 0x282   :  { %v7195_v62 = vadd.f32 %v2118_v5, %v2034_v9  ;;  %v7198_v28 = vmul.f32 %v10268_v35, %v2160_v11  ;;  %v7201_v40 = vmul.f32 %v10269_v1, %v2159_v59  ;;  %v7203_v6 = vadd.f32 %v2119_v57, %v2035_v50  ;;  %v10271_v9 = vld [vmem:[#allocation87_spill] sm:$0xff]  ;;  %v10273_v57 = vld [vmem:[#allocation64_spill] sm:$0xff] }
 0x283   :  { %v7205_v37 = vadd.f32 %v2120_v47, %v2036_v16  ;;  %v2129_v60 = vmul.f32 %v2127_v18, %v2097_v24  ;;  %v2130_v49 = vmul.f32 %v2127_v18, %v2098_v32  ;;  %v2131_v38 = vmul.f32 %v2127_v18, %v2099_v45 }
 0x284   :  { %v2193_v20 = vmul.f32 %v10270_v58, %v7198_v28  ;;  %v2194_v43 = vmul.f32 %v10270_v58, %v7201_v40  ;;  %v2229_v0 = vmul.f32 %v10271_v9, %v7198_v28  ;;  %v2230_v53 = vmul.f32 %v10271_v9, %v7201_v40  ;;  %v2203_v59 = vpop.permute.xlu1 %2202 }
 0x285   :  { %v2132_v50 = vmul.f32 %v2127_v18, %v2100_v54  ;;  %v2158_v24 = vsel %vm9642_vm15, %v10267_v41, %v2156_v17  ;;  %v2161_v32 = vsel %vm9642_vm15, %v2156_v17, %v2150_v30  ;;  %v7220_v51 = vadd.f32 %v2129_v60, %v2045_v14 }
 0x286   :  { %v2197_v16 = vadd.f32 %v2193_v20, %v2109_v8  ;;  %v2198_v13 = vadd.f32 %v2194_v43, %v2110_v29  ;;  %v2233_v21 = vadd.f32 %v2229_v0, %v2145_v56  ;;  %v2234_v48 = vadd.f32 %v2230_v53, %v2146_v31 }
 0x287   :  { %v7222_v34 = vadd.f32 %v2130_v49, %v2046_v63  ;;  %v2187_v5 = vmul.f32 %v10272_v22, %v2158_v24  ;;  %v2188_v45 = vmul.f32 %v10273_v57, %v2161_v32  ;;  %v2135_v24 = vadd.f32 %v2131_v38, %v7184_v46 }
 0x288   :  { %v2238_v54 = vsel %vm2237_vm14, %v2197_v16, 0.0  ;;  %v2245_v18 = vsel %vm2237_vm14, %v2198_v13, 0.0  ;;  %v2322_v47 = vsel %vm2237_vm14, %v2233_v21, 0.0  ;;  %v2329_v30 = vsel %vm2237_vm14, %v2234_v48, 0.0 }
 0x289   :  { %v2239_v8 = vrot.slane %v2238_v54, 4  ;;  %v2246_v29 = vrot.slane %v2245_v18, 4  ;;  %v2323_v56 = vrot.slane %v2322_v47, 4  ;;  %v2330_v31 = vrot.slane %v2329_v30, 4 }
 0x28a   :  { %v2195_v14 = vmul.f32 %v10270_v58, %v2187_v5  ;;  %v2196_v63 = vmul.f32 %v10270_v58, %v2188_v45  ;;  %v2231_v42 = vmul.f32 %v10271_v9, %v2187_v5  ;;  %v2232_v41 = vmul.f32 %v10271_v9, %v2188_v45 }
 0x28b   :  { %v2240_v11 = vadd.f32 %v2239_v8, %v2238_v54  ;;  %v2247_v60 = vadd.f32 %v2246_v29, %v2245_v18  ;;  %v7234_v49 = vadd.f32 %v2323_v56, %v2322_v47  ;;  %v7236_v20 = vadd.f32 %v2330_v31, %v2329_v30  ;;  %v2215_v54 = vpop.permute.xlu1 %2214 }
 0x28c   :  { %v2199_v43 = vadd.f32 %v2195_v14, %v2111_v12  ;;  %v2200_v0 = vadd.f32 %v2196_v63, %v2112_v55  ;;  %v2235_v53 = vadd.f32 %v2231_v42, %v2147_v2  ;;  %v2236_v17 = vadd.f32 %v2232_v41, %v2148_v33 }
 0x28d   :  { %v2136_v32 = vadd.f32 %v2132_v50, %v7186_v36  ;;  %v2241_v58 = vrot.slane %v2240_v11, 2  ;;  %v2248_v16 = vrot.slane %v2247_v60, 2  ;;  %v2325_v36 = vrot.slane %v7234_v49, 2 }
 0x28e   :  { %v2252_v13 = vsel %vm2237_vm14, %v2199_v43, 0.0  ;;  %v2259_v9 = vsel %vm2237_vm14, %v2200_v0, 0.0  ;;  %v7243_v21 = vsel %vm2237_vm14, %v2235_v53, 0.0  ;;  %v7246_v48 = vsel %vm2237_vm14, %v2236_v17, 0.0 }
 0x28f   :  { %v7248_v12 = vadd.f32 %v2241_v58, %v2240_v11  ;;  %v7250_v55 = vadd.f32 %v2248_v16, %v2247_v60  ;;  %v2253_v2 = vrot.slane %v2252_v13, 4  ;;  %v2260_v46 = vrot.slane %v2259_v9, 4 }
 0x290   :  { %v2332_v33 = vrot.slane %v7236_v20, 2  ;;  %v2205_v38 = vmul.f32 %v2203_v59, %v7198_v28  ;;  %v2206_v50 = vmul.f32 %v2203_v59, %v7201_v40  ;;  %v2337_v30 = vrot.slane %v7243_v21, 4 }
 0x291   :  { %v2243_v18 = vrot.slane %v7248_v12, 1  ;;  %v2254_v47 = vadd.f32 %v2253_v2, %v2252_v13  ;;  %v2344_v8 = vrot.slane %v7246_v48, 4  ;;  %v2250_v29 = vrot.slane %v7250_v55, 1 }
 0x292   :  { %v2207_v56 = vmul.f32 %v2203_v59, %v2187_v5  ;;  %v2208_v31 = vmul.f32 %v2203_v59, %v2188_v45  ;;  %v2209_v14 = vadd.f32 %v2205_v38, %v7193_v27  ;;  %v7261_v42 = vadd.f32 %v2260_v46, %v2259_v9 }
 0x293   :  { %v2255_v63 = vrot.slane %v2254_v47, 2  ;;  %v2210_v41 = vadd.f32 %v2206_v50, %v7195_v62  ;;  %v2217_v11 = vmul.f32 %v2215_v54, %v7198_v28  ;;  %v2218_v53 = vmul.f32 %v2215_v54, %v7201_v40 }
 0x294   :  { %v2211_v60 = vadd.f32 %v2207_v56, %v7203_v6  ;;  %v2212_v43 = vadd.f32 %v2208_v31, %v7205_v37  ;;  %v2266_v0 = vsel %vm2237_vm14, %v2209_v14, 0.0  ;;  %v2219_v58 = vmul.f32 %v2215_v54, %v2187_v5 }
 0x295   :  { %v7269_v17 = vadd.f32 %v2255_v63, %v2254_v47  ;;  %v2267_v59 = vrot.slane %v2266_v0, 4  ;;  %v2273_v27 = vsel %vm2237_vm14, %v2210_v41, 0.0  ;;  %v2220_v28 = vmul.f32 %v2215_v54, %v2188_v45 }
 0x296   :  { %v2274_v16 = vrot.slane %v2273_v27, 4  ;;  %v2280_v13 = vsel %vm2237_vm14, %v2211_v60, 0.0  ;;  %v2287_v62 = vsel %vm2237_vm14, %v2212_v43, 0.0  ;;  %v2221_v37 = vadd.f32 %v2217_v11, %v7220_v51 }
 0x297   :  { %v2268_v9 = vadd.f32 %v2267_v59, %v2266_v0  ;;  %v2281_v6 = vrot.slane %v2280_v13, 4  ;;  %v2288_v2 = vrot.slane %v2287_v62, 4  ;;  %v2222_v40 = vadd.f32 %v2218_v53, %v7222_v34 }
 0x298   :  { %v2275_v46 = vadd.f32 %v2274_v16, %v2273_v27  ;;  %v2223_v38 = vadd.f32 %v2219_v58, %v2135_v24  ;;  %v2224_v50 = vadd.f32 %v2220_v28, %v2136_v32  ;;  %v2294_v5 = vsel %vm2237_vm14, %v2221_v37, 0.0 }
 0x299   :  { %v2269_v47 = vrot.slane %v2268_v9, 2  ;;  %v2282_v56 = vadd.f32 %v2281_v6, %v2280_v13  ;;  %v2289_v31 = vadd.f32 %v2288_v2, %v2287_v62  ;;  %v2295_v63 = vrot.slane %v2294_v5, 4 }
 0x29a   :  { %v2276_v14 = vrot.slane %v2275_v46, 2  ;;  %v2301_v41 = vsel %vm2237_vm14, %v2222_v40, 0.0  ;;  %v2308_v45 = vsel %vm2237_vm14, %v2223_v38, 0.0  ;;  %v2315_v24 = vsel %vm2237_vm14, %v2224_v50, 0.0 }
 0x29b   :  { %v2270_v54 = vadd.f32 %v2269_v47, %v2268_v9  ;;  %v2283_v60 = vrot.slane %v2282_v56, 2  ;;  %v2290_v43 = vrot.slane %v2289_v31, 2  ;;  %v2302_v51 = vrot.slane %v2301_v41, 4 }
 0x29c   :  { %v2277_v11 = vadd.f32 %v2276_v14, %v2275_v46  ;;  %v2296_v0 = vadd.f32 %v2295_v63, %v2294_v5  ;;  %v2309_v34 = vrot.slane %v2308_v45, 4  ;;  %vm2350_vm15 = vcmask 1040384  }
 0x29d   :  { %v2271_v32 = vrot.slane %v2270_v54, 1  ;;  %v2284_v53 = vadd.f32 %v2283_v60, %v2282_v56  ;;  %v2291_v59 = vadd.f32 %v2290_v43, %v2289_v31  ;;  %v2303_v27 = vadd.f32 %v2302_v51, %v2301_v41 }
 0x29e   :  { %v2278_v58 = vrot.slane %v2277_v11, 1  ;;  %v2297_v16 = vrot.slane %v2296_v0, 2  ;;  %v2310_v13 = vadd.f32 %v2309_v34, %v2308_v45  ;;  %v2316_v62 = vrot.slane %v2315_v24, 4 }
 0x29f   :  { %v2262_v28 = vrot.slane %v7261_v42, 2  ;;  %v2338_v9 = vadd.f32 %v2337_v30, %v7243_v21  ;;  %v2285_v6 = vrot.slane %v2284_v53, 1  ;;  %v2304_v2 = vrot.slane %v2303_v27, 2 }
 0x2a0   :  { %v2272_v37 = vadd.f32 %v2271_v32, %v2270_v54  ;;  %v2298_v46 = vadd.f32 %v2297_v16, %v2296_v0  ;;  %v2311_v40 = vrot.slane %v2310_v13, 2  ;;  %v2317_v38 = vadd.f32 %v2316_v62, %v2315_v24 }
 0x2a1   :  { %v2279_v50 = vadd.f32 %v2278_v58, %v2277_v11  ;;  %v2286_v47 = vadd.f32 %v2285_v6, %v2284_v53  ;;  %v2292_v56 = vrot.slane %v2291_v59, 1  ;;  %v2305_v31 = vadd.f32 %v2304_v2, %v2303_v27 }
 0x2a2   :  { %v2299_v5 = vrot.slane %v2298_v46, 1  ;;  %v2312_v14 = vadd.f32 %v2311_v40, %v2310_v13  ;;  %v2318_v63 = vrot.slane %v2317_v38, 2  ;;  %v2257_v41 = vrot.slane %v7269_v17, 1 }
 0x2a3   :  { %v2306_v45 = vrot.slane %v2305_v31, 1  ;;  %v2244_v21 = vadd.f32 %v2243_v18, %v7248_v12  ;;  %v2263_v30 = vadd.f32 %v2262_v28, %v7261_v42  ;;  %v2326_v54 = vadd.f32 %v2325_v36, %v7234_v49 }
 0x2a4   :  { %v2300_v60 = vadd.f32 %v2299_v5, %v2298_v46  ;;  %v2313_v43 = vrot.slane %v2312_v14, 1  ;;  %v2319_v51 = vadd.f32 %v2318_v63, %v2317_v38  ;;  %v2251_v11 = vadd.f32 %v2250_v29, %v7250_v55 }
 0x2a5   :  { %v2258_v0 = vadd.f32 %v2257_v41, %v7269_v17  ;;  %v2264_v34 = vrot.slane %v2263_v30, 1  ;;  %v2327_v24 = vrot.slane %v2326_v54, 1  ;;  %v2333_v12 = vadd.f32 %v2332_v33, %v7236_v20 }
 0x2a6   :  { %v2307_v18 = vadd.f32 %v2306_v45, %v2305_v31  ;;  %v2320_v42 = vrot.slane %v2319_v51, 1  ;;  %v2339_v32 = vrot.slane %v2338_v9, 2  ;;  %v2345_v49 = vadd.f32 %v2344_v8, %v7246_v48 }
 0x2a7   :  { %v2265_v36 = vadd.f32 %v2264_v34, %v2263_v30  ;;  %v2293_v53 = vadd.f32 %v2292_v56, %v2291_v59  ;;  %v2314_v27 = vadd.f32 %v2313_v43, %v2312_v14  ;;  %v2334_v58 = vrot.slane %v2333_v12, 1 }
 0x2a8   :  { %v2328_v55 = vadd.f32 %v2327_v24, %v2326_v54  ;;  %v2340_v29 = vadd.f32 %v2339_v32, %v2338_v9  ;;  %v2346_v17 = vrot.slane %v2345_v49, 2  ;;  %v2351_v16 = vsel %vm2350_vm15, %v2244_v21, %v2272_v37 }
 0x2a9   :  { %v2321_v13 = vadd.f32 %v2320_v42, %v2319_v51  ;;  %v2335_v62 = vadd.f32 %v2334_v58, %v2333_v12  ;;  %v2352_v20 = vsel %vm2350_vm15, %v2251_v11, %v2279_v50  ;;  %v2356_v33 = vsel %vm2355_vm13, %v2351_v16, %v2300_v60 }
 0x2aa   :  { %v2341_v28 = vrot.slane %v2340_v29, 1  ;;  %v2347_v6 = vadd.f32 %v2346_v17, %v2345_v49  ;;  %v2353_v2 = vsel %vm2350_vm15, %v2258_v0, %v2286_v47  ;;  %v2357_v48 = vsel %vm2355_vm13, %v2352_v20, %v2307_v18 }
 0x2ab   :  { %v2354_v8 = vsel %vm2350_vm15, %v2265_v36, %v2293_v53  ;;  %v2358_v59 = vsel %vm2355_vm13, %v2353_v2, %v2314_v27  ;;  %v2361_v9 = vsel %vm2360_vm12, %v2356_v33, %v2328_v55  ;;  %v2362_v37 = vsel %vm2360_vm12, %v2357_v48, %v2335_v62 }
 0x2ac   :  { %v2342_v46 = vadd.f32 %v2341_v28, %v2340_v29  ;;  %v2348_v40 = vrot.slane %v2347_v6, 1  ;;  %v2365_v38 = vsel %vm2237_vm14, %v2361_v9, 0.0  ;;  %v2366_v50 = vsel %vm2237_vm14, %v2362_v37, 0.0  ;;  %v31_v29 = vld [vmem:[%s9261_s3] sm:$0xf] }
 0x2ad   :  { %v2359_v56 = vsel %vm2355_vm13, %v2354_v8, %v2321_v13  ;;  %v2367_v31 = vadd.f32 %v2366_v50, %v2365_v38  ;;  %v2374_v47 = vmul.f32 %v2361_v9, %v2361_v9  ;;  %v2375_v5 = vmul.f32 %v2362_v37, %v2362_v37  ;;  %v32_v13 = vld [vmem:[%s9262_s4] sm:$0xf] }
 0x2ae   :  { %v2349_v14 = vadd.f32 %v2348_v40, %v2347_v6  ;;  %v2363_v63 = vsel %vm2360_vm12, %v2358_v59, %v2342_v46  ;;  %v10274_v33 = vmov 4   ;;  %v10356_v57 = vmov 86  }
 0x2af   :  { %v2368_v41 = vsel %vm2237_vm14, %v2363_v63, 0.0  ;;  %v2376_v45 = vmul.f32 %v2363_v63, %v2363_v63  ;;  %v2378_v21 = vsel %vm2237_vm14, %v2374_v47, 0.0  ;;  %v2379_v30 = vsel %vm2237_vm14, %v2375_v5, 0.0 }
 0x2b0   :  { %v2364_v54 = vsel %vm2360_vm12, %v2359_v56, %v2349_v14  ;;  %v2369_v60 = vadd.f32 %v2368_v41, %v2367_v31  ;;  %v2380_v43 = vadd.f32 %v2379_v30, %v2378_v21  ;;  %v10277_v5 = vmov 7  }
 0x2b1   :  { %v2370_v51 = vsel %vm2237_vm14, %v2364_v54, 0.0  ;;  %v2377_v11 = vmul.f32 %v2364_v54, %v2364_v54  ;;  %v2381_v0 = vsel %vm2237_vm14, %v2376_v45, 0.0  ;;  %v10278_v14 = vmov 8  }
 0x2b2   :  { %v2371_v34 = vadd.f32 %v2370_v51, %v2369_v60  ;;  %v2382_v24 = vadd.f32 %v2381_v0, %v2380_v43  ;;  %v10280_v41 = vmov 11   ;;  %v10281_v45 = vmov 2  }
 0x2b3   :  { %v2383_v12 = vsel %vm2237_vm14, %v2377_v11, 0.0  ;;  %v10282_v21 = vmov 3   ;;  %v10283_v30 = vmov 12   ;;  %v10285_v60 = vmov 15  }
 0x2b4   :  { %2372 = vadd.xlane.f32.xlu1 %v2371_v34  ;;  %v2384_v18 = vadd.f32 %v2383_v12, %v2382_v24  ;;  %v10286_v43 = vmov 16   ;;  %v10287_v51 = vmov 6   ;;  %v10288_v11 = vmov 19  }
 0x2b5   :  { %v10289_v0 = vmov 9   ;;  %v10290_v34 = vmov 20   ;;  %v10291_v24 = vmov 23   ;;  %v10292_v12 = vmov 10  }
 0x2b6   :  { %2385 = vadd.xlane.f32.xlu0 %v2384_v18  ;;  %v10293_v18 = vmov 24   ;;  %v10359_v19 = vmov 46   ;;  %v10360_v3 = vmov 87   ;;  %v10363_v4 = vmov 48  }
 0x2b7   :  { %v10365_v52 = vmov 90   ;;  %v10370_v25 = vmov 91   ;;  %v10371_v44 = vmov 51  }
 0x341   :  { %v2373_v42 = vpop.xlane.xlu1 %2372 }
 0x342   :  { %v2387_v32 = vmul.f32 0.001953125, %v2373_v42  ;;  %v10294_v42 = vmov 13  }
 0x343   :  { %v2386_v49 = vpop.xlane.xlu0 %2385 }
 0x344   :  { %v2389_v36 = vmul.f32 %v2387_v32, %v2387_v32  ;;  %v2388_v53 = vmul.f32 0.001953125, %v2386_v49  ;;  %v10296_v49 = vmov 28  }
 0x346   :  { %v2390_v27 = vsub.f32 %v2388_v53, %v2389_v36  ;;  %v10297_v36 = vmov 14   ;;  %v10298_v53 = vmov 31  }
 0x348   :  { %v2391_v58 = vmax.f32 %v2390_v27, 0.0  ;;  %v10299_v27 = vmov 17  }
 0x34a   :  { %v2392_v55 = vadd.f32 1e-05, %v2391_v58  ;;  %v10300_v58 = vmov 32  }
 0x34c   :  { %4559 = vrsqrt.f32 %v2392_v55  ;;  %v10301_v55 = vmov 35  }
 0x356   :  { %v4560_v17 = vpop.eup %4559 }
 0x357   :  { %v2394_v16 = vmul.f32 %v4560_v17, %v31_v29  ;;  %v10303_v29 = vmov 36   ;;  %v10304_v17 = vmov 18  }
 0x359   :  { %2399 = vperm.xlu1 %4455, %v2394_v16   ;;  %v2395_v62 = vmul.f32 %v2394_v16, %v2387_v32  ;;  %v10295_v32 = vmov 27   ;;  %v10305_v16 = vmov 39  }
 0x35b   :  { %v2396_v20 = vsub.f32 %v32_v13, %v2395_v62  ;;  %v10306_v13 = vmov 21  }
 0x35d   :  { %2408 = vperm.xlu0 %4454, %v2396_v20   ;;  %v10308_v20 = vmov 40  }
 0x361   :  { %4459 = vset.pattern.permute.xlu0 %v10274_v33 }
 0x3d8   :  { %v2400_v28 = vpop.permute.xlu1 %2399 }
 0x3d9   :  { %v2402_v6 = vmul.f32 %v2400_v28, %v2361_v9  ;;  %v2403_v48 = vmul.f32 %v2400_v28, %v2362_v37  ;;  %v2404_v8 = vmul.f32 %v2400_v28, %v2363_v63  ;;  %v2405_v31 = vmul.f32 %v2400_v28, %v2364_v54  ;;  %v7344_v9 = vld [vmem:[%s9263_s5] sm:$0xf] }
 0x3da   :  { %v10279_v63 = vmov 1   ;;  %v10284_v54 = vmov 5   ;;  %v10309_v28 = vmov 43  }
 0x3dc   :  { %v2409_v2 = vpop.permute.xlu0 %2408 }
 0x3dd   :  { %v2411_v59 = vadd.f32 %v2409_v2, %v2402_v6  ;;  %v2412_v46 = vadd.f32 %v2409_v2, %v2403_v48  ;;  %v2413_v40 = vadd.f32 %v2409_v2, %v2404_v8  ;;  %v2414_v37 = vadd.f32 %v2409_v2, %v2405_v31 }
 0x3de   :  { %v10310_v6 = vmov 22   ;;  %v10312_v48 = vmov 44   ;;  %v10313_v8 = vmov 25   ;;  %v10315_v31 = vmov 50  }
 0x3df   :  { %v7327_v38 = vmax.f32 %v2411_v59, 0.0  ;;  %v7333_v50 = vmax.f32 %v2412_v46, 0.0  ;;  %v7335_v56 = vmax.f32 %v2413_v40, 0.0  ;;  %v7349_v47 = vmax.f32 %v2414_v37, 0.0 }
 0x3e0   :  { %v10314_v46 = vmov 47  }
 0x3e1   :  { %10275 = vst [vmem:[#allocation168_spill] sm:$0xff] %v7327_v38  ;;  %2487 = vrot.lane.b32.xlu0 %v7327_v38, %s4576_s12  ;;  %2422 = vrot.lane.b32.xlu1 %v7327_v38, %s4574_s9  ;;  %10276 = vst [vmem:[#allocation15_spill] sm:$0xff] %v7349_v47 }
 0x3e5   :  { %2491 = vrot.lane.b32.xlu0 %v7335_v56, %s4576_s12  ;;  %2424 = vrot.lane.b32.xlu1 %v7333_v50, %s4574_s9 }
 0x3e9   :  { %2504 = vperm.xlu0 %4459, %v7344_v9   ;;  %2426 = vrot.lane.b32.xlu1 %v7335_v56, %s4574_s9 }
 0x3ed   :  { %4462 = vset.pattern.permute.xlu0 %v10277_v5  ;;  %2428 = vrot.lane.b32.xlu1 %v7349_v47, %s4574_s9  ;;  %s10302_s9 = smov 14   ;;  %v10317_v5 = vmov 26  }
 0x3ee   :  { %2540 = vperm.xlu0 %4462, %v7344_v9  }
 0x3f1   :  { %2440 = vperm.xlu1 %4455, %v7344_v9  }
 0x3f2   :  { %2555 = vrot.lane.b32.xlu0 %v7335_v56, %s4580_s13 }
 0x3f3   :  { %4463 = vset.pattern.permute.xlu0 %v10278_v14 }
 0x3f5   :  { %4456 = vset.pattern.permute.xlu1 %v10279_v63  ;;  %v10318_v63 = vmov 53  }
 0x3f6   :  { %2568 = vperm.xlu0 %4463, %v7344_v9   ;;  %2452 = vperm.xlu1 %4456, %v7344_v9  }
 0x3fa   :  { %4466 = vset.pattern.permute.xlu0 %v10280_v41  ;;  %4457 = vset.pattern.permute.xlu1 %v10281_v45  ;;  %v10319_v45 = vmov 29  }
 0x3fb   :  { %2604 = vperm.xlu0 %4466, %v7344_v9   ;;  %2464 = vperm.xlu1 %4457, %v7344_v9  }
 0x3ff   :  { %2619 = vrot.lane.b32.xlu0 %v7335_v56, %s4584_s14  ;;  %4458 = vset.pattern.permute.xlu1 %v10282_v21 }
 0x400   :  { %2476 = vperm.xlu1 %4458, %v7344_v9   ;;  %4467 = vset.pattern.permute.xlu0 %v10283_v30  ;;  %v10321_v30 = vmov 56  }
 0x403   :  { %2632 = vperm.xlu0 %4467, %v7344_v9  }
 0x404   :  { %2489 = vrot.lane.b32.xlu1 %v7333_v50, %s4576_s12 }
 0x405   :  { %4460 = vset.pattern.permute.xlu1 %v10284_v54 }
 0x407   :  { %4470 = vset.pattern.permute.xlu0 %v10285_v60 }
 0x408   :  { %2668 = vperm.xlu0 %4470, %v7344_v9   ;;  %2493 = vrot.lane.b32.xlu1 %v7349_v47, %s4576_s12  ;;  %s10307_s12 = smov 2  }
 0x40c   :  { %2683 = vrot.lane.b32.xlu0 %v7335_v56, %s4588_s15  ;;  %2516 = vperm.xlu1 %4460, %v7344_v9  }
 0x40d   :  { %4471 = vset.pattern.permute.xlu0 %v10286_v43  ;;  %v10322_v43 = vmov 30  }
 0x410   :  { %2696 = vperm.xlu0 %4471, %v7344_v9   ;;  %4461 = vset.pattern.permute.xlu1 %v10287_v51 }
 0x411   :  { %2528 = vperm.xlu1 %4461, %v7344_v9  }
 0x414   :  { %4474 = vset.pattern.permute.xlu0 %v10288_v11  ;;  %v10323_v11 = vmov 59  }
 0x415   :  { %2732 = vperm.xlu0 %4474, %v7344_v9   ;;  %2551 = vrot.lane.b32.xlu1 %v7327_v38, %s4580_s13 }
 0x416   :  { %4464 = vset.pattern.permute.xlu1 %v10289_v0 }
 0x419   :  { %2747 = vrot.lane.b32.xlu0 %v7335_v56, %s4593_s16  ;;  %2553 = vrot.lane.b32.xlu1 %v7333_v50, %s4580_s13 }
 0x41a   :  { %4475 = vset.pattern.permute.xlu0 %v10290_v34  ;;  %v10324_v34 = vmov 33  }
 0x41d   :  { %2760 = vperm.xlu0 %4475, %v7344_v9   ;;  %2557 = vrot.lane.b32.xlu1 %v7349_v47, %s4580_s13  ;;  %s10311_s13 = smov 1  }
 0x421   :  { %4478 = vset.pattern.permute.xlu0 %v10291_v24  ;;  %2580 = vperm.xlu1 %4464, %v7344_v9  }
 0x422   :  { %2796 = vperm.xlu0 %4478, %v7344_v9  }
 0x425   :  { %4465 = vset.pattern.permute.xlu1 %v10292_v12  ;;  %v10325_v12 = vmov 61  }
 0x426   :  { %2811 = vrot.lane.b32.xlu0 %v7335_v56, %s4597_s17  ;;  %2592 = vperm.xlu1 %4465, %v7344_v9  }
 0x427   :  { %4479 = vset.pattern.permute.xlu0 %v10293_v18 }
 0x42a   :  { %2824 = vperm.xlu0 %4479, %v7344_v9   ;;  %2615 = vrot.lane.b32.xlu1 %v7327_v38, %s4584_s14 }
 0x42b   :  { %4468 = vset.pattern.permute.xlu1 %v10294_v42 }
 0x42e   :  { %4482 = vset.pattern.permute.xlu0 %v10295_v32  ;;  %2617 = vrot.lane.b32.xlu1 %v7333_v50, %s4584_s14  ;;  %v10326_v32 = vmov 64  }
 0x42f   :  { %2860 = vperm.xlu0 %4482, %v7344_v9  }
 0x432   :  { %2621 = vrot.lane.b32.xlu1 %v7349_v47, %s4584_s14  ;;  %s10316_s14 = smov 127  }
 0x433   :  { %2875 = vrot.lane.b32.xlu0 %v7335_v56, %s4601_s18 }
 0x434   :  { %4483 = vset.pattern.permute.xlu0 %v10296_v49 }
 0x436   :  { %2644 = vperm.xlu1 %4468, %v7344_v9  }
 0x437   :  { %2888 = vperm.xlu0 %4483, %v7344_v9  }
 0x43a   :  { %4469 = vset.pattern.permute.xlu1 %v10297_v36 }
 0x43b   :  { %4486 = vset.pattern.permute.xlu0 %v10298_v53  ;;  %2656 = vperm.xlu1 %4469, %v7344_v9  }
 0x43c   :  { %2924 = vperm.xlu0 %4486, %v7344_v9  }
 0x43f   :  { %2679 = vrot.lane.b32.xlu1 %v7327_v38, %s4588_s15 }
 0x440   :  { %2939 = vrot.lane.b32.xlu0 %v7335_v56, %s4606_s19  ;;  %4472 = vset.pattern.permute.xlu1 %v10299_v27  ;;  %v10328_v27 = vmov 67  }
 0x441   :  { %4487 = vset.pattern.permute.xlu0 %v10300_v58  ;;  %v10329_v58 = vmov 34  }
 0x443   :  { %2681 = vrot.lane.b32.xlu1 %v7333_v50, %s4588_s15 }
 0x444   :  { %2952 = vperm.xlu0 %4487, %v7344_v9  }
 0x447   :  { %2685 = vrot.lane.b32.xlu1 %v7349_v47, %s4588_s15  ;;  %s10320_s15 = smov 126  }
 0x448   :  { %4490 = vset.pattern.permute.xlu0 %v10301_v55 }
 0x449   :  { %2988 = vperm.xlu0 %4490, %v7344_v9  }
 0x44b   :  { %2708 = vperm.xlu1 %4472, %v7344_v9  }
 0x44d   :  { %3003 = vrot.lane.b32.xlu0 %v7335_v56, %s10302_s9 }
 0x44e   :  { %4491 = vset.pattern.permute.xlu0 %v10303_v29 }
 0x44f   :  { %4473 = vset.pattern.permute.xlu1 %v10304_v17  ;;  %v10330_v17 = vmov 70  }
 0x450   :  { %2720 = vperm.xlu1 %4473, %v7344_v9  }
 0x451   :  { %3016 = vperm.xlu0 %4491, %v7344_v9  }
 0x453   :  { %v7453_v62 = vpop.permute.xlu1 %2422  ;;  %v7535_v24 = vpop.permute.xlu0 %2487 }
 0x454   :  { %2743 = vrot.lane.b32.xlu1 %v7327_v38, %s4593_s16 }
 0x455   :  { %4494 = vset.pattern.permute.xlu0 %v10305_v16  ;;  %4476 = vset.pattern.permute.xlu1 %v10306_v13  ;;  %v10331_v13 = vmov 37  }
 0x456   :  { %3052 = vperm.xlu0 %4494, %v7344_v9  }
 0x457   :  { %v7461_v33 = vpop.permute.xlu1 %2424  ;;  %v7543_v42 = vpop.permute.xlu0 %2491 }
 0x458   :  { %2745 = vrot.lane.b32.xlu1 %v7333_v50, %s4593_s16 }
 0x45a   :  { %3067 = vrot.lane.b32.xlu0 %v7335_v56, %s10307_s12 }
 0x45b   :  { %4495 = vset.pattern.permute.xlu0 %v10308_v20  ;;  %v7468_v2 = vpop.permute.xlu1 %2426 }
 0x45c   :  { %2749 = vrot.lane.b32.xlu1 %v7349_v47, %s4593_s16  ;;  %s10327_s16 = smov 114  }
 0x45e   :  { %3080 = vperm.xlu0 %4495, %v7344_v9  }
 0x45f   :  { %v7477_v59 = vpop.permute.xlu1 %2428 }
 0x460   :  { %2772 = vperm.xlu1 %4476, %v7344_v9  }
 0x462   :  { %4498 = vset.pattern.permute.xlu0 %v10309_v28 }
 0x463   :  { %3116 = vperm.xlu0 %4498, %v7344_v9  }
 0x464   :  { %4477 = vset.pattern.permute.xlu1 %v10310_v6  ;;  %v10333_v6 = vmov 71  }
 0x465   :  { %2784 = vperm.xlu1 %4477, %v7344_v9  }
 0x467   :  { %3131 = vrot.lane.b32.xlu0 %v7335_v56, %s10311_s13 }
 0x468   :  { %4499 = vset.pattern.permute.xlu0 %v10312_v48  ;;  %v7551_v36 = vpop.permute.xlu0 %2504 }
 0x469   :  { %2807 = vrot.lane.b32.xlu1 %v7327_v38, %s4597_s17 }
 0x46a   :  { %4480 = vset.pattern.permute.xlu1 %v10313_v8 }
 0x46b   :  { %3144 = vperm.xlu0 %4499, %v7344_v9  }
 0x46d   :  { %2809 = vrot.lane.b32.xlu1 %v7333_v50, %s4597_s17  ;;  %v7561_v55 = vpop.permute.xlu0 %2540 }
 0x46f   :  { %4502 = vset.pattern.permute.xlu0 %v10314_v46 }
 0x470   :  { %3180 = vperm.xlu0 %4502, %v7344_v9   ;;  %v7483_v40 = vpop.permute.xlu1 %2440 }
 0x471   :  { %2813 = vrot.lane.b32.xlu1 %v7349_v47, %s4597_s17  ;;  %v7573_v20 = vpop.permute.xlu0 %2555  ;;  %s10332_s17 = smov 113  }
 0x474   :  { %4505 = vset.pattern.permute.xlu0 %v10315_v31  ;;  %v10335_v31 = vmov 74  }
 0x475   :  { %3220 = vperm.xlu0 %4505, %v7344_v9   ;;  %2836 = vperm.xlu1 %4480, %v7344_v9   ;;  %v7490_v37 = vpop.permute.xlu1 %2452  ;;  %v7582_v48 = vpop.permute.xlu0 %2568 }
 0x479   :  { %3245 = vrot.lane.b32.xlu0 %v7333_v50, %s10316_s14  ;;  %4481 = vset.pattern.permute.xlu1 %v10317_v5 }
 0x47a   :  { %2848 = vperm.xlu1 %4481, %v7344_v9   ;;  %v7496_v14 = vpop.permute.xlu1 %2464  ;;  %4508 = vset.pattern.permute.xlu0 %v10318_v63  ;;  %v7593_v5 = vpop.permute.xlu0 %2604  ;;  %v10336_v63 = vmov 38  }
 0x47d   :  { %3249 = vrot.lane.b32.xlu0 %v7349_v47, %s10316_s14 }
 0x47e   :  { %2871 = vrot.lane.b32.xlu1 %v7327_v38, %s4601_s18 }
 0x47f   :  { %v7503_v41 = vpop.permute.xlu1 %2476  ;;  %4484 = vset.pattern.permute.xlu1 %v10319_v45 }
 0x481   :  { %3272 = vperm.xlu0 %4508, %v7344_v9  }
 0x482   :  { %2873 = vrot.lane.b32.xlu1 %v7333_v50, %s4601_s18 }
 0x483   :  { %v7509_v21 = vpop.permute.xlu1 %2489 }
 0x485   :  { %3307 = vrot.lane.b32.xlu0 %v7327_v38, %s10320_s15 }
 0x486   :  { %2877 = vrot.lane.b32.xlu1 %v7349_v47, %s4601_s18  ;;  %4511 = vset.pattern.permute.xlu0 %v10321_v30  ;;  %s10338_s18 = smov 112   ;;  %v10339_v30 = vmov 75  }
 0x487   :  { %v7516_v54 = vpop.permute.xlu1 %2493 }
 0x489   :  { %3311 = vrot.lane.b32.xlu0 %v7335_v56, %s10320_s15 }
 0x48a   :  { %2900 = vperm.xlu1 %4484, %v7344_v9  }
 0x48b   :  { %v7521_v60 = vpop.permute.xlu1 %2516 }
 0x48d   :  { %3324 = vperm.xlu0 %4511, %v7344_v9  }
 0x48e   :  { %4485 = vset.pattern.permute.xlu1 %v10322_v43  ;;  %v7603_v43 = vpop.permute.xlu0 %2619 }
 0x48f   :  { %2912 = vperm.xlu1 %4485, %v7344_v9  }
 0x490   :  { %v7526_v51 = vpop.permute.xlu1 %2528 }
 0x491   :  { %4514 = vset.pattern.permute.xlu0 %v10323_v11 }
 0x492   :  { %3360 = vperm.xlu0 %4514, %v7344_v9  }
 0x493   :  { %2935 = vrot.lane.b32.xlu1 %v7327_v38, %s4606_s19 }
 0x494   :  { %v7532_v0 = vpop.permute.xlu1 %2551  ;;  %4488 = vset.pattern.permute.xlu1 %v10324_v34  ;;  %v10341_v34 = vmov 41  }
 0x496   :  { %4516 = vset.pattern.permute.xlu0 %v10325_v12 }
 0x497   :  { %3400 = vperm.xlu0 %4516, %v7344_v9   ;;  %2937 = vrot.lane.b32.xlu1 %v7333_v50, %s4606_s19 }
 0x498   :  { %v7541_v18 = vpop.permute.xlu1 %2553 }
 0x49b   :  { %4519 = vset.pattern.permute.xlu0 %v10326_v32  ;;  %2941 = vrot.lane.b32.xlu1 %v7349_v47, %s4606_s19  ;;  %v7615_v32 = vpop.permute.xlu0 %2632 }
 0x49c   :  { %3452 = vperm.xlu0 %4519, %v7344_v9   ;;  %v7549_v49 = vpop.permute.xlu1 %2557 }
 0x49f   :  { %2964 = vperm.xlu1 %4488, %v7344_v9  }
 0x4a0   :  { %3373 = vrot.lane.b32.xlu0 %v7333_v50, %s10327_s16  ;;  %v7556_v53 = vpop.permute.xlu1 %2580 }
 0x4a1   :  { %4522 = vset.pattern.permute.xlu0 %v10328_v27  ;;  %v10342_v27 = vmov 78  }
 0x4a3   :  { %4489 = vset.pattern.permute.xlu1 %v10329_v58 }
 0x4a4   :  { %3488 = vperm.xlu0 %4522, %v7344_v9   ;;  %2976 = vperm.xlu1 %4489, %v7344_v9  }
 0x4a5   :  { %v7564_v29 = vpop.permute.xlu1 %2592 }
 0x4a8   :  { %4525 = vset.pattern.permute.xlu0 %v10330_v17  ;;  %2999 = vrot.lane.b32.xlu1 %v7327_v38, %s10302_s9  ;;  %v7625_v17 = vpop.permute.xlu0 %2668 }
 0x4a9   :  { %3540 = vperm.xlu0 %4525, %v7344_v9   ;;  %v7570_v16 = vpop.permute.xlu1 %2615  ;;  %4492 = vset.pattern.permute.xlu1 %v10331_v13  ;;  %v10344_v13 = vmov 79  }
 0x4ac   :  { %3001 = vrot.lane.b32.xlu1 %v7333_v50, %s10302_s9 }
 0x4ad   :  { %3437 = vrot.lane.b32.xlu0 %v7333_v50, %s10332_s17  ;;  %v7579_v28 = vpop.permute.xlu1 %2617 }
 0x4ae   :  { %4526 = vset.pattern.permute.xlu0 %v10333_v6 }
 0x4b0   :  { %3005 = vrot.lane.b32.xlu1 %v7349_v47, %s10302_s9 }
 0x4b1   :  { %v7586_v8 = vpop.permute.xlu1 %2621  ;;  %3552 = vperm.xlu0 %4526, %v7344_v9  }
 0x4b4   :  { %3028 = vperm.xlu1 %4492, %v7344_v9  }
 0x4b5   :  { %v7590_v46 = vpop.permute.xlu1 %2644  ;;  %4529 = vset.pattern.permute.xlu0 %v10335_v31  ;;  %v10346_v31 = vmov 42  }
 0x4b6   :  { %10334 = vst [vmem:[#allocation62_spill] sm:$0xff] %v7590_v46  ;;  %3604 = vperm.xlu0 %4529, %v7344_v9   ;;  %v10438_v46 = vld [vmem:[#allocation99_spill] sm:$0xff] }
 0x4b8   :  { %4493 = vset.pattern.permute.xlu1 %v10336_v63  ;;  %v7633_v63 = vpop.permute.xlu0 %2683 }
 0x4b9   :  { %3040 = vperm.xlu1 %4493, %v7344_v9  }
 0x4ba   :  { %v7598_v45 = vpop.permute.xlu1 %2656  ;;  %3501 = vrot.lane.b32.xlu0 %v7333_v50, %s10338_s18 }
 0x4bb   :  { %10337 = vst [vmem:[#allocation167_spill] sm:$0xff] %v7598_v45  ;;  %4530 = vset.pattern.permute.xlu0 %v10339_v30  ;;  %v10437_v45 = vld [vmem:[#allocation97_spill] sm:$0xff] }
 0x4bc   :  { %v7645_v22 = vpop.permute.xlu0 %2696 }
 0x4bd   :  { %3063 = vrot.lane.b32.xlu1 %v7327_v38, %s10307_s12  ;;  %10351 = vst [vmem:[#allocation19_spill] sm:$0xff] %v7645_v22 }
 0x4be   :  { %v7607_v11 = vpop.permute.xlu1 %2679  ;;  %3616 = vperm.xlu0 %4530, %v7344_v9   ;;  %4496 = vset.pattern.permute.xlu1 %v10341_v34  ;;  %v10348_v34 = vmov 82  }
 0x4bf   :  { %10340 = vst [vmem:[#allocation44_spill] sm:$0xff] %v7607_v11 }
 0x4c0   :  { %v7655_v1 = vpop.permute.xlu0 %2732 }
 0x4c1   :  { %3065 = vrot.lane.b32.xlu1 %v7333_v50, %s10307_s12  ;;  %10354 = vst [vmem:[#allocation169_spill] sm:$0xff] %v7655_v1 }
 0x4c2   :  { %v7613_v12 = vpop.permute.xlu1 %2681  ;;  %4533 = vset.pattern.permute.xlu0 %v10342_v27 }
 0x4c3   :  { %3668 = vperm.xlu0 %4533, %v7344_v9  }
 0x4c4   :  { %v7666_v35 = vpop.permute.xlu0 %2747 }
 0x4c5   :  { %3069 = vrot.lane.b32.xlu1 %v7349_v47, %s10307_s12  ;;  %10358 = vst [vmem:[#allocation27_spill] sm:$0xff] %v7666_v35 }
 0x4c6   :  { %v7621_v58 = vpop.permute.xlu1 %2685 }
 0x4c7   :  { %10343 = vst [vmem:[#allocation25_spill] sm:$0xff] %v7621_v58  ;;  %3565 = vrot.lane.b32.xlu0 %v7333_v50, %s4645_s28 }
 0x4c8   :  { %4534 = vset.pattern.permute.xlu0 %v10344_v13  ;;  %v10350_v13 = vmov 45  }
 0x4c9   :  { %3092 = vperm.xlu1 %4496, %v7344_v9  }
 0x4ca   :  { %v7629_v6 = vpop.permute.xlu1 %2708 }
 0x4cb   :  { %10345 = vst [vmem:[#allocation21_spill] sm:$0xff] %v7629_v6  ;;  %3680 = vperm.xlu0 %4534, %v7344_v9   ;;  %v10425_v6 = vld [vmem:[#allocation94_spill] sm:$0xff] }
 0x4cd   :  { %4497 = vset.pattern.permute.xlu1 %v10346_v31  ;;  %v10352_v31 = vmov 83  }
 0x4ce   :  { %3104 = vperm.xlu1 %4497, %v7344_v9  }
 0x4cf   :  { %v7636_v30 = vpop.permute.xlu1 %2720  ;;  %4537 = vset.pattern.permute.xlu0 %v10348_v34 }
 0x4d0   :  { %10347 = vst [vmem:[#allocation11_spill] sm:$0xff] %v7636_v30  ;;  %3732 = vperm.xlu0 %4537, %v7344_v9   ;;  %v10423_v30 = vld [vmem:[#allocation89_spill] sm:$0xff] }
 0x4d2   :  { %3127 = vrot.lane.b32.xlu1 %v7327_v38, %s10311_s13 }
 0x4d3   :  { %v7642_v27 = vpop.permute.xlu1 %2743  ;;  %4500 = vset.pattern.permute.xlu1 %v10350_v13 }
 0x4d4   :  { %10349 = vst [vmem:[#allocation66_spill] sm:$0xff] %v7642_v27  ;;  %3629 = vrot.lane.b32.xlu0 %v7333_v50, %s4648_s29 }
 0x4d5   :  { %4538 = vset.pattern.permute.xlu0 %v10352_v31 }
 0x4d6   :  { %3129 = vrot.lane.b32.xlu1 %v7333_v50, %s10311_s13 }
 0x4d7   :  { %v7652_v34 = vpop.permute.xlu1 %2745 }
 0x4d8   :  { %10353 = vst [vmem:[#allocation166_spill] sm:$0xff] %v7652_v34  ;;  %3744 = vperm.xlu0 %4538, %v7344_v9   ;;  %v10436_v34 = vmov 72  }
 0x4da   :  { %3133 = vrot.lane.b32.xlu1 %v7349_v47, %s10311_s13 }
 0x4db   :  { %v7659_v13 = vpop.permute.xlu1 %2749 }
 0x4dc   :  { %10355 = vst [vmem:[#allocation55_spill] sm:$0xff] %v7659_v13  ;;  %4541 = vset.pattern.permute.xlu0 %v10356_v57  ;;  %v7676_v57 = vpop.permute.xlu0 %2760  ;;  %v10424_v13 = vld [vmem:[#allocation93_spill] sm:$0xff] }
 0x4dd   :  { %3796 = vperm.xlu0 %4541, %v7344_v9   ;;  %10362 = vst [vmem:[#allocation175_spill] sm:$0xff] %v7676_v57 }
 0x4de   :  { %3156 = vperm.xlu1 %4500, %v7344_v9  }
 0x4df   :  { %v7664_v31 = vpop.permute.xlu1 %2772 }
 0x4e0   :  { %10357 = vst [vmem:[#allocation30_spill] sm:$0xff] %v7664_v31  ;;  %v7686_v39 = vpop.permute.xlu0 %2796 }
 0x4e1   :  { %3693 = vrot.lane.b32.xlu0 %v7333_v50, %s4654_s30  ;;  %10367 = vst [vmem:[#allocation75_spill] sm:$0xff] %v7686_v39  ;;  %v10422_v39 = vld [vmem:[#allocation88_spill] sm:$0xff] }
 0x4e2   :  { %4501 = vset.pattern.permute.xlu1 %v10359_v19  ;;  %4542 = vset.pattern.permute.xlu0 %v10360_v3  ;;  %v10368_v3 = vmov 49  }
 0x4e3   :  { %3168 = vperm.xlu1 %4501, %v7344_v9  }
 0x4e4   :  { %v7673_v15 = vpop.permute.xlu1 %2784 }
 0x4e5   :  { %10361 = vst [vmem:[#allocation40_spill] sm:$0xff] %v7673_v15  ;;  %3808 = vperm.xlu0 %4542, %v7344_v9   ;;  %v10384_v15 = vmov 98  }
 0x4e7   :  { %4503 = vset.pattern.permute.xlu1 %v10363_v4 }
 0x4e8   :  { %v7679_v10 = vpop.permute.xlu1 %2807  ;;  %3196 = vperm.xlu1 %4503, %v7344_v9  }
 0x4e9   :  { %10364 = vst [vmem:[#allocation65_spill] sm:$0xff] %v7679_v10  ;;  %4545 = vset.pattern.permute.xlu0 %v10365_v52  ;;  %v7696_v52 = vpop.permute.xlu0 %2811 }
 0x4ea   :  { %3860 = vperm.xlu0 %4545, %v7344_v9   ;;  %10372 = vst [vmem:[#allocation68_spill] sm:$0xff] %v7696_v52 }
 0x4ec   :  { %v7684_v19 = vpop.permute.xlu1 %2809  ;;  %4504 = vset.pattern.permute.xlu1 %v10368_v3  ;;  %v10374_v3 = vmov 94  }
 0x4ed   :  { %10366 = vst [vmem:[#allocation176_spill] sm:$0xff] %v7684_v19  ;;  %3208 = vperm.xlu1 %4504, %v7344_v9   ;;  %v7705_v26 = vpop.permute.xlu0 %2824  ;;  %v10421_v19 = vld [vmem:[#allocation92_spill] sm:$0xff] }
 0x4ee   :  { %3757 = vrot.lane.b32.xlu0 %v7333_v50, %s4659_s10  ;;  %10375 = vst [vmem:[#allocation69_spill] sm:$0xff] %v7705_v26 }
 0x4ef   :  { %4546 = vset.pattern.permute.xlu0 %v10370_v25 }
 0x4f0   :  { %v7692_v4 = vpop.permute.xlu1 %2813 }
 0x4f1   :  { %10369 = vst [vmem:[#allocation70_spill] sm:$0xff] %v7692_v4  ;;  %4506 = vset.pattern.permute.xlu1 %v10371_v44  ;;  %v10377_v44 = vmov 52   ;;  %v10420_v4 = vld [vmem:[#allocation90_spill] sm:$0xff] }
 0x4f2   :  { %3872 = vperm.xlu0 %4546, %v7344_v9   ;;  %3232 = vperm.xlu1 %4506, %v7344_v9  }
 0x4f4   :  { %v7700_v61 = vpop.permute.xlu1 %2836 }
 0x4f5   :  { %10373 = vst [vmem:[#allocation37_spill] sm:$0xff] %v7700_v61  ;;  %v7718_v61 = vpop.permute.xlu0 %2860 }
 0x4f6   :  { %4549 = vset.pattern.permute.xlu0 %v10374_v3  ;;  %3243 = vrot.lane.b32.xlu1 %v7327_v38, %s10316_s14  ;;  %v10379_v3 = vmov 95   ;;  %10380 = vst [vmem:[#allocation72_spill] sm:$0xff] %v7718_v61 }
 0x4f7   :  { %3924 = vperm.xlu0 %4549, %v7344_v9   ;;  %4507 = vset.pattern.permute.xlu1 %v10377_v44 }
 0x4f9   :  { %v7708_v25 = vpop.permute.xlu1 %2848  ;;  %v7725_v44 = vpop.permute.xlu0 %2875 }
 0x4fa   :  { %10376 = vst [vmem:[#allocation183_spill] sm:$0xff] %v7708_v25  ;;  %3247 = vrot.lane.b32.xlu1 %v7335_v56, %s10316_s14  ;;  %v10382_v25 = vmov 54   ;;  %10383 = vst [vmem:[#allocation50_spill] sm:$0xff] %v7725_v44  ;;  %v10407_v44 = vmov 65  }
 0x4fb   :  { %3821 = vrot.lane.b32.xlu0 %v7333_v50, %s4664_s11 }
 0x4fc   :  { %4550 = vset.pattern.permute.xlu0 %v10379_v3 }
 0x4fd   :  { %v7715_v7 = vpop.permute.xlu1 %2871  ;;  %v7735_v61 = vpop.permute.xlu0 %2888 }
 0x4fe   :  { %10378 = vst [vmem:[#allocation39_spill] sm:$0xff] %v7715_v7  ;;  %3260 = vperm.xlu1 %4507, %v7344_v9   ;;  %v10387_v7 = vmov 55   ;;  %10388 = vst [vmem:[#allocation82_spill] sm:$0xff] %v7735_v61 }
 0x4ff   :  { %3936 = vperm.xlu0 %4550, %v7344_v9  }
 0x501   :  { %v7722_v26 = vpop.permute.xlu1 %2873 }
 0x502   :  { %10381 = vst [vmem:[#allocation31_spill] sm:$0xff] %v7722_v26  ;;  %4509 = vset.pattern.permute.xlu1 %v10382_v25  ;;  %v10389_v25 = vmov 99  }
 0x503   :  { %4553 = vset.pattern.permute.xlu0 %v10384_v15  ;;  %3284 = vperm.xlu1 %4509, %v7344_v9  }
 0x504   :  { %3988 = vperm.xlu0 %4553, %v7344_v9  }
 0x505   :  { %v7728_v31 = vpop.permute.xlu1 %2877 }
 0x506   :  { %10385 = vst [vmem:[#allocation49_spill] sm:$0xff] %v7728_v31  ;;  %v10391_v31 = vmov 57  }
 0x507   :  { %4510 = vset.pattern.permute.xlu1 %v10387_v7 }
 0x508   :  { %3885 = vrot.lane.b32.xlu0 %v7333_v50, %s4668_s23  ;;  %3296 = vperm.xlu1 %4510, %v7344_v9  }
 0x509   :  { %v7732_v3 = vpop.permute.xlu1 %2900  ;;  %4554 = vset.pattern.permute.xlu0 %v10389_v25  ;;  %v10394_v25 = vmov 0  }
 0x50a   :  { %10386 = vst [vmem:[#allocation181_spill] sm:$0xff] %v7732_v3  ;;  %v7747_v3 = vpop.permute.xlu0 %2924 }
 0x50b   :  { %10392 = vst [vmem:[#allocation59_spill] sm:$0xff] %v7747_v3 }
 0x50c   :  { %4000 = vperm.xlu0 %4554, %v7344_v9   ;;  %3309 = vrot.lane.b32.xlu1 %v7333_v50, %s10320_s15 }
 0x50d   :  { %4512 = vset.pattern.permute.xlu1 %v10391_v31 }
 0x50e   :  { %v7741_v15 = vpop.permute.xlu1 %2912  ;;  %v7758_v61 = vpop.permute.xlu0 %2939 }
 0x50f   :  { %10390 = vst [vmem:[#allocation51_spill] sm:$0xff] %v7741_v15  ;;  %10396 = vst [vmem:[#allocation35_spill] sm:$0xff] %v7758_v61  ;;  %v10402_v61 = vmov 62  }
 0x510   :  { %3949 = vrot.lane.b32.xlu0 %v7333_v50, %s4673_s24  ;;  %3313 = vrot.lane.b32.xlu1 %v7349_v47, %s10320_s15 }
 0x511   :  { %4555 = vset.pattern.permute.xlu0 %v10394_v25  ;;  %v10400_v25 = vmov 60  }
 0x512   :  { %v7749_v7 = vpop.permute.xlu1 %2935 }
 0x513   :  { %10393 = vst [vmem:[#allocation76_spill] sm:$0xff] %v7749_v7  ;;  %v10398_v7 = vmov 58  }
 0x514   :  { %3953 = vrot.lane.b32.xlu0 %v7349_v47, %s4673_s24  ;;  %3336 = vperm.xlu1 %4512, %v7344_v9  }
 0x516   :  { %v7756_v15 = vpop.permute.xlu1 %2937 }
 0x517   :  { %10395 = vst [vmem:[#allocation74_spill] sm:$0xff] %v7756_v15 }
 0x518   :  { %4513 = vset.pattern.permute.xlu1 %v10398_v7 }
 0x519   :  { %3348 = vperm.xlu1 %4513, %v7344_v9  }
 0x51a   :  { %v7763_v31 = vpop.permute.xlu1 %2941 }
 0x51b   :  { %10397 = vst [vmem:[#allocation135_spill] sm:$0xff] %v7763_v31  ;;  %v10405_v31 = vmov 63  }
 0x51d   :  { %3371 = vrot.lane.b32.xlu1 %v7327_v38, %s10327_s16 }
 0x51e   :  { %v7767_v3 = vpop.permute.xlu1 %2964  ;;  %4515 = vset.pattern.permute.xlu1 %v10400_v25 }
 0x51f   :  { %10399 = vst [vmem:[#allocation147_spill] sm:$0xff] %v7767_v3 }
 0x521   :  { %3388 = vperm.xlu1 %4515, %v7344_v9  }
 0x523   :  { %v7773_v15 = vpop.permute.xlu1 %2976 }
 0x524   :  { %10401 = vst [vmem:[#allocation71_spill] sm:$0xff] %v7773_v15  ;;  %v10409_v15 = vmov 66  }
 0x525   :  { %4517 = vset.pattern.permute.xlu1 %v10402_v61 }
 0x526   :  { %3412 = vperm.xlu1 %4517, %v7344_v9  }
 0x527   :  { %v7776_v26 = vpop.permute.xlu1 %2999 }
 0x528   :  { %10403 = vst [vmem:[#allocation79_spill] sm:$0xff] %v7776_v26  ;;  %v7793_v26 = vpop.permute.xlu0 %2952 }
 0x529   :  { %10411 = vst [vmem:[#allocation80_spill] sm:$0xff] %v7793_v26 }
 0x52a   :  { %4518 = vset.pattern.permute.xlu1 %v10405_v31  ;;  %v10412_v31 = vmov 68  }
 0x52b   :  { %v7779_v7 = vpop.permute.xlu1 %3001  ;;  %3424 = vperm.xlu1 %4518, %v7344_v9  }
 0x52c   :  { %10404 = vst [vmem:[#allocation78_spill] sm:$0xff] %v7779_v7  ;;  %v10416_v7 = vld [vmem:[#allocation138_spill] sm:$0xff] }
 0x52d   :  { %v7831_v26 = vmul.f32 %v7333_v50, %v10416_v7  ;;  %v2495_v50 = vsel %vm138_vm1, %v7543_v42, %v7516_v54  ;;  %v10426_v7 = vmov 69  }
 0x52f   :  { %v7783_v3 = vpop.permute.xlu1 %3005  ;;  %4520 = vset.pattern.permute.xlu1 %v10407_v44  ;;  %v2432_v44 = vsel %vm50_vm0, %v7453_v62, %v7461_v33  ;;  %10417 = vst [vmem:[#allocation84_spill] sm:$0xff] %v7831_v26 }
 0x530   :  { %10406 = vst [vmem:[#allocation179_spill] sm:$0xff] %v7783_v3  ;;  %3464 = vperm.xlu1 %4520, %v7344_v9   ;;  %v2435_v10 = vmul.f32 %v2432_v44, %v10420_v4  ;;  %v2498_v4 = vsel %vm138_vm1, %v7516_v54, %v7535_v24 }
 0x532   :  { %v2456_v44 = vmul.f32 %v7490_v37, %v2435_v10 }
 0x533   :  { %v7787_v25 = vpop.permute.xlu1 %3028 }
 0x534   :  { %10408 = vst [vmem:[#allocation148_spill] sm:$0xff] %v7787_v25  ;;  %4521 = vset.pattern.permute.xlu1 %v10409_v15  ;;  %v2431_v15 = vsel %vm50_vm0, %v7461_v33, %v7468_v2  ;;  %v2496_v25 = vsel %vm138_vm1, %v7509_v21, %v7543_v42  ;;  %v2497_v33 = vsel %vm138_vm1, %v7535_v24, %v7509_v21  ;;  %vm10571_vm1 = vcmp.lt.s32.totalorder %v5302_v23, 126 }
 0x535   :  { %3476 = vperm.xlu1 %4521, %v7344_v9   ;;  %v2436_v52 = vmul.f32 %v2431_v15, %v10421_v19  ;;  %v10427_v19 = vld [vmem:[#allocation140_spill] sm:$0xff] }
 0x537   :  { %v2445_v54 = vmul.f32 %v7483_v40, %v2436_v52  ;;  %v2457_v15 = vmul.f32 %v7490_v37, %v2436_v52  ;;  %v2481_v27 = vmul.f32 %v7503_v41, %v2436_v52 }
 0x538   :  { %v7791_v61 = vpop.permute.xlu1 %3040 }
 0x539   :  { %10410 = vst [vmem:[#allocation16_spill] sm:$0xff] %v7791_v61  ;;  %3375 = vrot.lane.b32.xlu1 %v7335_v56, %s10327_s16  ;;  %v2430_v61 = vsel %vm50_vm0, %v7468_v2, %v7477_v59  ;;  %v7827_v2 = vpop.permute.xlu0 %2988 }
 0x53a   :  { %4523 = vset.pattern.permute.xlu1 %v10412_v31  ;;  %v2433_v31 = vsel %vm50_vm0, %v7477_v59, %v7453_v62  ;;  %10415 = vst [vmem:[#allocation81_spill] sm:$0xff] %v7827_v2  ;;  %v10418_v62 = vld [vmem:[#allocation139_spill] sm:$0xff]  ;;  %v2437_v21 = vmul.f32 %v2430_v61, %v10423_v30  ;;  %v2501_v2 = vmul.f32 %v2496_v25, %v10425_v6  ;;  %v10429_v6 = vld [vmem:[#allocation137_spill] sm:$0xff]  ;;  %vm10567_vm0 = vcmp.lt.s32.totalorder %v5302_v23, 127 }
 0x53b   :  { %v7835_v59 = vmul.f32 %v7335_v56, %v10418_v62  ;;  %v2434_v57 = vmul.f32 %v2433_v31, %v10422_v39  ;;  %v2444_v30 = vmul.f32 %v7483_v40, %v2435_v10  ;;  %v7860_v25 = vmul.f32 %v7327_v38, %v10429_v6 }
 0x53c   :  { %v7798_v3 = vpop.permute.xlu1 %3063  ;;  %v2446_v24 = vmul.f32 %v7483_v40, %v2437_v21  ;;  %v2458_v31 = vmul.f32 %v7490_v37, %v2437_v21 }
 0x53d   :  { %10413 = vst [vmem:[#allocation86_spill] sm:$0xff] %v7798_v3  ;;  %3516 = vperm.xlu1 %4523, %v7344_v9   ;;  %10419 = vst [vmem:[#allocation184_spill] sm:$0xff] %v7835_v59  ;;  %v2443_v39 = vmul.f32 %v7483_v40, %v2434_v57  ;;  %v2455_v61 = vmul.f32 %v7490_v37, %v2434_v57  ;;  %v2545_v40 = vmul.f32 %v7561_v55, %v2501_v2  ;;  %v7877_v59 = vpop.permute.xlu0 %3003 }
 0x53e   :  { %10430 = vst [vmem:[#allocation130_spill] sm:$0xff] %v7860_v25  ;;  %10434 = vst [vmem:[#allocation45_spill] sm:$0xff] %v7877_v59  ;;  %v2467_v26 = vmul.f32 %v7496_v14, %v2434_v57  ;;  %v2468_v25 = vmul.f32 %v7496_v14, %v2435_v10  ;;  %v2469_v37 = vmul.f32 %v7496_v14, %v2436_v52 }
 0x53f   :  { %v2482_v59 = vmul.f32 %v7503_v41, %v2437_v21 }
 0x540   :  { %v7825_v3 = vpop.permute.xlu1 %3065 }
 0x541   :  { %10414 = vst [vmem:[#allocation85_spill] sm:$0xff] %v7825_v3  ;;  %v2500_v3 = vmul.f32 %v2497_v33, %v10424_v13  ;;  %4524 = vset.pattern.permute.xlu1 %v10426_v7  ;;  %v7856_v13 = vmul.f32 %v7349_v47, %v10427_v19  ;;  %v10432_v33 = vld [vmem:[#allocation95_spill] sm:$0xff]  ;;  %v10433_v7 = vld [vmem:[#allocation96_spill] sm:$0xff] }
 0x542   :  { %3528 = vperm.xlu1 %4524, %v7344_v9   ;;  %v2499_v62 = vmul.f32 %v2498_v4, %v10432_v33  ;;  %v2502_v19 = vmul.f32 %v2495_v50, %v10433_v7  ;;  %v2470_v4 = vmul.f32 %v7496_v14, %v2437_v21  ;;  %v2479_v33 = vmul.f32 %v7503_v41, %v2434_v57 }
 0x543   :  { %10428 = vst [vmem:[#allocation91_spill] sm:$0xff] %v7856_v13  ;;  %v2508_v6 = vmul.f32 %v7551_v36, %v2500_v3  ;;  %v2544_v13 = vmul.f32 %v7561_v55, %v2500_v3  ;;  %v2480_v7 = vmul.f32 %v7503_v41, %v2435_v10  ;;  %v2560_v14 = vsel %vm226_vm2, %v7541_v18, %v7573_v20 }
 0x544   :  { %v7863_v42 = vpop.permute.xlu1 %3069  ;;  %v2507_v35 = vmul.f32 %v7551_v36, %v2499_v62  ;;  %v2510_v1 = vmul.f32 %v7551_v36, %v2502_v19  ;;  %v2561_v10 = vsel %vm226_vm2, %v7532_v0, %v7541_v18  ;;  %v2549_v41 = vadd.f32 %v2545_v40, %v2481_v27  ;;  %v7918_v27 = vpop.permute.xlu0 %3016 }
 0x545   :  { %10431 = vst [vmem:[#allocation115_spill] sm:$0xff] %v7863_v42  ;;  %v2509_v42 = vmul.f32 %v7551_v36, %v2501_v2  ;;  %v2512_v57 = vadd.f32 %v2508_v6, %v2444_v30  ;;  %v2546_v21 = vmul.f32 %v7561_v55, %v2502_v19  ;;  %v2519_v36 = vmul.f32 %v7521_v60, %v2499_v62 }
 0x546   :  { %3377 = vrot.lane.b32.xlu1 %v7349_v47, %s10327_s16  ;;  %v2520_v22 = vmul.f32 %v7521_v60, %v2500_v3  ;;  %v2564_v58 = vmul.f32 %v2561_v10, %v10437_v45  ;;  %v2565_v11 = vmul.f32 %v2560_v14, %v10438_v46  ;;  %v2559_v18 = vsel %vm226_vm2, %v7573_v20, %v7549_v49  ;;  %v10441_v10 = vld [vmem:[#allocation101_spill] sm:$0xff] }
 0x547   :  { %4527 = vset.pattern.permute.xlu1 %v10436_v34  ;;  %v2513_v52 = vadd.f32 %v2509_v42, %v2445_v54  ;;  %v2543_v34 = vmul.f32 %v7561_v55, %v2499_v62  ;;  %v2562_v55 = vsel %vm226_vm2, %v7549_v49, %v7532_v0  ;;  %v2514_v42 = vadd.f32 %v2510_v1, %v2446_v24  ;;  %v10440_v49 = vld [vmem:[#allocation100_spill] sm:$0xff]  ;;  %vm10584_vm2 = vmmov %vm10567_vm0 }
 0x548   :  { %v7885_v50 = vpop.permute.xlu1 %3092  ;;  %v2521_v45 = vmul.f32 %v7521_v60, %v2501_v2  ;;  %v2522_v46 = vmul.f32 %v7521_v60, %v2502_v19  ;;  %v2531_v54 = vmul.f32 %v7526_v51, %v2499_v62  ;;  %v2532_v6 = vmul.f32 %v7526_v51, %v2500_v3 }
 0x549   :  { %10435 = vst [vmem:[#allocation52_spill] sm:$0xff] %v7885_v50  ;;  %v2548_v50 = vadd.f32 %v2544_v13, %v2480_v7  ;;  %v2511_v13 = vadd.f32 %v2507_v35, %v2443_v39  ;;  %v2533_v20 = vmul.f32 %v7526_v51, %v2501_v2  ;;  %v2534_v40 = vmul.f32 %v7526_v51, %v2502_v19 }
 0x54a   :  { %3435 = vrot.lane.b32.xlu1 %v7327_v38, %s10332_s17  ;;  %v2547_v7 = vadd.f32 %v2543_v34, %v2479_v33  ;;  %v2550_v0 = vadd.f32 %v2546_v21, %v2482_v59  ;;  %v2563_v14 = vmul.f32 %v2562_v55, %v10440_v49  ;;  %v2572_v35 = vmul.f32 %v7582_v48, %v2564_v58  ;;  %v7938_v21 = vpop.permute.xlu0 %3052 }
 0x54b   :  { %v2573_v1 = vmul.f32 %v7582_v48, %v2565_v11  ;;  %v2608_v60 = vmul.f32 %v7593_v5, %v2564_v58  ;;  %v2609_v3 = vmul.f32 %v7593_v5, %v2565_v11  ;;  %v2523_v51 = vadd.f32 %v2519_v36, %v2455_v61  ;;  %v10442_v36 = vld [vmem:[#allocation102_spill] sm:$0xff] }
 0x54c   :  { %v2524_v39 = vadd.f32 %v2520_v22, %v2456_v44  ;;  %v2525_v59 = vadd.f32 %v2521_v45, %v2457_v15  ;;  %v2526_v24 = vadd.f32 %v2522_v46, %v2458_v31  ;;  %v2535_v62 = vadd.f32 %v2531_v54, %v2467_v26  ;;  %v10443_v46 = vld [vmem:[#allocation103_spill] sm:$0xff] }
 0x54d   :  { %v7920_v30 = vpop.permute.xlu1 %3104  ;;  %v2536_v19 = vadd.f32 %v2532_v6, %v2468_v25  ;;  %v2537_v33 = vadd.f32 %v2533_v20, %v2469_v37  ;;  %v2538_v34 = vadd.f32 %v2534_v40, %v2470_v4  ;;  %v2624_v49 = vsel %vm314_vm3, %v7579_v28, %v7603_v43 }
 0x54e   :  { %10439 = vst [vmem:[#allocation111_spill] sm:$0xff] %v7920_v30  ;;  %v2566_v30 = vmul.f32 %v2559_v18, %v10441_v10  ;;  %3439 = vrot.lane.b32.xlu1 %v7335_v56, %s10332_s17  ;;  %v2571_v18 = vmul.f32 %v7582_v48, %v2563_v14  ;;  %v2625_v22 = vsel %vm314_vm3, %v7570_v16, %v7579_v28  ;;  %v10444_v6 = vmov 73  }
 0x54f   :  { %v2576_v26 = vadd.f32 %v2572_v35, %v2512_v57  ;;  %v2577_v25 = vadd.f32 %v2573_v1, %v2513_v52  ;;  %v2612_v61 = vadd.f32 %v2608_v60, %v2548_v50  ;;  %v2613_v44 = vadd.f32 %v2609_v3, %v2549_v41  ;;  %v7974_v35 = vpop.permute.xlu0 %3067  ;;  %v10446_v1 = vld [vmem:[#allocation105_spill] sm:$0xff] }
 0x550   :  { %v2574_v55 = vmul.f32 %v7582_v48, %v2566_v30  ;;  %v2607_v48 = vmul.f32 %v7593_v5, %v2563_v14  ;;  %v2610_v31 = vmul.f32 %v7593_v5, %v2566_v30  ;;  %v2583_v37 = vmul.f32 %v7556_v53, %v2563_v14 }
 0x551   :  { %v7936_v2 = vpop.permute.xlu1 %3127  ;;  %v2584_v4 = vmul.f32 %v7556_v53, %v2564_v58  ;;  %v2628_v45 = vmul.f32 %v2625_v22, %v10442_v36  ;;  %v2629_v28 = vmul.f32 %v2624_v49, %v10443_v46  ;;  %v2623_v50 = vsel %vm314_vm3, %v7603_v43, %v7586_v8  ;;  %v10450_v36 = vld [vmem:[#allocation62_spill] sm:$0xff] }
 0x552   :  { %3580 = vperm.xlu1 %4527, %v7344_v9   ;;  %v2626_v57 = vsel %vm314_vm3, %v7586_v8, %v7570_v16  ;;  %v2575_v52 = vadd.f32 %v2571_v18, %v2511_v13  ;;  %v2578_v5 = vadd.f32 %v2574_v55, %v2514_v42  ;;  %v2585_v41 = vmul.f32 %v7556_v53, %v2565_v11  ;;  %v10445_v42 = vld [vmem:[#allocation104_spill] sm:$0xff] }
 0x553   :  { %v2586_v54 = vmul.f32 %v7556_v53, %v2566_v30  ;;  %v2595_v20 = vmul.f32 %v7564_v29, %v2563_v14  ;;  %v2596_v40 = vmul.f32 %v7564_v29, %v2564_v58  ;;  %v2597_v10 = vmul.f32 %v7564_v29, %v2565_v11 }
 0x554   :  { %v2598_v43 = vmul.f32 %v7564_v29, %v2566_v30  ;;  %v2611_v8 = vadd.f32 %v2607_v48, %v2547_v7  ;;  %v2614_v13 = vadd.f32 %v2610_v31, %v2550_v0  ;;  %v2627_v53 = vmul.f32 %v2626_v57, %v10445_v42  ;;  %v10451_v57 = vld [vmem:[#allocation106_spill] sm:$0xff] }
 0x555   :  { %v7951_v15 = vpop.permute.xlu1 %3129  ;;  %v2630_v60 = vmul.f32 %v2623_v50, %v10446_v1  ;;  %v2636_v14 = vmul.f32 %v7615_v32, %v2628_v45  ;;  %v2637_v58 = vmul.f32 %v7615_v32, %v2629_v28  ;;  %v2672_v11 = vmul.f32 %v7625_v17, %v2628_v45 }
 0x556   :  { %4528 = vset.pattern.permute.xlu1 %v10444_v6  ;;  %v2673_v29 = vmul.f32 %v7625_v17, %v2629_v28  ;;  %v2587_v30 = vadd.f32 %v2583_v37, %v2523_v51  ;;  %v2588_v3 = vadd.f32 %v2584_v4, %v2524_v39  ;;  %v2589_v18 = vadd.f32 %v2585_v41, %v2525_v59  ;;  %v10448_v39 = vld [vmem:[#allocation44_spill] sm:$0xff]  ;;  %v8000_v37 = vpop.permute.xlu0 %3080  ;;  %v10453_v6 = vld [vmem:[#allocation25_spill] sm:$0xff] }
 0x557   :  { %3592 = vperm.xlu1 %4528, %v7344_v9   ;;  %v2590_v9 = vadd.f32 %v2586_v54, %v2526_v24  ;;  %v2599_v55 = vadd.f32 %v2595_v20, %v2535_v62  ;;  %v2600_v49 = vadd.f32 %v2596_v40, %v2536_v19  ;;  %v2601_v7 = vadd.f32 %v2597_v10, %v2537_v33  ;;  %v10452_v54 = vld [vmem:[#allocation107_spill] sm:$0xff] }
 0x558   :  { %v2602_v0 = vadd.f32 %v2598_v43, %v2538_v34  ;;  %v2635_v48 = vmul.f32 %v7615_v32, %v2627_v53  ;;  %v2638_v31 = vmul.f32 %v7615_v32, %v2630_v60  ;;  %v2688_v51 = vsel %vm402_vm4, %v7613_v12, %v7633_v63  ;;  %v10455_v10 = vld [vmem:[#allocation167_spill] sm:$0xff] }
 0x559   :  { %v7977_v16 = vpop.permute.xlu1 %3133  ;;  %v2689_v59 = vsel %vm402_vm4, %v10448_v39, %v7613_v12  ;;  %v10449_v24 = vmov 76   ;;  %v2640_v62 = vadd.f32 %v2636_v14, %v2576_v26  ;;  %v2641_v19 = vadd.f32 %v2637_v58, %v2577_v25 }
 0x55a   :  { %v2676_v33 = vadd.f32 %v2672_v11, %v2612_v61  ;;  %v2677_v34 = vadd.f32 %v2673_v29, %v2613_v44  ;;  %v2671_v32 = vmul.f32 %v7625_v17, %v2627_v53  ;;  %v2674_v4 = vmul.f32 %v7625_v17, %v2630_v60  ;;  %v10456_v11 = vld [vmem:[#allocation108_spill] sm:$0xff] }
 0x55b   :  { %3441 = vrot.lane.b32.xlu1 %v7349_v47, %s10332_s17  ;;  %v2647_v46 = vmul.f32 %v10450_v36, %v2627_v53  ;;  %v2648_v50 = vmul.f32 %v10450_v36, %v2628_v45  ;;  %v2692_v41 = vmul.f32 %v2689_v59, %v10451_v57  ;;  %v2693_v12 = vmul.f32 %v2688_v51, %v10452_v54  ;;  %v10458_v51 = vld [vmem:[#allocation19_spill] sm:$0xff]  ;;  %v10462_v57 = vld [vmem:[#allocation166_spill] sm:$0xff] }
 0x55c   :  { %4531 = vset.pattern.permute.xlu1 %v10449_v24  ;;  %v2687_v26 = vsel %vm402_vm4, %v7633_v63, %v10453_v6  ;;  %v2690_v25 = vsel %vm402_vm4, %v10453_v6, %v10448_v39  ;;  %v2639_v17 = vadd.f32 %v2635_v48, %v2575_v52  ;;  %v2642_v61 = vadd.f32 %v2638_v31, %v2578_v5  ;;  %v10457_v52 = vld [vmem:[#allocation109_spill] sm:$0xff]  ;;  %v8030_v24 = vpop.permute.xlu0 %3116  ;;  %v8053_v6 = vld [vmem:[%s9263_s5] sm:$0xf]  ;;  %vm10589_vm4 = vmmov %vm10567_vm0 }
 0x55d   :  { %v7987_v22 = vpop.permute.xlu1 %3156  ;;  %v2649_v44 = vmul.f32 %v10450_v36, %v2629_v28  ;;  %v2650_v20 = vmul.f32 %v10450_v36, %v2630_v60  ;;  %v2659_v43 = vmul.f32 %v10455_v10, %v2627_v53  ;;  %v2660_v63 = vmul.f32 %v10455_v10, %v2628_v45  ;;  %v10459_v53 = vld [vmem:[#allocation169_spill] sm:$0xff] }
 0x55e   :  { %10447 = vst [vmem:[#allocation124_spill] sm:$0xff] %v7987_v22  ;;  %v2661_v42 = vmul.f32 %v10455_v10, %v2629_v28  ;;  %v2662_v1 = vmul.f32 %v10455_v10, %v2630_v60  ;;  %v2675_v14 = vadd.f32 %v2671_v32, %v2611_v8  ;;  %v2678_v58 = vadd.f32 %v2674_v4, %v2614_v13 }
 0x55f   :  { %3499 = vrot.lane.b32.xlu1 %v7327_v38, %s10338_s18  ;;  %v2691_v29 = vmul.f32 %v2690_v25, %v10456_v11  ;;  %v2694_v5 = vmul.f32 %v2687_v26, %v10457_v52  ;;  %v2651_v48 = vadd.f32 %v2647_v46, %v2587_v30  ;;  %v2652_v31 = vadd.f32 %v2648_v50, %v2588_v3  ;;  %v10461_v50 = vld [vmem:[#allocation27_spill] sm:$0xff] }
 0x560   :  { %v2700_v39 = vmul.f32 %v10458_v51, %v2692_v41  ;;  %v2701_v59 = vmul.f32 %v10458_v51, %v2693_v12  ;;  %v2653_v45 = vadd.f32 %v2649_v44, %v2589_v18  ;;  %v2654_v28 = vadd.f32 %v2650_v20, %v2590_v9  ;;  %v10463_v9 = vld [vmem:[#allocation66_spill] sm:$0xff]  ;;  %v10464_v44 = vld [vmem:[#allocation21_spill] sm:$0xff] }
 0x561   :  { %v2736_v8 = vmul.f32 %v10459_v53, %v2692_v41  ;;  %v2737_v13 = vmul.f32 %v10459_v53, %v2693_v12  ;;  %v2663_v60 = vadd.f32 %v2659_v43, %v2599_v55  ;;  %v2664_v32 = vadd.f32 %v2660_v63, %v2600_v49  ;;  %v10465_v43 = vld [vmem:[#allocation110_spill] sm:$0xff] }
 0x562   :  { %v8020_v40 = vpop.permute.xlu1 %3168  ;;  %v2665_v4 = vadd.f32 %v2661_v42, %v2601_v7  ;;  %v2666_v30 = vadd.f32 %v2662_v1, %v2602_v0  ;;  %v2699_v36 = vmul.f32 %v10458_v51, %v2691_v29  ;;  %v2702_v46 = vmul.f32 %v10458_v51, %v2694_v5  ;;  %v10467_v42 = vld [vmem:[#allocation55_spill] sm:$0xff] }
 0x563   :  { %10454 = vst [vmem:[#allocation133_spill] sm:$0xff] %v8020_v40  ;;  %3503 = vrot.lane.b32.xlu1 %v7335_v56, %s10338_s18  ;;  %v2752_v18 = vsel %vm490_vm5, %v10462_v57, %v10461_v50  ;;  %v2753_v54 = vsel %vm490_vm5, %v10463_v9, %v10462_v57  ;;  %v2704_v55 = vadd.f32 %v2700_v39, %v2640_v62  ;;  %vm10588_vm3 = vcmp.lt.s32.totalorder %v5302_v23, 114 }
 0x564   :  { %v2705_v49 = vadd.f32 %v2701_v59, %v2641_v19  ;;  %v2735_v7 = vmul.f32 %v10459_v53, %v2691_v29  ;;  %v2738_v0 = vmul.f32 %v10459_v53, %v2694_v5  ;;  %v2740_v26 = vadd.f32 %v2736_v8, %v2676_v33  ;;  %v10466_v19 = vld [vmem:[#allocation113_spill] sm:$0xff]  ;;  %v8068_v33 = vpop.permute.xlu0 %3131 }
 0x565   :  { %v2741_v25 = vadd.f32 %v2737_v13, %v2677_v34  ;;  %v2711_v20 = vmul.f32 %v10464_v44, %v2691_v29  ;;  %v2712_v10 = vmul.f32 %v10464_v44, %v2692_v41  ;;  %v2756_v62 = vmul.f32 %v2753_v54, %v10465_v43  ;;  %v10469_v13 = vld [vmem:[#allocation11_spill] sm:$0xff] }
 0x566   :  { %v2757_v63 = vmul.f32 %v2752_v18, %v10466_v19  ;;  %v2751_v1 = vsel %vm490_vm5, %v10461_v50, %v10467_v42  ;;  %v2754_v11 = vsel %vm490_vm5, %v10467_v42, %v10463_v9  ;;  %v2703_v34 = vadd.f32 %v2699_v36, %v2639_v17  ;;  %v10471_v17 = vld [vmem:[#allocation117_spill] sm:$0xff]  ;;  %v10472_v36 = vld [vmem:[#allocation118_spill] sm:$0xff]  ;;  %vm10592_vm5 = vmmov %vm10567_vm0 }
 0x567   :  { %v8036_v3 = vpop.permute.xlu1 %3196  ;;  %3644 = vperm.xlu1 %4531, %v8053_v6   ;;  %v2706_v52 = vadd.f32 %v2702_v46, %v2642_v61  ;;  %v2713_v51 = vmul.f32 %v10464_v44, %v2693_v12  ;;  %v2714_v39 = vmul.f32 %v10464_v44, %v2694_v5  ;;  %v2739_v53 = vadd.f32 %v2735_v7, %v2675_v14  ;;  %v10473_v44 = vld [vmem:[#allocation175_spill] sm:$0xff] }
 0x568   :  { %10460 = vst [vmem:[#allocation144_spill] sm:$0xff] %v8036_v3  ;;  %v2742_v8 = vadd.f32 %v2738_v0, %v2678_v58  ;;  %v2723_v57 = vmul.f32 %v10469_v13, %v2691_v29  ;;  %v2724_v50 = vmul.f32 %v10469_v13, %v2692_v41  ;;  %v10470_v18 = vmov 77   ;;  %v10474_v58 = vld [vmem:[#allocation75_spill] sm:$0xff]  ;;  %v8086_v7 = vpop.permute.xlu0 %3144 }
 0x569   :  { %v2725_v9 = vmul.f32 %v10469_v13, %v2693_v12  ;;  %v2726_v54 = vmul.f32 %v10469_v13, %v2694_v5  ;;  %v2755_v61 = vmul.f32 %v2754_v11, %v10471_v17  ;;  %v2758_v46 = vmul.f32 %v2751_v1, %v10472_v36  ;;  %v10475_v13 = vld [vmem:[#allocation68_spill] sm:$0xff]  ;;  %v10477_v17 = vld [vmem:[#allocation65_spill] sm:$0xff] }
 0x56a   :  { %v2764_v43 = vmul.f32 %v10473_v44, %v2756_v62  ;;  %v2765_v14 = vmul.f32 %v10473_v44, %v2757_v63  ;;  %v2800_v29 = vmul.f32 %v10474_v58, %v2756_v62  ;;  %v2801_v41 = vmul.f32 %v10474_v58, %v2757_v63  ;;  %v10476_v1 = vld [vmem:[#allocation176_spill] sm:$0xff] }
 0x56b   :  { %4532 = vset.pattern.permute.xlu1 %v10470_v18  ;;  %v2715_v0 = vadd.f32 %v2711_v20, %v2651_v48  ;;  %v2716_v12 = vadd.f32 %v2712_v10, %v2652_v31  ;;  %v2717_v19 = vadd.f32 %v2713_v51, %v2653_v45  ;;  %v2718_v5 = vadd.f32 %v2714_v39, %v2654_v28  ;;  %v10480_v10 = vld [vmem:[#allocation120_spill] sm:$0xff]  ;;  %v10481_v39 = vld [vmem:[#allocation121_spill] sm:$0xff] }
 0x56c   :  { %v8072_v59 = vpop.permute.xlu1 %3208  ;;  %3656 = vperm.xlu1 %4532, %v8053_v6   ;;  %v2727_v42 = vadd.f32 %v2723_v57, %v2663_v60  ;;  %v2728_v11 = vadd.f32 %v2724_v50, %v2664_v32  ;;  %v2816_v18 = vsel %vm578_vm6, %v10476_v1, %v10475_v13  ;;  %v2817_v36 = vsel %vm578_vm6, %v10477_v17, %v10476_v1 }
 0x56d   :  { %10468 = vst [vmem:[#allocation151_spill] sm:$0xff] %v8072_v59  ;;  %v2729_v3 = vadd.f32 %v2725_v9, %v2665_v4  ;;  %v2730_v22 = vadd.f32 %v2726_v54, %v2666_v30  ;;  %v2763_v48 = vmul.f32 %v10473_v44, %v2755_v61  ;;  %v2766_v31 = vmul.f32 %v10473_v44, %v2758_v46  ;;  %v10482_v4 = vld [vmem:[#allocation70_spill] sm:$0xff]  ;;  %v8121_v54 = vpop.permute.xlu0 %3180 }
 0x56e   :  { %v2768_v45 = vadd.f32 %v2764_v43, %v2704_v55  ;;  %v2769_v28 = vadd.f32 %v2765_v14, %v2705_v49  ;;  %v2804_v60 = vadd.f32 %v2800_v29, %v2740_v26  ;;  %v2805_v32 = vadd.f32 %v2801_v41, %v2741_v25  ;;  %v10483_v25 = vld [vmem:[#allocation30_spill] sm:$0xff]  ;;  %10484 = vst [vmem:[#allocation4_spill] sm:$0xff] %v8121_v54 }
 0x56f   :  { %v10479_v20 = vmov 80   ;;  %v8104_v51 = vmul.f32 %v2817_v36, %v10480_v10  ;;  %v8107_v57 = vmul.f32 %v2816_v18, %v10481_v39  ;;  %v2815_v30 = vsel %vm578_vm6, %v10475_v13, %v10482_v4  ;;  %v10486_v13 = vld [vmem:[#allocation40_spill] sm:$0xff]  ;;  %v10487_v18 = vld [vmem:[#allocation122_spill] sm:$0xff]  ;;  %v10488_v36 = vld [vmem:[#allocation123_spill] sm:$0xff] }
 0x570   :  { %3505 = vrot.lane.b32.xlu1 %v7349_v47, %s10338_s18  ;;  %v2818_v55 = vsel %vm578_vm6, %v10482_v4, %v10477_v17  ;;  %v2799_v49 = vmul.f32 %v10474_v58, %v2755_v61  ;;  %v2802_v26 = vmul.f32 %v10474_v58, %v2758_v46  ;;  %v2775_v50 = vmul.f32 %v10483_v25, %v2755_v61  ;;  %vm10599_vm6 = vmmov %vm10571_vm1 }
 0x571   :  { %v8096_v59 = vpop.permute.xlu1 %3232  ;;  %4535 = vset.pattern.permute.xlu1 %v10479_v20  ;;  %v2776_v9 = vmul.f32 %v10483_v25, %v2756_v62  ;;  %v2767_v43 = vadd.f32 %v2763_v48, %v2703_v34  ;;  %v2770_v14 = vadd.f32 %v2766_v31, %v2706_v52  ;;  %v2777_v29 = vmul.f32 %v10483_v25, %v2757_v63  ;;  %v10489_v52 = vld [vmem:[#allocation69_spill] sm:$0xff] }
 0x572   :  { %10478 = vst [vmem:[#allocation119_spill] sm:$0xff] %v8096_v59  ;;  %v2778_v41 = vmul.f32 %v10483_v25, %v2758_v46  ;;  %v2787_v1 = vmul.f32 %v10486_v13, %v2755_v61  ;;  %v2788_v58 = vmul.f32 %v10486_v13, %v2756_v62  ;;  %v2819_v17 = vmul.f32 %v2818_v55, %v10487_v18  ;;  %v10490_v61 = vld [vmem:[#allocation72_spill] sm:$0xff] }
 0x573   :  { %v2822_v20 = vmul.f32 %v2815_v30, %v10488_v36  ;;  %v2789_v10 = vmul.f32 %v10486_v13, %v2757_v63  ;;  %v2790_v34 = vmul.f32 %v10486_v13, %v2758_v46  ;;  %v2828_v48 = vmul.f32 %v10489_v52, %v8104_v51 }
 0x574   :  { %3563 = vrot.lane.b32.xlu1 %v7327_v38, %s4645_s28  ;;  %v2829_v31 = vmul.f32 %v10489_v52, %v8107_v57  ;;  %v2803_v39 = vadd.f32 %v2799_v49, %v2739_v53  ;;  %v2806_v4 = vadd.f32 %v2802_v26, %v2742_v8  ;;  %v2864_v25 = vmul.f32 %v10490_v61, %v8104_v51  ;;  %v3221_v49 = vpop.permute.xlu0 %3220 }
 0x575   :  { %v8123_v44 = vpop.permute.xlu1 %3243  ;;  %v2865_v62 = vmul.f32 %v10490_v61, %v8107_v57  ;;  %v2779_v30 = vadd.f32 %v2775_v50, %v2715_v0  ;;  %v2780_v63 = vadd.f32 %v2776_v9, %v2716_v12  ;;  %v2781_v18 = vadd.f32 %v2777_v29, %v2717_v19  ;;  %v10492_v0 = vld [vmem:[#allocation50_spill] sm:$0xff]  ;;  %v10493_v12 = vld [vmem:[#allocation31_spill] sm:$0xff]  ;;  %v10500_v29 = vld [vmem:[#allocation184_spill] sm:$0xff] }
 0x576   :  { %10485 = vst [vmem:[#allocation131_spill] sm:$0xff] %v8123_v44  ;;  %v2782_v46 = vadd.f32 %v2778_v41, %v2718_v5  ;;  %v2791_v13 = vadd.f32 %v2787_v1, %v2727_v42  ;;  %v2792_v36 = vadd.f32 %v2788_v58, %v2728_v11  ;;  %v2827_v53 = vmul.f32 %v10489_v52, %v2819_v17  ;;  %v10494_v5 = vld [vmem:[#allocation39_spill] sm:$0xff] }
 0x577   :  { %v2830_v8 = vmul.f32 %v10489_v52, %v2822_v20  ;;  %v2793_v26 = vadd.f32 %v2789_v10, %v2729_v3  ;;  %v2794_v59 = vadd.f32 %v2790_v34, %v2730_v22  ;;  %v2832_v44 = vadd.f32 %v2828_v48, %v2768_v45  ;;  %v10495_v3 = vld [vmem:[#allocation130_spill] sm:$0xff]  ;;  %v10497_v45 = vld [vmem:[#allocation84_spill] sm:$0xff]  ;;  %v10502_v1 = vld [vmem:[#allocation91_spill] sm:$0xff] }
 0x578   :  { %3567 = vrot.lane.b32.xlu1 %v7335_v56, %s4645_s28  ;;  %v2833_v40 = vadd.f32 %v2829_v31, %v2769_v28  ;;  %v2868_v54 = vadd.f32 %v2864_v25, %v2804_v60  ;;  %v2880_v19 = vsel %vm666_vm7, %v10493_v12, %v10492_v0  ;;  %v2881_v42 = vsel %vm666_vm7, %v10494_v5, %v10493_v12  ;;  %v10504_v10 = vld [vmem:[#allocation126_spill] sm:$0xff]  ;;  %v10505_v52 = vld [vmem:[#allocation127_spill] sm:$0xff]  ;;  %v10506_v31 = vld [vmem:[#allocation49_spill] sm:$0xff] }
 0x579   :  { %v8143_v55 = vpop.permute.xlu1 %3247  ;;  %v2863_v11 = vmul.f32 %v10490_v61, %v2819_v17  ;;  %v2866_v50 = vmul.f32 %v10490_v61, %v2822_v20  ;;  %v8160_v22 = vmul.f32 %v3221_v49, %v10495_v3  ;;  %v8163_v28 = vmul.f32 %v3221_v49, %v10497_v45  ;;  %v10516_v45 = vld [vmem:[#allocation74_spill] sm:$0xff] }
 0x57a   :  { %10491 = vst [vmem:[#allocation141_spill] sm:$0xff] %v8143_v55  ;;  %v2869_v55 = vadd.f32 %v2865_v62, %v2805_v32  ;;  %v2831_v32 = vadd.f32 %v2827_v53, %v2767_v43  ;;  %v2834_v9 = vadd.f32 %v2830_v8, %v2770_v14  ;;  %v8169_v41 = vmul.f32 %v3221_v49, %v10500_v29  ;;  %v10507_v14 = vld [vmem:[#allocation37_spill] sm:$0xff]  ;;  %v10515_v29 = vld [vmem:[#allocation35_spill] sm:$0xff] }
 0x57b   :  { %10496 = vst [vmem:[#allocation150_spill] sm:$0xff] %v8160_v22  ;;  %10498 = vst [vmem:[#allocation154_spill] sm:$0xff] %v8163_v28  ;;  %v8172_v58 = vmul.f32 %v3221_v49, %v10502_v1  ;;  %v2884_v34 = vmul.f32 %v2881_v42, %v10504_v10  ;;  %v2885_v48 = vmul.f32 %v2880_v19, %v10505_v52  ;;  %v10508_v49 = vld [vmem:[#allocation183_spill] sm:$0xff]  ;;  %v10509_v42 = vmov 81   ;;  %v10511_v1 = vld [vmem:[#allocation129_spill] sm:$0xff] }
 0x57c   :  { %3708 = vperm.xlu1 %4535, %v8053_v6   ;;  %10501 = vst [vmem:[#allocation12_spill] sm:$0xff] %v8169_v41  ;;  %v2879_v61 = vsel %vm666_vm7, %v10492_v0, %v10506_v31  ;;  %v2882_v43 = vsel %vm666_vm7, %v10506_v31, %v10494_v5  ;;  %v2839_v25 = vmul.f32 %v10507_v14, %v2819_v17  ;;  %v10510_v31 = vld [vmem:[#allocation128_spill] sm:$0xff]  ;;  %vm10600_vm7 = vmmov %vm10571_vm1 }
 0x57d   :  { %v8166_v60 = vpop.permute.xlu1 %3260  ;;  %10503 = vst [vmem:[#allocation10_spill] sm:$0xff] %v8172_v58  ;;  %v2840_v62 = vmul.f32 %v10507_v14, %v8104_v51  ;;  %v2841_v53 = vmul.f32 %v10507_v14, %v8107_v57  ;;  %v2842_v8 = vmul.f32 %v10507_v14, %v2822_v20  ;;  %v2851_v12 = vmul.f32 %v10508_v49, %v2819_v17  ;;  %v10512_v14 = vld [vmem:[#allocation82_spill] sm:$0xff] }
 0x57e   :  { %10499 = vst [vmem:[#allocation14_spill] sm:$0xff] %v8166_v60  ;;  %v2852_v0 = vmul.f32 %v10508_v49, %v8104_v51  ;;  %v2853_v19 = vmul.f32 %v10508_v49, %v8107_v57  ;;  %v2854_v5 = vmul.f32 %v10508_v49, %v2822_v20  ;;  %v2867_v10 = vadd.f32 %v2863_v11, %v2803_v39  ;;  %v10513_v51 = vld [vmem:[#allocation59_spill] sm:$0xff]  ;;  %v8206_v11 = vpop.permute.xlu0 %3245 }
 0x57f   :  { %v2870_v52 = vadd.f32 %v2866_v50, %v2806_v4  ;;  %v2883_v60 = vmul.f32 %v2882_v43, %v10510_v31  ;;  %v2886_v22 = vmul.f32 %v2879_v61, %v10511_v1  ;;  %v2892_v17 = vmul.f32 %v10512_v14, %v2884_v34 }
 0x580   :  { %4536 = vset.pattern.permute.xlu1 %v10509_v42  ;;  %v2893_v58 = vmul.f32 %v10512_v14, %v2885_v48  ;;  %v2928_v41 = vmul.f32 %v10513_v51, %v2884_v34  ;;  %v2929_v57 = vmul.f32 %v10513_v51, %v2885_v48  ;;  %v2843_v20 = vadd.f32 %v2839_v25, %v2779_v30  ;;  %v10517_v30 = vld [vmem:[#allocation76_spill] sm:$0xff] }
 0x581   :  { %3720 = vperm.xlu1 %4536, %v8053_v6   ;;  %v2844_v49 = vadd.f32 %v2840_v62, %v2780_v63  ;;  %v2845_v39 = vadd.f32 %v2841_v53, %v2781_v18  ;;  %v2846_v4 = vadd.f32 %v2842_v8, %v2782_v46  ;;  %v2855_v50 = vadd.f32 %v2851_v12, %v2791_v13  ;;  %v10519_v62 = vld [vmem:[#allocation181_spill] sm:$0xff] }
 0x582   :  { %v8204_v28 = vpop.permute.xlu1 %3284  ;;  %v2856_v1 = vadd.f32 %v2852_v0, %v2792_v36  ;;  %v2857_v61 = vadd.f32 %v2853_v19, %v2793_v26  ;;  %v2858_v43 = vadd.f32 %v2854_v5, %v2794_v59  ;;  %v2891_v42 = vmul.f32 %v10512_v14, %v2883_v60  ;;  %v10522_v19 = vld [vmem:[#allocation146_spill] sm:$0xff] }
 0x583   :  { %10514 = vst [vmem:[#allocation159_spill] sm:$0xff] %v8204_v28  ;;  %v2894_v31 = vmul.f32 %v10512_v14, %v2886_v22  ;;  %v2944_v3 = vsel %vm754_vm8, %v10516_v45, %v10515_v29  ;;  %v2945_v63 = vsel %vm754_vm8, %v10517_v30, %v10516_v45  ;;  %v2896_v18 = vadd.f32 %v2892_v17, %v2832_v44  ;;  %v10521_v45 = vld [vmem:[#allocation142_spill] sm:$0xff]  ;;  %v10523_v44 = vld [vmem:[#allocation135_spill] sm:$0xff] }
 0x584   :  { %v2897_v46 = vadd.f32 %v2893_v58, %v2833_v40  ;;  %v2932_v59 = vadd.f32 %v2928_v41, %v2868_v54  ;;  %v2933_v13 = vadd.f32 %v2929_v57, %v2869_v55  ;;  %v10518_v36 = vmov 84   ;;  %v10525_v17 = vld [vmem:[#allocation51_spill] sm:$0xff] }
 0x585   :  { %3569 = vrot.lane.b32.xlu1 %v7349_v47, %s4645_s28  ;;  %v2927_v26 = vmul.f32 %v10513_v51, %v2883_v60  ;;  %v2930_v25 = vmul.f32 %v10513_v51, %v2886_v22  ;;  %v2903_v53 = vmul.f32 %v10519_v62, %v2883_v60  ;;  %v2904_v8 = vmul.f32 %v10519_v62, %v2884_v34 }
 0x586   :  { %4539 = vset.pattern.permute.xlu1 %v10518_v36  ;;  %v2948_v0 = vmul.f32 %v2945_v63, %v10521_v45  ;;  %v2949_v5 = vmul.f32 %v2944_v3, %v10522_v19  ;;  %v2943_v40 = vsel %vm754_vm8, %v10515_v29, %v10523_v44  ;;  %v2946_v54 = vsel %vm754_vm8, %v10523_v44, %v10517_v30  ;;  %v8241_v3 = vpop.permute.xlu0 %3249  ;;  %v10528_v19 = vld [vmem:[#allocation80_spill] sm:$0xff]  ;;  %vm10601_vm8 = vmmov %vm10571_vm1 }
 0x587   :  { %v8225_v12 = vpop.permute.xlu1 %3296  ;;  %v2895_v55 = vadd.f32 %v2891_v42, %v2831_v32  ;;  %v2898_v41 = vadd.f32 %v2894_v31, %v2834_v9  ;;  %v2905_v58 = vmul.f32 %v10519_v62, %v2885_v48  ;;  %v2906_v14 = vmul.f32 %v10519_v62, %v2886_v22  ;;  %10524 = vst [vmem:[#allocation165_spill] sm:$0xff] %v8241_v3  ;;  %v10526_v9 = vld [vmem:[#allocation149_spill] sm:$0xff] }
 0x588   :  { %10520 = vst [vmem:[#allocation22_spill] sm:$0xff] %v8225_v12  ;;  %v2915_v51 = vmul.f32 %v10525_v17, %v2883_v60  ;;  %v2916_v29 = vmul.f32 %v10525_v17, %v2884_v34  ;;  %v2917_v57 = vmul.f32 %v10525_v17, %v2885_v48  ;;  %v2918_v63 = vmul.f32 %v10525_v17, %v2886_v22  ;;  %v10527_v31 = vld [vmem:[#allocation153_spill] sm:$0xff] }
 0x589   :  { %3627 = vrot.lane.b32.xlu1 %v7327_v38, %s4648_s29  ;;  %v2931_v30 = vadd.f32 %v2927_v26, %v2867_v10  ;;  %v2934_v32 = vadd.f32 %v2930_v25, %v2870_v52  ;;  %v2947_v42 = vmul.f32 %v2946_v54, %v10526_v9  ;;  %v2950_v36 = vmul.f32 %v2943_v40, %v10527_v31  ;;  %v10529_v60 = vld [vmem:[#allocation81_spill] sm:$0xff]  ;;  %v10531_v54 = vld [vmem:[#allocation78_spill] sm:$0xff]  ;;  %v10536_v31 = vld [vmem:[#allocation156_spill] sm:$0xff] }
 0x58a   :  { %v2907_v45 = vadd.f32 %v2903_v53, %v2843_v20  ;;  %v2956_v44 = vmul.f32 %v10528_v19, %v2948_v0  ;;  %v2957_v12 = vmul.f32 %v10528_v19, %v2949_v5  ;;  %v2992_v3 = vmul.f32 %v10529_v60, %v2948_v0  ;;  %v10530_v40 = vld [vmem:[#allocation45_spill] sm:$0xff] }
 0x58b   :  { %v8249_v62 = vpop.permute.xlu1 %3309  ;;  %v2908_v34 = vadd.f32 %v2904_v8, %v2844_v49  ;;  %v2909_v28 = vadd.f32 %v2905_v58, %v2845_v39  ;;  %v2910_v48 = vadd.f32 %v2906_v14, %v2846_v4  ;;  %v2993_v22 = vmul.f32 %v10529_v60, %v2949_v5  ;;  %v10532_v39 = vld [vmem:[#allocation79_spill] sm:$0xff] }
 0x58c   :  { %v2919_v10 = vadd.f32 %v2915_v51, %v2855_v50  ;;  %v2920_v52 = vadd.f32 %v2916_v29, %v2856_v1  ;;  %v2921_v26 = vadd.f32 %v2917_v57, %v2857_v61  ;;  %v2922_v25 = vadd.f32 %v2918_v63, %v2858_v43  ;;  %v8269_v50 = vpop.permute.xlu0 %3272  ;;  %v10534_v51 = vld [vmem:[#allocation147_spill] sm:$0xff] }
 0x58d   :  { %3631 = vrot.lane.b32.xlu1 %v7335_v56, %s4648_s29  ;;  %v2955_v20 = vmul.f32 %v10528_v19, %v2947_v42  ;;  %v2958_v53 = vmul.f32 %v10528_v19, %v2950_v36  ;;  %v3008_v49 = vsel %vm842_vm9, %v10531_v54, %v10530_v40  ;;  %v3009_v4 = vsel %vm842_vm9, %v10532_v39, %v10531_v54  ;;  %v10535_v63 = vld [vmem:[#allocation155_spill] sm:$0xff] }
 0x58e   :  { %v2960_v1 = vadd.f32 %v2956_v44, %v2896_v18  ;;  %v2961_v61 = vadd.f32 %v2957_v12, %v2897_v46  ;;  %v2996_v43 = vadd.f32 %v2992_v3, %v2932_v59  ;;  %v2991_v58 = vmul.f32 %v10529_v60, %v2947_v42  ;;  %v10537_v54 = vld [vmem:[#allocation179_spill] sm:$0xff] }
 0x58f   :  { %v8267_v8 = vpop.permute.xlu1 %3313  ;;  %v2997_v14 = vadd.f32 %v2993_v22, %v2933_v13  ;;  %v2994_v17 = vmul.f32 %v10529_v60, %v2950_v36  ;;  %v2967_v29 = vmul.f32 %v10534_v51, %v2947_v42  ;;  %v2968_v57 = vmul.f32 %v10534_v51, %v2948_v0  ;;  %v10539_v22 = vld [vmem:[#allocation71_spill] sm:$0xff] }
 0x590   :  { %10533 = vst [vmem:[#allocation17_spill] sm:$0xff] %v8267_v8  ;;  %v3012_v9 = vmul.f32 %v3009_v4, %v10535_v63  ;;  %v3013_v19 = vmul.f32 %v3008_v49, %v10536_v31  ;;  %v3007_v18 = vsel %vm842_vm9, %v10530_v40, %v10537_v54  ;;  %v3010_v46 = vsel %vm842_vm9, %v10537_v54, %v10532_v39  ;;  %v10540_v8 = vld [vmem:[#allocation158_spill] sm:$0xff]  ;;  %vm10608_vm9 = vmmov %vm10588_vm3 }
 0x591   :  { %3772 = vperm.xlu1 %4539, %v8053_v6   ;;  %v2959_v59 = vadd.f32 %v2955_v20, %v2895_v55  ;;  %v2962_v13 = vadd.f32 %v2958_v53, %v2898_v41  ;;  %v2969_v12 = vmul.f32 %v10534_v51, %v2949_v5  ;;  %v2970_v3 = vmul.f32 %v10534_v51, %v2950_v36  ;;  %v10541_v55 = vld [vmem:[#allocation5_spill] sm:$0xff]  ;;  %v8297_v53 = vpop.permute.xlu0 %3307 }
 0x592   :  { %v2995_v60 = vadd.f32 %v2991_v58, %v2931_v30  ;;  %v2979_v49 = vmul.f32 %v10539_v22, %v2947_v42  ;;  %v2980_v4 = vmul.f32 %v10539_v22, %v2948_v0  ;;  %v2981_v40 = vmul.f32 %v10539_v22, %v2949_v5 }
 0x593   :  { %v8288_v44 = vpop.permute.xlu1 %3336  ;;  %v2998_v63 = vadd.f32 %v2994_v17, %v2934_v32  ;;  %v2982_v31 = vmul.f32 %v10539_v22, %v2950_v36  ;;  %v3011_v39 = vmul.f32 %v3010_v46, %v10540_v8  ;;  %v3014_v41 = vmul.f32 %v3007_v18, %v10541_v55  ;;  %v10543_v18 = vld [vmem:[#allocation85_spill] sm:$0xff]  ;;  %v10544_v46 = vld [vmem:[#allocation86_spill] sm:$0xff] }
 0x594   :  { %10538 = vst [vmem:[#allocation46_spill] sm:$0xff] %v8288_v44  ;;  %v10542_v20 = vmov 85   ;;  %v2971_v51 = vadd.f32 %v2967_v29, %v2907_v45  ;;  %v3020_v30 = vmul.f32 %v7918_v27, %v3012_v9  ;;  %v3021_v42 = vmul.f32 %v7918_v27, %v3013_v19 }
 0x595   :  { %4540 = vset.pattern.permute.xlu1 %v10542_v20  ;;  %v3056_v0 = vmul.f32 %v7938_v21, %v3012_v9  ;;  %v2972_v5 = vadd.f32 %v2968_v57, %v2908_v34  ;;  %v2973_v32 = vadd.f32 %v2969_v12, %v2909_v28  ;;  %v2974_v36 = vadd.f32 %v2970_v3, %v2910_v48  ;;  %v10545_v57 = vld [vmem:[#allocation148_spill] sm:$0xff]  ;;  %v10546_v3 = vld [vmem:[#allocation7_spill] sm:$0xff] }
 0x596   :  { %3784 = vperm.xlu1 %4540, %v8053_v6   ;;  %v3057_v8 = vmul.f32 %v7938_v21, %v3013_v19  ;;  %v2983_v58 = vadd.f32 %v2979_v49, %v2919_v10  ;;  %v2984_v17 = vadd.f32 %v2980_v4, %v2920_v52  ;;  %v2985_v54 = vadd.f32 %v2981_v40, %v2921_v26  ;;  %v8323_v4 = vpop.permute.xlu0 %3311  ;;  %v10549_v40 = vld [vmem:[#allocation115_spill] sm:$0xff] }
 0x597   :  { %v3073_v45 = vsel %vm930_vm10, %v10544_v46, %v10543_v18  ;;  %v2986_v22 = vadd.f32 %v2982_v31, %v2922_v25  ;;  %v3019_v55 = vmul.f32 %v7918_v27, %v3011_v39  ;;  %v3022_v20 = vmul.f32 %v7918_v27, %v3014_v41 }
 0x598   :  { %v8308_v29 = vpop.permute.xlu1 %3348  ;;  %v3072_v28 = vsel %vm930_vm10, %v10543_v18, %v7974_v35  ;;  %v3024_v34 = vadd.f32 %v3020_v30, %v2960_v1  ;;  %v3025_v48 = vadd.f32 %v3021_v42, %v2961_v61  ;;  %v3060_v10 = vadd.f32 %v3056_v0, %v2996_v43  ;;  %v10548_v61 = vld [vmem:[#allocation161_spill] sm:$0xff] }
 0x599   :  { %v3055_v52 = vmul.f32 %v7938_v21, %v3011_v39  ;;  %v3061_v26 = vadd.f32 %v3057_v8, %v2997_v14  ;;  %v3058_v25 = vmul.f32 %v7938_v21, %v3014_v41  ;;  %v3031_v12 = vmul.f32 %v10545_v57, %v3011_v39 }
 0x59a   :  { %3633 = vrot.lane.b32.xlu1 %v7349_v47, %s4648_s29  ;;  %v3076_v27 = vmul.f32 %v3073_v45, %v10546_v3  ;;  %v10547_v49 = vmov 88   ;;  %v3032_v1 = vmul.f32 %v10545_v57, %v3012_v9  ;;  %v3077_v43 = vmul.f32 %v3072_v28, %v10548_v61  ;;  %v10551_v45 = vld [vmem:[#allocation16_spill] sm:$0xff]  ;;  %v8348_v61 = vpop.permute.xlu0 %3324 }
 0x59b   :  { %4543 = vset.pattern.permute.xlu1 %v10547_v49  ;;  %v3071_v31 = vsel %vm930_vm10, %v7974_v35, %v10549_v40  ;;  %v3074_v21 = vsel %vm930_vm10, %v10549_v40, %v10544_v46  ;;  %v3023_v30 = vadd.f32 %v3019_v55, %v2959_v59  ;;  %v3026_v42 = vadd.f32 %v3022_v20, %v2962_v13  ;;  %v10552_v59 = vld [vmem:[#allocation162_spill] sm:$0xff]  ;;  %v10553_v55 = vld [vmem:[#allocation8_spill] sm:$0xff]  ;;  %vm10612_vm10 = vmmov %vm10588_vm3 }
 0x59c   :  { %v8335_v14 = vpop.permute.xlu1 %3371  ;;  %v3033_v0 = vmul.f32 %v10545_v57, %v3013_v19  ;;  %v3034_v8 = vmul.f32 %v10545_v57, %v3014_v41  ;;  %v3059_v18 = vadd.f32 %v3055_v52, %v2995_v60  ;;  %v3043_v28 = vmul.f32 %v10551_v45, %v3011_v39 }
 0x59d   :  { %10550 = vst [vmem:[#allocation23_spill] sm:$0xff] %v8335_v14  ;;  %v3044_v3 = vmul.f32 %v10551_v45, %v3012_v9  ;;  %v3045_v35 = vmul.f32 %v10551_v45, %v3013_v19  ;;  %v3046_v46 = vmul.f32 %v10551_v45, %v3014_v41  ;;  %v3084_v49 = vmul.f32 %v8000_v37, %v3076_v27 }
 0x59e   :  { %3691 = vrot.lane.b32.xlu1 %v7327_v38, %s4654_s30  ;;  %v3075_v13 = vmul.f32 %v3074_v21, %v10552_v59  ;;  %v3078_v20 = vmul.f32 %v3071_v31, %v10553_v55  ;;  %v3062_v60 = vadd.f32 %v3058_v25, %v2998_v63  ;;  %v3085_v39 = vmul.f32 %v8000_v37, %v3077_v43 }
 0x59f   :  { %v3120_v9 = vmul.f32 %v8030_v24, %v3076_v27  ;;  %v3121_v19 = vmul.f32 %v8030_v24, %v3077_v43  ;;  %v3035_v57 = vadd.f32 %v3031_v12, %v2971_v51  ;;  %v3036_v40 = vadd.f32 %v3032_v1, %v2972_v5  ;;  %v10555_v12 = vld [vmem:[#allocation52_spill] sm:$0xff] }
 0x5a0   :  { %v8353_v52 = vpop.permute.xlu1 %3388  ;;  %v3037_v41 = vadd.f32 %v3033_v0, %v2973_v32  ;;  %v3038_v45 = vadd.f32 %v3034_v8, %v2974_v36  ;;  %v3047_v44 = vadd.f32 %v3043_v28, %v2983_v58  ;;  %v3048_v14 = vadd.f32 %v3044_v3, %v2984_v17 }
 0x5a1   :  { %10554 = vst [vmem:[#allocation53_spill] sm:$0xff] %v8353_v52  ;;  %v3049_v21 = vadd.f32 %v3045_v35, %v2985_v54  ;;  %v3137_v63 = vsel %vm1018_vm11, %v7936_v2, %v7951_v15  ;;  %v3050_v25 = vadd.f32 %v3046_v46, %v2986_v22  ;;  %v3083_v31 = vmul.f32 %v8000_v37, %v3075_v13  ;;  %v10556_v22 = vld [vmem:[#allocation36_spill] sm:$0xff]  ;;  %v10558_v46 = vld [vmem:[#allocation111_spill] sm:$0xff] }
 0x5a2   :  { %3695 = vrot.lane.b32.xlu1 %v7335_v56, %s4654_s30  ;;  %v3086_v59 = vmul.f32 %v8000_v37, %v3078_v20  ;;  %v3088_v51 = vadd.f32 %v3084_v49, %v3024_v34  ;;  %v3136_v5 = vsel %vm1018_vm11, %v7951_v15, %v8068_v33  ;;  %v3089_v32 = vadd.f32 %v3085_v39, %v3025_v48  ;;  %v8373_v37 = vpop.permute.xlu0 %3360 }
 0x5a3   :  { %v3124_v36 = vadd.f32 %v3120_v9, %v3060_v10  ;;  %v3125_v58 = vadd.f32 %v3121_v19, %v3061_v26  ;;  %v3119_v17 = vmul.f32 %v8030_v24, %v3075_v13  ;;  %v3122_v54 = vmul.f32 %v8030_v24, %v3078_v20  ;;  %v10557_v24 = vld [vmem:[#allocation34_spill] sm:$0xff]  ;;  %v10559_v19 = vld [vmem:[#allocation163_spill] sm:$0xff] }
 0x5a4   :  { %v3095_v1 = vmul.f32 %v10555_v12, %v3075_v13  ;;  %v3140_v0 = vmul.f32 %v3137_v63, %v10556_v22  ;;  %v3096_v34 = vmul.f32 %v10555_v12, %v3076_v27  ;;  %v3097_v28 = vmul.f32 %v10555_v12, %v3077_v43 }
 0x5a5   :  { %v8371_v8 = vpop.permute.xlu1 %3412  ;;  %v3098_v15 = vmul.f32 %v10555_v12, %v3078_v20  ;;  %v3138_v48 = vsel %vm1018_vm11, %v7977_v16, %v7936_v2  ;;  %v3141_v10 = vmul.f32 %v3136_v5, %v10557_v24  ;;  %v3135_v26 = vsel %vm1018_vm11, %v8068_v33, %v7977_v16  ;;  %v10560_v16 = vld [vmem:[#allocation164_spill] sm:$0xff]  ;;  %vm10613_vm11 = vmmov %vm10588_vm3 }
 0x5a6   :  { %3836 = vperm.xlu1 %4543, %v8053_v6   ;;  %v3087_v3 = vadd.f32 %v3083_v31, %v3023_v30  ;;  %v3090_v35 = vadd.f32 %v3086_v59, %v3026_v42  ;;  %v3107_v49 = vmul.f32 %v10558_v46, %v3075_v13  ;;  %v3108_v55 = vmul.f32 %v10558_v46, %v3076_v27  ;;  %v10562_v13 = vld [vmem:[#allocation4_spill] sm:$0xff] }
 0x5a7   :  { %v3109_v39 = vmul.f32 %v10558_v46, %v3077_v43  ;;  %v3110_v9 = vmul.f32 %v10558_v46, %v3078_v20  ;;  %v3148_v2 = vmul.f32 %v8086_v7, %v3140_v0  ;;  %v3139_v63 = vmul.f32 %v3138_v48, %v10559_v19 }
 0x5a8   :  { %v3123_v5 = vadd.f32 %v3119_v17, %v3059_v18  ;;  %v3126_v12 = vadd.f32 %v3122_v54, %v3062_v60  ;;  %v3099_v22 = vadd.f32 %v3095_v1, %v3035_v57  ;;  %v3100_v24 = vadd.f32 %v3096_v34, %v3036_v40  ;;  %v8402_v18 = vpop.permute.xlu0 %3400  ;;  %v10563_v17 = vld [vmem:[#allocation133_spill] sm:$0xff] }
 0x5a9   :  { %v3101_v52 = vadd.f32 %v3097_v28, %v3037_v41  ;;  %v3142_v33 = vmul.f32 %v3135_v26, %v10560_v16  ;;  %v10561_v30 = vmov 89   ;;  %v3102_v27 = vadd.f32 %v3098_v15, %v3038_v45 }
 0x5aa   :  { %4544 = vset.pattern.permute.xlu1 %v10561_v30  ;;  %v8396_v42 = vpop.permute.xlu1 %3424  ;;  %v3149_v43 = vmul.f32 %v8086_v7, %v3141_v10  ;;  %v3184_v20 = vmul.f32 %v10562_v13, %v3140_v0  ;;  %v3185_v31 = vmul.f32 %v10562_v13, %v3141_v10  ;;  %v3111_v60 = vadd.f32 %v3107_v49, %v3047_v44 }
 0x5ab   :  { %3848 = vperm.xlu1 %4544, %v8053_v6   ;;  %v3112_v57 = vadd.f32 %v3108_v55, %v3048_v14  ;;  %v3113_v40 = vadd.f32 %v3109_v39, %v3049_v21  ;;  %v3114_v41 = vadd.f32 %v3110_v9, %v3050_v25  ;;  %v3147_v59 = vmul.f32 %v8086_v7, %v3139_v63 }
 0x5ac   :  { %v3172_v54 = vmul.f32 %v10563_v17, %v3140_v0  ;;  %v3173_v45 = vmul.f32 %v10563_v17, %v3141_v10  ;;  %v3152_v1 = vadd.f32 %v3148_v2, %v3088_v51  ;;  %v3150_v34 = vmul.f32 %v8086_v7, %v3142_v33  ;;  %v10564_v51 = vld [vmem:[#allocation124_spill] sm:$0xff]  ;;  %v8429_v19 = vpop.permute.xlu0 %3452 }
 0x5ad   :  { %v3183_v28 = vmul.f32 %v10562_v13, %v3139_v63  ;;  %v3171_v15 = vmul.f32 %v10563_v17, %v3139_v63  ;;  %v3174_v48 = vmul.f32 %v10563_v17, %v3142_v33  ;;  %v3186_v44 = vmul.f32 %v10562_v13, %v3142_v33 }
 0x5ae   :  { %v3153_v14 = vadd.f32 %v3149_v43, %v3089_v32  ;;  %v8412_v21 = vadd.f32 %v3184_v20, %v3124_v36  ;;  %v8414_v25 = vadd.f32 %v3185_v31, %v3125_v58  ;;  %v3159_v7 = vmul.f32 %v10564_v51, %v3139_v63  ;;  %v10566_v58 = vld [vmem:[#allocation141_spill] sm:$0xff]  ;;  %v10568_v43 = vld [vmem:[#allocation130_spill] sm:$0xff] }
 0x5af   :  { %3697 = vrot.lane.b32.xlu1 %v7349_v47, %s4654_s30  ;;  %v8418_v26 = vpop.permute.xlu1 %3464  ;;  %v3160_v46 = vmul.f32 %v10564_v51, %v3140_v0  ;;  %v3161_v49 = vmul.f32 %v10564_v51, %v3141_v10  ;;  %v3162_v55 = vmul.f32 %v10564_v51, %v3142_v33  ;;  %v10565_v39 = vmov 92   ;;  %v10569_v10 = vld [vmem:[#allocation144_spill] sm:$0xff] }
 0x5b0   :  { %4547 = vset.pattern.permute.xlu1 %v10565_v39  ;;  %v3176_v32 = vadd.f32 %v3172_v54, %v3112_v57  ;;  %v3177_v36 = vadd.f32 %v3173_v45, %v3113_v40  ;;  %v3151_v9 = vadd.f32 %v3147_v59, %v3087_v3  ;;  %v3252_v2 = vsel %vm10567_vm0, %v8206_v11, %v10566_v58  ;;  %v10570_v33 = vld [vmem:[#allocation84_spill] sm:$0xff]  ;;  %v10574_v54 = vld [vmem:[#allocation154_spill] sm:$0xff]  ;;  %v10580_v39 = vld [vmem:[#allocation91_spill] sm:$0xff] }
 0x5b1   :  { %v3175_v16 = vadd.f32 %v3171_v15, %v3111_v60  ;;  %v3178_v63 = vadd.f32 %v3174_v48, %v3114_v41  ;;  %v3154_v30 = vadd.f32 %v3150_v34, %v3090_v35  ;;  %v3187_v0 = vadd.f32 %v3183_v28, %v3123_v5  ;;  %v10572_v40 = vld [vmem:[#allocation184_spill] sm:$0xff]  ;;  %v10573_v5 = vld [vmem:[#allocation170_spill] sm:$0xff] }
 0x5b2   :  { %v3199_v13 = vmul.f32 %v10569_v10, %v10568_v43  ;;  %v3200_v20 = vmul.f32 %v10569_v10, %v10570_v33  ;;  %v3190_v31 = vadd.f32 %v3186_v44, %v3126_v12  ;;  %v3316_v3 = vsel %vm10571_vm1, %v8249_v62, %v8323_v4  ;;  %v10575_v34 = vld [vmem:[#allocation12_spill] sm:$0xff]  ;;  %v10576_v15 = vld [vmem:[#allocation10_spill] sm:$0xff]  ;;  %v10578_v44 = vld [vmem:[#allocation159_spill] sm:$0xff] }
 0x5b3   :  { %3755 = vrot.lane.b32.xlu1 %v7327_v38, %s4659_s10  ;;  %v3163_v57 = vadd.f32 %v3159_v7, %v3099_v22  ;;  %v3164_v60 = vadd.f32 %v3160_v46, %v3100_v24  ;;  %v3201_v35 = vmul.f32 %v10569_v10, %v10572_v40  ;;  %v8444_v41 = vmul.f32 %v3252_v2, %v10573_v5  ;;  %v10577_v22 = vld [vmem:[#allocation150_spill] sm:$0xff]  ;;  %v10579_v7 = vld [vmem:[#allocation29_spill] sm:$0xff]  ;;  %v3374_v2 = vpop.permute.xlu0 %3373 }
 0x5b4   :  { %v8446_v59 = vpop.permute.xlu1 %3476  ;;  %v3165_v17 = vadd.f32 %v3161_v49, %v3101_v52  ;;  %v3166_v12 = vadd.f32 %v3162_v55, %v3102_v27  ;;  %v3228_v45 = vadd.f32 %v10574_v54, %v3176_v32  ;;  %v8450_v28 = vadd.f32 %v10575_v34, %v3177_v36  ;;  %v10582_v55 = vld [vmem:[#allocation131_spill] sm:$0xff]  ;;  %v10583_v32 = vld [vmem:[#allocation165_spill] sm:$0xff]  ;;  %v10590_v34 = vld [vmem:[#allocation42_spill] sm:$0xff] }
 0x5b5   :  { %v8453_v48 = vadd.f32 %v10576_v15, %v3178_v63  ;;  %v8456_v24 = vadd.f32 %v10577_v22, %v3175_v16  ;;  %v3288_v51 = vmul.f32 %v10578_v44, %v8444_v41  ;;  %v8461_v46 = vmul.f32 %v3316_v3, %v10579_v7  ;;  %v10586_v63 = vld [vmem:[#allocation151_spill] sm:$0xff]  ;;  %v10591_v7 = vld [vmem:[#allocation61_spill] sm:$0xff] }
 0x5b6   :  { %v3202_v52 = vmul.f32 %v10569_v10, %v10580_v39  ;;  %v8465_v27 = vadd.f32 %v3199_v13, %v3151_v9  ;;  %v3204_v49 = vadd.f32 %v3200_v20, %v3152_v1  ;;  %v3254_v36 = vsel %vm10584_vm2, %v10583_v32, %v10582_v55 }
 0x5b7   :  { %3759 = vrot.lane.b32.xlu1 %v7335_v56, %s4659_s10  ;;  %v8473_v16 = vadd.f32 %v3201_v35, %v3153_v14  ;;  %v3211_v3 = vmul.f32 %v10586_v63, %v10568_v43  ;;  %v3212_v10 = vmul.f32 %v10586_v63, %v10570_v33  ;;  %v3352_v1 = vmul.f32 %v8308_v29, %v8461_v46  ;;  %v10587_v14 = vld [vmem:[#allocation119_spill] sm:$0xff] }
 0x5b8   :  { %10581 = vst [vmem:[#allocation174_spill] sm:$0xff] %v8465_v27  ;;  %v8481_v9 = vpop.permute.xlu1 %3375  ;;  %v3213_v13 = vmul.f32 %v10586_v63, %v10572_v40  ;;  %v3214_v20 = vmul.f32 %v10586_v63, %v10580_v39  ;;  %v3235_v35 = vmul.f32 %v10587_v14, %v10568_v43  ;;  %v3253_v54 = vsel %vm10589_vm4, %v10582_v55, %v8206_v11 }
 0x5b9   :  { %10585 = vst [vmem:[#allocation63_spill] sm:$0xff] %v8473_v16  ;;  %v3380_v5 = vsel %vm10588_vm3, %v3374_v2, %v8481_v9  ;;  %v8497_v15 = vmul.f32 %v3254_v36, %v10590_v34  ;;  %v3292_v22 = vadd.f32 %v3288_v51, %v3228_v45  ;;  %v3236_v63 = vmul.f32 %v10587_v14, %v10570_v33 }
 0x5ba   :  { %v8500_v16 = vmul.f32 %v3380_v5, %v10591_v7  ;;  %v3237_v43 = vmul.f32 %v10587_v14, %v10572_v40  ;;  %v3238_v27 = vmul.f32 %v10587_v14, %v10580_v39  ;;  %v3251_v11 = vsel %vm10592_vm5, %v10566_v58, %v10583_v32  ;;  %v10594_v58 = vld [vmem:[#allocation47_spill] sm:$0xff] }
 0x5bb   :  { %3900 = vperm.xlu1 %4547, %v8053_v6   ;;  %v8513_v45 = vadd.f32 %v3202_v52, %v3154_v30  ;;  %v3356_v51 = vadd.f32 %v3352_v1, %v3292_v22  ;;  %v8523_v39 = vadd.f32 %v3211_v3, %v3163_v57  ;;  %v3216_v36 = vadd.f32 %v3212_v10, %v3164_v60  ;;  %v10595_v52 = vld [vmem:[#allocation171_spill] sm:$0xff]  ;;  %v8542_v3 = vpop.permute.xlu0 %3488  ;;  %v10597_v10 = vld [vmem:[#allocation14_spill] sm:$0xff] }
 0x5bc   :  { %v3416_v55 = vmul.f32 %v8371_v8, %v8500_v16  ;;  %v8519_v33 = vmul.f32 %v8396_v42, %v8500_v16  ;;  %v8521_v40 = vpop.permute.xlu1 %3516  ;;  %v8525_v14 = vadd.f32 %v3213_v13, %v3165_v17  ;;  %v3255_v32 = vmul.f32 %v3253_v54, %v10594_v58 }
 0x5bd   :  { %10593 = vst [vmem:[#allocation177_spill] sm:$0xff] %v8521_v40  ;;  %v3218_v5 = vadd.f32 %v3214_v20, %v3166_v12  ;;  %v3278_v30 = vmul.f32 %v8269_v50, %v8497_v15  ;;  %v8531_v1 = vmul.f32 %v3251_v11, %v10595_v52  ;;  %v3239_v22 = vadd.f32 %v3235_v35, %v3187_v0  ;;  %v10598_v20 = vld [vmem:[#allocation17_spill] sm:$0xff] }
 0x5be   :  { %v8533_v34 = vadd.f32 %v3416_v55, %v3356_v51  ;;  %v3240_v7 = vadd.f32 %v3236_v63, %v8412_v21  ;;  %v8537_v57 = vadd.f32 %v3237_v43, %v8414_v25  ;;  %v8539_v60 = vadd.f32 %v3238_v27, %v3190_v31 }
 0x5bf   :  { %v10596_v17 = vmov 93   ;;  %v3276_v12 = vmul.f32 %v8269_v50, %v8444_v41  ;;  %v3264_v13 = vmul.f32 %v10597_v10, %v8444_v41  ;;  %v3315_v21 = vsel %vm10599_vm6, %v8323_v4, %v10598_v20 }
 0x5c0   :  { %4548 = vset.pattern.permute.xlu1 %v10596_v17  ;;  %v3318_v25 = vsel %vm10600_vm7, %v10598_v20, %v8297_v53  ;;  %v8558_v0 = vmul.f32 %v8269_v50, %v3255_v32  ;;  %v3287_v31 = vmul.f32 %v10578_v44, %v3255_v32  ;;  %v3289_v27 = vmul.f32 %v10578_v44, %v8531_v1  ;;  %v10606_v17 = vld [vmem:[#allocation57_spill] sm:$0xff] }
 0x5c1   :  { %3912 = vperm.xlu1 %4548, %v8053_v6   ;;  %v3317_v4 = vsel %vm10601_vm8, %v8297_v53, %v8249_v62  ;;  %v8567_v35 = vpop.permute.xlu1 %3528  ;;  %v8571_v54 = vmul.f32 %v8269_v50, %v8531_v1  ;;  %v8574_v63 = vmul.f32 %v10597_v10, %v3255_v32  ;;  %v3290_v43 = vmul.f32 %v10578_v44, %v8497_v15  ;;  %v10604_v53 = vld [vmem:[#allocation172_spill] sm:$0xff]  ;;  %v10605_v50 = vld [vmem:[#allocation173_spill] sm:$0xff] }
 0x5c2   :  { %10602 = vst [vmem:[#allocation77_spill] sm:$0xff] %v8567_v35  ;;  %v8578_v11 = vadd.f32 %v3278_v30, %v3218_v5  ;;  %v8582_v51 = vmul.f32 %v10597_v10, %v8531_v1  ;;  %v8586_v62 = vmul.f32 %v10597_v10, %v8497_v15  ;;  %v8589_v55 = vmul.f32 %v3315_v21, %v10604_v53  ;;  %v10607_v5 = vld [vmem:[#allocation23_spill] sm:$0xff] }
 0x5c3   :  { %v8592_v58 = vmul.f32 %v3318_v25, %v10605_v50  ;;  %v3268_v52 = vadd.f32 %v3264_v13, %v3204_v49  ;;  %v8595_v20 = vmul.f32 %v3317_v4, %v10606_v17  ;;  %v3280_v44 = vadd.f32 %v3276_v12, %v3216_v36  ;;  %v8609_v36 = vpop.permute.xlu0 %3540  ;;  %v10611_v12 = vld [vmem:[#allocation22_spill] sm:$0xff]  ;;  %v10616_v17 = vld [vmem:[#allocation73_spill] sm:$0xff] }
 0x5c4   :  { %10603 = vst [vmem:[#allocation83_spill] sm:$0xff] %v8578_v11  ;;  %v3381_v30 = vsel %vm10608_vm9, %v10607_v5, %v3374_v2  ;;  %v3291_v10 = vadd.f32 %v3287_v31, %v8456_v24  ;;  %v3293_v21 = vadd.f32 %v3289_v27, %v8450_v28  ;;  %v3353_v25 = vmul.f32 %v8308_v29, %v8589_v55  ;;  %v10614_v27 = vld [vmem:[#allocation67_spill] sm:$0xff] }
 0x5c5   :  { %3761 = vrot.lane.b32.xlu1 %v7349_v47, %s4659_s10  ;;  %v3354_v49 = vmul.f32 %v8308_v29, %v8592_v58  ;;  %v3378_v13 = vpop.permute.xlu1 %3377  ;;  %v10609_v4 = vmov 96   ;;  %10610 = vst [vmem:[#allocation87_spill] sm:$0xff] %v8609_v36  ;;  %v3294_v2 = vadd.f32 %v3290_v43, %v8453_v48  ;;  %v3299_v53 = vmul.f32 %v10611_v12, %v3255_v32  ;;  %v10617_v48 = vld [vmem:[#allocation33_spill] sm:$0xff] }
 0x5c6   :  { %4551 = vset.pattern.permute.xlu1 %v10609_v4  ;;  %v3379_v24 = vsel %vm10612_vm10, %v8481_v9, %v3378_v13  ;;  %v3382_v28 = vsel %vm10613_vm11, %v3378_v13, %v10607_v5  ;;  %v3300_v31 = vmul.f32 %v10611_v12, %v8444_v41  ;;  %v8622_v50 = vmul.f32 %v3381_v30, %v10614_v27  ;;  %v10618_v30 = vld [vmem:[#allocation46_spill] sm:$0xff] }
 0x5c7   :  { %v8625_v4 = vmul.f32 %v3379_v24, %v10616_v17  ;;  %v8628_v43 = vmul.f32 %v3382_v28, %v10617_v48  ;;  %v3328_v32 = vmul.f32 %v8348_v61, %v8461_v46  ;;  %v3364_v9 = vmul.f32 %v8373_v37, %v8461_v46  ;;  %v3438_v40 = vpop.permute.xlu0 %3437 }
 0x5c8   :  { %10615 = vst [vmem:[#allocation138_spill] sm:$0xff] %v8622_v50  ;;  %v3351_v5 = vmul.f32 %v8308_v29, %v8595_v20  ;;  %v3363_v41 = vmul.f32 %v8373_v37, %v8595_v20  ;;  %v3340_v13 = vmul.f32 %v10618_v30, %v8461_v46  ;;  %v3357_v24 = vadd.f32 %v3353_v25, %v3293_v21 }
 0x5c9   :  { %3819 = vrot.lane.b32.xlu1 %v7327_v38, %s4664_s11  ;;  %v3358_v28 = vadd.f32 %v3354_v49, %v3294_v2  ;;  %v3415_v27 = vmul.f32 %v8371_v8, %v8622_v50  ;;  %v8644_v17 = vpop.permute.xlu1 %3435  ;;  %v3417_v48 = vmul.f32 %v8371_v8, %v8625_v4  ;;  %v3418_v29 = vmul.f32 %v8371_v8, %v8628_v43  ;;  %v10621_v49 = vld [vmem:[#allocation53_spill] sm:$0xff] }
 0x5ca   :  { %v8652_v36 = vmul.f32 %v8396_v42, %v8625_v4  ;;  %v8656_v46 = vmul.f32 %v8396_v42, %v8628_v43  ;;  %v3303_v21 = vadd.f32 %v3299_v53, %v3239_v22  ;;  %v3427_v25 = vmul.f32 %v8396_v42, %v8622_v50 }
 0x5cb   :  { %v3392_v2 = vmul.f32 %v10621_v49, %v8500_v16  ;;  %v3404_v35 = vmul.f32 %v8402_v18, %v8500_v16  ;;  %v3304_v8 = vadd.f32 %v3300_v31, %v3240_v7  ;;  %v3355_v38 = vadd.f32 %v3351_v5, %v3291_v10  ;;  %v10623_v7 = vld [vmem:[#allocation41_spill] sm:$0xff] }
 0x5cc   :  { %10619 = vst [vmem:[#allocation139_spill] sm:$0xff] %v8652_v36  ;;  %10620 = vst [vmem:[#allocation90_spill] sm:$0xff] %v8656_v46  ;;  %v8664_v11 = vadd.f32 %v3417_v48, %v3357_v24  ;;  %v8666_v36 = vadd.f32 %v3418_v29, %v3358_v28  ;;  %v3332_v22 = vadd.f32 %v3328_v32, %v3268_v52  ;;  %vm10622_vm0 = vcmp.lt.s32.totalorder %v5302_v23, 113 }
 0x5cd   :  { %3823 = vrot.lane.b32.xlu1 %v7335_v56, %s4664_s11  ;;  %v3344_v53 = vadd.f32 %v3340_v13, %v3280_v44  ;;  %v3367_v46 = vadd.f32 %v3363_v41, %v3303_v21  ;;  %v3445_v42 = vsel %vm10622_vm0, %v8644_v17, %v3438_v40  ;;  %v8673_v50 = vpop.permute.xlu1 %3439  ;;  %v3368_v16 = vadd.f32 %v3364_v9, %v3304_v8  ;;  %vm10624_vm1 = vmmov %vm10622_vm0  ;;  %v10625_v44 = vld [vmem:[#allocation178_spill] sm:$0xff] }
 0x5ce   :  { %v3419_v47 = vadd.f32 %v3415_v27, %v3355_v38  ;;  %v8676_v10 = vmul.f32 %v3445_v42, %v10623_v7  ;;  %v3444_v31 = vsel %vm10624_vm1, %v3438_v40, %v8673_v50  ;;  %v3396_v24 = vadd.f32 %v3392_v2, %v3332_v22  ;;  %vm10633_vm2 = vmmov %vm10622_vm0 }
 0x5cf   :  { %v3431_v5 = vadd.f32 %v3427_v25, %v3367_v46  ;;  %v3408_v52 = vadd.f32 %v3404_v35, %v3344_v53  ;;  %v3448_v32 = vmul.f32 %v3444_v31, %v10625_v44  ;;  %v3432_v41 = vadd.f32 %v8519_v33, %v3368_v16  ;;  %v8724_v53 = vpop.permute.xlu0 %3552  ;;  %vm10634_vm3 = vmmov %vm10622_vm0 }
 0x5d0   :  { %v8685_v13 = vmul.f32 %v8418_v26, %v8676_v10  ;;  %v3479_v38 = vmul.f32 %v8446_v59, %v8676_v10  ;;  %v3491_v9 = vmul.f32 %v8542_v3, %v8676_v10  ;;  %v3301_v48 = vmul.f32 %v10611_v12, %v8531_v1 }
 0x5d1   :  { %3964 = vperm.xlu1 %4551, %v8053_v6   ;;  %v3456_v40 = vmul.f32 %v8429_v19, %v3448_v32  ;;  %v3468_v35 = vmul.f32 %v8418_v26, %v3448_v32  ;;  %v3480_v28 = vmul.f32 %v8446_v59, %v3448_v32  ;;  %v3492_v33 = vmul.f32 %v8542_v3, %v3448_v32  ;;  %v8696_v27 = vpop.permute.xlu1 %3580 }
 0x5d2   :  { %v3302_v29 = vmul.f32 %v10611_v12, %v8497_v15  ;;  %v8702_v46 = vadd.f32 %v3479_v38, %v3419_v47  ;;  %v8704_v21 = vadd.f32 %v3491_v9, %v3431_v5  ;;  %v3327_v22 = vmul.f32 %v8348_v61, %v8595_v20  ;;  %v10630_v38 = vld [vmem:[#allocation83_spill] sm:$0xff] }
 0x5d3   :  { %v8706_v6 = vadd.f32 %v3456_v40, %v3396_v24  ;;  %v8708_v25 = vadd.f32 %v3468_v35, %v3408_v52  ;;  %v8711_v2 = vadd.f32 %v3480_v28, %v8533_v34  ;;  %v8713_v8 = vadd.f32 %v3492_v33, %v3432_v41  ;;  %v10627_v34 = vld [vmem:[#allocation174_spill] sm:$0xff] }
 0x5d4   :  { %v3329_v1 = vmul.f32 %v8348_v61, %v8589_v55  ;;  %v3281_v47 = vadd.f32 %v8571_v54, %v8525_v14  ;;  %v3279_v15 = vadd.f32 %v8558_v0, %v8523_v39  ;;  %v10626_v12 = vmov 97   ;;  %v4569_v39 = vld [vmem:[%s9263_s5] sm:$0xf]  ;;  %v10628_v14 = vld [vmem:[#allocation63_spill] sm:$0xff] }
 0x5d5   :  { %4552 = vset.pattern.permute.xlu1 %v10626_v12  ;;  %v3267_v42 = vadd.f32 %v8574_v63, %v10627_v34  ;;  %v3330_v16 = vmul.f32 %v8348_v61, %v8592_v58  ;;  %v3365_v7 = vmul.f32 %v8373_v37, %v8589_v55  ;;  %v3366_v31 = vmul.f32 %v8373_v37, %v8592_v58  ;;  %v10631_v40 = vld [vmem:[#allocation138_spill] sm:$0xff] }
 0x5d6   :  { %3976 = vperm.xlu1 %4552, %v4569_v39   ;;  %v3269_v0 = vadd.f32 %v8582_v51, %v10628_v14  ;;  %v3339_v54 = vmul.f32 %v10618_v30, %v8595_v20  ;;  %v3341_v61 = vmul.f32 %v10618_v30, %v8589_v55  ;;  %v3342_v63 = vmul.f32 %v10618_v30, %v8592_v58  ;;  %v8745_v5 = vpop.permute.xlu1 %3592  ;;  %v10636_v12 = vld [vmem:[#allocation182_spill] sm:$0xff] }
 0x5d7   :  { %v3270_v37 = vadd.f32 %v8586_v62, %v8513_v45  ;;  %v3305_v24 = vadd.f32 %v3301_v48, %v8537_v57  ;;  %v3306_v52 = vadd.f32 %v3302_v29, %v8539_v60  ;;  %v3393_v51 = vmul.f32 %v10621_v49, %v8625_v4  ;;  %v10629_v57 = vld [vmem:[#allocation15_spill] sm:$0xff] }
 0x5d8   :  { %v3333_v44 = vadd.f32 %v3329_v1, %v3269_v0  ;;  %v3331_v20 = vadd.f32 %v3327_v22, %v3267_v42  ;;  %v3394_v55 = vmul.f32 %v10621_v49, %v8628_v43  ;;  %v3405_v58 = vmul.f32 %v8402_v18, %v8625_v4  ;;  %v8765_v4 = vpop.permute.xlu0 %3604 }
 0x5d9   :  { %v3334_v30 = vadd.f32 %v3330_v16, %v3270_v37  ;;  %v3369_v32 = vadd.f32 %v3365_v7, %v3305_v24  ;;  %v3370_v41 = vadd.f32 %v3366_v31, %v3306_v52  ;;  %v3406_v45 = vmul.f32 %v8402_v18, %v8628_v43  ;;  %v10637_v16 = vld [vmem:[#allocation139_spill] sm:$0xff]  ;;  %v10638_v31 = vld [vmem:[#allocation90_spill] sm:$0xff] }
 0x5da   :  { %3825 = vrot.lane.b32.xlu1 %v10629_v57, %s4664_s11  ;;  %v3343_v60 = vadd.f32 %v3339_v54, %v3279_v15  ;;  %v3345_v62 = vadd.f32 %v3341_v61, %v3281_v47  ;;  %v3346_v9 = vadd.f32 %v3342_v63, %v10630_v38  ;;  %v3403_v35 = vmul.f32 %v8402_v18, %v10631_v40  ;;  %v3442_v28 = vpop.permute.xlu1 %3441  ;;  %v10635_v18 = vld [vmem:[#allocation180_spill] sm:$0xff] }
 0x5db   :  { %v10632_v33 = vmov 0   ;;  %v3391_v48 = vmul.f32 %v10621_v49, %v10631_v40  ;;  %v3397_v29 = vadd.f32 %v3393_v51, %v3333_v44  ;;  %v3443_v43 = vsel %vm10633_vm2, %v8673_v50, %v3442_v28  ;;  %v10639_v50 = vld [vmem:[#allocation168_spill] sm:$0xff] }
 0x5dc   :  { %4556 = vset.pattern.permute.xlu1 %v10632_v33  ;;  %v3446_v22 = vsel %vm10634_vm3, %v3442_v28, %v8644_v17  ;;  %v3398_v1 = vadd.f32 %v3394_v55, %v3334_v30  ;;  %v3409_v47 = vadd.f32 %v3405_v58, %v3345_v62  ;;  %v3449_v15 = vmul.f32 %v3443_v43, %v10635_v18  ;;  %v3502_v58 = vpop.permute.xlu0 %3501  ;;  %v10641_v62 = vld [vmem:[#allocation43_spill] sm:$0xff]  ;;  %v10644_v33 = vld [vmem:[#allocation177_spill] sm:$0xff] }
 0x5dd   :  { %v3450_v34 = vmul.f32 %v3446_v22, %v10636_v12  ;;  %v3410_v42 = vadd.f32 %v3406_v45, %v3346_v9  ;;  %v3433_v7 = vadd.f32 %v10637_v16, %v3369_v32  ;;  %v3434_v49 = vadd.f32 %v10638_v31, %v3370_v41  ;;  %v10645_v43 = vld [vmem:[#allocation77_spill] sm:$0xff] }
 0x5de   :  { %v3455_v39 = vmul.f32 %v8429_v19, %v8676_v10  ;;  %3883 = vrot.lane.b32.xlu1 %v10639_v50, %s4668_s23  ;;  %v3457_v14 = vmul.f32 %v8429_v19, %v3449_v15  ;;  %v3469_v0 = vmul.f32 %v8418_v26, %v3449_v15  ;;  %v3500_v61 = vpop.permute.xlu1 %3499  ;;  %v3481_v63 = vmul.f32 %v8446_v59, %v3449_v15 }
 0x5df   :  { %v3458_v17 = vmul.f32 %v8429_v19, %v3450_v34  ;;  %v3470_v54 = vmul.f32 %v8418_v26, %v3450_v34  ;;  %v3482_v37 = vmul.f32 %v8446_v59, %v3450_v34  ;;  %v3493_v24 = vmul.f32 %v8542_v3, %v3449_v15 }
 0x5e0   :  { %v3494_v10 = vmul.f32 %v8542_v3, %v3450_v34  ;;  %v3461_v52 = vadd.f32 %v3457_v14, %v3397_v29  ;;  %v3473_v44 = vadd.f32 %v3469_v0, %v3409_v47  ;;  %v3485_v19 = vadd.f32 %v3481_v63, %v8664_v11  ;;  %v10650_v14 = vld [vmem:[#allocation185_spill] sm:$0xff] }
 0x5e1   :  { %v3462_v51 = vadd.f32 %v3458_v17, %v3398_v1  ;;  %v3474_v55 = vadd.f32 %v3470_v54, %v3410_v42  ;;  %v3486_v30 = vadd.f32 %v3482_v37, %v8666_v36  ;;  %v3497_v32 = vadd.f32 %v3493_v24, %v3433_v7  ;;  %v10643_v36 = vld [vmem:[#allocation48_spill] sm:$0xff] }
 0x5e2   :  { %v3498_v26 = vadd.f32 %v3494_v10, %v3434_v49  ;;  %3887 = vrot.lane.b32.xlu1 %v7335_v56, %s4668_s23  ;;  %v3407_v41 = vadd.f32 %v3403_v35, %v3343_v60  ;;  %v3395_v59 = vadd.f32 %v3391_v48, %v3331_v20  ;;  %vm10640_vm4 = vcmp.lt.s32.totalorder %v5302_v23, 112  ;;  %v3504_v3 = vpop.permute.xlu1 %3503  ;;  %v10646_v60 = vld [vmem:[#allocation87_spill] sm:$0xff]  ;;  %v8822_v49 = vpop.permute.xlu0 %3616 }
 0x5e3   :  { %v3509_v45 = vsel %vm10640_vm4, %v3500_v61, %v3502_v58  ;;  %vm10642_vm5 = vmmov %vm10640_vm4  ;;  %vm10651_vm8 = vcmp.lt.s32.totalorder %v5302_v23, 111  ;;  %vm10659_vm0 = vcmp.lt.s32.totalorder %v5302_v23, 110 }
 0x5e4   :  { %v3511_v38 = vmul.f32 %v3509_v45, %v10641_v62  ;;  %v3508_v9 = vsel %vm10642_vm5, %v3502_v58, %v3504_v3  ;;  %v3459_v40 = vadd.f32 %v3455_v39, %v3395_v59  ;;  %v3471_v11 = vadd.f32 %v8685_v13, %v3407_v41  ;;  %vm10647_vm6 = vmmov %vm10640_vm4 }
 0x5e5   :  { %v3512_v28 = vmul.f32 %v3508_v9, %v10643_v36  ;;  %vm10648_vm7 = vmmov %vm10640_vm4  ;;  %vm10667_vm4 = vcmp.lt.s32.totalorder %v5302_v23, 98 }
 0x5e6   :  { %v3519_v29 = vmul.f32 %v10644_v33, %v3511_v38  ;;  %v3531_v22 = vmul.f32 %v10645_v43, %v3511_v38  ;;  %v3543_v20 = vmul.f32 %v10646_v60, %v3511_v38  ;;  %v3555_v35 = vmul.f32 %v8724_v53, %v3511_v38  ;;  %3889 = vrot.lane.b32.xlu1 %v10629_v57, %s4668_s23  ;;  %v8812_v18 = vpop.permute.xlu1 %3644  ;;  %vm10653_vm9 = vmmov %vm10651_vm8 }
 0x5e7   :  { %v3520_v48 = vmul.f32 %v10644_v33, %v3512_v28  ;;  %v3532_v1 = vmul.f32 %v10645_v43, %v3512_v28  ;;  %v3544_v47 = vmul.f32 %v10646_v60, %v3512_v28  ;;  %v3556_v13 = vmul.f32 %v8724_v53, %v3512_v28  ;;  %v10652_v28 = vld [vmem:[#allocation98_spill] sm:$0xff]  ;;  %vm10655_vm10 = vmmov %vm10651_vm8 }
 0x5e8   :  { %v3523_v15 = vadd.f32 %v3519_v29, %v3459_v40  ;;  %v3535_v12 = vadd.f32 %v3531_v22, %v3471_v11  ;;  %v3547_v34 = vadd.f32 %v3543_v20, %v8702_v46  ;;  %v3559_v42 = vadd.f32 %v3555_v35, %v8704_v21  ;;  %v8828_v21 = vpop.permute.xlu0 %3668  ;;  %vm10656_vm11 = vmmov %vm10651_vm8 }
 0x5e9   :  { %v3524_v16 = vadd.f32 %v3520_v48, %v8706_v6  ;;  %v3536_v57 = vadd.f32 %v3532_v1, %v8708_v25  ;;  %v3548_v7 = vadd.f32 %v3544_v47, %v8711_v2  ;;  %v3560_v31 = vadd.f32 %v3556_v13, %v8713_v8  ;;  %v10649_v2 = vld [vmem:[#allocation114_spill] sm:$0xff]  ;;  %vm10661_vm1 = vmmov %vm10659_vm0 }
 0x5ea   :  { %3947 = vrot.lane.b32.xlu1 %v10639_v50, %s4673_s24  ;;  %vm10663_vm2 = vmmov %vm10659_vm0 }
 0x5eb   :  { %v8824_v39 = vpop.permute.xlu1 %3656  ;;  %vm10664_vm3 = vmmov %vm10659_vm0 }
 0x5ec   :  { %vm10669_vm5 = vmmov %vm10667_vm4 }
 0x5ee   :  { %3951 = vrot.lane.b32.xlu1 %v7335_v56, %s4673_s24 }
 0x5ef   :  { %v3506_v46 = vpop.permute.xlu1 %3505 }
 0x5f0   :  { %v3507_v6 = vsel %vm10647_vm6, %v3504_v3, %v3506_v46  ;;  %v3510_v25 = vsel %vm10648_vm7, %v3506_v46, %v3500_v61  ;;  %v3566_v3 = vpop.permute.xlu0 %3565  ;;  %vm10671_vm6 = vmmov %vm10667_vm4 }
 0x5f1   :  { %v3513_v8 = vmul.f32 %v3507_v6, %v10649_v2  ;;  %v3514_v50 = vmul.f32 %v3510_v25, %v10650_v14  ;;  %vm10672_vm7 = vmmov %vm10667_vm4 }
 0x5f3   :  { %v3521_v17 = vmul.f32 %v10644_v33, %v3513_v8  ;;  %v3522_v0 = vmul.f32 %v10644_v33, %v3514_v50  ;;  %v3533_v54 = vmul.f32 %v10645_v43, %v3513_v8  ;;  %v3534_v56 = vmul.f32 %v10645_v43, %v3514_v50  ;;  %v3564_v63 = vpop.permute.xlu1 %3563  ;;  %v10654_v43 = vld [vmem:[#allocation186_spill] sm:$0xff] }
 0x5f4   :  { %v3545_v37 = vmul.f32 %v10646_v60, %v3513_v8  ;;  %v3546_v24 = vmul.f32 %v10646_v60, %v3514_v50  ;;  %v3557_v10 = vmul.f32 %v8724_v53, %v3513_v8  ;;  %v3558_v61 = vmul.f32 %v8724_v53, %v3514_v50  ;;  %v8860_v6 = vpop.permute.xlu0 %3680 }
 0x5f5   :  { %v3525_v58 = vadd.f32 %v3521_v17, %v3461_v52  ;;  %v3526_v41 = vadd.f32 %v3522_v0, %v3462_v51  ;;  %v3537_v59 = vadd.f32 %v3533_v54, %v3473_v44  ;;  %v3538_v45 = vadd.f32 %v3534_v56, %v3474_v55 }
 0x5f6   :  { %v3549_v62 = vadd.f32 %v3545_v37, %v3485_v19  ;;  %v3550_v38 = vadd.f32 %v3546_v24, %v3486_v30  ;;  %v3561_v9 = vadd.f32 %v3557_v10, %v3497_v32  ;;  %v3562_v40 = vadd.f32 %v3558_v61, %v3498_v26 }
 0x5f7   :  { %v3573_v11 = vsel %vm10651_vm8, %v3564_v63, %v3566_v3  ;;  %v3568_v36 = vpop.permute.xlu1 %3567  ;;  %vm10675_vm8 = vcmp.lt.s32.totalorder %v5302_v23, 97 }
 0x5f8   :  { %v3575_v33 = vmul.f32 %v3573_v11, %v10652_v28  ;;  %v3572_v29 = vsel %vm10653_vm9, %v3566_v3, %v3568_v36  ;;  %v8864_v8 = vpop.permute.xlu0 %3732  ;;  %vm10677_vm9 = vmmov %vm10675_vm8 }
 0x5f9   :  { %v3576_v53 = vmul.f32 %v3572_v29, %v10654_v43  ;;  %v10660_v29 = vld [vmem:[#allocation143_spill] sm:$0xff] }
 0x5fa   :  { %v3583_v52 = vmul.f32 %v8696_v27, %v3575_v33  ;;  %v3595_v51 = vmul.f32 %v8745_v5, %v3575_v33  ;;  %v3607_v44 = vmul.f32 %v8765_v4, %v3575_v33  ;;  %v3619_v55 = vmul.f32 %v8822_v49, %v3575_v33 }
 0x5fb   :  { %v3584_v19 = vmul.f32 %v8696_v27, %v3576_v53  ;;  %v3596_v30 = vmul.f32 %v8745_v5, %v3576_v53  ;;  %v3608_v32 = vmul.f32 %v8765_v4, %v3576_v53  ;;  %v3620_v26 = vmul.f32 %v8822_v49, %v3576_v53  ;;  %v8858_v22 = vpop.permute.xlu1 %3708  ;;  %v10662_v53 = vld [vmem:[#allocation54_spill] sm:$0xff] }
 0x5fc   :  { %v3587_v60 = vadd.f32 %v3583_v52, %v3523_v15  ;;  %v3599_v20 = vadd.f32 %v3595_v51, %v3535_v12  ;;  %v3611_v35 = vadd.f32 %v3607_v44, %v3547_v34  ;;  %v3623_v48 = vadd.f32 %v3619_v55, %v3559_v42  ;;  %v10657_v12 = vld [vmem:[#allocation112_spill] sm:$0xff]  ;;  %v10658_v42 = vld [vmem:[#allocation125_spill] sm:$0xff]  ;;  %v3630_v3 = vpop.permute.xlu0 %3629 }
 0x5fd   :  { %v3588_v1 = vadd.f32 %v3584_v19, %v3524_v16  ;;  %v3600_v47 = vadd.f32 %v3596_v30, %v3536_v57  ;;  %v3612_v13 = vadd.f32 %v3608_v32, %v3548_v7  ;;  %v3624_v46 = vadd.f32 %v3620_v26, %v3560_v31 }
 0x600   :  { %v8862_v25 = vpop.permute.xlu1 %3720 }
 0x604   :  { %v3570_v2 = vpop.permute.xlu1 %3569 }
 0x605   :  { %v3571_v14 = vsel %vm10655_vm10, %v3568_v36, %v3570_v2  ;;  %v3574_v15 = vsel %vm10656_vm11, %v3570_v2, %v3564_v63  ;;  %vm10679_vm10 = vmmov %vm10675_vm8 }
 0x606   :  { %v3577_v34 = vmul.f32 %v3571_v14, %v10657_v12  ;;  %v3578_v16 = vmul.f32 %v3574_v15, %v10658_v42  ;;  %v8896_v14 = vpop.permute.xlu0 %3744  ;;  %vm10680_vm11 = vmmov %vm10675_vm8 }
 0x608   :  { %v3585_v57 = vmul.f32 %v8696_v27, %v3577_v34  ;;  %v3586_v7 = vmul.f32 %v8696_v27, %v3578_v16  ;;  %v3597_v31 = vmul.f32 %v8745_v5, %v3577_v34  ;;  %v3598_v50 = vmul.f32 %v8745_v5, %v3578_v16  ;;  %v3628_v17 = vpop.permute.xlu1 %3627 }
 0x609   :  { %v3609_v0 = vmul.f32 %v8765_v4, %v3577_v34  ;;  %v3610_v54 = vmul.f32 %v8765_v4, %v3578_v16  ;;  %v3621_v56 = vmul.f32 %v8822_v49, %v3577_v34  ;;  %v3622_v63 = vmul.f32 %v8822_v49, %v3578_v16 }
 0x60a   :  { %v3589_v37 = vadd.f32 %v3585_v57, %v3525_v58  ;;  %v3590_v24 = vadd.f32 %v3586_v7, %v3526_v41  ;;  %v3601_v10 = vadd.f32 %v3597_v31, %v3537_v59  ;;  %v3602_v61 = vadd.f32 %v3598_v50, %v3538_v45  ;;  %v8900_v34 = vpop.permute.xlu0 %3796 }
 0x60b   :  { %v3613_v11 = vadd.f32 %v3609_v0, %v3549_v62  ;;  %v3614_v27 = vadd.f32 %v3610_v54, %v3550_v38  ;;  %v3625_v36 = vadd.f32 %v3621_v56, %v3561_v9  ;;  %v3626_v28 = vadd.f32 %v3622_v63, %v3562_v40 }
 0x60c   :  { %v3637_v5 = vsel %vm10659_vm0, %v3628_v17, %v3630_v3  ;;  %v3632_v33 = vpop.permute.xlu1 %3631  ;;  %vm10683_vm0 = vcmp.lt.s32.totalorder %v5302_v23, 96 }
 0x60d   :  { %v3639_v43 = vmul.f32 %v3637_v5, %v10660_v29  ;;  %v3636_v4 = vsel %vm10661_vm1, %v3630_v3, %v3632_v33  ;;  %vm10685_vm1 = vmmov %vm10683_vm0 }
 0x60e   :  { %v3640_v49 = vmul.f32 %v3636_v4, %v10662_v53  ;;  %v3694_v3 = vpop.permute.xlu0 %3693  ;;  %v10668_v4 = vld [vmem:[#allocation136_spill] sm:$0xff] }
 0x60f   :  { %v3647_v58 = vmul.f32 %v8812_v18, %v3639_v43  ;;  %v3659_v41 = vmul.f32 %v8824_v39, %v3639_v43  ;;  %v3671_v59 = vmul.f32 %v8828_v21, %v3639_v43  ;;  %v3683_v45 = vmul.f32 %v8860_v6, %v3639_v43 }
 0x610   :  { %v3648_v62 = vmul.f32 %v8812_v18, %v3640_v49  ;;  %v3660_v38 = vmul.f32 %v8824_v39, %v3640_v49  ;;  %v3672_v9 = vmul.f32 %v8828_v21, %v3640_v49  ;;  %v3684_v40 = vmul.f32 %v8860_v6, %v3640_v49  ;;  %v8894_v52 = vpop.permute.xlu1 %3772  ;;  %v10670_v49 = vld [vmem:[#allocation132_spill] sm:$0xff] }
 0x611   :  { %v3651_v51 = vadd.f32 %v3647_v58, %v3587_v60  ;;  %v3663_v44 = vadd.f32 %v3659_v41, %v3599_v20  ;;  %v3675_v55 = vadd.f32 %v3671_v59, %v3611_v35  ;;  %v3687_v19 = vadd.f32 %v3683_v45, %v3623_v48  ;;  %v10665_v20 = vld [vmem:[#allocation116_spill] sm:$0xff]  ;;  %v10666_v48 = vld [vmem:[#allocation134_spill] sm:$0xff] }
 0x612   :  { %v3652_v30 = vadd.f32 %v3648_v62, %v3588_v1  ;;  %v3664_v32 = vadd.f32 %v3660_v38, %v3600_v47  ;;  %v3676_v26 = vadd.f32 %v3672_v9, %v3612_v13  ;;  %v3688_v2 = vadd.f32 %v3684_v40, %v3624_v46  ;;  %v8932_v41 = vpop.permute.xlu0 %3808 }
 0x615   :  { %v8898_v15 = vpop.permute.xlu1 %3784 }
 0x619   :  { %v3634_v12 = vpop.permute.xlu1 %3633 }
 0x61a   :  { %v3635_v42 = vsel %vm10663_vm2, %v3632_v33, %v3634_v12  ;;  %v3638_v60 = vsel %vm10664_vm3, %v3634_v12, %v3628_v17  ;;  %vm10687_vm2 = vmmov %vm10683_vm0 }
 0x61b   :  { %v3641_v35 = vmul.f32 %v3635_v42, %v10665_v20  ;;  %v3642_v1 = vmul.f32 %v3638_v60, %v10666_v48  ;;  %v8944_v20 = vpop.permute.xlu0 %3860  ;;  %vm10688_vm3 = vmmov %vm10683_vm0 }
 0x61d   :  { %v3649_v47 = vmul.f32 %v8812_v18, %v3641_v35  ;;  %v3650_v13 = vmul.f32 %v8812_v18, %v3642_v1  ;;  %v3661_v46 = vmul.f32 %v8824_v39, %v3641_v35  ;;  %v3662_v16 = vmul.f32 %v8824_v39, %v3642_v1  ;;  %v3692_v57 = vpop.permute.xlu1 %3691 }
 0x61e   :  { %v3673_v7 = vmul.f32 %v8828_v21, %v3641_v35  ;;  %v3674_v31 = vmul.f32 %v8828_v21, %v3642_v1  ;;  %v3685_v50 = vmul.f32 %v8860_v6, %v3641_v35  ;;  %v3686_v17 = vmul.f32 %v8860_v6, %v3642_v1 }
 0x61f   :  { %v3653_v0 = vadd.f32 %v3649_v47, %v3589_v37  ;;  %v3654_v54 = vadd.f32 %v3650_v13, %v3590_v24  ;;  %v3665_v56 = vadd.f32 %v3661_v46, %v3601_v10  ;;  %v3666_v63 = vadd.f32 %v3662_v16, %v3602_v61 }
 0x620   :  { %v3677_v5 = vadd.f32 %v3673_v7, %v3613_v11  ;;  %v3678_v18 = vadd.f32 %v3674_v31, %v3614_v27  ;;  %v3689_v33 = vadd.f32 %v3685_v50, %v3625_v36  ;;  %v3690_v29 = vadd.f32 %v3686_v17, %v3626_v28 }
 0x621   :  { %v3701_v39 = vsel %vm10667_vm4, %v3692_v57, %v3694_v3  ;;  %v3696_v43 = vpop.permute.xlu1 %3695  ;;  %vm10691_vm4 = vcmp.lt.s32.totalorder %v5302_v23, 95 }
 0x622   :  { %v3703_v53 = vmul.f32 %v3701_v39, %v10668_v4  ;;  %v3700_v21 = vsel %vm10669_vm5, %v3694_v3, %v3696_v43  ;;  %vm10693_vm5 = vmmov %vm10691_vm4 }
 0x623   :  { %v3704_v6 = vmul.f32 %v3700_v21, %v10670_v49 }
 0x624   :  { %v3711_v37 = vmul.f32 %v8858_v22, %v3703_v53  ;;  %v3723_v24 = vmul.f32 %v8862_v25, %v3703_v53  ;;  %v3735_v10 = vmul.f32 %v8864_v8, %v3703_v53  ;;  %v3747_v61 = vmul.f32 %v8896_v14, %v3703_v53  ;;  %v10676_v53 = vld [vmem:[#allocation152_spill] sm:$0xff] }
 0x625   :  { %v3712_v11 = vmul.f32 %v8858_v22, %v3704_v6  ;;  %v3724_v27 = vmul.f32 %v8862_v25, %v3704_v6  ;;  %v3736_v36 = vmul.f32 %v8864_v8, %v3704_v6  ;;  %v3748_v28 = vmul.f32 %v8896_v14, %v3704_v6  ;;  %v8930_v58 = vpop.permute.xlu1 %3836 }
 0x626   :  { %v3715_v59 = vadd.f32 %v3711_v37, %v3651_v51  ;;  %v3727_v45 = vadd.f32 %v3723_v24, %v3663_v44  ;;  %v8934_v62 = vadd.f32 %v3735_v10, %v3675_v55  ;;  %v8936_v38 = vadd.f32 %v3747_v61, %v3687_v19  ;;  %v10673_v44 = vld [vmem:[#allocation56_spill] sm:$0xff]  ;;  %v10674_v19 = vld [vmem:[#allocation145_spill] sm:$0xff] }
 0x627   :  { %v3716_v9 = vadd.f32 %v3712_v11, %v3652_v30  ;;  %v3728_v40 = vadd.f32 %v3724_v27, %v3664_v32  ;;  %v8938_v12 = vadd.f32 %v3736_v36, %v3676_v26  ;;  %v8940_v42 = vadd.f32 %v3748_v28, %v3688_v2  ;;  %v3758_v32 = vpop.permute.xlu0 %3757 }
 0x62a   :  { %v8942_v60 = vpop.permute.xlu1 %3848 }
 0x62e   :  { %v3698_v35 = vpop.permute.xlu1 %3697 }
 0x62f   :  { %v3699_v48 = vsel %vm10671_vm6, %v3696_v43, %v3698_v35  ;;  %v3702_v51 = vsel %vm10672_vm7, %v3698_v35, %v3692_v57  ;;  %v10681_v35 = vld [vmem:[#allocation60_spill] sm:$0xff]  ;;  %vm10695_vm6 = vmmov %vm10691_vm4 }
 0x630   :  { %v3705_v55 = vmul.f32 %v3699_v48, %v10673_v44  ;;  %v3706_v30 = vmul.f32 %v3702_v51, %v10674_v19  ;;  %vm10696_vm7 = vmmov %vm10691_vm4 }
 0x632   :  { %v3713_v26 = vmul.f32 %v8858_v22, %v3705_v55  ;;  %v3714_v2 = vmul.f32 %v8858_v22, %v3706_v30  ;;  %v3725_v1 = vmul.f32 %v8862_v25, %v3705_v55  ;;  %v3726_v47 = vmul.f32 %v8862_v25, %v3706_v30  ;;  %v3756_v13 = vpop.permute.xlu1 %3755 }
 0x633   :  { %v3737_v46 = vmul.f32 %v8864_v8, %v3705_v55  ;;  %v3738_v16 = vmul.f32 %v8864_v8, %v3706_v30  ;;  %v3749_v57 = vmul.f32 %v8896_v14, %v3705_v55  ;;  %v3750_v7 = vmul.f32 %v8896_v14, %v3706_v30 }
 0x634   :  { %v3717_v31 = vadd.f32 %v3713_v26, %v3653_v0  ;;  %v3718_v50 = vadd.f32 %v3714_v2, %v3654_v54  ;;  %v3729_v17 = vadd.f32 %v3725_v1, %v3665_v56  ;;  %v3730_v3 = vadd.f32 %v3726_v47, %v3666_v63  ;;  %v8973_v0 = vpop.permute.xlu0 %3872  ;;  %v10678_v54 = vld [vmem:[#allocation157_spill] sm:$0xff] }
 0x635   :  { %v8960_v39 = vadd.f32 %v3737_v46, %v3677_v5  ;;  %v8962_v22 = vadd.f32 %v3738_v16, %v3678_v18  ;;  %v8964_v43 = vadd.f32 %v3749_v57, %v3689_v33  ;;  %v8966_v25 = vadd.f32 %v3750_v7, %v3690_v29  ;;  %v10686_v16 = vld [vmem:[#allocation24_spill] sm:$0xff] }
 0x636   :  { %v3765_v4 = vsel %vm10675_vm8, %v3756_v13, %v3758_v32  ;;  %v3760_v8 = vpop.permute.xlu1 %3759  ;;  %vm10699_vm8 = vcmp.lt.s32.totalorder %v5302_v23, 94 }
 0x637   :  { %v3767_v21 = vmul.f32 %v3765_v4, %v10676_v53  ;;  %v3764_v14 = vsel %vm10677_vm9, %v3758_v32, %v3760_v8  ;;  %vm10700_vm9 = vmmov %vm10699_vm8 }
 0x638   :  { %v3768_v56 = vmul.f32 %v3764_v14, %v10678_v54  ;;  %v8986_v10 = vpop.permute.xlu0 %3924 }
 0x639   :  { %v3775_v63 = vmul.f32 %v8894_v52, %v3767_v21  ;;  %v3787_v5 = vmul.f32 %v8898_v15, %v3767_v21  ;;  %v3799_v53 = vmul.f32 %v8900_v34, %v3767_v21  ;;  %v3811_v14 = vmul.f32 %v8932_v41, %v3767_v21  ;;  %v10689_v21 = vld [vmem:[#allocation6_spill] sm:$0xff] }
 0x63a   :  { %v3776_v18 = vmul.f32 %v8894_v52, %v3768_v56  ;;  %v3788_v33 = vmul.f32 %v8898_v15, %v3768_v56  ;;  %v8980_v29 = vpop.permute.xlu1 %3900  ;;  %v3800_v54 = vmul.f32 %v8900_v34, %v3768_v56 }
 0x63b   :  { %v3779_v49 = vadd.f32 %v3775_v63, %v3715_v59  ;;  %v8982_v6 = vadd.f32 %v3787_v5, %v3727_v45  ;;  %v10682_v59 = vld [vmem:[#allocation26_spill] sm:$0xff]  ;;  %v3812_v63 = vmul.f32 %v8932_v41, %v3768_v56 }
 0x63c   :  { %v3780_v37 = vadd.f32 %v3776_v18, %v3716_v9  ;;  %v8984_v24 = vadd.f32 %v3788_v33, %v3728_v40  ;;  %v3822_v27 = vpop.permute.xlu0 %3821  ;;  %v3804_v56 = vadd.f32 %v3800_v54, %v8938_v12 }
 0x640   :  { %v8988_v61 = vpop.permute.xlu1 %3912  ;;  %v9000_v2 = vpop.permute.xlu0 %3936 }
 0x644   :  { %v3762_v11 = vpop.permute.xlu1 %3761 }
 0x645   :  { %v3763_v36 = vsel %vm10679_vm10, %v3760_v8, %v3762_v11  ;;  %v3766_v28 = vsel %vm10680_vm11, %v3762_v11, %v3756_v13  ;;  %v10684_v13 = vld [vmem:[#allocation58_spill] sm:$0xff]  ;;  %v3803_v11 = vadd.f32 %v3799_v53, %v8934_v62  ;;  %vm10703_vm10 = vmmov %vm10699_vm8 }
 0x646   :  { %v3769_v48 = vmul.f32 %v3763_v36, %v10681_v35  ;;  %v3770_v45 = vmul.f32 %v3766_v28, %v10682_v59  ;;  %v10690_v28 = vld [vmem:[#allocation160_spill] sm:$0xff]  ;;  %vm10704_vm11 = vmmov %vm10699_vm8 }
 0x648   :  { %v3777_v9 = vmul.f32 %v8894_v52, %v3769_v48  ;;  %v3778_v40 = vmul.f32 %v8894_v52, %v3770_v45  ;;  %v3789_v51 = vmul.f32 %v8898_v15, %v3769_v48  ;;  %v3790_v44 = vmul.f32 %v8898_v15, %v3770_v45  ;;  %v3820_v55 = vpop.permute.xlu1 %3819 }
 0x649   :  { %v3829_v1 = vsel %vm10683_vm0, %v3820_v55, %v3822_v27  ;;  %v3801_v18 = vmul.f32 %v8900_v34, %v3769_v48  ;;  %v3802_v33 = vmul.f32 %v8900_v34, %v3770_v45  ;;  %v3813_v59 = vmul.f32 %v8932_v41, %v3769_v48 }
 0x64a   :  { %v3781_v19 = vadd.f32 %v3777_v9, %v3717_v31  ;;  %v3782_v30 = vadd.f32 %v3778_v40, %v3718_v50  ;;  %v3793_v32 = vadd.f32 %v3789_v51, %v3729_v17  ;;  %v3794_v26 = vadd.f32 %v3790_v44, %v3730_v3  ;;  %v9012_v50 = vpop.permute.xlu0 %3988 }
 0x64b   :  { %v3831_v46 = vmul.f32 %v3829_v1, %v10684_v13  ;;  %v3814_v34 = vmul.f32 %v8932_v41, %v3770_v45  ;;  %v3816_v1 = vadd.f32 %v3812_v63, %v8940_v42  ;;  %v3805_v12 = vadd.f32 %v3801_v18, %v8960_v39 }
 0x64c   :  { %v3824_v47 = vpop.permute.xlu1 %3823  ;;  %v3806_v48 = vadd.f32 %v3802_v33, %v8962_v22 }
 0x64d   :  { %v3828_v52 = vsel %vm10685_vm1, %v3822_v27, %v3824_v47  ;;  %v3839_v15 = vmul.f32 %v8930_v58, %v3831_v46  ;;  %v3815_v27 = vadd.f32 %v3811_v14, %v8936_v38  ;;  %v3851_v9 = vmul.f32 %v8942_v60, %v3831_v46 }
 0x64e   :  { %v3832_v57 = vmul.f32 %v3828_v52, %v10686_v16  ;;  %v3886_v8 = vpop.permute.xlu0 %3885  ;;  %v3863_v41 = vmul.f32 %v8944_v20, %v3831_v46  ;;  %v3817_v52 = vadd.f32 %v3813_v59, %v8964_v43  ;;  %v3818_v16 = vadd.f32 %v3814_v34, %v8966_v25 }
 0x64f   :  { %v9014_v17 = vadd.f32 %v3839_v15, %v3779_v49  ;;  %v3875_v42 = vmul.f32 %v8973_v0, %v3831_v46  ;;  %v3855_v22 = vadd.f32 %v3851_v9, %v8982_v6 }
 0x650   :  { %v3840_v7 = vmul.f32 %v8930_v58, %v3832_v57  ;;  %v9010_v31 = vpop.permute.xlu1 %3964  ;;  %v3852_v39 = vmul.f32 %v8942_v60, %v3832_v57  ;;  %v3864_v15 = vmul.f32 %v8944_v20, %v3832_v57  ;;  %v3867_v53 = vadd.f32 %v3863_v41, %v3803_v11 }
 0x651   :  { %v3879_v63 = vadd.f32 %v3875_v42, %v3815_v27 }
 0x652   :  { %v9016_v3 = vadd.f32 %v3840_v7, %v3780_v37  ;;  %v9038_v40 = vpop.permute.xlu0 %4000  ;;  %v10692_v7 = vld [vmem:[#allocation20_spill] sm:$0xff]  ;;  %v3868_v33 = vadd.f32 %v3864_v15, %v3804_v56 }
 0x655   :  { %v9018_v4 = vpop.permute.xlu1 %3976 }
 0x659   :  { %v3826_v5 = vpop.permute.xlu1 %3825 }
 0x65a   :  { %v3827_v49 = vsel %vm10687_vm2, %v3824_v47, %v3826_v5  ;;  %v3830_v37 = vsel %vm10688_vm3, %v3826_v5, %v3820_v55  ;;  %v3856_v5 = vadd.f32 %v3852_v39, %v8984_v24 }
 0x65b   :  { %v3833_v36 = vmul.f32 %v3827_v49, %v10689_v21  ;;  %v3834_v35 = vmul.f32 %v3830_v37, %v10690_v28 }
 0x65d   :  { %v3841_v51 = vmul.f32 %v8930_v58, %v3833_v36  ;;  %v3842_v62 = vmul.f32 %v8930_v58, %v3834_v35  ;;  %v3853_v38 = vmul.f32 %v8942_v60, %v3833_v36  ;;  %v3854_v44 = vmul.f32 %v8942_v60, %v3834_v35  ;;  %v3884_v55 = vpop.permute.xlu1 %3883  ;;  %v3950_v60 = vpop.permute.xlu0 %3949 }
 0x65e   :  { %v3866_v43 = vmul.f32 %v8944_v20, %v3834_v35  ;;  %v3877_v6 = vmul.f32 %v8973_v0, %v3833_v36  ;;  %v3878_v14 = vmul.f32 %v8973_v0, %v3834_v35 }
 0x65f   :  { %v9048_v45 = vadd.f32 %v3841_v51, %v3781_v19  ;;  %v9050_v47 = vadd.f32 %v3842_v62, %v3782_v30  ;;  %v9052_v13 = vadd.f32 %v3853_v38, %v3793_v32  ;;  %v9054_v58 = vadd.f32 %v3854_v44, %v3794_v26 }
 0x660   :  { %v3876_v19 = vmul.f32 %v8973_v0, %v3832_v57  ;;  %v3893_v30 = vsel %vm10691_vm4, %v3884_v55, %v3886_v8  ;;  %v3865_v26 = vmul.f32 %v8944_v20, %v3833_v36  ;;  %v10694_v57 = vld [vmem:[#allocation28_spill] sm:$0xff]  ;;  %v3870_v36 = vadd.f32 %v3866_v43, %v3806_v48  ;;  %v10698_v48 = vld [vmem:[#allocation13_spill] sm:$0xff] }
 0x661   :  { %v3888_v32 = vpop.permute.xlu1 %3887  ;;  %v3895_v25 = vmul.f32 %v3893_v30, %v10692_v7  ;;  %v3881_v27 = vadd.f32 %v3877_v6, %v3817_v52  ;;  %v3882_v35 = vadd.f32 %v3878_v14, %v3818_v16  ;;  %v3954_v62 = vpop.permute.xlu0 %3953  ;;  %v10701_v14 = vld [vmem:[#allocation18_spill] sm:$0xff] }
 0x662   :  { %v3892_v46 = vsel %vm10693_vm5, %v3886_v8, %v3888_v32  ;;  %v3880_v49 = vadd.f32 %v3876_v19, %v3816_v1  ;;  %v3869_v21 = vadd.f32 %v3865_v26, %v3805_v12  ;;  %v10697_v1 = vld [vmem:[#allocation32_spill] sm:$0xff] }
 0x663   :  { %v3896_v54 = vmul.f32 %v3892_v46, %v10694_v57  ;;  %v3903_v18 = vmul.f32 %v8980_v29, %v3895_v25  ;;  %v3915_v20 = vmul.f32 %v8988_v61, %v3895_v25  ;;  %v3927_v37 = vmul.f32 %v8986_v10, %v3895_v25  ;;  %v10702_v57 = vld [vmem:[#allocation64_spill] sm:$0xff] }
 0x664   :  { %v3939_v8 = vmul.f32 %v9000_v2, %v3895_v25 }
 0x665   :  { %v3890_v11 = vpop.permute.xlu1 %3889  ;;  %v3904_v0 = vmul.f32 %v8980_v29, %v3896_v54  ;;  %v3916_v28 = vmul.f32 %v8988_v61, %v3896_v54  ;;  %v3928_v24 = vmul.f32 %v8986_v10, %v3896_v54  ;;  %v3940_v59 = vmul.f32 %v9000_v2, %v3896_v54 }
 0x666   :  { %v3907_v56 = vadd.f32 %v3903_v18, %v9014_v17  ;;  %v3919_v34 = vadd.f32 %v3915_v20, %v3855_v22  ;;  %v3891_v9 = vsel %vm10695_vm6, %v3888_v32, %v3890_v11  ;;  %v3894_v51 = vsel %vm10696_vm7, %v3890_v11, %v3884_v55 }
 0x667   :  { %v3931_v38 = vadd.f32 %v3927_v37, %v3867_v53  ;;  %v3943_v44 = vadd.f32 %v3939_v8, %v3879_v63  ;;  %v3897_v12 = vmul.f32 %v3891_v9, %v10697_v1  ;;  %v3898_v41 = vmul.f32 %v3894_v51, %v10698_v48 }
 0x668   :  { %v9090_v16 = vadd.f32 %v3904_v0, %v9016_v3  ;;  %v9092_v42 = vadd.f32 %v3916_v28, %v3856_v5  ;;  %v9106_v43 = vadd.f32 %v3928_v24, %v3868_v33  ;;  %v9108_v7 = vadd.f32 %v3940_v59, %v3880_v49 }
 0x669   :  { %v3948_v52 = vpop.permute.xlu1 %3947  ;;  %v3905_v55 = vmul.f32 %v8980_v29, %v3897_v12  ;;  %v3906_v22 = vmul.f32 %v8980_v29, %v3898_v41  ;;  %v3917_v15 = vmul.f32 %v8988_v61, %v3897_v12  ;;  %v3918_v19 = vmul.f32 %v8988_v61, %v3898_v41 }
 0x66a   :  { %v3957_v17 = vsel %vm10699_vm8, %v3948_v52, %v3950_v60  ;;  %v3958_v39 = vsel %vm10700_vm9, %v3954_v62, %v3948_v52  ;;  %v3929_v30 = vmul.f32 %v8986_v10, %v3897_v12  ;;  %v3930_v3 = vmul.f32 %v8986_v10, %v3898_v41 }
 0x66b   :  { %v3941_v32 = vmul.f32 %v9000_v2, %v3897_v12  ;;  %v3942_v26 = vmul.f32 %v9000_v2, %v3898_v41  ;;  %v9111_v25 = vadd.f32 %v3905_v55, %v9048_v45  ;;  %v3910_v29 = vadd.f32 %v3906_v22, %v9050_v47 }
 0x66c   :  { %v9115_v61 = vadd.f32 %v3917_v15, %v9052_v13  ;;  %v3922_v53 = vadd.f32 %v3918_v19, %v9054_v58  ;;  %v9118_v10 = vadd.f32 %v3929_v30, %v3869_v21  ;;  %v3934_v6 = vadd.f32 %v3930_v3, %v3870_v36  ;;  %v10705_v13 = vld [vmem:[#allocation9_spill] sm:$0xff]  ;;  %v10706_v58 = vld [vmem:[#allocation38_spill] sm:$0xff] }
 0x66d   :  { %v3952_v46 = vpop.permute.xlu1 %3951  ;;  %v3959_v2 = vmul.f32 %v3957_v17, %v10701_v14  ;;  %v3962_v54 = vmul.f32 %v3958_v39, %v10702_v57  ;;  %v9126_v47 = vadd.f32 %v3941_v32, %v3881_v27  ;;  %v3946_v5 = vadd.f32 %v3942_v26, %v3882_v35 }
 0x66e   :  { %v3955_v63 = vsel %vm10703_vm10, %v3952_v46, %v3954_v62  ;;  %v3956_v45 = vsel %vm10704_vm11, %v3950_v60, %v3952_v46 }
 0x66f   :  { %v9129_v18 = vmul.f32 %v3956_v45, %v10705_v13  ;;  %v9132_v20 = vmul.f32 %v3955_v63, %v10706_v58  ;;  %v3967_v33 = vmul.f32 %v9010_v31, %v3959_v2  ;;  %v3970_v49 = vmul.f32 %v9010_v31, %v3962_v54 }
 0x670   :  { %v3979_v37 = vmul.f32 %v9018_v4, %v3959_v2  ;;  %v3982_v8 = vmul.f32 %v9018_v4, %v3962_v54  ;;  %v3991_v23 = vmul.f32 %v9012_v50, %v3959_v2  ;;  %v3994_v60 = vmul.f32 %v9012_v50, %v3962_v54 }
 0x671   :  { %v4003_v11 = vmul.f32 %v9038_v40, %v3959_v2  ;;  %v4006_v21 = vmul.f32 %v9038_v40, %v3962_v54  ;;  %v3971_v36 = vadd.f32 %v3967_v33, %v3907_v56  ;;  %v3974_v0 = vadd.f32 %v3970_v49, %v3910_v29 }
 0x672   :  { %v3983_v28 = vadd.f32 %v3979_v37, %v3919_v34  ;;  %v3986_v27 = vadd.f32 %v3982_v8, %v3922_v53  ;;  %v3995_v35 = vadd.f32 %v3991_v23, %v3931_v38  ;;  %v3998_v24 = vadd.f32 %v3994_v60, %v3934_v6 }
 0x673   :  { %v4007_v59 = vadd.f32 %v4003_v11, %v3943_v44  ;;  %v4010_v9 = vadd.f32 %v4006_v21, %v3946_v5  ;;  %v4011_v51 = vsel %vm2237_vm14, %v3971_v36, 0.0  ;;  %v4032_v62 = vsel %vm2237_vm14, %v3974_v0, 0.0 }
 0x674   :  { %v4039_v1 = vsel %vm2237_vm14, %v3983_v28, 0.0  ;;  %v4060_v12 = vsel %vm2237_vm14, %v3986_v27, 0.0  ;;  %v4012_v48 = vrot.slane %v4011_v51, 4  ;;  %v4033_v41 = vrot.slane %v4032_v62, 4 }
 0x675   :  { %v4040_v52 = vrot.slane %v4039_v1, 4  ;;  %v4061_v17 = vrot.slane %v4060_v12, 4  ;;  %v4067_v56 = vsel %vm2237_vm14, %v3995_v35, 0.0  ;;  %v4088_v34 = vsel %vm2237_vm14, %v3998_v24, 0.0 }
 0x676   :  { %v4095_v38 = vsel %vm2237_vm14, %v4007_v59, 0.0  ;;  %v9150_v44 = vsel %vm2237_vm14, %v4010_v9, 0.0  ;;  %v4013_v39 = vadd.f32 %v4012_v48, %v4011_v51  ;;  %v4034_v55 = vadd.f32 %v4033_v41, %v4032_v62 }
 0x677   :  { %v4041_v22 = vadd.f32 %v4040_v52, %v4039_v1  ;;  %v4062_v15 = vadd.f32 %v4061_v17, %v4060_v12  ;;  %v4068_v19 = vrot.slane %v4067_v56, 4  ;;  %v4089_v30 = vrot.slane %v4088_v34, 4 }
 0x678   :  { %v4096_v3 = vrot.slane %v4095_v38, 4  ;;  %v4117_v32 = vrot.slane %v9150_v44, 4  ;;  %v4014_v26 = vrot.slane %v4013_v39, 2  ;;  %v4035_v29 = vrot.slane %v4034_v55, 2 }
 0x679   :  { %v4042_v46 = vrot.slane %v4041_v22, 2  ;;  %v4063_v53 = vrot.slane %v4062_v15, 2  ;;  %v4069_v6 = vadd.f32 %v4068_v19, %v4067_v56  ;;  %v9153_v14 = vadd.f32 %v4089_v30, %v4088_v34 }
 0x67a   :  { %v9155_v2 = vadd.f32 %v4096_v3, %v4095_v38  ;;  %v3968_v57 = vmul.f32 %v9010_v31, %v9129_v18  ;;  %v4015_v54 = vadd.f32 %v4014_v26, %v4013_v39  ;;  %v9159_v63 = vadd.f32 %v4035_v29, %v4034_v55 }
 0x67b   :  { %v4043_v45 = vadd.f32 %v4042_v46, %v4041_v22  ;;  %v9161_v5 = vadd.f32 %v4063_v53, %v4062_v15  ;;  %v4070_v13 = vrot.slane %v4069_v6, 2  ;;  %v4091_v58 = vrot.slane %v9153_v14, 2 }
 0x67c   :  { %v4098_v33 = vrot.slane %v9155_v2, 2  ;;  %v3969_v49 = vmul.f32 %v9010_v31, %v9132_v20  ;;  %v4016_v37 = vrot.slane %v4015_v54, 1  ;;  %v3972_v23 = vadd.f32 %v3968_v57, %v9090_v16 }
 0x67d   :  { %v4044_v8 = vrot.slane %v4043_v45, 1  ;;  %v3980_v60 = vmul.f32 %v9018_v4, %v9129_v18  ;;  %v9170_v11 = vadd.f32 %v4070_v13, %v4069_v6  ;;  %v3981_v36 = vmul.f32 %v9018_v4, %v9132_v20 }
 0x67e   :  { %v3973_v21 = vadd.f32 %v3969_v49, %v9111_v25  ;;  %v3992_v0 = vmul.f32 %v9012_v50, %v9129_v18  ;;  %v9177_v28 = vadd.f32 %v4016_v37, %v4015_v54  ;;  %v3993_v16 = vmul.f32 %v9012_v50, %v9132_v20 }
 0x67f   :  { %v9179_v31 = vadd.f32 %v4044_v8, %v4043_v45  ;;  %v3984_v27 = vadd.f32 %v3980_v60, %v9092_v42  ;;  %v4072_v35 = vrot.slane %v9170_v11, 1  ;;  %v3985_v24 = vadd.f32 %v3981_v36, %v9115_v61 }
 0x680   :  { %v3996_v25 = vadd.f32 %v3992_v0, %v9106_v43  ;;  %v4004_v4 = vmul.f32 %v9038_v40, %v9129_v18  ;;  %v3997_v59 = vadd.f32 %v3993_v16, %v9118_v10  ;;  %v4005_v9 = vmul.f32 %v9038_v40, %v9132_v20 }
 0x681   :  { %v4018_v51 = vsel %vm2237_vm14, %v3972_v23, 0.0  ;;  %v4025_v42 = vsel %vm2237_vm14, %v3973_v21, 0.0  ;;  %v4046_v61 = vsel %vm2237_vm14, %v3984_v27, 0.0  ;;  %v4053_v18 = vsel %vm2237_vm14, %v3985_v24, 0.0 }
 0x682   :  { %v4008_v50 = vadd.f32 %v4004_v4, %v9108_v7  ;;  %v4019_v62 = vrot.slane %v4018_v51, 4  ;;  %v4026_v1 = vrot.slane %v4025_v42, 4  ;;  %v4009_v43 = vadd.f32 %v4005_v9, %v9126_v47 }
 0x683   :  { %v4047_v12 = vrot.slane %v4046_v61, 4  ;;  %v4074_v10 = vsel %vm2237_vm14, %v3996_v25, 0.0  ;;  %v4054_v40 = vrot.slane %v4053_v18, 4  ;;  %v4081_v17 = vsel %vm2237_vm14, %v3997_v59, 0.0 }
 0x684   :  { %v4020_v48 = vadd.f32 %v4019_v62, %v4018_v51  ;;  %v4027_v41 = vadd.f32 %v4026_v1, %v4025_v42  ;;  %v4075_v20 = vrot.slane %v4074_v10, 4  ;;  %v4102_v7 = vsel %vm2237_vm14, %v4008_v50, 0.0 }
 0x685   :  { %v4048_v52 = vadd.f32 %v4047_v12, %v4046_v61  ;;  %v4109_v56 = vsel %vm2237_vm14, %v4009_v43, 0.0  ;;  %v4055_v39 = vadd.f32 %v4054_v40, %v4053_v18  ;;  %v4082_v22 = vrot.slane %v4081_v17, 4 }
 0x686   :  { %v4021_v34 = vrot.slane %v4020_v48, 2  ;;  %v4028_v38 = vrot.slane %v4027_v41, 2  ;;  %v4076_v47 = vadd.f32 %v4075_v20, %v4074_v10  ;;  %v4103_v15 = vrot.slane %v4102_v7, 4 }
 0x687   :  { %v4049_v55 = vrot.slane %v4048_v52, 2  ;;  %v4110_v19 = vrot.slane %v4109_v56, 4  ;;  %v4056_v26 = vrot.slane %v4055_v39, 2  ;;  %v4083_v53 = vadd.f32 %v4082_v22, %v4081_v17 }
 0x688   :  { %v4022_v30 = vadd.f32 %v4021_v34, %v4020_v48  ;;  %v4029_v3 = vadd.f32 %v4028_v38, %v4027_v41  ;;  %v4077_v29 = vrot.slane %v4076_v47, 2  ;;  %v4104_v6 = vadd.f32 %v4103_v15, %v4102_v7 }
 0x689   :  { %v4050_v46 = vadd.f32 %v4049_v55, %v4048_v52  ;;  %v4111_v57 = vadd.f32 %v4110_v19, %v4109_v56  ;;  %v4057_v13 = vadd.f32 %v4056_v26, %v4055_v39  ;;  %v4084_v8 = vrot.slane %v4083_v53, 2 }
 0x68a   :  { %v4023_v54 = vrot.slane %v4022_v30, 1  ;;  %v4030_v45 = vrot.slane %v4029_v3, 1  ;;  %v4078_v49 = vadd.f32 %v4077_v29, %v4076_v47  ;;  %v4105_v23 = vrot.slane %v4104_v6, 2 }
 0x68b   :  { %v4051_v37 = vrot.slane %v4050_v46, 1  ;;  %v4037_v60 = vrot.slane %v9159_v63, 1  ;;  %v4058_v36 = vrot.slane %v4057_v13, 1  ;;  %v4085_v24 = vadd.f32 %v4084_v8, %v4083_v53 }
 0x68c   :  { %v4024_v21 = vadd.f32 %v4023_v54, %v4022_v30  ;;  %v4079_v0 = vrot.slane %v4078_v49, 1  ;;  %v4031_v27 = vadd.f32 %v4030_v45, %v4029_v3  ;;  %v4065_v4 = vrot.slane %v9161_v5, 1 }
 0x68d   :  { %v4052_v16 = vadd.f32 %v4051_v37, %v4050_v46  ;;  %v4038_v25 = vadd.f32 %v4037_v60, %v9159_v63  ;;  %v4059_v59 = vadd.f32 %v4058_v36, %v4057_v13  ;;  %v4073_v9 = vadd.f32 %v4072_v35, %v9170_v11 }
 0x68e   :  { %v4080_v51 = vadd.f32 %v4079_v0, %v4078_v49  ;;  %v4092_v42 = vadd.f32 %v4091_v58, %v9153_v14  ;;  %v4066_v50 = vadd.f32 %v4065_v4, %v9161_v5  ;;  %v4086_v62 = vrot.slane %v4085_v24, 1 }
 0x68f   :  { %v4099_v1 = vadd.f32 %v4098_v33, %v9155_v2  ;;  %v4106_v61 = vadd.f32 %v4105_v23, %v4104_v6  ;;  %v4112_v63 = vrot.slane %v4111_v57, 2  ;;  %v4118_v12 = vadd.f32 %v4117_v32, %v9150_v44 }
 0x690   :  { %v4093_v43 = vrot.slane %v4092_v42, 1  ;;  %v4123_v11 = vsel %vm2350_vm15, %v9177_v28, %v9179_v31  ;;  %v4087_v35 = vadd.f32 %v4086_v62, %v4085_v24  ;;  %v4124_v5 = vsel %vm2350_vm15, %v4024_v21, %v4052_v16 }
 0x691   :  { %v4100_v14 = vrot.slane %v4099_v1, 1  ;;  %v4107_v58 = vrot.slane %v4106_v61, 1  ;;  %v4113_v10 = vadd.f32 %v4112_v63, %v4111_v57  ;;  %v4119_v48 = vrot.slane %v4118_v12, 2 }
 0x692   :  { %v4094_v18 = vadd.f32 %v4093_v43, %v4092_v42  ;;  %v4125_v2 = vsel %vm2350_vm15, %v4031_v27, %v4059_v59  ;;  %v4126_v40 = vsel %vm2350_vm15, %v4038_v25, %v4066_v50  ;;  %v4127_v44 = vsel %vm2355_vm13, %v4123_v11, %v4073_v9  ;;  %v2419_v25 = vld [vmem:[%s9264_s6] sm:$0xf] }
 0x693   :  { %v4101_v33 = vadd.f32 %v4100_v14, %v4099_v1  ;;  %v4108_v41 = vadd.f32 %v4107_v58, %v4106_v61  ;;  %v4114_v32 = vrot.slane %v4113_v10, 1  ;;  %v4120_v20 = vadd.f32 %v4119_v48, %v4118_v12  ;;  %v2420_v9 = vld [vmem:[%s9265_s7] sm:$0xf] }
 0x694   :  { %v4128_v28 = vsel %vm2355_vm13, %v4124_v5, %v4080_v51  ;;  %v4129_v31 = vsel %vm2355_vm13, %v4125_v2, %v4087_v35  ;;  %v4130_v52 = vsel %vm2355_vm13, %v4126_v40, %v4094_v18  ;;  %v4570_v48 = vld [vmem:[%s9258_s0] sm:$0xff]  ;;  %v4571_v40 = vld [vmem:[%s9258_s0 + $0x8] sm:$0xff] }
 0x695   :  { %v4131_v17 = vsel %vm2360_vm12, %v4127_v44, %v4101_v33  ;;  %v4132_v7 = vsel %vm2360_vm12, %v4128_v28, %v4108_v41  ;;  %v4115_v56 = vadd.f32 %v4114_v32, %v4113_v10  ;;  %v4121_v34 = vrot.slane %v4120_v20, 1  ;;  %v10707_v33 = vld [vmem:[#allocation3_spill] sm:$0xff]  ;;  %v10708_v32 = vld [vmem:[#allocation2_spill] sm:$0xff] }
 0x696   :  { %v4135_v38 = vsel %vm2237_vm14, %v4131_v17, 0.0  ;;  %v4136_v39 = vsel %vm2237_vm14, %v4132_v7, 0.0  ;;  %v4144_v55 = vmul.f32 %v4131_v17, %v4131_v17  ;;  %v4145_v22 = vmul.f32 %v4132_v7, %v4132_v7 }
 0x697   :  { %v4137_v47 = vadd.f32 %v4136_v39, %v4135_v38  ;;  %v4122_v15 = vadd.f32 %v4121_v34, %v4120_v20  ;;  %v4133_v19 = vsel %vm2360_vm12, %v4129_v31, %v4115_v56 }
 0x698   :  { %v4138_v30 = vsel %vm2237_vm14, %v4133_v19, 0.0  ;;  %v4146_v3 = vmul.f32 %v4133_v19, %v4133_v19  ;;  %v4148_v26 = vsel %vm2237_vm14, %v4144_v55, 0.0  ;;  %v4149_v29 = vsel %vm2237_vm14, %v4145_v22, 0.0 }
 0x699   :  { %v4134_v46 = vsel %vm2360_vm12, %v4130_v52, %v4122_v15  ;;  %v4139_v53 = vadd.f32 %v4138_v30, %v4137_v47  ;;  %v4150_v6 = vadd.f32 %v4149_v29, %v4148_v26 }
 0x69a   :  { %v4140_v57 = vsel %vm2237_vm14, %v4134_v46, 0.0  ;;  %v4147_v54 = vmul.f32 %v4134_v46, %v4134_v46  ;;  %v4151_v45 = vsel %vm2237_vm14, %v4146_v3, 0.0 }
 0x69b   :  { %v4141_v13 = vadd.f32 %v4140_v57, %v4139_v53  ;;  %v4152_v49 = vadd.f32 %v4151_v45, %v4150_v6 }
 0x69c   :  { %v4153_v37 = vsel %vm2237_vm14, %v4147_v54, 0.0 }
 0x69d   :  { %4142 = vadd.xlane.f32.xlu1 %v4141_v13  ;;  %v4154_v8 = vadd.f32 %v4153_v37, %v4152_v49 }
 0x69f   :  { %4155 = vadd.xlane.f32.xlu0 %v4154_v8 }
 0x72a   :  { %v4143_v23 = vpop.xlane.xlu1 %4142 }
 0x72b   :  { %v4157_v60 = vmul.f32 0.001953125, %v4143_v23 }
 0x72c   :  { %v4156_v21 = vpop.xlane.xlu0 %4155 }
 0x72d   :  { %v4159_v36 = vmul.f32 %v4157_v60, %v4157_v60  ;;  %v4158_v0 = vmul.f32 0.001953125, %v4156_v21 }
 0x72f   :  { %v4160_v27 = vsub.f32 %v4158_v0, %v4159_v36 }
 0x731   :  { %v4161_v16 = vmax.f32 %v4160_v27, 0.0 }
 0x733   :  { %v4162_v24 = vadd.f32 1e-05, %v4161_v16 }
 0x735   :  { %4561 = vrsqrt.f32 %v4162_v24 }
 0x73f   :  { %v4562_v4 = vpop.eup %4561 }
 0x740   :  { %v4164_v59 = vmul.f32 %v4562_v4, %v2419_v25 }
 0x742   :  { %4169 = vperm.xlu0 %4555, %v4164_v59   ;;  %v4165_v51 = vmul.f32 %v4164_v59, %v4157_v60 }
 0x744   :  { %v4166_v42 = vsub.f32 %v2420_v9, %v4165_v51 }
 0x746   :  { %4178 = vperm.xlu1 %4556, %v4166_v42  }
 0x7c1   :  { %v4170_v50 = vpop.permute.xlu0 %4169 }
 0x7c2   :  { %v4172_v62 = vmul.f32 %v4170_v50, %v4131_v17  ;;  %v4173_v1 = vmul.f32 %v4170_v50, %v4132_v7  ;;  %v4174_v61 = vmul.f32 %v4170_v50, %v4133_v19  ;;  %v4175_v43 = vmul.f32 %v4170_v50, %v4134_v46 }
 0x7c5   :  { %v4179_v63 = vpop.permute.xlu1 %4178 }
 0x7c6   :  { %v4181_v12 = vadd.f32 %v4179_v63, %v4172_v62  ;;  %v4182_v11 = vadd.f32 %v4179_v63, %v4173_v1  ;;  %v4183_v35 = vadd.f32 %v4179_v63, %v4174_v61  ;;  %v4184_v14 = vadd.f32 %v4179_v63, %v4175_v43 }
 0x7c8   :  { %v4185_v58 = vmax.f32 %v4181_v12, 0.0  ;;  %v4186_v5 = vmax.f32 %v4182_v11, 0.0  ;;  %v4187_v18 = vmax.f32 %v4183_v35, 0.0  ;;  %v4188_v10 = vmax.f32 %v4184_v14, 0.0 }
 0x7ca   :  { %v4189_v2 = vadd.f32 %v4570_v48, %v4185_v58  ;;  %v4190_v41 = vadd.f32 %v4186_v5, %v10707_v33  ;;  %v4191_v44 = vadd.f32 %v4571_v40, %v4187_v18  ;;  %v4192_v20 = vadd.f32 %v4188_v10, %v10708_v32 }
 0x7cc   :  { %v4197_v28 = vcombine.low %v4189_v2, %v4190_v41  ;;  %v4198_v31 = vcombine.low %v4191_v44, %v4192_v20 }
 0x7ce   :  { %4201 = vst [vmem:[%s9266_s8] sm:$0xff] %v4197_v28  ;;  %4202 = vst [vmem:[%s9266_s8 + $0x8] sm:$0xff] %v4198_v31 }

</bundles_post_ra>
